<compile_context>
chip_gen: v7x
topology: tpu7x:2x2x1
jax: 0.10.0
libtpu: 0.0.40
codegen_flags: <defaults>
</compile_context>

<pallas_src>
import jax
import jax.numpy as jnp
from jax.experimental import pallas as pl
from jax.experimental.pallas import tpu as pltpu

IN_FEATURES = 128 * 7 * 30      # 26880
HIDDEN = 128
T = 4                           # x[:, None, :].repeat(1, 4, 1)
NUM_CLASSES = 10
G3 = 3 * HIDDEN                 # 384, PyTorch gate order [r | z | n]

K_TILES = 3                     # sequential K tiles (reduction axis)
TK = IN_FEATURES // K_TILES     # 8960 = 128 * 70
assert IN_FEATURES % K_TILES == 0 and TK % 128 == 0


def _decoder_kernel(x_ref, wq_ref, wscale_ref, bih1_ref, whhs_ref, bhhs_ref,
                    wih2_ref, bih2_ref, wout_ref, bout_ref,
                    out_ref, acc_ref, h_all_ref):
    k = pl.program_id(0)

    @pl.when(k == 0)
    def _init():
        acc_ref[...] = jnp.zeros_like(acc_ref)

    # ---- stage 1: stream the int8 weight tile, accumulate in f32 ----
    # int8 -> f32 is exact; x was rounded to bf16 in the wrapper so the matmul
    # operands are bf16-exact -> products are exact for any MXU precision.
    w_f32 = wq_ref[...].astype(jnp.float32)
    acc_ref[...] += jnp.dot(x_ref[...], w_f32,
                            preferred_element_type=jnp.float32)

    # ---- stage 2 (fused): GRU recurrence + output Linear on the last step ----
    @pl.when(k == pl.num_programs(0) - 1)
    def _epilogue():
        B = acc_ref.shape[0]
        # per-column dequant scale applied once, after the full K reduction
        xg1 = acc_ref[...] * wscale_ref[...] + bih1_ref[...]        # (B, 3H)

        whhs = whhs_ref[...]                                        # (2H, 6H)
        bhhs = bhhs_ref[...]                                        # (1, 6H)
        wih2 = wih2_ref[...]
        bih2 = bih2_ref[...]

        # h0 = 0 for both layers; hidden state carried in vregs (no scratch
        # round trip); T = 4 statically unrolled.
        h1 = jnp.zeros((B, HIDDEN), jnp.float32)
        h2 = jnp.zeros((B, HIDDEN), jnp.float32)
        for t in range(T):
            h12 = jnp.concatenate([h1, h2], axis=1)                 # (B, 2H)
            # fused block-diagonal hidden-state projection of both layers
            hgs = jnp.dot(h12, whhs, preferred_element_type=jnp.float32) + bhhs
            hg1 = hgs[:, :G3]
            hg2 = hgs[:, G3:]
            # ---- GRU layer 1 cell ----
            r1 = jax.nn.sigmoid(xg1[:, :HIDDEN] + hg1[:, :HIDDEN])
            z1 = jax.nn.sigmoid(xg1[:, HIDDEN:2 * HIDDEN]
                                + hg1[:, HIDDEN:2 * HIDDEN])
            n1 = jnp.tanh(xg1[:, 2 * HIDDEN:] + r1 * hg1[:, 2 * HIDDEN:])
            h1 = (1.0 - z1) * n1 + z1 * h1
            # ---- GRU layer 2 cell (input = new h1) ----
            xg2 = jnp.dot(h1, wih2, preferred_element_type=jnp.float32) + bih2
            r2 = jax.nn.sigmoid(xg2[:, :HIDDEN] + hg2[:, :HIDDEN])
            z2 = jax.nn.sigmoid(xg2[:, HIDDEN:2 * HIDDEN]
                                + hg2[:, HIDDEN:2 * HIDDEN])
            n2 = jnp.tanh(xg2[:, 2 * HIDDEN:] + r2 * hg2[:, 2 * HIDDEN:])
            h2 = (1.0 - z2) * n2 + z2 * h2
            h_all_ref[t * B:(t + 1) * B, :] = h2                    # t-major

        # single deferred output Linear + one store (instead of T tiny ones)
        out_ref[...] = (jnp.dot(h_all_ref[...], wout_ref[...],
                                preferred_element_type=jnp.float32)
                        + bout_ref[...])


def decoder_forward(x, p):
    B = x.shape[0]
    # x is reused at every timestep (repeat(1,4,1)); round to bf16 once so the
    # in-kernel matmul operands are bf16-exact for any MXU precision mode.
    x2 = x.reshape(B, IN_FEATURES).astype(jnp.bfloat16).astype(jnp.float32)

    def full(shape):
        return pl.BlockSpec(shape, lambda k: (0,) * len(shape))

    out_flat = pl.pallas_call(
        _decoder_kernel,
        out_shape=jax.ShapeDtypeStruct((T * B, NUM_CLASSES), jnp.float32),
        grid_spec=pltpu.PrefetchScalarGridSpec(
            num_scalar_prefetch=0,
            grid=(K_TILES,),
            in_specs=[
                pl.BlockSpec((B, TK), lambda k: (0, k)),       # x K-slice
                pl.BlockSpec((TK, G3), lambda k: (k, 0)),      # int8 wih1 tile
                full((1, G3)),                                 # per-column scale
                full((1, G3)),                                 # b_ih layer1
                full((2 * HIDDEN, 2 * G3)),                    # block-diag [whh1|whh2]
                full((1, 2 * G3)),                             # [bhh1 | bhh2]
                full((HIDDEN, G3)),                            # W_ih layer2^T
                full((1, G3)),                                 # b_ih layer2
                full((HIDDEN, NUM_CLASSES)),                   # W_out^T
                full((1, NUM_CLASSES)),                        # b_out
            ],
            out_specs=full((T * B, NUM_CLASSES)),
            scratch_shapes=[pltpu.VMEM((B, G3), jnp.float32),          # xg1 acc
                            pltpu.VMEM((T * B, HIDDEN), jnp.float32)], # h2 slab
        ),
        compiler_params=pltpu.CompilerParams(
            dimension_semantics=("arbitrary",),   # reduction axis, revisited out
            vmem_limit_bytes=32 * 1024 * 1024),
    )(x2, p["wih1_q"], p["wih1_scale"], p["bih1"], p["whhs"], p["bhhs"],
      p["wih2_T"], p["bih2"], p["wout_T"], p["bout"])

    # kernel rows are t-major (row = t*B + b) -> (B, T, 10) in the wrapper
    return out_flat.reshape(T, B, NUM_CLASSES).transpose(1, 0, 2)


def init_params(key):
    """PyTorch-style uniform(-1/sqrt(H), 1/sqrt(H)) init + precomputed packing."""
    ks = jax.random.split(key, 10)
    bound = 1.0 / jnp.sqrt(jnp.float32(HIDDEN))
    u = lambda k, shape: jax.random.uniform(k, shape, jnp.float32, -bound, bound)

    # Dominant weight stream: per-column symmetric int8 quantization.
    wih1 = u(ks[0], (IN_FEATURES, G3))
    amax = jnp.maximum(jnp.max(jnp.abs(wih1), axis=0, keepdims=True), 1e-8)
    wih1_scale = amax / 127.0                                   # (1, G3) f32
    wih1_q = jnp.clip(jnp.round(wih1 / wih1_scale),
                      -127.0, 127.0).astype(jnp.int8)

    whh1_T = u(ks[2], (HIDDEN, G3))
    whh2_T = u(ks[6], (HIDDEN, G3))
    bhh1 = u(ks[3], (1, G3))
    bhh2 = u(ks[7], (1, G3))
    # Precomputed block-diagonal stack -> one hidden-state matmul per GRU step.
    whhs = jnp.zeros((2 * HIDDEN, 2 * G3), jnp.float32)
    whhs = whhs.at[:HIDDEN, :G3].set(whh1_T)
    whhs = whhs.at[HIDDEN:, G3:].set(whh2_T)
    bhhs = jnp.concatenate([bhh1, bhh2], axis=1)

    return {
        "wih1_q": wih1_q, "wih1_scale": wih1_scale,
        "bih1": u(ks[1], (1, G3)),
        "whh1_T": whh1_T, "bhh1": bhh1,
        "whh2_T": whh2_T, "bhh2": bhh2,
        "whhs": whhs, "bhhs": bhhs,
        "wih2_T": u(ks[4], (HIDDEN, G3)),
        "bih2": u(ks[5], (1, G3)),
        "wout_T": u(ks[8], (HIDDEN, NUM_CLASSES)),
        "bout": u(ks[9], (1, NUM_CLASSES)),
    }


def decoder_reference(x, p):
    """Plain-JAX reference of the PyTorch forward with the same quantized path."""
    B = x.shape[0]
    hp = jax.lax.Precision.HIGHEST
    xf = x.reshape(B, IN_FEATURES).astype(jnp.bfloat16).astype(jnp.float32)
    wq = p["wih1_q"].astype(jnp.float32)
    xg1 = jnp.dot(xf, wq, precision=hp) * p["wih1_scale"] + p["bih1"]
    h1 = jnp.zeros((B, HIDDEN), jnp.float32)
    h2 = jnp.zeros((B, HIDDEN), jnp.float32)
    outs = []
    for _ in range(T):
        hg1 = jnp.dot(h1, p["whh1_T"], precision=hp) + p["bhh1"]
        r1 = jax.nn.sigmoid(xg1[:, :HIDDEN] + hg1[:, :HIDDEN])
        z1 = jax.nn.sigmoid(xg1[:, HIDDEN:2 * HIDDEN] + hg1[:, HIDDEN:2 * HIDDEN])
        n1 = jnp.tanh(xg1[:, 2 * HIDDEN:] + r1 * hg1[:, 2 * HIDDEN:])
        h1 = (1.0 - z1) * n1 + z1 * h1
        xg2 = jnp.dot(h1, p["wih2_T"], precision=hp) + p["bih2"]
        hg2 = jnp.dot(h2, p["whh2_T"], precision=hp) + p["bhh2"]
        r2 = jax.nn.sigmoid(xg2[:, :HIDDEN] + hg2[:, :HIDDEN])
        z2 = jax.nn.sigmoid(xg2[:, HIDDEN:2 * HIDDEN] + hg2[:, HIDDEN:2 * HIDDEN])
        n2 = jnp.tanh(xg2[:, 2 * HIDDEN:] + r2 * hg2[:, 2 * HIDDEN:])
        h2 = (1.0 - z2) * n2 + z2 * h2
        outs.append(jnp.dot(h2, p["wout_T"], precision=hp) + p["bout"])
    return jnp.stack(outs, axis=1)


if __name__ == "__main__":
    key = jax.random.PRNGKey(0)
    kx, kp = jax.random.split(key)
    # Input consistent with x.reshape(-1, 128*7*30): batch=2, (128, 7, 30) map.
    x = jax.random.normal(kx, (2, 128, 7, 30), jnp.float32)
    params = init_params(kp)

    fwd = jax.jit(decoder_forward)
    out = jax.block_until_ready(fwd(x, params))
    assert out.shape == (2, T, NUM_CLASSES)

    ref = decoder_reference(x, params)
    err = float(jnp.max(jnp.abs(out - ref)))
    assert jnp.allclose(out, ref, atol=5e-3, rtol=5e-3), err
    print("KERNEL_OK")
</pallas_src>

<mosaic_0001>
module attributes {stable_mosaic.version = 11 : i64} {
  func.func @_decoder_kernel(%arg0: i32, %arg1: memref<2x8960xf32, #tpu.memory_space<vmem>>, %arg2: memref<8960x384xi8, #tpu.memory_space<vmem>>, %arg3: memref<1x384xf32, #tpu.memory_space<vmem>>, %arg4: memref<1x384xf32, #tpu.memory_space<vmem>>, %arg5: memref<256x768xf32, #tpu.memory_space<vmem>>, %arg6: memref<1x768xf32, #tpu.memory_space<vmem>>, %arg7: memref<128x384xf32, #tpu.memory_space<vmem>>, %arg8: memref<1x384xf32, #tpu.memory_space<vmem>>, %arg9: memref<128x10xf32, #tpu.memory_space<vmem>>, %arg10: memref<1x10xf32, #tpu.memory_space<vmem>>, %arg11: memref<8x10xf32, #tpu.memory_space<vmem>>, %arg12: memref<2x384xf32, #tpu.memory_space<vmem>>, %arg13: memref<8x128xf32, #tpu.memory_space<vmem>>) attributes {dimension_semantics = [#tpu.dimension_semantics<arbitrary>], iteration_bounds = array<i64: 3>, scalar_prefetch = 0 : i64, scratch_operands = 2 : i64, tpu.core_type = #tpu.core_type<tc>, window_params = [{transform_indices = @transform_0, window_bounds = array<i64: 2, 8960>}, {transform_indices = @transform_1, window_bounds = array<i64: 8960, 384>}, {pipeline_mode = #tpu.pipeline_mode<synchronous>, transform_indices = @transform_2, window_bounds = array<i64: 1, 384>}, {pipeline_mode = #tpu.pipeline_mode<synchronous>, transform_indices = @transform_3, window_bounds = array<i64: 1, 384>}, {pipeline_mode = #tpu.pipeline_mode<synchronous>, transform_indices = @transform_4, window_bounds = array<i64: 256, 768>}, {pipeline_mode = #tpu.pipeline_mode<synchronous>, transform_indices = @transform_5, window_bounds = array<i64: 1, 768>}, {pipeline_mode = #tpu.pipeline_mode<synchronous>, transform_indices = @transform_6, window_bounds = array<i64: 128, 384>}, {pipeline_mode = #tpu.pipeline_mode<synchronous>, transform_indices = @transform_7, window_bounds = array<i64: 1, 384>}, {pipeline_mode = #tpu.pipeline_mode<synchronous>, transform_indices = @transform_8, window_bounds = array<i64: 128, 10>}, {pipeline_mode = #tpu.pipeline_mode<synchronous>, transform_indices = @transform_9, window_bounds = array<i64: 1, 10>}, {pipeline_mode = #tpu.pipeline_mode<synchronous>, transform_indices = @transform_10, window_bounds = array<i64: 8, 10>}]} {
    %c0_i32 = arith.constant 0 : i32
    %0 = arith.cmpi eq, %arg0, %c0_i32 : i32
    %1 = arith.extui %0 : i1 to i32
    %c0_i32_0 = arith.constant 0 : i32
    %2 = arith.cmpi ne, %1, %c0_i32_0 : i32
    scf.if %2 {
      %cst_9 = arith.constant 0.000000e+00 : f32
      %13 = vector.broadcast %cst_9 : f32 to vector<2x384xf32>
      %c0_10 = arith.constant 0 : index
      %c0_11 = arith.constant 0 : index
      %14 = vector.load %arg12[%c0_10, %c0_11] : memref<2x384xf32, #tpu.memory_space<vmem>>, vector<2x384xf32>
      tpu.vector_store %arg12[%c0_10, %c0_11], %13 {strides = array<i32>} : memref<2x384xf32, #tpu.memory_space<vmem>>, vector<2x384xf32>,
    } else {
    }
    %c0 = arith.constant 0 : index
    %c0_1 = arith.constant 0 : index
    %3 = vector.load %arg2[%c0, %c0_1] : memref<8960x384xi8, #tpu.memory_space<vmem>>, vector<8960x384xi8>
    %4 = arith.sitofp %3 : vector<8960x384xi8> to vector<8960x384xf32>
    %c0_2 = arith.constant 0 : index
    %c0_3 = arith.constant 0 : index
    %5 = vector.load %arg12[%c0_2, %c0_3] : memref<2x384xf32, #tpu.memory_space<vmem>>, vector<2x384xf32>
    %c0_4 = arith.constant 0 : index
    %c0_5 = arith.constant 0 : index
    %6 = vector.load %arg1[%c0_4, %c0_5] : memref<2x8960xf32, #tpu.memory_space<vmem>>, vector<2x8960xf32>
    %cst = arith.constant dense<0.000000e+00> : vector<2x384xf32>
    %7 = tpu.matmul %6, %4, %cst {dimension_numbers = #tpu.dot_dimension_numbers<[1], [0], [0], [1], [0, 0, 1, 1], [], []>} : vector<2x8960xf32>, vector<8960x384xf32>, vector<2x384xf32> -> vector<2x384xf32>
    %8 = arith.addf %5, %7 : vector<2x384xf32>
    %c0_6 = arith.constant 0 : index
    %c0_7 = arith.constant 0 : index
    %9 = vector.load %arg12[%c0_6, %c0_7] : memref<2x384xf32, #tpu.memory_space<vmem>>, vector<2x384xf32>
    tpu.vector_store %arg12[%c0_6, %c0_7], %8 {strides = array<i32>} : memref<2x384xf32, #tpu.memory_space<vmem>>, vector<2x384xf32>,
    %c2_i32 = arith.constant 2 : i32
    %10 = arith.cmpi eq, %arg0, %c2_i32 : i32
    %11 = arith.extui %10 : i1 to i32
    %c0_i32_8 = arith.constant 0 : i32
    %12 = arith.cmpi ne, %11, %c0_i32_8 : i32
    scf.if %12 {
      %c0_9 = arith.constant 0 : index
      %c0_10 = arith.constant 0 : index
      %13 = vector.load %arg12[%c0_9, %c0_10] : memref<2x384xf32, #tpu.memory_space<vmem>>, vector<2x384xf32>
      %c0_11 = arith.constant 0 : index
      %c0_12 = arith.constant 0 : index
      %14 = vector.load %arg3[%c0_11, %c0_12] : memref<1x384xf32, #tpu.memory_space<vmem>>, vector<1x384xf32>
      %15 = vector.broadcast %14 : vector<1x384xf32> to vector<2x384xf32>
      %16 = arith.mulf %13, %15 : vector<2x384xf32>
      %c0_13 = arith.constant 0 : index
      %c0_14 = arith.constant 0 : index
      %17 = vector.load %arg4[%c0_13, %c0_14] : memref<1x384xf32, #tpu.memory_space<vmem>>, vector<1x384xf32>
      %18 = vector.broadcast %17 : vector<1x384xf32> to vector<2x384xf32>
      %19 = arith.addf %16, %18 : vector<2x384xf32>
      %c0_15 = arith.constant 0 : index
      %c0_16 = arith.constant 0 : index
      %20 = vector.load %arg5[%c0_15, %c0_16] : memref<256x768xf32, #tpu.memory_space<vmem>>, vector<256x768xf32>
      %c0_17 = arith.constant 0 : index
      %c0_18 = arith.constant 0 : index
      %21 = vector.load %arg6[%c0_17, %c0_18] : memref<1x768xf32, #tpu.memory_space<vmem>>, vector<1x768xf32>
      %c0_19 = arith.constant 0 : index
      %c0_20 = arith.constant 0 : index
      %22 = vector.load %arg7[%c0_19, %c0_20] : memref<128x384xf32, #tpu.memory_space<vmem>>, vector<128x384xf32>
      %c0_21 = arith.constant 0 : index
      %c0_22 = arith.constant 0 : index
      %23 = vector.load %arg8[%c0_21, %c0_22] : memref<1x384xf32, #tpu.memory_space<vmem>>, vector<1x384xf32>
      %cst_23 = arith.constant 0.000000e+00 : f32
      %24 = vector.broadcast %cst_23 : f32 to vector<2x128xf32>
      %cst_24 = arith.constant 0.000000e+00 : f32
      %25 = vector.broadcast %cst_24 : f32 to vector<2x128xf32>
      %26 = tpu.concatenate %24, %25 in 1 : vector<2x128xf32>, vector<2x128xf32> -> vector<2x256xf32>
      %cst_25 = arith.constant dense<0.000000e+00> : vector<2x768xf32>
      %27 = tpu.matmul %26, %20, %cst_25 {dimension_numbers = #tpu.dot_dimension_numbers<[1], [0], [0], [1], [0, 0, 1, 1], [], []>} : vector<2x256xf32>, vector<256x768xf32>, vector<2x768xf32> -> vector<2x768xf32>
      %28 = vector.broadcast %21 : vector<1x768xf32> to vector<2x768xf32>
      %29 = arith.addf %27, %28 : vector<2x768xf32>
      %30 = vector.extract_strided_slice %29 {offsets = [0, 0], sizes = [2, 384], strides = [1, 1]} : vector<2x768xf32> to vector<2x384xf32>
      %31 = vector.extract_strided_slice %29 {offsets = [0, 384], sizes = [2, 384], strides = [1, 1]} : vector<2x768xf32> to vector<2x384xf32>
      %32 = vector.extract_strided_slice %19 {offsets = [0, 0], sizes = [2, 128], strides = [1, 1]} : vector<2x384xf32> to vector<2x128xf32>
      %33 = vector.extract_strided_slice %30 {offsets = [0, 0], sizes = [2, 128], strides = [1, 1]} : vector<2x384xf32> to vector<2x128xf32>
      %34 = arith.addf %32, %33 : vector<2x128xf32>
      %35 = arith.negf %34 : vector<2x128xf32>
      %36 = math.exp %35 : vector<2x128xf32>
      %cst_26 = arith.constant 1.000000e+00 : f32
      %37 = vector.broadcast %cst_26 : f32 to vector<2x128xf32>
      %38 = arith.addf %37, %36 : vector<2x128xf32>
      %39 = arith.divf %37, %38 : vector<2x128xf32>
      %40 = vector.extract_strided_slice %19 {offsets = [0, 128], sizes = [2, 128], strides = [1, 1]} : vector<2x384xf32> to vector<2x128xf32>
      %41 = vector.extract_strided_slice %30 {offsets = [0, 128], sizes = [2, 128], strides = [1, 1]} : vector<2x384xf32> to vector<2x128xf32>
      %42 = arith.addf %40, %41 : vector<2x128xf32>
      %43 = arith.negf %42 : vector<2x128xf32>
      %44 = math.exp %43 : vector<2x128xf32>
      %cst_27 = arith.constant 1.000000e+00 : f32
      %45 = vector.broadcast %cst_27 : f32 to vector<2x128xf32>
      %46 = arith.addf %45, %44 : vector<2x128xf32>
      %47 = arith.divf %45, %46 : vector<2x128xf32>
      %48 = vector.extract_strided_slice %19 {offsets = [0, 256], sizes = [2, 128], strides = [1, 1]} : vector<2x384xf32> to vector<2x128xf32>
      %49 = vector.extract_strided_slice %30 {offsets = [0, 256], sizes = [2, 128], strides = [1, 1]} : vector<2x384xf32> to vector<2x128xf32>
      %50 = arith.mulf %39, %49 : vector<2x128xf32>
      %51 = arith.addf %48, %50 : vector<2x128xf32>
      %52 = math.tanh %51 : vector<2x128xf32>
      %cst_28 = arith.constant 1.000000e+00 : f32
      %53 = vector.broadcast %cst_28 : f32 to vector<2x128xf32>
      %54 = arith.subf %53, %47 : vector<2x128xf32>
      %55 = arith.mulf %54, %52 : vector<2x128xf32>
      %56 = arith.mulf %47, %24 : vector<2x128xf32>
      %57 = arith.addf %55, %56 : vector<2x128xf32>
      %cst_29 = arith.constant dense<0.000000e+00> : vector<2x384xf32>
      %58 = tpu.matmul %57, %22, %cst_29 {dimension_numbers = #tpu.dot_dimension_numbers<[1], [0], [0], [1], [0, 0, 1, 1], [], []>} : vector<2x128xf32>, vector<128x384xf32>, vector<2x384xf32> -> vector<2x384xf32>
      %59 = vector.broadcast %23 : vector<1x384xf32> to vector<2x384xf32>
      %60 = arith.addf %58, %59 : vector<2x384xf32>
      %61 = vector.extract_strided_slice %60 {offsets = [0, 0], sizes = [2, 128], strides = [1, 1]} : vector<2x384xf32> to vector<2x128xf32>
      %62 = vector.extract_strided_slice %31 {offsets = [0, 0], sizes = [2, 128], strides = [1, 1]} : vector<2x384xf32> to vector<2x128xf32>
      %63 = arith.addf %61, %62 : vector<2x128xf32>
      %64 = arith.negf %63 : vector<2x128xf32>
      %65 = math.exp %64 : vector<2x128xf32>
      %cst_30 = arith.constant 1.000000e+00 : f32
      %66 = vector.broadcast %cst_30 : f32 to vector<2x128xf32>
      %67 = arith.addf %66, %65 : vector<2x128xf32>
      %68 = arith.divf %66, %67 : vector<2x128xf32>
      %69 = vector.extract_strided_slice %60 {offsets = [0, 128], sizes = [2, 128], strides = [1, 1]} : vector<2x384xf32> to vector<2x128xf32>
      %70 = vector.extract_strided_slice %31 {offsets = [0, 128], sizes = [2, 128], strides = [1, 1]} : vector<2x384xf32> to vector<2x128xf32>
      %71 = arith.addf %69, %70 : vector<2x128xf32>
      %72 = arith.negf %71 : vector<2x128xf32>
      %73 = math.exp %72 : vector<2x128xf32>
      %cst_31 = arith.constant 1.000000e+00 : f32
      %74 = vector.broadcast %cst_31 : f32 to vector<2x128xf32>
      %75 = arith.addf %74, %73 : vector<2x128xf32>
      %76 = arith.divf %74, %75 : vector<2x128xf32>
      %77 = vector.extract_strided_slice %60 {offsets = [0, 256], sizes = [2, 128], strides = [1, 1]} : vector<2x384xf32> to vector<2x128xf32>
      %78 = vector.extract_strided_slice %31 {offsets = [0, 256], sizes = [2, 128], strides = [1, 1]} : vector<2x384xf32> to vector<2x128xf32>
      %79 = arith.mulf %68, %78 : vector<2x128xf32>
      %80 = arith.addf %77, %79 : vector<2x128xf32>
      %81 = math.tanh %80 : vector<2x128xf32>
      %cst_32 = arith.constant 1.000000e+00 : f32
      %82 = vector.broadcast %cst_32 : f32 to vector<2x128xf32>
      %83 = arith.subf %82, %76 : vector<2x128xf32>
      %84 = arith.mulf %83, %81 : vector<2x128xf32>
      %85 = arith.mulf %76, %25 : vector<2x128xf32>
      %86 = arith.addf %84, %85 : vector<2x128xf32>
      %c0_33 = arith.constant 0 : index
      %c0_34 = arith.constant 0 : index
      %87 = vector.load %arg13[%c0_33, %c0_34] : memref<8x128xf32, #tpu.memory_space<vmem>>, vector<2x128xf32>
      tpu.vector_store %arg13[%c0_33, %c0_34], %86 {strides = array<i32>} : memref<8x128xf32, #tpu.memory_space<vmem>>, vector<2x128xf32>,
      %88 = tpu.concatenate %57, %86 in 1 : vector<2x128xf32>, vector<2x128xf32> -> vector<2x256xf32>
      %cst_35 = arith.constant dense<0.000000e+00> : vector<2x768xf32>
      %89 = tpu.matmul %88, %20, %cst_35 {dimension_numbers = #tpu.dot_dimension_numbers<[1], [0], [0], [1], [0, 0, 1, 1], [], []>} : vector<2x256xf32>, vector<256x768xf32>, vector<2x768xf32> -> vector<2x768xf32>
      %90 = vector.broadcast %21 : vector<1x768xf32> to vector<2x768xf32>
      %91 = arith.addf %89, %90 : vector<2x768xf32>
      %92 = vector.extract_strided_slice %91 {offsets = [0, 0], sizes = [2, 384], strides = [1, 1]} : vector<2x768xf32> to vector<2x384xf32>
      %93 = vector.extract_strided_slice %91 {offsets = [0, 384], sizes = [2, 384], strides = [1, 1]} : vector<2x768xf32> to vector<2x384xf32>
      %94 = vector.extract_strided_slice %19 {offsets = [0, 0], sizes = [2, 128], strides = [1, 1]} : vector<2x384xf32> to vector<2x128xf32>
      %95 = vector.extract_strided_slice %92 {offsets = [0, 0], sizes = [2, 128], strides = [1, 1]} : vector<2x384xf32> to vector<2x128xf32>
      %96 = arith.addf %94, %95 : vector<2x128xf32>
      %97 = arith.negf %96 : vector<2x128xf32>
      %98 = math.exp %97 : vector<2x128xf32>
      %cst_36 = arith.constant 1.000000e+00 : f32
      %99 = vector.broadcast %cst_36 : f32 to vector<2x128xf32>
      %100 = arith.addf %99, %98 : vector<2x128xf32>
      %101 = arith.divf %99, %100 : vector<2x128xf32>
      %102 = vector.extract_strided_slice %19 {offsets = [0, 128], sizes = [2, 128], strides = [1, 1]} : vector<2x384xf32> to vector<2x128xf32>
      %103 = vector.extract_strided_slice %92 {offsets = [0, 128], sizes = [2, 128], strides = [1, 1]} : vector<2x384xf32> to vector<2x128xf32>
      %104 = arith.addf %102, %103 : vector<2x128xf32>
      %105 = arith.negf %104 : vector<2x128xf32>
      %106 = math.exp %105 : vector<2x128xf32>
      %cst_37 = arith.constant 1.000000e+00 : f32
      %107 = vector.broadcast %cst_37 : f32 to vector<2x128xf32>
      %108 = arith.addf %107, %106 : vector<2x128xf32>
      %109 = arith.divf %107, %108 : vector<2x128xf32>
      %110 = vector.extract_strided_slice %19 {offsets = [0, 256], sizes = [2, 128], strides = [1, 1]} : vector<2x384xf32> to vector<2x128xf32>
      %111 = vector.extract_strided_slice %92 {offsets = [0, 256], sizes = [2, 128], strides = [1, 1]} : vector<2x384xf32> to vector<2x128xf32>
      %112 = arith.mulf %101, %111 : vector<2x128xf32>
      %113 = arith.addf %110, %112 : vector<2x128xf32>
      %114 = math.tanh %113 : vector<2x128xf32>
      %cst_38 = arith.constant 1.000000e+00 : f32
      %115 = vector.broadcast %cst_38 : f32 to vector<2x128xf32>
      %116 = arith.subf %115, %109 : vector<2x128xf32>
      %117 = arith.mulf %116, %114 : vector<2x128xf32>
      %118 = arith.mulf %109, %57 : vector<2x128xf32>
      %119 = arith.addf %117, %118 : vector<2x128xf32>
      %cst_39 = arith.constant dense<0.000000e+00> : vector<2x384xf32>
      %120 = tpu.matmul %119, %22, %cst_39 {dimension_numbers = #tpu.dot_dimension_numbers<[1], [0], [0], [1], [0, 0, 1, 1], [], []>} : vector<2x128xf32>, vector<128x384xf32>, vector<2x384xf32> -> vector<2x384xf32>
      %121 = vector.broadcast %23 : vector<1x384xf32> to vector<2x384xf32>
      %122 = arith.addf %120, %121 : vector<2x384xf32>
      %123 = vector.extract_strided_slice %122 {offsets = [0, 0], sizes = [2, 128], strides = [1, 1]} : vector<2x384xf32> to vector<2x128xf32>
      %124 = vector.extract_strided_slice %93 {offsets = [0, 0], sizes = [2, 128], strides = [1, 1]} : vector<2x384xf32> to vector<2x128xf32>
      %125 = arith.addf %123, %124 : vector<2x128xf32>
      %126 = arith.negf %125 : vector<2x128xf32>
      %127 = math.exp %126 : vector<2x128xf32>
      %cst_40 = arith.constant 1.000000e+00 : f32
      %128 = vector.broadcast %cst_40 : f32 to vector<2x128xf32>
      %129 = arith.addf %128, %127 : vector<2x128xf32>
      %130 = arith.divf %128, %129 : vector<2x128xf32>
      %131 = vector.extract_strided_slice %122 {offsets = [0, 128], sizes = [2, 128], strides = [1, 1]} : vector<2x384xf32> to vector<2x128xf32>
      %132 = vector.extract_strided_slice %93 {offsets = [0, 128], sizes = [2, 128], strides = [1, 1]} : vector<2x384xf32> to vector<2x128xf32>
      %133 = arith.addf %131, %132 : vector<2x128xf32>
      %134 = arith.negf %133 : vector<2x128xf32>
      %135 = math.exp %134 : vector<2x128xf32>
      %cst_41 = arith.constant 1.000000e+00 : f32
      %136 = vector.broadcast %cst_41 : f32 to vector<2x128xf32>
      %137 = arith.addf %136, %135 : vector<2x128xf32>
      %138 = arith.divf %136, %137 : vector<2x128xf32>
      %139 = vector.extract_strided_slice %122 {offsets = [0, 256], sizes = [2, 128], strides = [1, 1]} : vector<2x384xf32> to vector<2x128xf32>
      %140 = vector.extract_strided_slice %93 {offsets = [0, 256], sizes = [2, 128], strides = [1, 1]} : vector<2x384xf32> to vector<2x128xf32>
      %141 = arith.mulf %130, %140 : vector<2x128xf32>
      %142 = arith.addf %139, %141 : vector<2x128xf32>
      %143 = math.tanh %142 : vector<2x128xf32>
      %cst_42 = arith.constant 1.000000e+00 : f32
      %144 = vector.broadcast %cst_42 : f32 to vector<2x128xf32>
      %145 = arith.subf %144, %138 : vector<2x128xf32>
      %146 = arith.mulf %145, %143 : vector<2x128xf32>
      %147 = arith.mulf %138, %86 : vector<2x128xf32>
      %148 = arith.addf %146, %147 : vector<2x128xf32>
      %c2 = arith.constant 2 : index
      %c0_43 = arith.constant 0 : index
      %149 = vector.load %arg13[%c2, %c0_43] : memref<8x128xf32, #tpu.memory_space<vmem>>, vector<2x128xf32>
      tpu.vector_store %arg13[%c2, %c0_43], %148 {strides = array<i32>} : memref<8x128xf32, #tpu.memory_space<vmem>>, vector<2x128xf32>,
      %150 = tpu.concatenate %119, %148 in 1 : vector<2x128xf32>, vector<2x128xf32> -> vector<2x256xf32>
      %cst_44 = arith.constant dense<0.000000e+00> : vector<2x768xf32>
      %151 = tpu.matmul %150, %20, %cst_44 {dimension_numbers = #tpu.dot_dimension_numbers<[1], [0], [0], [1], [0, 0, 1, 1], [], []>} : vector<2x256xf32>, vector<256x768xf32>, vector<2x768xf32> -> vector<2x768xf32>
      %152 = vector.broadcast %21 : vector<1x768xf32> to vector<2x768xf32>
      %153 = arith.addf %151, %152 : vector<2x768xf32>
      %154 = vector.extract_strided_slice %153 {offsets = [0, 0], sizes = [2, 384], strides = [1, 1]} : vector<2x768xf32> to vector<2x384xf32>
      %155 = vector.extract_strided_slice %153 {offsets = [0, 384], sizes = [2, 384], strides = [1, 1]} : vector<2x768xf32> to vector<2x384xf32>
      %156 = vector.extract_strided_slice %19 {offsets = [0, 0], sizes = [2, 128], strides = [1, 1]} : vector<2x384xf32> to vector<2x128xf32>
      %157 = vector.extract_strided_slice %154 {offsets = [0, 0], sizes = [2, 128], strides = [1, 1]} : vector<2x384xf32> to vector<2x128xf32>
      %158 = arith.addf %156, %157 : vector<2x128xf32>
      %159 = arith.negf %158 : vector<2x128xf32>
      %160 = math.exp %159 : vector<2x128xf32>
      %cst_45 = arith.constant 1.000000e+00 : f32
      %161 = vector.broadcast %cst_45 : f32 to vector<2x128xf32>
      %162 = arith.addf %161, %160 : vector<2x128xf32>
      %163 = arith.divf %161, %162 : vector<2x128xf32>
      %164 = vector.extract_strided_slice %19 {offsets = [0, 128], sizes = [2, 128], strides = [1, 1]} : vector<2x384xf32> to vector<2x128xf32>
      %165 = vector.extract_strided_slice %154 {offsets = [0, 128], sizes = [2, 128], strides = [1, 1]} : vector<2x384xf32> to vector<2x128xf32>
      %166 = arith.addf %164, %165 : vector<2x128xf32>
      %167 = arith.negf %166 : vector<2x128xf32>
      %168 = math.exp %167 : vector<2x128xf32>
      %cst_46 = arith.constant 1.000000e+00 : f32
      %169 = vector.broadcast %cst_46 : f32 to vector<2x128xf32>
      %170 = arith.addf %169, %168 : vector<2x128xf32>
      %171 = arith.divf %169, %170 : vector<2x128xf32>
      %172 = vector.extract_strided_slice %19 {offsets = [0, 256], sizes = [2, 128], strides = [1, 1]} : vector<2x384xf32> to vector<2x128xf32>
      %173 = vector.extract_strided_slice %154 {offsets = [0, 256], sizes = [2, 128], strides = [1, 1]} : vector<2x384xf32> to vector<2x128xf32>
      %174 = arith.mulf %163, %173 : vector<2x128xf32>
      %175 = arith.addf %172, %174 : vector<2x128xf32>
      %176 = math.tanh %175 : vector<2x128xf32>
      %cst_47 = arith.constant 1.000000e+00 : f32
      %177 = vector.broadcast %cst_47 : f32 to vector<2x128xf32>
      %178 = arith.subf %177, %171 : vector<2x128xf32>
      %179 = arith.mulf %178, %176 : vector<2x128xf32>
      %180 = arith.mulf %171, %119 : vector<2x128xf32>
      %181 = arith.addf %179, %180 : vector<2x128xf32>
      %cst_48 = arith.constant dense<0.000000e+00> : vector<2x384xf32>
      %182 = tpu.matmul %181, %22, %cst_48 {dimension_numbers = #tpu.dot_dimension_numbers<[1], [0], [0], [1], [0, 0, 1, 1], [], []>} : vector<2x128xf32>, vector<128x384xf32>, vector<2x384xf32> -> vector<2x384xf32>
      %183 = vector.broadcast %23 : vector<1x384xf32> to vector<2x384xf32>
      %184 = arith.addf %182, %183 : vector<2x384xf32>
      %185 = vector.extract_strided_slice %184 {offsets = [0, 0], sizes = [2, 128], strides = [1, 1]} : vector<2x384xf32> to vector<2x128xf32>
      %186 = vector.extract_strided_slice %155 {offsets = [0, 0], sizes = [2, 128], strides = [1, 1]} : vector<2x384xf32> to vector<2x128xf32>
      %187 = arith.addf %185, %186 : vector<2x128xf32>
      %188 = arith.negf %187 : vector<2x128xf32>
      %189 = math.exp %188 : vector<2x128xf32>
      %cst_49 = arith.constant 1.000000e+00 : f32
      %190 = vector.broadcast %cst_49 : f32 to vector<2x128xf32>
      %191 = arith.addf %190, %189 : vector<2x128xf32>
      %192 = arith.divf %190, %191 : vector<2x128xf32>
      %193 = vector.extract_strided_slice %184 {offsets = [0, 128], sizes = [2, 128], strides = [1, 1]} : vector<2x384xf32> to vector<2x128xf32>
      %194 = vector.extract_strided_slice %155 {offsets = [0, 128], sizes = [2, 128], strides = [1, 1]} : vector<2x384xf32> to vector<2x128xf32>
      %195 = arith.addf %193, %194 : vector<2x128xf32>
      %196 = arith.negf %195 : vector<2x128xf32>
      %197 = math.exp %196 : vector<2x128xf32>
      %cst_50 = arith.constant 1.000000e+00 : f32
      %198 = vector.broadcast %cst_50 : f32 to vector<2x128xf32>
      %199 = arith.addf %198, %197 : vector<2x128xf32>
      %200 = arith.divf %198, %199 : vector<2x128xf32>
      %201 = vector.extract_strided_slice %184 {offsets = [0, 256], sizes = [2, 128], strides = [1, 1]} : vector<2x384xf32> to vector<2x128xf32>
      %202 = vector.extract_strided_slice %155 {offsets = [0, 256], sizes = [2, 128], strides = [1, 1]} : vector<2x384xf32> to vector<2x128xf32>
      %203 = arith.mulf %192, %202 : vector<2x128xf32>
      %204 = arith.addf %201, %203 : vector<2x128xf32>
      %205 = math.tanh %204 : vector<2x128xf32>
      %cst_51 = arith.constant 1.000000e+00 : f32
      %206 = vector.broadcast %cst_51 : f32 to vector<2x128xf32>
      %207 = arith.subf %206, %200 : vector<2x128xf32>
      %208 = arith.mulf %207, %205 : vector<2x128xf32>
      %209 = arith.mulf %200, %148 : vector<2x128xf32>
      %210 = arith.addf %208, %209 : vector<2x128xf32>
      %c4 = arith.constant 4 : index
      %c0_52 = arith.constant 0 : index
      %211 = vector.load %arg13[%c4, %c0_52] : memref<8x128xf32, #tpu.memory_space<vmem>>, vector<2x128xf32>
      tpu.vector_store %arg13[%c4, %c0_52], %210 {strides = array<i32>} : memref<8x128xf32, #tpu.memory_space<vmem>>, vector<2x128xf32>,
      %212 = tpu.concatenate %181, %210 in 1 : vector<2x128xf32>, vector<2x128xf32> -> vector<2x256xf32>
      %cst_53 = arith.constant dense<0.000000e+00> : vector<2x768xf32>
      %213 = tpu.matmul %212, %20, %cst_53 {dimension_numbers = #tpu.dot_dimension_numbers<[1], [0], [0], [1], [0, 0, 1, 1], [], []>} : vector<2x256xf32>, vector<256x768xf32>, vector<2x768xf32> -> vector<2x768xf32>
      %214 = vector.broadcast %21 : vector<1x768xf32> to vector<2x768xf32>
      %215 = arith.addf %213, %214 : vector<2x768xf32>
      %216 = vector.extract_strided_slice %215 {offsets = [0, 0], sizes = [2, 384], strides = [1, 1]} : vector<2x768xf32> to vector<2x384xf32>
      %217 = vector.extract_strided_slice %215 {offsets = [0, 384], sizes = [2, 384], strides = [1, 1]} : vector<2x768xf32> to vector<2x384xf32>
      %218 = vector.extract_strided_slice %19 {offsets = [0, 0], sizes = [2, 128], strides = [1, 1]} : vector<2x384xf32> to vector<2x128xf32>
      %219 = vector.extract_strided_slice %216 {offsets = [0, 0], sizes = [2, 128], strides = [1, 1]} : vector<2x384xf32> to vector<2x128xf32>
      %220 = arith.addf %218, %219 : vector<2x128xf32>
      %221 = arith.negf %220 : vector<2x128xf32>
      %222 = math.exp %221 : vector<2x128xf32>
      %cst_54 = arith.constant 1.000000e+00 : f32
      %223 = vector.broadcast %cst_54 : f32 to vector<2x128xf32>
      %224 = arith.addf %223, %222 : vector<2x128xf32>
      %225 = arith.divf %223, %224 : vector<2x128xf32>
      %226 = vector.extract_strided_slice %19 {offsets = [0, 128], sizes = [2, 128], strides = [1, 1]} : vector<2x384xf32> to vector<2x128xf32>
      %227 = vector.extract_strided_slice %216 {offsets = [0, 128], sizes = [2, 128], strides = [1, 1]} : vector<2x384xf32> to vector<2x128xf32>
      %228 = arith.addf %226, %227 : vector<2x128xf32>
      %229 = arith.negf %228 : vector<2x128xf32>
      %230 = math.exp %229 : vector<2x128xf32>
      %cst_55 = arith.constant 1.000000e+00 : f32
      %231 = vector.broadcast %cst_55 : f32 to vector<2x128xf32>
      %232 = arith.addf %231, %230 : vector<2x128xf32>
      %233 = arith.divf %231, %232 : vector<2x128xf32>
      %234 = vector.extract_strided_slice %19 {offsets = [0, 256], sizes = [2, 128], strides = [1, 1]} : vector<2x384xf32> to vector<2x128xf32>
      %235 = vector.extract_strided_slice %216 {offsets = [0, 256], sizes = [2, 128], strides = [1, 1]} : vector<2x384xf32> to vector<2x128xf32>
      %236 = arith.mulf %225, %235 : vector<2x128xf32>
      %237 = arith.addf %234, %236 : vector<2x128xf32>
      %238 = math.tanh %237 : vector<2x128xf32>
      %cst_56 = arith.constant 1.000000e+00 : f32
      %239 = vector.broadcast %cst_56 : f32 to vector<2x128xf32>
      %240 = arith.subf %239, %233 : vector<2x128xf32>
      %241 = arith.mulf %240, %238 : vector<2x128xf32>
      %242 = arith.mulf %233, %181 : vector<2x128xf32>
      %243 = arith.addf %241, %242 : vector<2x128xf32>
      %cst_57 = arith.constant dense<0.000000e+00> : vector<2x384xf32>
      %244 = tpu.matmul %243, %22, %cst_57 {dimension_numbers = #tpu.dot_dimension_numbers<[1], [0], [0], [1], [0, 0, 1, 1], [], []>} : vector<2x128xf32>, vector<128x384xf32>, vector<2x384xf32> -> vector<2x384xf32>
      %245 = vector.broadcast %23 : vector<1x384xf32> to vector<2x384xf32>
      %246 = arith.addf %244, %245 : vector<2x384xf32>
      %247 = vector.extract_strided_slice %246 {offsets = [0, 0], sizes = [2, 128], strides = [1, 1]} : vector<2x384xf32> to vector<2x128xf32>
      %248 = vector.extract_strided_slice %217 {offsets = [0, 0], sizes = [2, 128], strides = [1, 1]} : vector<2x384xf32> to vector<2x128xf32>
      %249 = arith.addf %247, %248 : vector<2x128xf32>
      %250 = arith.negf %249 : vector<2x128xf32>
      %251 = math.exp %250 : vector<2x128xf32>
      %cst_58 = arith.constant 1.000000e+00 : f32
      %252 = vector.broadcast %cst_58 : f32 to vector<2x128xf32>
      %253 = arith.addf %252, %251 : vector<2x128xf32>
      %254 = arith.divf %252, %253 : vector<2x128xf32>
      %255 = vector.extract_strided_slice %246 {offsets = [0, 128], sizes = [2, 128], strides = [1, 1]} : vector<2x384xf32> to vector<2x128xf32>
      %256 = vector.extract_strided_slice %217 {offsets = [0, 128], sizes = [2, 128], strides = [1, 1]} : vector<2x384xf32> to vector<2x128xf32>
      %257 = arith.addf %255, %256 : vector<2x128xf32>
      %258 = arith.negf %257 : vector<2x128xf32>
      %259 = math.exp %258 : vector<2x128xf32>
      %cst_59 = arith.constant 1.000000e+00 : f32
      %260 = vector.broadcast %cst_59 : f32 to vector<2x128xf32>
      %261 = arith.addf %260, %259 : vector<2x128xf32>
      %262 = arith.divf %260, %261 : vector<2x128xf32>
      %263 = vector.extract_strided_slice %246 {offsets = [0, 256], sizes = [2, 128], strides = [1, 1]} : vector<2x384xf32> to vector<2x128xf32>
      %264 = vector.extract_strided_slice %217 {offsets = [0, 256], sizes = [2, 128], strides = [1, 1]} : vector<2x384xf32> to vector<2x128xf32>
      %265 = arith.mulf %254, %264 : vector<2x128xf32>
      %266 = arith.addf %263, %265 : vector<2x128xf32>
      %267 = math.tanh %266 : vector<2x128xf32>
      %cst_60 = arith.constant 1.000000e+00 : f32
      %268 = vector.broadcast %cst_60 : f32 to vector<2x128xf32>
      %269 = arith.subf %268, %262 : vector<2x128xf32>
      %270 = arith.mulf %269, %267 : vector<2x128xf32>
      %271 = arith.mulf %262, %210 : vector<2x128xf32>
      %272 = arith.addf %270, %271 : vector<2x128xf32>
      %c6 = arith.constant 6 : index
      %c0_61 = arith.constant 0 : index
      %273 = vector.load %arg13[%c6, %c0_61] : memref<8x128xf32, #tpu.memory_space<vmem>>, vector<2x128xf32>
      tpu.vector_store %arg13[%c6, %c0_61], %272 {strides = array<i32>} : memref<8x128xf32, #tpu.memory_space<vmem>>, vector<2x128xf32>,
      %c0_62 = arith.constant 0 : index
      %c0_63 = arith.constant 0 : index
      %274 = vector.load %arg13[%c0_62, %c0_63] : memref<8x128xf32, #tpu.memory_space<vmem>>, vector<8x128xf32>
      %c0_64 = arith.constant 0 : index
      %c0_65 = arith.constant 0 : index
      %275 = vector.load %arg9[%c0_64, %c0_65] : memref<128x10xf32, #tpu.memory_space<vmem>>, vector<128x10xf32>
      %cst_66 = arith.constant dense<0.000000e+00> : vector<8x10xf32>
      %276 = tpu.matmul %274, %275, %cst_66 {dimension_numbers = #tpu.dot_dimension_numbers<[1], [0], [0], [1], [0, 0, 1, 1], [], []>} : vector<8x128xf32>, vector<128x10xf32>, vector<8x10xf32> -> vector<8x10xf32>
      %c0_67 = arith.constant 0 : index
      %c0_68 = arith.constant 0 : index
      %277 = vector.load %arg10[%c0_67, %c0_68] : memref<1x10xf32, #tpu.memory_space<vmem>>, vector<1x10xf32>
      %278 = vector.broadcast %277 : vector<1x10xf32> to vector<8x10xf32>
      %279 = arith.addf %276, %278 : vector<8x10xf32>
      %c0_69 = arith.constant 0 : index
      %c0_70 = arith.constant 0 : index
      %280 = vector.load %arg11[%c0_69, %c0_70] : memref<8x10xf32, #tpu.memory_space<vmem>>, vector<8x10xf32>
      tpu.vector_store %arg11[%c0_69, %c0_70], %279 {strides = array<i32>} : memref<8x10xf32, #tpu.memory_space<vmem>>, vector<8x10xf32>,
    } else {
    }
    return
  }
  func.func @transform_0(%arg0: i32) -> (i32, i32) {
    %c0_i32 = arith.constant 0 : i32
    %c0_i32_0 = arith.constant 0 : i32
    return %c0_i32, %arg0 : i32, i32
  }
  func.func @transform_1(%arg0: i32) -> (i32, i32) {
    %c0_i32 = arith.constant 0 : i32
    %c0_i32_0 = arith.constant 0 : i32
    return %arg0, %c0_i32 : i32, i32
  }
  func.func @transform_2(%arg0: i32) -> (i32, i32) {
    %c0_i32 = arith.constant 0 : i32
    %c0_i32_0 = arith.constant 0 : i32
    %c0_i32_1 = arith.constant 0 : i32
    return %c0_i32, %c0_i32_0 : i32, i32
  }
  func.func @transform_3(%arg0: i32) -> (i32, i32) {
    %c0_i32 = arith.constant 0 : i32
    %c0_i32_0 = arith.constant 0 : i32
    %c0_i32_1 = arith.constant 0 : i32
    return %c0_i32, %c0_i32_0 : i32, i32
  }
  func.func @transform_4(%arg0: i32) -> (i32, i32) {
    %c0_i32 = arith.constant 0 : i32
    %c0_i32_0 = arith.constant 0 : i32
    %c0_i32_1 = arith.constant 0 : i32
    return %c0_i32, %c0_i32_0 : i32, i32
  }
  func.func @transform_5(%arg0: i32) -> (i32, i32) {
    %c0_i32 = arith.constant 0 : i32
    %c0_i32_0 = arith.constant 0 : i32
    %c0_i32_1 = arith.constant 0 : i32
    return %c0_i32, %c0_i32_0 : i32, i32
  }
  func.func @transform_6(%arg0: i32) -> (i32, i32) {
    %c0_i32 = arith.constant 0 : i32
    %c0_i32_0 = arith.constant 0 : i32
    %c0_i32_1 = arith.constant 0 : i32
    return %c0_i32, %c0_i32_0 : i32, i32
  }
  func.func @transform_7(%arg0: i32) -> (i32, i32) {
    %c0_i32 = arith.constant 0 : i32
    %c0_i32_0 = arith.constant 0 : i32
    %c0_i32_1 = arith.constant 0 : i32
    return %c0_i32, %c0_i32_0 : i32, i32
  }
  func.func @transform_8(%arg0: i32) -> (i32, i32) {
    %c0_i32 = arith.constant 0 : i32
    %c0_i32_0 = arith.constant 0 : i32
    %c0_i32_1 = arith.constant 0 : i32
    return %c0_i32, %c0_i32_0 : i32, i32
  }
  func.func @transform_9(%arg0: i32) -> (i32, i32) {
    %c0_i32 = arith.constant 0 : i32
    %c0_i32_0 = arith.constant 0 : i32
    %c0_i32_1 = arith.constant 0 : i32
    return %c0_i32, %c0_i32_0 : i32, i32
  }
  func.func @transform_10(%arg0: i32) -> (i32, i32) {
    %c0_i32 = arith.constant 0 : i32
    %c0_i32_0 = arith.constant 0 : i32
    %c0_i32_1 = arith.constant 0 : i32
    return %c0_i32, %c0_i32_0 : i32, i32
  }
}

</mosaic_0001>

<bundles_post_ra>
// kernel: decoder_forward.1
= control target key start
LH: loop header
LB: loop body
LE: loop exit
PB: predicated region body
PF: predicated region fallthrough
CT: control target
= control target key end

     0   :  { %s24840_s0 = inlined_call_operand.vmem [shape: f32[2,26880], index: 0, kind: input, shape index: {}]   ;;  %s24841_s1 = inlined_call_operand.hbm [shape: s8[26880,384], index: 1, kind: input, shape index: {}]   ;;  %s24842_s2 = inlined_call_operand.hbm [shape: f32[1,384], index: 2, kind: input, shape index: {}]   ;;  %s24843_s3 = inlined_call_operand.hbm [shape: f32[1,384], index: 3, kind: input, shape index: {}]   ;;  %s24844_s4 = inlined_call_operand.hbm [shape: f32[256,768], index: 4, kind: input, shape index: {}]   ;;  %s24845_s5 = inlined_call_operand.hbm [shape: f32[1,768], index: 5, kind: input, shape index: {}]   ;;  %s24846_s6 = inlined_call_operand.hbm [shape: f32[128,384], index: 6, kind: input, shape index: {}]   ;;  %s24847_s7 = inlined_call_operand.hbm [shape: f32[1,384], index: 7, kind: input, shape index: {}]   ;;  %s24848_s8 = inlined_call_operand.vmem [shape: f32[128,10], index: 8, kind: input, shape index: {}]   ;;  %s24849_s9 = inlined_call_operand.hbm [shape: f32[1,10], index: 9, kind: input, shape index: {}]   ;;  %s24850_s10 = inlined_call_operand.vmem [shape: f32[8,10], index: 10, kind: output, shape index: {}]  }
   0x1   :  { %25084 = sst [smem:[#allocation142_spill]] %s24842_s2 }
   0x2   :  { %25085 = sst [smem:[#allocation143_spill]] %s24844_s4 }
   0x3   :  { %15 = vsyncpa [#allocation5], 0 }
   0x4   :  { %17 = vsyncpa [#allocation5 + $0x1], 0 }
   0x5   :  { %18 = vsyncpa [#allocation7], 0 }
   0x6   :  { %19 = vsyncpa [#allocation10], 0 }
   0x7   :  { %20 = vsyncpa [#allocation13], 0 }
   0x8   :  { %21 = vsyncpa [#allocation16], 0  ;;  %s22115_s13 = smov 0   ;;  %s22117_s14 = smov 0  }
   0x9   :  { %s22119_s15 = smov 0   ;;  %s22121_s16 = smov 0  }
   0xa LB: > { %s22043_s17 = smov [#allocation6]   ;;  %s22136_s19 = sadd.s32 4294967295, %s22041_s16   ;;  %s22041_s16 = sphi %s22121_s16, %s25454_s16   ;;  %s22037_s15 = sphi %s22119_s15, %s25453_s15   ;;  %s22033_s14 = sphi %s22117_s14, %s25452_s14   ;;  %s22029_s13 = sphi %s22115_s13, %s25451_s13  }
   0xb   : > { %s286_s18 = sshll.u32 %s22043_s17, 4  ;;  %p15573_p0 = scmp.ge.s32.totalorder %s22041_s16, 1  ;;  %s287_s18 = int_to_ptr.vmem [resolvable:$true] %s286_s18 }
   0xc   : > { %p24851_p1 = scmp.eq.s32.totalorder %s22136_s19, 0  ;;  %p273_p2 = scmp.lt.s32.totalorder %s22041_s16, 4 }
   0xd   : > { %s22044_s21 = smov [#allocation9]   ;;  %s22045_s24 = smov [#allocation12]  }
   0xe   : > { %p22142_p4 = pnand %p15573_p0, %p273_p2  ;;  %s307_s22 = sshll.u32 %s22044_s21, 4  ;;  %s22148_s22 = int_to_ptr.vmem [resolvable:$true] %s307_s22 }
   0xf   : > { %s22156_s25 = sshll.u32 %s22045_s24, 4  ;;  %s25088_s2 = sld [smem:[#allocation142_spill]]  ;;  %s332_s25 = int_to_ptr.vmem [resolvable:$true] %s22156_s25 }
  0x10   : > { %s25086_s20 = scalar_select %p22142_p4, 1, 0 }
  0x11   : > { %p21576_p5 = pneg %p22142_p4 }
  0x13   : > { %p22152_p6 = pnand %p21576_p5, %p24851_p1 }
  0x15   : > { %s21765_s28 = scalar_lea.hbm %s25088_s2, 48  ;;  %p22166_p8 = pneg %p22152_p6 }
  0x16   : > { %p21766_p7 = scmp.ne.s32.totalorder %s25088_s2, %s21765_s28  ;;  %p21772_p11 = scmp.lt.u32.totalorder %s21765_s28, %s25088_s2 }
  0x18   : > { %p21768_p9 = pnand %p22166_p8, %p21766_p7 }
  0x1a   : > { %p21769_p10 = pneg %p21768_p9 }
  0x1c   : > { %p21774_p12 = pnand %p21772_p11, %p21769_p10 }
  0x1e   : > { %21777 = shalt.err (!%p21774_p12)
}
  0x1f   : > { %s21778_s21 = scalar_lea.vmem %s287_s18, 48  ;;  %s21785_s24 = scalar_lea.vmem %s287_s18, 64 }
  0x20   : > { %p21779_p13 = scmp.ne.s32.totalorder %s287_s18, %s21778_s21  ;;  %p21786_p5 = scmp.lt.s32.totalorder %s287_s18, %s287_s18 }
  0x21   : > { %p21787_p3 = scmp.lt.s32.totalorder %s21785_s24, %s21778_s21 }
  0x22   : > { %p21781_p0 = pnand %p21779_p13, %p22166_p8 }
  0x23   : > { %p21788_p1 = por %p21787_p3, %p21786_p5 }
  0x24   : > { %p21782_p2 = pneg %p21781_p0 }
  0x26   : > { %p21789_p4 = pnand %p21788_p1, %p21782_p2 }
  0x28   : > { %21792 = shalt.err (!%p21789_p4)
}
  0x29   : > { %21579 = dma.hbm_to_vmem [thread:$0]  (!%p22152_p6), %s25088_s2, 48, %s287_s18, [#allocation7]  }
  0x2a   : > { %s25090_s4 = sld [smem:[#allocation143_spill]] }
  0x30   : > { %s21793_s30 = scalar_lea.hbm %s25090_s4, 24576 }
  0x31   : > { %p21794_p7 = scmp.ne.s32.totalorder %s25090_s4, %s21793_s30  ;;  %p21800_p1 = scmp.lt.u32.totalorder %s21793_s30, %s25090_s4 }
  0x33   : > { %p21796_p9 = pnand %p21794_p7, %p22166_p8 }
  0x35   : > { %p21797_p3 = pneg %p21796_p9 }
  0x37   : > { %p21802_p4 = pnand %p21800_p1, %p21797_p3 }
  0x39   : > { %21805 = shalt.err (!%p21802_p4)
}
  0x3a   : > { %s21806_s18 = scalar_lea.vmem %s22148_s22, 24576  ;;  %p21814_p13 = scmp.lt.s32.totalorder %s22148_s22, %s22148_s22 }
  0x3b   : > { %p21807_p10 = scmp.ne.s32.totalorder %s22148_s22, %s21806_s18  ;;  %p21815_p0 = scmp.lt.s32.totalorder %s21806_s18, %s21806_s18 }
  0x3d   : > { %p21809_p11 = pnand %p21807_p10, %p22166_p8  ;;  %p21816_p2 = por %p21815_p0, %p21814_p13 }
  0x3f   : > { %p21810_p12 = pneg %p21809_p11 }
  0x41   : > { %p21817_p5 = pnand %p21816_p2, %p21810_p12 }
  0x43   : > { %21820 = shalt.err (!%p21817_p5)
}
  0x44   : > { %s22046_s26 = smov 768   ;;  %s22047_s27 = smov 48  }
  0x45   : > { %21585 = dma.hbm_to_vmem [thread:$0]  (!%p22152_p6), %s25090_s4, 24576, %s22148_s22, [#allocation10], %s22046_s26, %s22046_s26, %s22047_s27  }
  0x46   : > { %s21821_s17 = scalar_lea.hbm %s24846_s6, 6144 }
  0x47   : > { %p21822_p7 = scmp.ne.s32.totalorder %s24846_s6, %s21821_s17  ;;  %p21828_p1 = scmp.lt.u32.totalorder %s21821_s17, %s24846_s6 }
  0x49   : > { %p21824_p9 = pnand %p21822_p7, %p22166_p8 }
  0x4b   : > { %p21825_p3 = pneg %p21824_p9 }
  0x4d   : > { %p21830_p4 = pnand %p21828_p1, %p21825_p3 }
  0x4f   : > { %21833 = shalt.err (!%p21830_p4)
}
  0x50   : > { %s21834_s28 = scalar_lea.vmem %s332_s25, 6144  ;;  %p21842_p13 = scmp.lt.s32.totalorder %s332_s25, %s332_s25 }
  0x51   : > { %p21835_p10 = scmp.ne.s32.totalorder %s332_s25, %s21834_s28  ;;  %p21843_p0 = scmp.lt.s32.totalorder %s21834_s28, %s21834_s28 }
  0x53   : > { %p21837_p11 = pnand %p21835_p10, %p22166_p8  ;;  %p21844_p2 = por %p21843_p0, %p21842_p13 }
  0x55   : > { %p21838_p12 = pneg %p21837_p11 }
  0x57   : > { %p21845_p5 = pnand %p21844_p2, %p21838_p12 }
  0x59   : > { %21848 = shalt.err (!%p21845_p5)
}
  0x5a   : > { %s22048_s22 = smov 384   ;;  %s22049_s26 = smov 24  }
  0x5b   : > { %21591 = dma.hbm_to_vmem [thread:$0]  (!%p22152_p6), %s24846_s6, 6144, %s332_s25, [#allocation13], %s22048_s22, %s22048_s22, %s22049_s26  }
  0x5c   : > { %s22050_s29 = smov [#allocation8]   ;;  %s22051_s12 = smov [#allocation11]  }
  0x5d   : > { %s297_s30 = sshll.u32 %s22050_s29, 4  ;;  %s321_s17 = sshll.u32 %s22051_s12, 4  ;;  %s298_s30 = int_to_ptr.vmem [resolvable:$true] %s297_s30  ;;  %s22227_s17 = int_to_ptr.vmem [resolvable:$true] %s321_s17 }
  0x5e   : > { %s21849_s18 = scalar_lea.hbm %s24843_s3, 48 }
  0x5f   : > { %p21850_p7 = scmp.ne.s32.totalorder %s24843_s3, %s21849_s18  ;;  %p21856_p1 = scmp.lt.u32.totalorder %s21849_s18, %s24843_s3 }
  0x61   : > { %p21852_p9 = pnand %p21850_p7, %p22166_p8 }
  0x63   : > { %p21853_p3 = pneg %p21852_p9 }
  0x65   : > { %p21858_p4 = pnand %p21856_p1, %p21853_p3 }
  0x67   : > { %21861 = shalt.err (!%p21858_p4)
}
  0x68   : > { %s21862_s27 = scalar_lea.vmem %s298_s30, 48  ;;  %s21869_s29 = scalar_lea.vmem %s298_s30, 64 }
  0x69   : > { %p21863_p10 = scmp.ne.s32.totalorder %s298_s30, %s21862_s27  ;;  %p21870_p13 = scmp.lt.s32.totalorder %s298_s30, %s298_s30 }
  0x6a   : > { %p21871_p0 = scmp.lt.s32.totalorder %s21869_s29, %s21862_s27 }
  0x6b   : > { %p21865_p11 = pnand %p21863_p10, %p22166_p8 }
  0x6c   : > { %p21872_p2 = por %p21871_p0, %p21870_p13 }
  0x6d   : > { %p21866_p12 = pneg %p21865_p11 }
  0x6f   : > { %p21873_p5 = pnand %p21872_p2, %p21866_p12 }
  0x71   : > { %21876 = shalt.err (!%p21873_p5)
}
  0x72   : > { %21582 = dma.hbm_to_vmem [thread:$0]  (!%p22152_p6), %s24843_s3, 48, %s298_s30, [#allocation7]  }
  0x73   : > { %s21877_s18 = scalar_lea.hbm %s24845_s5, 96 }
  0x74   : > { %p21878_p7 = scmp.ne.s32.totalorder %s24845_s5, %s21877_s18  ;;  %p21884_p1 = scmp.lt.u32.totalorder %s21877_s18, %s24845_s5 }
  0x76   : > { %p21880_p9 = pnand %p21878_p7, %p22166_p8 }
  0x78   : > { %p21881_p3 = pneg %p21880_p9 }
  0x7a   : > { %p21886_p4 = pnand %p21884_p1, %p21881_p3 }
  0x7c   : > { %21889 = shalt.err (!%p21886_p4)
}
  0x7d   : > { %s21890_s30 = scalar_lea.vmem %s22227_s17, 96  ;;  %p21898_p13 = scmp.lt.s32.totalorder %s22227_s17, %s22227_s17 }
  0x7e   : > { %p21891_p10 = scmp.ne.s32.totalorder %s22227_s17, %s21890_s30  ;;  %p21899_p0 = scmp.lt.s32.totalorder %s21890_s30, %s21890_s30 }
  0x80   : > { %p21893_p11 = pnand %p21891_p10, %p22166_p8  ;;  %p21900_p2 = por %p21899_p0, %p21898_p13 }
  0x82   : > { %p21894_p12 = pneg %p21893_p11 }
  0x84   : > { %p21901_p5 = pnand %p21900_p2, %p21894_p12 }
  0x86   : > { %21904 = shalt.err (!%p21901_p5)
}
  0x87   : > { %21588 = dma.hbm_to_vmem [thread:$0]  (!%p22152_p6), %s24845_s5, 96, %s22227_s17, [#allocation10]  }
  0x88   : > { %s22052_s12 = smov [#allocation14]   ;;  %s22053_s24 = smov [#allocation15]  }
  0x89   : > { %s345_s21 = sshll.u32 %s22052_s12, 4  ;;  %s359_s18 = sshll.u32 %s22053_s24, 4  ;;  %s346_s21 = int_to_ptr.vmem [resolvable:$true] %s345_s21  ;;  %s22270_s18 = int_to_ptr.vmem [resolvable:$true] %s359_s18 }
  0x8a   : > { %s21905_s25 = scalar_lea.hbm %s24847_s7, 48 }
  0x8b   : > { %p21906_p7 = scmp.ne.s32.totalorder %s24847_s7, %s21905_s25  ;;  %p21912_p1 = scmp.lt.u32.totalorder %s21905_s25, %s24847_s7 }
  0x8d   : > { %p21908_p9 = pnand %p21906_p7, %p22166_p8 }
  0x8f   : > { %p21909_p3 = pneg %p21908_p9 }
  0x91   : > { %p21914_p4 = pnand %p21912_p1, %p21909_p3 }
  0x93   : > { %21917 = shalt.err (!%p21914_p4)
}
  0x94   : > { %s21918_s4 = scalar_lea.vmem %s346_s21, 48  ;;  %s21925_s12 = scalar_lea.vmem %s346_s21, 64 }
  0x95   : > { %p21919_p10 = scmp.ne.s32.totalorder %s346_s21, %s21918_s4  ;;  %p21926_p13 = scmp.lt.s32.totalorder %s346_s21, %s346_s21 }
  0x96   : > { %p21927_p0 = scmp.lt.s32.totalorder %s21925_s12, %s21918_s4 }
  0x97   : > { %p21921_p11 = pnand %p21919_p10, %p22166_p8 }
  0x98   : > { %p21928_p2 = por %p21927_p0, %p21926_p13 }
  0x99   : > { %p21922_p12 = pneg %p21921_p11 }
  0x9b   : > { %p21929_p5 = pnand %p21928_p2, %p21922_p12 }
  0x9d   : > { %21932 = shalt.err (!%p21929_p5)
}
  0x9e   : > { %21594 = dma.hbm_to_vmem [thread:$0]  (!%p22152_p6), %s24847_s7, 48, %s346_s21, [#allocation13]  }
  0x9f   : > { %s21933_s27 = scalar_lea.hbm %s24849_s9, 16 }
  0xa0   : > { %p21934_p7 = scmp.ne.s32.totalorder %s24849_s9, %s21933_s27  ;;  %p21940_p1 = scmp.lt.u32.totalorder %s21933_s27, %s24849_s9 }
  0xa2   : > { %p21936_p9 = pnand %p21934_p7, %p22166_p8 }
  0xa4   : > { %p21937_p3 = pneg %p21936_p9 }
  0xa6   : > { %p21942_p4 = pnand %p21940_p1, %p21937_p3 }
  0xa8   : > { %21945 = shalt.err (!%p21942_p4)
}
  0xa9   : > { %s21946_s21 = scalar_lea.vmem %s22270_s18, 16  ;;  %s21953_s12 = scalar_lea.vmem %s22270_s18, 32 }
  0xaa   : > { %p21947_p10 = scmp.ne.s32.totalorder %s22270_s18, %s21946_s21  ;;  %p21954_p13 = scmp.lt.s32.totalorder %s22270_s18, %s22270_s18 }
  0xab   : > { %p21955_p0 = scmp.lt.s32.totalorder %s21953_s12, %s21946_s21 }
  0xac   : > { %p21949_p11 = pnand %p21947_p10, %p22166_p8 }
  0xad   : > { %p21956_p2 = por %p21955_p0, %p21954_p13 }
  0xae   : > { %p21950_p12 = pneg %p21949_p11 }
  0xb0   : > { %p21957_p5 = pnand %p21956_p2, %p21950_p12 }
  0xb2   : > { %21960 = shalt.err (!%p21957_p5)
}
  0xb3   : > { %21597 = dma.hbm_to_vmem [thread:$0]  (!%p22152_p6), %s24849_s9, 16, %s22270_s18, [#allocation16]  }
  0xb4   : > { %s22315_s11 = sadd.s32 1, %s22041_s16   ;;  %s60_s23 = sadd.s32 1, %s22037_s15 }
  0xb5   : > { %s57_s2 = ssub.s32 %s22041_s16, %s22315_s11  ;;  %p67_p8 = scmp.ne.s32.totalorder %s22037_s15, %s22033_s14 }
  0xb6   : > { %p58_p7 = scmp.eq.s32.totalorder %s57_s2, 0  ;;  %p68_p9 = scmp.eq.s32.totalorder %s22041_s16, 0 }
  0xb7   : > { %p73_p3 = scmp.ne.s32.totalorder %s22033_s14, %s22029_s13  ;;  %p21609_p1 = scmp.lt.s32.totalorder %s22041_s16, 3 }
  0xb8   : > { %s22327_s25 = scalar_select %p58_p7, %s22037_s15, %s60_s23  }
  0xb9   : > { %p69_p4 = por %p68_p9, %p67_p8  ;;  %p25091_p10 = scmp.eq.s32.totalorder %s22136_s19, 0 }
  0xba   : > { %s379_s30 = sand.u32 1, %s22037_s15   ;;  %s21610_s18 = smul.u32 107520, %s22041_s16 }
  0xbb   : > { %p22331_p11 = por %p25091_p10, %p73_p3  ;;  %s21543_s29 = smul.u32 6720, %s379_s30 }
  0xbc   : > { %p22337_p6 = pnand %p21609_p1, %p69_p4  ;;  %s22344_s13 = scalar_lea.hbm %s24841_s1, %s21610_s18 }
  0xbd   : > { %s383_s12 = scalar_lea.vmem [#allocation4], %s21543_s29  ;;  %s22348_s16 = scalar_lea.sflag [#allocation5], %s379_s30 }
  0xbe   : > { %s391_s24 = sshll.u32 %s383_s12, 4  ;;  %s21961_s28 = scalar_lea.hbm %s22344_s13, 107520  ;;  %s22346_s24 = int_to_ptr.vmem [resolvable:$true] %s391_s24 }
  0xbf   : > { %p21962_p12 = scmp.ne.s32.totalorder %s22344_s13, %s21961_s28  ;;  %p21963_p13 = pneg %p22337_p6 }
  0xc0   : > { %s21966_s18 = scalar_lea.hbm %s24841_s1, 322560  ;;  %p21967_p5 = scmp.lt.u32.totalorder %s22344_s13, %s24841_s1 }
  0xc1   : > { %p21964_p0 = pnand %p21963_p13, %p21962_p12  ;;  %p21968_p8 = scmp.lt.u32.totalorder %s21966_s18, %s21961_s28 }
  0xc2   : > { %p21970_p9 = scmp.lt.u32.totalorder %s21961_s28, %s22344_s13 }
  0xc3   : > { %p21965_p2 = pneg %p21964_p0  ;;  %p21969_p7 = por %p21968_p8, %p21967_p5 }
  0xc5   : > { %p21971_p3 = por %p21970_p9, %p21969_p7 }
  0xc7   : > { %p21972_p1 = pnand %p21971_p3, %p21965_p2 }
  0xc9   : > { %21975 = shalt.err (!%p21972_p1)
}
  0xca   : > { %s21976_s30 = scalar_lea.vmem %s22346_s24, 107520  ;;  %s22054_s29 = smov [#allocation4]  }
  0xcb   : > { %p21977_p4 = scmp.ne.s32.totalorder %s22346_s24, %s21976_s30  ;;  %s21981_s12 = sshll.u32 %s22054_s29, 4  ;;  %s21982_s12 = int_to_ptr.vmem [resolvable:$false] %s21981_s12 }
  0xcc   : > { %s21983_s23 = scalar_lea.vmem %s21982_s12, 215040  ;;  %p21984_p0 = scmp.lt.s32.totalorder %s22346_s24, %s21982_s12 }
  0xcd   : > { %p21979_p10 = pnand %p21977_p4, %p21963_p13  ;;  %p21985_p5 = scmp.lt.s32.totalorder %s21983_s23, %s21976_s30 }
  0xcf   : > { %p21980_p12 = pneg %p21979_p10  ;;  %p21986_p8 = por %p21985_p5, %p21984_p0 }
  0xd1   : > { %p21987_p7 = pnand %p21986_p8, %p21980_p12 }
  0xd3   : > { %21990 = shalt.err (!%p21987_p7)
}
  0xd4   : > { %21601 = dma.hbm_to_vmem [thread:$0]  (!%p22337_p6), %s22344_s13, 107520, %s22346_s24, %s22348_s16, %s22048_s22, %s22048_s22, %s22049_s26  }
  0xd5   : > { %p25094_p13 = scmp.ne.s32.totalorder %s25086_s20, 0 }
  0xd6   : > { %s405_s28 = sand.u32 (!%p25094_p13), 1, %s22033_s14  }
  0xd7   : > { %403 = sbr.rel (%p25094_p13) target bundleno = 4556 (0x11cc), region = 60  ;;  %s406_s18 = scalar_lea.sflag (!%p25094_p13), [#allocation5], %s405_s28 }
  0xd8   : > { %s21545_s2 = smul.u32 (!%p25094_p13), 6720, %s405_s28 }
  0xda   : > { %s22382_s4 = scalar_lea.vmem (!%p25094_p13), [#allocation4], %s21545_s2 }
  0xde   : > { %22008 = dma.done.wait (%p22331_p11), %s406_s18, 107520  }
  0xdf   : > { %22010 = vsyncadd (%p22331_p11), %s406_s18, 4294859776  ;;  %p25095_p2 = scmp.eq.s32.totalorder %s22136_s19, 0 }
  0xe1   : > { %22012 = dma.done.wait (%p25095_p2), [#allocation7], 96   ;;  %p25096_p6 = pmov %p25095_p2 }
  0xe2   : > { %p25097_p9 = pmov %p25095_p2 }
  0xe3   : > { %22014 = vsyncadd (%p25096_p6), [#allocation7], 4294967200 }
  0xe4   : > { %22016 = dma.done.wait (%p25097_p9), [#allocation10], 24672   ;;  %p25098_p3 = pmov %p25095_p2 }
  0xe5   : > { %p25099_p1 = pmov %p25095_p2 }
  0xe6   : > { %22018 = vsyncadd (%p25098_p3), [#allocation10], 4294942624 }
  0xe7   : > { %22020 = dma.done.wait (%p25099_p1), [#allocation13], 6192   ;;  %p25100_p4 = pmov %p25099_p1 }
  0xe8   : > { %p25101_p11 = pmov %p25099_p1 }
  0xe9   : > { %22022 = vsyncadd (%p25100_p4), [#allocation13], 4294961104 }
  0xea   : > { %22024 = dma.done.wait (%p25101_p11), [#allocation16], 16   ;;  %p25102_p10 = pmov %p25099_p1 }
  0xeb   : > { %s474_s20 = smul.u32 70, %s22136_s19  ;;  %p25103_p0 = scmp.ne.s32.totalorder %s22136_s19, 0 }
  0xec   : > { %22026 = vsyncadd (%p25102_p10), [#allocation16], 4294967280  ;;  %v22055_v0 = vmov (!%p25103_p0), 0.0  }
  0xed   : > { %p475_p12 = scmp.lt.s32.totalorder %s474_s20, 209  ;;  %484 = sbr.rel (%p25103_p0) target bundleno = 244 (0xf4), region = 96  ;;  %485 = vst [vmem:[#allocation2] sm:$0x3f] (!%p25103_p0), %v22055_v0 }
  0xef   : > { %s25456_s20 = smov (!%p475_p12, %s474_s20), 209 }
  0xf0   : > { %s15591_s22 = sshll.u32 %s25456_s20, 1 }
  0xf1   : > { %s22408_s17 = scalar_lea.vmem %s24840_s0, %s15591_s22 }
  0xf4 PF: > { %v487_v1 = vld [vmem:[%s22382_s4 + $0x8] sm:$0xff]  ;;  %v486_v3 = vld [vmem:[%s22382_s4] sm:$0xff]  ;;  %v489_v17 = vld [vmem:[%s22382_s4 + $0x18] sm:$0xff]  ;;  %v8087_v31 = vlaneseq  ;;  %v22056_v37 = vmov 1983009808   ;;  %p15594_p5 = scmp.ne.s32.totalorder %s22136_s19, 2 }
  0xf5   : > { %v703_v2 = vld [vmem:[%s22382_s4 + $0x6c8] sm:$0xff]  ;;  %v17099_v4 = vunpack.c.l.s8.bf16 %v487_v1  ;;  %v17103_v5 = vunpack.c.h.s8.bf16 %v487_v1  ;;  %v702_v8 = vld [vmem:[%s22382_s4 + $0x6c0] sm:$0xff]  ;;  %v17101_v9 = vunpack.c.l.s8.bf16 %v486_v3  ;;  %v17105_v13 = vunpack.c.h.s8.bf16 %v486_v3  ;;  %v705_v18 = vld [vmem:[%s22382_s4 + $0x6d8] sm:$0xff] }
  0xf6   : > { %v17675_v6 = vunpack.c.l.s8.bf16 %v703_v2  ;;  %v17679_v7 = vunpack.c.h.s8.bf16 %v703_v2  ;;  %v17677_v10 = vunpack.c.l.s8.bf16 %v702_v8  ;;  %v490_v11 = vld [vmem:[%s22382_s4 + $0x20] sm:$0xff]  ;;  %v17681_v14 = vunpack.c.h.s8.bf16 %v702_v8  ;;  %v493_v23 = vld [vmem:[%s22382_s4 + $0x38] sm:$0xff]  ;;  %v492_v29 = vld [vmem:[%s22382_s4 + $0x30] sm:$0xff] }
  0xf7   : > { %v706_v12 = vld [vmem:[%s22382_s4 + $0x6e0] sm:$0xff]  ;;  %17100 = vmatprep.subr.bf16.mxu1 %v17099_v4  ;;  %v17107_v15 = vunpack.c.l.s8.bf16 %v490_v11  ;;  %v17109_v19 = vunpack.c.l.s8.bf16 %v489_v17  ;;  %v17685_v20 = vunpack.c.l.s8.bf16 %v705_v18  ;;  %v17111_v21 = vunpack.c.h.s8.bf16 %v490_v11  ;;  %v709_v24 = vld [vmem:[%s22382_s4 + $0x6f8] sm:$0xff]  ;;  %v708_v30 = vld [vmem:[%s22382_s4 + $0x6f0] sm:$0xff] }
  0xf8   : > { %17676 = vmatprep.subr.bf16.mxu0 %v17675_v6  ;;  %17102 = vmatpush1.bf16.msra.mxu1 %v17101_v9  ;;  %v17683_v16 = vunpack.c.l.s8.bf16 %v706_v12  ;;  %v17687_v22 = vunpack.c.h.s8.bf16 %v706_v12  ;;  %v17113_v25 = vunpack.c.h.s8.bf16 %v489_v17  ;;  %v17689_v26 = vunpack.c.h.s8.bf16 %v705_v18  ;;  %v8051_v34 = vld [vmem:[%s22408_s17 + $0x20] sm:$0xff]  ;;  %v495_v49 = vld [vmem:[%s22382_s4 + $0x48] sm:$0xff]  ;;  %v498_v2 = vld [vmem:[%s22382_s4 + $0x60] sm:$0xff] }
  0xf9   : > { %17678 = vmatpush1.bf16.msra.mxu0 %v17677_v10  ;;  %17104 = vmatprep.subr.bf16.mxu1 %v17103_v5  ;;  %v17115_v27 = vunpack.c.l.s8.bf16 %v493_v23  ;;  %v17691_v28 = vunpack.c.l.s8.bf16 %v709_v24  ;;  %v17117_v32 = vunpack.c.l.s8.bf16 %v492_v29  ;;  %v17693_v33 = vunpack.c.l.s8.bf16 %v708_v30  ;;  %v496_v40 = vld [vmem:[%s22382_s4 + $0x50] sm:$0xff]  ;;  %v711_v50 = vld [vmem:[%s22382_s4 + $0x708] sm:$0xff]  ;;  %v714_v3 = vld [vmem:[%s22382_s4 + $0x720] sm:$0xff] }
  0xfa   : > { %17680 = vmatprep.subr.bf16.mxu0 %v17679_v7  ;;  %v17119_v35 = vunpack.c.h.s8.bf16 %v493_v23  ;;  %v17695_v36 = vunpack.c.h.s8.bf16 %v709_v24  ;;  %v8085_v38 = vunpack.c.l.s4 %v22056_v37  ;;  %v22425_v39 = vshrl.u32 %v8087_v31, 7  ;;  %v712_v41 = vld [vmem:[%s22382_s4 + $0x710] sm:$0xff]  ;;  %v499_v60 = vld [vmem:[%s22382_s4 + $0x68] sm:$0xff]  ;;  %v502_v8 = vld [vmem:[%s22382_s4 + $0x80] sm:$0xff] }
  0xfb   : > { %v8151_v43 = vcombine.high %v8051_v34, %v8051_v34  ;;  %v17121_v44 = vunpack.c.h.s8.bf16 %v492_v29  ;;  %v17697_v45 = vunpack.c.h.s8.bf16 %v708_v30  ;;  %v22430_v46 = vld [vmem:[%s22408_s17] sm:$0xff]  ;;  %v17123_v47 = vunpack.c.l.s8.bf16 %v496_v40  ;;  %v715_v61 = vld [vmem:[%s22382_s4 + $0x728] sm:$0xff]  ;;  %v718_v9 = vld [vmem:[%s22382_s4 + $0x740] sm:$0xff] }
  0xfc   : > { %17106 = vmatpush1.bf16.msra.mxu1 %v17105_v13  ;;  %v8086_v42 = vunpack.c.0.s8 %v8085_v38  ;;  %v17699_v48 = vunpack.c.l.s8.bf16 %v712_v41  ;;  %v17125_v54 = vunpack.c.l.s8.bf16 %v495_v49  ;;  %v17701_v55 = vunpack.c.l.s8.bf16 %v711_v50  ;;  %v507_v38 = vld [vmem:[%s22382_s4 + $0xa8] sm:$0xff] }
  0xfd   : > { %17682 = vmatpush1.bf16.msra.mxu0 %v17681_v14  ;;  %17108 = vmatprep.subr.bf16.mxu1 %v17107_v15  ;;  %v17127_v56 = vunpack.c.h.s8.bf16 %v496_v40  ;;  %v17703_v57 = vunpack.c.h.s8.bf16 %v712_v41  ;;  %v17129_v62 = vunpack.c.h.s8.bf16 %v495_v49  ;;  %v17705_v63 = vunpack.c.h.s8.bf16 %v711_v50  ;;  %v501_v14 = vld [vmem:[%s22382_s4 + $0x78] sm:$0xff]  ;;  %v723_v40 = vld [vmem:[%s22382_s4 + $0x768] sm:$0xff] }
  0xfe   : > { %17684 = vmatprep.subr.bf16.mxu0 %v17683_v16  ;;  %v22435_v51 = vsub.s32 %v8086_v42, %v22425_v39  ;;  %v17131_v0 = vunpack.c.l.s8.bf16 %v499_v60  ;;  %v17707_v1 = vunpack.c.l.s8.bf16 %v715_v61  ;;  %v17133_v4 = vunpack.c.l.s8.bf16 %v498_v2  ;;  %v717_v15 = vld [vmem:[%s22382_s4 + $0x738] sm:$0xff] }
  0xff   : > { %v17709_v5 = vunpack.c.l.s8.bf16 %v714_v3  ;;  %v17135_v6 = vunpack.c.h.s8.bf16 %v499_v60  ;;  %v17711_v7 = vunpack.c.h.s8.bf16 %v715_v61  ;;  %v17137_v10 = vunpack.c.h.s8.bf16 %v498_v2  ;;  %v22475_v49 = vld [vmem:[%s22408_s17 + $0x28] sm:$0xff] }
 0x100   : > { %17110 = vmatpush1.bf16.msra.mxu1 %v17109_v19  ;;  %v22439_v52 = vrot.slane %v22430_v46, %v22435_v51  ;;  %v22442_v53 = vrot.slane %v8151_v43, %v22435_v51  ;;  %v17713_v11 = vunpack.c.h.s8.bf16 %v714_v3  ;;  %v17139_v12 = vunpack.c.l.s8.bf16 %v502_v8  ;;  %v726_v60 = vld [vmem:[%s22382_s4 + $0x780] sm:$0xff] }
 0x101   : > { %17686 = vmatpush1.bf16.msra.mxu0 %v17685_v20  ;;  %17112 = vmatprep.subr.bf16.mxu1 %v17111_v21  ;;  %v17715_v13 = vunpack.c.l.s8.bf16 %v718_v9  ;;  %v17141_v16 = vunpack.c.l.s8.bf16 %v501_v14  ;;  %v17717_v17 = vunpack.c.l.s8.bf16 %v717_v15  ;;  %v17143_v18 = vunpack.c.h.s8.bf16 %v502_v8  ;;  %v505_v20 = vld [vmem:[%s22382_s4 + $0x98] sm:$0xff]  ;;  %v514_v2 = vld [vmem:[%s22382_s4 + $0xe0] sm:$0xff] }
 0x102   : > { %17688 = vmatprep.subr.bf16.mxu0 %v17687_v22  ;;  %v22446_v58 = vcombine.high %v22439_v52, %v22439_v52  ;;  %v22450_v59 = vcombine.high %v22442_v53, %v22442_v53  ;;  %v17719_v19 = vunpack.c.h.s8.bf16 %v718_v9  ;;  %v721_v21 = vld [vmem:[%s22382_s4 + $0x758] sm:$0xff]  ;;  %v17145_v22 = vunpack.c.h.s8.bf16 %v501_v14  ;;  %v730_v3 = vld [vmem:[%s22382_s4 + $0x7a0] sm:$0xff] }
 0x103   : > { %v17721_v23 = vunpack.c.h.s8.bf16 %v717_v15  ;;  %v17147_v24 = vunpack.c.l.s8.bf16 %v505_v20  ;;  %v17151_v30 = vunpack.c.h.s8.bf16 %v505_v20  ;;  %v17727_v31 = vunpack.c.h.s8.bf16 %v721_v21 }
 0x104   : > { %17114 = vmatpush1.bf16.msra.mxu1 %v17113_v25  ;;  %8514 = vmatprep.mubr.f32.mxu1 %v22446_v58  ;;  %v17723_v25 = vunpack.c.l.s8.bf16 %v721_v21  ;;  %v17157_v41 = vunpack.c.l.s8.bf16 %v507_v38  ;;  %v17733_v42 = vunpack.c.l.s8.bf16 %v723_v40  ;;  %v17161_v50 = vunpack.c.h.s8.bf16 %v507_v38 }
 0x105   : > { %17690 = vmatpush1.bf16.msra.mxu0 %v17689_v26  ;;  %17116 = vmatprep.subr.bf16.mxu1 %v17115_v27  ;;  %v504_v26 = vld [vmem:[%s22382_s4 + $0x90] sm:$0xff]  ;;  %v17171_v8 = vunpack.c.l.s8.bf16 %v514_v2  ;;  %v17747_v9 = vunpack.c.l.s8.bf16 %v730_v3  ;;  %v17175_v14 = vunpack.c.h.s8.bf16 %v514_v2  ;;  %v17751_v15 = vunpack.c.h.s8.bf16 %v730_v3  ;;  %v525_v3 = vld [vmem:[%s22382_s4 + $0x138] sm:$0xff] }
 0x106   : > { %17692 = vmatprep.subr.bf16.mxu0 %v17691_v28  ;;  %9153 = vmatprep.mubr.f32.mxu0 %v22450_v59  ;;  %v720_v27 = vld [vmem:[%s22382_s4 + $0x750] sm:$0xff]  ;;  %v17149_v28 = vunpack.c.l.s8.bf16 %v504_v26  ;;  %v17153_v34 = vunpack.c.h.s8.bf16 %v504_v26 }
 0x107   : > { %v17725_v29 = vunpack.c.l.s8.bf16 %v720_v27 }
 0x108   : > { %17118 = vmatpush1.bf16.msra.mxu1 %v17117_v32  ;;  %v508_v32 = vld [vmem:[%s22382_s4 + $0xb0] sm:$0xff] }
 0x109   : > { %17694 = vmatpush1.bf16.msra.mxu0 %v17693_v33  ;;  %17120 = vmatprep.subr.bf16.mxu1 %v17119_v35  ;;  %v724_v33 = vld [vmem:[%s22382_s4 + $0x770] sm:$0xff]  ;;  %v17729_v35 = vunpack.c.h.s8.bf16 %v720_v27  ;;  %v17159_v43 = vunpack.c.h.s8.bf16 %v508_v32 }
 0x10a   : > { %17696 = vmatprep.subr.bf16.mxu0 %v17695_v36  ;;  %v17155_v36 = vunpack.c.l.s8.bf16 %v508_v32  ;;  %v17731_v37 = vunpack.c.l.s8.bf16 %v724_v33 }
 0x10c   : > { %17122 = vmatpush1.bf16.msra.mxu1 %v17121_v44  ;;  %v17735_v44 = vunpack.c.h.s8.bf16 %v724_v33 }
 0x10d   : > { %17698 = vmatpush1.bf16.msra.mxu0 %v17697_v45  ;;  %17124 = vmatprep.subr.bf16.mxu1 %v17123_v47  ;;  %v8083_v45 = vcombine.high %v22430_v46, %v22430_v46  ;;  %v511_v47 = vld [vmem:[%s22382_s4 + $0xc8] sm:$0xff]  ;;  %v22484_v46 = vrot.slane %v22475_v49, %v22435_v51 }
 0x10e   : > { %17700 = vmatprep.subr.bf16.mxu0 %v17699_v48  ;;  %v727_v48 = vld [vmem:[%s22382_s4 + $0x788] sm:$0xff] }
 0x10f   : > { %v22480_v61 = vrot.slane %v8083_v45, %v22435_v51 }
 0x110   : > { %17126 = vmatpush1.bf16.msra.mxu1 %v17125_v54  ;;  %v17737_v54 = vunpack.c.h.s8.bf16 %v723_v40 }
 0x111   : > { %17702 = vmatpush1.bf16.msra.mxu0 %v17701_v55  ;;  %17128 = vmatprep.subr.bf16.mxu1 %v17127_v56  ;;  %v17163_v55 = vunpack.c.l.s8.bf16 %v511_v47  ;;  %v17739_v56 = vunpack.c.l.s8.bf16 %v727_v48 }
 0x112   : > { %17704 = vmatprep.subr.bf16.mxu0 %v17703_v57  ;;  %v510_v57 = vld [vmem:[%s22382_s4 + $0xc0] sm:$0xff] }
 0x114   : > { %17130 = vmatpush1.bf16.msra.mxu1 %v17129_v62  ;;  %v17165_v62 = vunpack.c.l.s8.bf16 %v510_v57 }
 0x115   : > { %17706 = vmatpush1.bf16.msra.mxu0 %v17705_v63  ;;  %17132 = vmatprep.subr.bf16.mxu1 %v17131_v0  ;;  %v17741_v63 = vunpack.c.l.s8.bf16 %v726_v60  ;;  %v17167_v0 = vunpack.c.h.s8.bf16 %v511_v47 }
 0x116   : > { %17708 = vmatprep.subr.bf16.mxu0 %v17707_v1  ;;  %v17743_v1 = vunpack.c.h.s8.bf16 %v727_v48  ;;  %v522_v48 = vld [vmem:[%s22382_s4 + $0x120] sm:$0xff] }
 0x118   : > { %17134 = vmatpush1.bf16.msra.mxu1 %v17133_v4  ;;  %v22490_v4 = vcombine.high %v22480_v61, %v22480_v61 }
 0x119   : > { %17710 = vmatpush1.bf16.msra.mxu0 %v17709_v5  ;;  %17136 = vmatprep.subr.bf16.mxu1 %v17135_v6  ;;  %v22494_v5 = vcombine.high %v22484_v46, %v22484_v46  ;;  %v17169_v6 = vunpack.c.h.s8.bf16 %v510_v57 }
 0x11a   : > { %17712 = vmatprep.subr.bf16.mxu0 %v17711_v7  ;;  %v17745_v7 = vunpack.c.h.s8.bf16 %v726_v60  ;;  %v526_v60 = vld [vmem:[%s22382_s4 + $0x140] sm:$0xff] }
 0x11c   : > { %17138 = vmatpush1.bf16.msra.mxu1 %v17137_v10  ;;  %v513_v10 = vld [vmem:[%s22382_s4 + $0xd8] sm:$0xff] }
 0x11d   : > { %17714 = vmatpush1.bf16.msra.mxu0 %v17713_v11  ;;  %17140 = vmatprep.subr.bf16.mxu1 %v17139_v12  ;;  %v729_v11 = vld [vmem:[%s22382_s4 + $0x798] sm:$0xff]  ;;  %v17173_v12 = vunpack.c.l.s8.bf16 %v513_v10 }
 0x11e   : > { %17716 = vmatprep.subr.bf16.mxu0 %v17715_v13  ;;  %v17749_v13 = vunpack.c.l.s8.bf16 %v729_v11 }
 0x120   : > { %17142 = vmatpush1.bf16.msra.mxu1 %v17141_v16  ;;  %v517_v16 = vld [vmem:[%s22382_s4 + $0xf8] sm:$0xff] }
 0x121   : > { %17718 = vmatpush1.bf16.msra.mxu0 %v17717_v17  ;;  %17144 = vmatprep.subr.bf16.mxu1 %v17143_v18  ;;  %v733_v17 = vld [vmem:[%s22382_s4 + $0x7b8] sm:$0xff]  ;;  %v17177_v18 = vunpack.c.h.s8.bf16 %v513_v10  ;;  %v17179_v20 = vunpack.c.l.s8.bf16 %v517_v16  ;;  %v17183_v26 = vunpack.c.h.s8.bf16 %v517_v16 }
 0x122   : > { %17720 = vmatprep.subr.bf16.mxu0 %v17719_v19  ;;  %v17753_v19 = vunpack.c.h.s8.bf16 %v729_v11  ;;  %v17755_v21 = vunpack.c.l.s8.bf16 %v733_v17  ;;  %v17759_v27 = vunpack.c.h.s8.bf16 %v733_v17  ;;  %v529_v11 = vld [vmem:[%s22382_s4 + $0x158] sm:$0xff]  ;;  %v528_v17 = vld [vmem:[%s22382_s4 + $0x150] sm:$0xff] }
 0x124   : > { %17146 = vmatpush1.bf16.msra.mxu1 %v17145_v22  ;;  %v516_v22 = vld [vmem:[%s22382_s4 + $0xf0] sm:$0xff] }
 0x125   : > { %17722 = vmatpush1.bf16.msra.mxu0 %v17721_v23  ;;  %17148 = vmatprep.subr.bf16.mxu1 %v17147_v24  ;;  %v732_v23 = vld [vmem:[%s22382_s4 + $0x7b0] sm:$0xff]  ;;  %v17181_v24 = vunpack.c.l.s8.bf16 %v516_v22 }
 0x126   : > { %17724 = vmatprep.subr.bf16.mxu0 %v17723_v25  ;;  %v17757_v25 = vunpack.c.l.s8.bf16 %v732_v23 }
 0x128   : > { %17150 = vmatpush1.bf16.msra.mxu1 %v17149_v28  ;;  %v520_v28 = vld [vmem:[%s22382_s4 + $0x110] sm:$0xff] }
 0x129   : > { %17726 = vmatpush1.bf16.msra.mxu0 %v17725_v29  ;;  %17152 = vmatprep.subr.bf16.mxu1 %v17151_v30  ;;  %v736_v29 = vld [vmem:[%s22382_s4 + $0x7d0] sm:$0xff]  ;;  %v17185_v30 = vunpack.c.h.s8.bf16 %v516_v22  ;;  %v17187_v32 = vunpack.c.l.s8.bf16 %v520_v28  ;;  %v17191_v38 = vunpack.c.h.s8.bf16 %v520_v28 }
 0x12a   : > { %17728 = vmatprep.subr.bf16.mxu0 %v17727_v31  ;;  %v17761_v31 = vunpack.c.h.s8.bf16 %v732_v23  ;;  %v17763_v33 = vunpack.c.l.s8.bf16 %v736_v29  ;;  %v17767_v40 = vunpack.c.h.s8.bf16 %v736_v29  ;;  %v532_v23 = vld [vmem:[%s22382_s4 + $0x170] sm:$0xff]  ;;  %v531_v29 = vld [vmem:[%s22382_s4 + $0x168] sm:$0xff] }
 0x12c   : > { %17154 = vmatpush1.bf16.msra.mxu1 %v17153_v34  ;;  %v519_v34 = vld [vmem:[%s22382_s4 + $0x108] sm:$0xff] }
 0x12d   : > { %17730 = vmatpush1.bf16.msra.mxu0 %v17729_v35  ;;  %17156 = vmatprep.subr.bf16.mxu1 %v17155_v36  ;;  %v735_v35 = vld [vmem:[%s22382_s4 + $0x7c8] sm:$0xff]  ;;  %v17189_v36 = vunpack.c.l.s8.bf16 %v519_v34 }
 0x12e   : > { %17732 = vmatprep.subr.bf16.mxu0 %v17731_v37  ;;  %v17765_v37 = vunpack.c.l.s8.bf16 %v735_v35 }
 0x130   : > { %17158 = vmatpush1.bf16.msra.mxu1 %v17157_v41  ;;  %v523_v41 = vld [vmem:[%s22382_s4 + $0x128] sm:$0xff] }
 0x131   : > { %17734 = vmatpush1.bf16.msra.mxu0 %v17733_v42  ;;  %17160 = vmatprep.subr.bf16.mxu1 %v17159_v43  ;;  %v739_v42 = vld [vmem:[%s22382_s4 + $0x7e8] sm:$0xff]  ;;  %v17193_v43 = vunpack.c.h.s8.bf16 %v519_v34  ;;  %v17195_v45 = vunpack.c.l.s8.bf16 %v523_v41 }
 0x132   : > { %17736 = vmatprep.subr.bf16.mxu0 %v17735_v44  ;;  %v17769_v44 = vunpack.c.h.s8.bf16 %v735_v35  ;;  %v17771_v47 = vunpack.c.l.s8.bf16 %v739_v42  ;;  %v17775_v57 = vunpack.c.h.s8.bf16 %v739_v42  ;;  %v535_v35 = vld [vmem:[%s22382_s4 + $0x188] sm:$0xff] }
 0x133   : > { %v17227_v42 = vunpack.c.l.s8.bf16 %v535_v35 }
 0x134   : > { %17162 = vmatpush1.bf16.msra.mxu1 %v17161_v50  ;;  %v738_v50 = vld [vmem:[%s22382_s4 + $0x7e0] sm:$0xff] }
 0x135   : > { %17738 = vmatpush1.bf16.msra.mxu0 %v17737_v54  ;;  %17164 = vmatprep.subr.bf16.mxu1 %v17163_v55  ;;  %v17197_v54 = vunpack.c.l.s8.bf16 %v522_v48  ;;  %v17773_v55 = vunpack.c.l.s8.bf16 %v738_v50 }
 0x136   : > { %17740 = vmatprep.subr.bf16.mxu0 %v17739_v56  ;;  %v17199_v56 = vunpack.c.h.s8.bf16 %v523_v41 }
 0x137   : > { %8515 = vmatmul.mubr.f32.vlgmr.msra.gmra.mrb[0].mxu1 %v22439_v52 }
 0x138   : > { %9154 = vmatmul.mubr.f32.vlgmr.msra.gmra.mrb[0].mxu0 %v22442_v53  ;;  %17166 = vmatpush1.bf16.msra.mxu1 %v17165_v62  ;;  %v742_v62 = vld [vmem:[%s22382_s4 + $0x800] sm:$0xff] }
 0x139   : > { %17742 = vmatpush1.bf16.msra.mxu0 %v17741_v63  ;;  %17168 = vmatprep.subr.bf16.mxu1 %v17167_v0  ;;  %v17201_v63 = vunpack.c.h.s8.bf16 %v522_v48  ;;  %v17777_v0 = vunpack.c.h.s8.bf16 %v738_v50  ;;  %v17779_v2 = vunpack.c.l.s8.bf16 %v742_v62  ;;  %v17783_v10 = vunpack.c.h.s8.bf16 %v742_v62 }
 0x13a   : > { %17744 = vmatprep.subr.bf16.mxu0 %v17743_v1  ;;  %8585 = vmatprep.mubr.f32.mxu1 %v22490_v4  ;;  %v17203_v1 = vunpack.c.l.s8.bf16 %v526_v60 }
 0x13b   : > { %9224 = vmatprep.mubr.f32.mxu0 %v22494_v5 }
 0x13c   : > { %17170 = vmatpush1.bf16.msra.mxu1 %v17169_v6  ;;  %v741_v6 = vld [vmem:[%s22382_s4 + $0x7f8] sm:$0xff] }
 0x13d   : > { %17746 = vmatpush1.bf16.msra.mxu0 %v17745_v7  ;;  %17172 = vmatprep.subr.bf16.mxu1 %v17171_v8  ;;  %v17205_v7 = vunpack.c.l.s8.bf16 %v525_v3  ;;  %v17781_v8 = vunpack.c.l.s8.bf16 %v741_v6 }
 0x13e   : > { %17748 = vmatprep.subr.bf16.mxu0 %v17747_v9  ;;  %v17207_v9 = vunpack.c.h.s8.bf16 %v526_v60 }
 0x140   : > { %17174 = vmatpush1.bf16.msra.mxu1 %v17173_v12  ;;  %v745_v12 = vld [vmem:[%s22382_s4 + $0x818] sm:$0xff] }
 0x141   : > { %17750 = vmatpush1.bf16.msra.mxu0 %v17749_v13  ;;  %17176 = vmatprep.subr.bf16.mxu1 %v17175_v14  ;;  %v17209_v13 = vunpack.c.h.s8.bf16 %v525_v3  ;;  %v17785_v14 = vunpack.c.h.s8.bf16 %v741_v6  ;;  %v17787_v16 = vunpack.c.l.s8.bf16 %v745_v12  ;;  %v17791_v22 = vunpack.c.h.s8.bf16 %v745_v12  ;;  %v537_v3 = vld [vmem:[%s22382_s4 + $0x198] sm:$0xff] }
 0x142   : > { %17752 = vmatprep.subr.bf16.mxu0 %v17751_v15  ;;  %v17211_v15 = vunpack.c.l.s8.bf16 %v529_v11  ;;  %v753_v6 = vld [vmem:[%s22382_s4 + $0x858] sm:$0xff] }
 0x143   : > { %v757_v12 = vld [vmem:[%s22382_s4 + $0x878] sm:$0xff] }
 0x144   : > { %17178 = vmatpush1.bf16.msra.mxu1 %v17177_v18  ;;  %v744_v18 = vld [vmem:[%s22382_s4 + $0x810] sm:$0xff] }
 0x145   : > { %17754 = vmatpush1.bf16.msra.mxu0 %v17753_v19  ;;  %17180 = vmatprep.subr.bf16.mxu1 %v17179_v20  ;;  %v17213_v19 = vunpack.c.l.s8.bf16 %v528_v17  ;;  %v17789_v20 = vunpack.c.l.s8.bf16 %v744_v18 }
 0x146   : > { %17756 = vmatprep.subr.bf16.mxu0 %v17755_v21  ;;  %v17215_v21 = vunpack.c.h.s8.bf16 %v529_v11  ;;  %v541_v11 = vld [vmem:[%s22382_s4 + $0x1b8] sm:$0xff] }
 0x148   : > { %17182 = vmatpush1.bf16.msra.mxu1 %v17181_v24  ;;  %v748_v24 = vld [vmem:[%s22382_s4 + $0x830] sm:$0xff] }
 0x149   : > { %17758 = vmatpush1.bf16.msra.mxu0 %v17757_v25  ;;  %17184 = vmatprep.subr.bf16.mxu1 %v17183_v26  ;;  %v17217_v25 = vunpack.c.h.s8.bf16 %v528_v17  ;;  %v17793_v26 = vunpack.c.h.s8.bf16 %v744_v18  ;;  %v17795_v28 = vunpack.c.l.s8.bf16 %v748_v24  ;;  %v17799_v34 = vunpack.c.h.s8.bf16 %v748_v24  ;;  %v540_v17 = vld [vmem:[%s22382_s4 + $0x1b0] sm:$0xff] }
 0x14a   : > { %17760 = vmatprep.subr.bf16.mxu0 %v17759_v27  ;;  %v17219_v27 = vunpack.c.l.s8.bf16 %v532_v23  ;;  %v756_v18 = vld [vmem:[%s22382_s4 + $0x870] sm:$0xff] }
 0x14b   : > { %v760_v24 = vld [vmem:[%s22382_s4 + $0x890] sm:$0xff] }
 0x14c   : > { %17186 = vmatpush1.bf16.msra.mxu1 %v17185_v30  ;;  %v747_v30 = vld [vmem:[%s22382_s4 + $0x828] sm:$0xff] }
 0x14d   : > { %17762 = vmatpush1.bf16.msra.mxu0 %v17761_v31  ;;  %17188 = vmatprep.subr.bf16.mxu1 %v17187_v32  ;;  %v17221_v31 = vunpack.c.l.s8.bf16 %v531_v29  ;;  %v17797_v32 = vunpack.c.l.s8.bf16 %v747_v30  ;;  %v17801_v41 = vunpack.c.h.s8.bf16 %v747_v30  ;;  %v759_v30 = vld [vmem:[%s22382_s4 + $0x888] sm:$0xff] }
 0x14e   : > { %17764 = vmatprep.subr.bf16.mxu0 %v17763_v33  ;;  %v17223_v33 = vunpack.c.h.s8.bf16 %v532_v23  ;;  %v544_v23 = vld [vmem:[%s22382_s4 + $0x1d0] sm:$0xff] }
 0x150   : > { %17190 = vmatpush1.bf16.msra.mxu1 %v17189_v36  ;;  %v751_v36 = vld [vmem:[%s22382_s4 + $0x848] sm:$0xff] }
 0x151   : > { %17766 = vmatpush1.bf16.msra.mxu0 %v17765_v37  ;;  %17192 = vmatprep.subr.bf16.mxu1 %v17191_v38  ;;  %v8168_v37 = vcombine.high %v22475_v49, %v22475_v49  ;;  %v22531_v38 = vld [vmem:[%s22408_s17 + $0x8] sm:$0xff] }
 0x152   : > { %17768 = vmatprep.subr.bf16.mxu0 %v17767_v40  ;;  %v17225_v40 = vunpack.c.h.s8.bf16 %v531_v29  ;;  %v543_v29 = vld [vmem:[%s22382_s4 + $0x1c8] sm:$0xff] }
 0x153   : > { %v22540_v49 = vrot.slane %v8168_v37, %v22435_v51  ;;  %v17257_v37 = vunpack.c.h.s8.bf16 %v543_v29 }
 0x154   : > { %17194 = vmatpush1.bf16.msra.mxu1 %v17193_v43  ;;  %v17803_v43 = vunpack.c.l.s8.bf16 %v751_v36 }
 0x155   : > { %17770 = vmatpush1.bf16.msra.mxu0 %v17769_v44  ;;  %17196 = vmatprep.subr.bf16.mxu1 %v17195_v45  ;;  %v534_v44 = vld [vmem:[%s22382_s4 + $0x180] sm:$0xff]  ;;  %v22550_v62 = vcombine.high %v22540_v49, %v22540_v49 }
 0x156   : > { %17772 = vmatprep.subr.bf16.mxu0 %v17771_v47  ;;  %v750_v45 = vld [vmem:[%s22382_s4 + $0x840] sm:$0xff]  ;;  %v22537_v47 = vrot.slane %v22531_v38, %v22435_v51  ;;  %v17229_v48 = vunpack.c.l.s8.bf16 %v534_v44 }
 0x157   : > { %v17805_v50 = vunpack.c.l.s8.bf16 %v750_v45 }
 0x158   : > { %17198 = vmatpush1.bf16.msra.mxu1 %v17197_v54  ;;  %v17231_v54 = vunpack.c.h.s8.bf16 %v535_v35  ;;  %v22546_v60 = vcombine.high %v22537_v47, %v22537_v47  ;;  %v547_v35 = vld [vmem:[%s22382_s4 + $0x1e8] sm:$0xff] }
 0x159   : > { %17774 = vmatpush1.bf16.msra.mxu0 %v17773_v55  ;;  %17200 = vmatprep.subr.bf16.mxu1 %v17199_v56  ;;  %v17807_v55 = vunpack.c.h.s8.bf16 %v751_v36  ;;  %v538_v56 = vld [vmem:[%s22382_s4 + $0x1a0] sm:$0xff]  ;;  %v763_v36 = vld [vmem:[%s22382_s4 + $0x8a8] sm:$0xff] }
 0x15a   : > { %17776 = vmatprep.subr.bf16.mxu0 %v17775_v57  ;;  %v754_v57 = vld [vmem:[%s22382_s4 + $0x860] sm:$0xff] }
 0x15c   : > { %17202 = vmatpush1.bf16.msra.mxu1 %v17201_v63  ;;  %v17233_v63 = vunpack.c.h.s8.bf16 %v534_v44  ;;  %v762_v44 = vld [vmem:[%s22382_s4 + $0x8a0] sm:$0xff] }
 0x15d   : > { %17778 = vmatpush1.bf16.msra.mxu0 %v17777_v0  ;;  %17204 = vmatprep.subr.bf16.mxu1 %v17203_v1  ;;  %v17809_v0 = vunpack.c.h.s8.bf16 %v750_v45  ;;  %v17235_v1 = vunpack.c.l.s8.bf16 %v538_v56 }
 0x15e   : > { %17780 = vmatprep.subr.bf16.mxu0 %v17779_v2  ;;  %v17811_v2 = vunpack.c.l.s8.bf16 %v754_v57 }
 0x160   : > { %17206 = vmatpush1.bf16.msra.mxu1 %v17205_v7  ;;  %v17237_v7 = vunpack.c.l.s8.bf16 %v537_v3 }
 0x161   : > { %17782 = vmatpush1.bf16.msra.mxu0 %v17781_v8  ;;  %17208 = vmatprep.subr.bf16.mxu1 %v17207_v9  ;;  %v17813_v8 = vunpack.c.l.s8.bf16 %v753_v6  ;;  %v17239_v9 = vunpack.c.h.s8.bf16 %v538_v56  ;;  %v766_v56 = vld [vmem:[%s22382_s4 + $0x8c0] sm:$0xff] }
 0x162   : > { %17784 = vmatprep.subr.bf16.mxu0 %v17783_v10  ;;  %v17815_v10 = vunpack.c.h.s8.bf16 %v754_v57 }
 0x164   : > { %17210 = vmatpush1.bf16.msra.mxu1 %v17209_v13  ;;  %v17241_v13 = vunpack.c.h.s8.bf16 %v537_v3  ;;  %v765_v3 = vld [vmem:[%s22382_s4 + $0x8b8] sm:$0xff] }
 0x165   : > { %17786 = vmatpush1.bf16.msra.mxu0 %v17785_v14  ;;  %17212 = vmatprep.subr.bf16.mxu1 %v17211_v15  ;;  %v17817_v14 = vunpack.c.h.s8.bf16 %v753_v6  ;;  %v17243_v15 = vunpack.c.l.s8.bf16 %v541_v11 }
 0x166   : > { %17788 = vmatprep.subr.bf16.mxu0 %v17787_v16  ;;  %v17819_v16 = vunpack.c.l.s8.bf16 %v757_v12 }
 0x168   : > { %17214 = vmatpush1.bf16.msra.mxu1 %v17213_v19  ;;  %v17245_v19 = vunpack.c.l.s8.bf16 %v540_v17 }
 0x169   : > { %17790 = vmatpush1.bf16.msra.mxu0 %v17789_v20  ;;  %17216 = vmatprep.subr.bf16.mxu1 %v17215_v21  ;;  %v17821_v20 = vunpack.c.l.s8.bf16 %v756_v18  ;;  %v17247_v21 = vunpack.c.h.s8.bf16 %v541_v11  ;;  %v769_v11 = vld [vmem:[%s22382_s4 + $0x8d8] sm:$0xff] }
 0x16a   : > { %17792 = vmatprep.subr.bf16.mxu0 %v17791_v22  ;;  %v17823_v22 = vunpack.c.h.s8.bf16 %v757_v12 }
 0x16c   : > { %17218 = vmatpush1.bf16.msra.mxu1 %v17217_v25  ;;  %v17249_v25 = vunpack.c.h.s8.bf16 %v540_v17  ;;  %v768_v17 = vld [vmem:[%s22382_s4 + $0x8d0] sm:$0xff] }
 0x16d   : > { %17794 = vmatpush1.bf16.msra.mxu0 %v17793_v26  ;;  %17220 = vmatprep.subr.bf16.mxu1 %v17219_v27  ;;  %v17825_v26 = vunpack.c.h.s8.bf16 %v756_v18  ;;  %v17251_v27 = vunpack.c.l.s8.bf16 %v544_v23 }
 0x16e   : > { %17796 = vmatprep.subr.bf16.mxu0 %v17795_v28  ;;  %v17827_v28 = vunpack.c.l.s8.bf16 %v760_v24 }
 0x170   : > { %17222 = vmatpush1.bf16.msra.mxu1 %v17221_v31  ;;  %v17253_v31 = vunpack.c.l.s8.bf16 %v543_v29  ;;  %v771_v29 = vld [vmem:[%s22382_s4 + $0x8e8] sm:$0xff] }
 0x171   : > { %17798 = vmatpush1.bf16.msra.mxu0 %v17797_v32  ;;  %17224 = vmatprep.subr.bf16.mxu1 %v17223_v33  ;;  %v17829_v32 = vunpack.c.l.s8.bf16 %v759_v30  ;;  %v17255_v33 = vunpack.c.h.s8.bf16 %v544_v23  ;;  %v772_v23 = vld [vmem:[%s22382_s4 + $0x8f0] sm:$0xff] }
 0x172   : > { %17800 = vmatprep.subr.bf16.mxu0 %v17799_v34  ;;  %v17831_v34 = vunpack.c.h.s8.bf16 %v760_v24 }
 0x174   : > { %17226 = vmatpush1.bf16.msra.mxu1 %v17225_v40  ;;  %v17833_v40 = vunpack.c.h.s8.bf16 %v759_v30 }
 0x175   : > { %17802 = vmatpush1.bf16.msra.mxu0 %v17801_v41  ;;  %17228 = vmatprep.subr.bf16.mxu1 %v17227_v42  ;;  %v17259_v41 = vunpack.c.l.s8.bf16 %v547_v35  ;;  %v17835_v42 = vunpack.c.l.s8.bf16 %v763_v36 }
 0x176   : > { %17804 = vmatprep.subr.bf16.mxu0 %v17803_v43  ;;  %v546_v43 = vld [vmem:[%s22382_s4 + $0x1e0] sm:$0xff] }
 0x177   : > { %8586 = vmatmul.mubr.f32.vlgmr.msra.gmra.mrb[0].mxu1 %v22480_v61  ;;  %v17261_v45 = vunpack.c.l.s8.bf16 %v546_v43  ;;  %v17265_v57 = vunpack.c.h.s8.bf16 %v546_v43 }
 0x178   : > { %9225 = vmatmul.mubr.f32.vlgmr.msra.gmra.mrb[0].mxu0 %v22484_v46  ;;  %17230 = vmatpush1.bf16.msra.mxu1 %v17229_v48  ;;  %v17837_v48 = vunpack.c.l.s8.bf16 %v762_v44 }
 0x179   : > { %17806 = vmatpush1.bf16.msra.mxu0 %v17805_v50  ;;  %17232 = vmatprep.subr.bf16.mxu1 %v17231_v54  ;;  %v17263_v50 = vunpack.c.h.s8.bf16 %v547_v35  ;;  %v17839_v54 = vunpack.c.h.s8.bf16 %v763_v36  ;;  %v775_v35 = vld [vmem:[%s22382_s4 + $0x908] sm:$0xff]  ;;  %v8100_v36 = vcombine.high %v22531_v38, %v22531_v38 }
 0x17a   : > { %17808 = vmatprep.subr.bf16.mxu0 %v17807_v55  ;;  %8656 = vmatprep.mubr.f32.mxu1 %v22546_v60  ;;  %v550_v55 = vld [vmem:[%s22382_s4 + $0x200] sm:$0xff]  ;;  %v17867_v43 = vunpack.c.l.s8.bf16 %v775_v35 }
 0x17b   : > { %9295 = vmatprep.mubr.f32.mxu0 %v22550_v62 }
 0x17c   : > { %17234 = vmatpush1.bf16.msra.mxu1 %v17233_v63  ;;  %v17841_v63 = vunpack.c.h.s8.bf16 %v762_v44  ;;  %v558_v44 = vld [vmem:[%s22382_s4 + $0x240] sm:$0xff] }
 0x17d   : > { %17810 = vmatpush1.bf16.msra.mxu0 %v17809_v0  ;;  %17236 = vmatprep.subr.bf16.mxu1 %v17235_v1  ;;  %v17267_v0 = vunpack.c.l.s8.bf16 %v550_v55  ;;  %v17843_v1 = vunpack.c.l.s8.bf16 %v766_v56 }
 0x17e   : > { %17812 = vmatprep.subr.bf16.mxu0 %v17811_v2  ;;  %v549_v2 = vld [vmem:[%s22382_s4 + $0x1f8] sm:$0xff] }
 0x17f   : > { %v17269_v6 = vunpack.c.l.s8.bf16 %v549_v2  ;;  %v17273_v12 = vunpack.c.h.s8.bf16 %v549_v2  ;;  %v17297_v2 = vunpack.c.h.s8.bf16 %v558_v44 }
 0x180   : > { %17238 = vmatpush1.bf16.msra.mxu1 %v17237_v7  ;;  %v17845_v7 = vunpack.c.l.s8.bf16 %v765_v3 }
 0x181   : > { %17814 = vmatpush1.bf16.msra.mxu0 %v17813_v8  ;;  %17240 = vmatprep.subr.bf16.mxu1 %v17239_v9  ;;  %v17271_v8 = vunpack.c.h.s8.bf16 %v550_v55  ;;  %v17847_v9 = vunpack.c.h.s8.bf16 %v766_v56  ;;  %v17871_v56 = vunpack.c.h.s8.bf16 %v775_v35 }
 0x182   : > { %17816 = vmatprep.subr.bf16.mxu0 %v17815_v10  ;;  %v553_v10 = vld [vmem:[%s22382_s4 + $0x218] sm:$0xff] }
 0x184   : > { %17242 = vmatpush1.bf16.msra.mxu1 %v17241_v13  ;;  %v17849_v13 = vunpack.c.h.s8.bf16 %v765_v3 }
 0x185   : > { %17818 = vmatpush1.bf16.msra.mxu0 %v17817_v14  ;;  %17244 = vmatprep.subr.bf16.mxu1 %v17243_v15  ;;  %v17275_v14 = vunpack.c.l.s8.bf16 %v553_v10  ;;  %v17851_v15 = vunpack.c.l.s8.bf16 %v769_v11 }
 0x186   : > { %17820 = vmatprep.subr.bf16.mxu0 %v17819_v16  ;;  %v552_v16 = vld [vmem:[%s22382_s4 + $0x210] sm:$0xff] }
 0x187   : > { %v17277_v18 = vunpack.c.l.s8.bf16 %v552_v16  ;;  %v17281_v24 = vunpack.c.h.s8.bf16 %v552_v16 }
 0x188   : > { %17246 = vmatpush1.bf16.msra.mxu1 %v17245_v19  ;;  %v17853_v19 = vunpack.c.l.s8.bf16 %v768_v17 }
 0x189   : > { %17822 = vmatpush1.bf16.msra.mxu0 %v17821_v20  ;;  %17248 = vmatprep.subr.bf16.mxu1 %v17247_v21  ;;  %v17279_v20 = vunpack.c.h.s8.bf16 %v553_v10  ;;  %v17855_v21 = vunpack.c.h.s8.bf16 %v769_v11 }
 0x18a   : > { %17824 = vmatprep.subr.bf16.mxu0 %v17823_v22  ;;  %v556_v22 = vld [vmem:[%s22382_s4 + $0x230] sm:$0xff] }
 0x18c   : > { %17250 = vmatpush1.bf16.msra.mxu1 %v17249_v25  ;;  %v17857_v25 = vunpack.c.h.s8.bf16 %v768_v17 }
 0x18d   : > { %17826 = vmatpush1.bf16.msra.mxu0 %v17825_v26  ;;  %17252 = vmatprep.subr.bf16.mxu1 %v17251_v27  ;;  %v17283_v26 = vunpack.c.l.s8.bf16 %v556_v22  ;;  %v17859_v27 = vunpack.c.l.s8.bf16 %v772_v23 }
 0x18e   : > { %17828 = vmatprep.subr.bf16.mxu0 %v17827_v28  ;;  %v555_v28 = vld [vmem:[%s22382_s4 + $0x228] sm:$0xff] }
 0x18f   : > { %v17285_v30 = vunpack.c.l.s8.bf16 %v555_v28 }
 0x190   : > { %17254 = vmatpush1.bf16.msra.mxu1 %v17253_v31  ;;  %v17861_v31 = vunpack.c.l.s8.bf16 %v771_v29 }
 0x191   : > { %17830 = vmatpush1.bf16.msra.mxu0 %v17829_v32  ;;  %17256 = vmatprep.subr.bf16.mxu1 %v17255_v33  ;;  %v17287_v32 = vunpack.c.h.s8.bf16 %v556_v22  ;;  %v17863_v33 = vunpack.c.h.s8.bf16 %v772_v23 }
 0x192   : > { %17832 = vmatprep.subr.bf16.mxu0 %v17831_v34  ;;  %v559_v34 = vld [vmem:[%s22382_s4 + $0x248] sm:$0xff] }
 0x193   : > { %v17295_v55 = vunpack.c.h.s8.bf16 %v559_v34 }
 0x194   : > { %17258 = vmatpush1.bf16.msra.mxu1 %v17257_v37  ;;  %v22587_v37 = vld [vmem:[%s22408_s17 + $0x30] sm:$0xff] }
 0x195   : > { %17834 = vmatpush1.bf16.msra.mxu0 %v17833_v40  ;;  %17260 = vmatprep.subr.bf16.mxu1 %v17259_v41  ;;  %v17289_v40 = vunpack.c.h.s8.bf16 %v555_v28  ;;  %v17865_v41 = vunpack.c.h.s8.bf16 %v771_v29  ;;  %v22596_v38 = vrot.slane %v22587_v37, %v22435_v51 }
 0x196   : > { %17836 = vmatprep.subr.bf16.mxu0 %v17835_v42  ;;  %v17291_v42 = vunpack.c.l.s8.bf16 %v559_v34 }
 0x198   : > { %17262 = vmatpush1.bf16.msra.mxu1 %v17261_v45  ;;  %v774_v45 = vld [vmem:[%s22382_s4 + $0x900] sm:$0xff] }
 0x199   : > { %17838 = vmatpush1.bf16.msra.mxu0 %v17837_v48  ;;  %17264 = vmatprep.subr.bf16.mxu1 %v17263_v50  ;;  %v22592_v48 = vrot.slane %v8100_v36, %v22435_v51  ;;  %v17293_v50 = vunpack.c.l.s8.bf16 %v558_v44  ;;  %v17873_v3 = vunpack.c.h.s8.bf16 %v774_v45 }
 0x19a   : > { %17840 = vmatprep.subr.bf16.mxu0 %v17839_v54  ;;  %v17869_v54 = vunpack.c.l.s8.bf16 %v774_v45 }
 0x19c   : > { %17266 = vmatpush1.bf16.msra.mxu1 %v17265_v57  ;;  %v562_v57 = vld [vmem:[%s22382_s4 + $0x260] sm:$0xff] }
 0x19d   : > { %17842 = vmatpush1.bf16.msra.mxu0 %v17841_v63  ;;  %17268 = vmatprep.subr.bf16.mxu1 %v17267_v0  ;;  %v778_v63 = vld [vmem:[%s22382_s4 + $0x920] sm:$0xff]  ;;  %v22602_v0 = vcombine.high %v22592_v48, %v22592_v48 }
 0x19e   : > { %17844 = vmatprep.subr.bf16.mxu0 %v17843_v1  ;;  %v22606_v1 = vcombine.high %v22596_v38, %v22596_v38 }
 0x1a0   : > { %17270 = vmatpush1.bf16.msra.mxu1 %v17269_v6  ;;  %v17299_v6 = vunpack.c.l.s8.bf16 %v562_v57 }
 0x1a1   : > { %17846 = vmatpush1.bf16.msra.mxu0 %v17845_v7  ;;  %17272 = vmatprep.subr.bf16.mxu1 %v17271_v8  ;;  %v17875_v7 = vunpack.c.l.s8.bf16 %v778_v63  ;;  %v561_v8 = vld [vmem:[%s22382_s4 + $0x258] sm:$0xff] }
 0x1a2   : > { %17848 = vmatprep.subr.bf16.mxu0 %v17847_v9  ;;  %v777_v9 = vld [vmem:[%s22382_s4 + $0x918] sm:$0xff]  ;;  %v17301_v10 = vunpack.c.l.s8.bf16 %v561_v8  ;;  %v17305_v16 = vunpack.c.h.s8.bf16 %v561_v8 }
 0x1a3   : > { %v17877_v11 = vunpack.c.l.s8.bf16 %v777_v9  ;;  %v17881_v17 = vunpack.c.h.s8.bf16 %v777_v9 }
 0x1a4   : > { %17274 = vmatpush1.bf16.msra.mxu1 %v17273_v12  ;;  %v17303_v12 = vunpack.c.h.s8.bf16 %v562_v57 }
 0x1a5   : > { %17850 = vmatpush1.bf16.msra.mxu0 %v17849_v13  ;;  %17276 = vmatprep.subr.bf16.mxu1 %v17275_v14  ;;  %v17879_v13 = vunpack.c.h.s8.bf16 %v778_v63  ;;  %v565_v14 = vld [vmem:[%s22382_s4 + $0x278] sm:$0xff] }
 0x1a6   : > { %17852 = vmatprep.subr.bf16.mxu0 %v17851_v15  ;;  %v781_v15 = vld [vmem:[%s22382_s4 + $0x938] sm:$0xff] }
 0x1a8   : > { %17278 = vmatpush1.bf16.msra.mxu1 %v17277_v18  ;;  %v17307_v18 = vunpack.c.l.s8.bf16 %v565_v14 }
 0x1a9   : > { %17854 = vmatpush1.bf16.msra.mxu0 %v17853_v19  ;;  %17280 = vmatprep.subr.bf16.mxu1 %v17279_v20  ;;  %v17883_v19 = vunpack.c.l.s8.bf16 %v781_v15  ;;  %v564_v20 = vld [vmem:[%s22382_s4 + $0x270] sm:$0xff] }
 0x1aa   : > { %17856 = vmatprep.subr.bf16.mxu0 %v17855_v21  ;;  %v780_v21 = vld [vmem:[%s22382_s4 + $0x930] sm:$0xff]  ;;  %v17309_v22 = vunpack.c.l.s8.bf16 %v564_v20  ;;  %v17313_v28 = vunpack.c.h.s8.bf16 %v564_v20 }
 0x1ab   : > { %v17885_v23 = vunpack.c.l.s8.bf16 %v780_v21  ;;  %v17889_v29 = vunpack.c.h.s8.bf16 %v780_v21 }
 0x1ac   : > { %17282 = vmatpush1.bf16.msra.mxu1 %v17281_v24  ;;  %v17311_v24 = vunpack.c.h.s8.bf16 %v565_v14 }
 0x1ad   : > { %17858 = vmatpush1.bf16.msra.mxu0 %v17857_v25  ;;  %17284 = vmatprep.subr.bf16.mxu1 %v17283_v26  ;;  %v17887_v25 = vunpack.c.h.s8.bf16 %v781_v15  ;;  %v568_v26 = vld [vmem:[%s22382_s4 + $0x290] sm:$0xff] }
 0x1ae   : > { %17860 = vmatprep.subr.bf16.mxu0 %v17859_v27  ;;  %v784_v27 = vld [vmem:[%s22382_s4 + $0x950] sm:$0xff]  ;;  %v17319_v36 = vunpack.c.h.s8.bf16 %v568_v26 }
 0x1b0   : > { %17286 = vmatpush1.bf16.msra.mxu1 %v17285_v30  ;;  %v17315_v30 = vunpack.c.l.s8.bf16 %v568_v26 }
 0x1b1   : > { %17862 = vmatpush1.bf16.msra.mxu0 %v17861_v31  ;;  %17288 = vmatprep.subr.bf16.mxu1 %v17287_v32  ;;  %v17891_v31 = vunpack.c.l.s8.bf16 %v784_v27  ;;  %v567_v32 = vld [vmem:[%s22382_s4 + $0x288] sm:$0xff] }
 0x1b2   : > { %17864 = vmatprep.subr.bf16.mxu0 %v17863_v33  ;;  %v783_v33 = vld [vmem:[%s22382_s4 + $0x948] sm:$0xff]  ;;  %v17317_v34 = vunpack.c.l.s8.bf16 %v567_v32 }
 0x1b3   : > { %v17893_v35 = vunpack.c.l.s8.bf16 %v783_v33  ;;  %v17897_v44 = vunpack.c.h.s8.bf16 %v783_v33 }
 0x1b4   : > { %17290 = vmatpush1.bf16.msra.mxu1 %v17289_v40  ;;  %v17895_v40 = vunpack.c.h.s8.bf16 %v784_v27 }
 0x1b5   : > { %17866 = vmatpush1.bf16.msra.mxu0 %v17865_v41  ;;  %17292 = vmatprep.subr.bf16.mxu1 %v17291_v42  ;;  %v571_v41 = vld [vmem:[%s22382_s4 + $0x2a8] sm:$0xff] }
 0x1b6   : > { %17868 = vmatprep.subr.bf16.mxu0 %v17867_v43  ;;  %v787_v42 = vld [vmem:[%s22382_s4 + $0x968] sm:$0xff]  ;;  %v17321_v43 = vunpack.c.h.s8.bf16 %v567_v32  ;;  %v17323_v45 = vunpack.c.l.s8.bf16 %v571_v41  ;;  %v17327_v63 = vunpack.c.h.s8.bf16 %v571_v41 }
 0x1b7   : > { %8657 = vmatmul.mubr.f32.vlgmr.msra.gmra.mrb[0].mxu1 %v22537_v47 }
 0x1b8   : > { %9296 = vmatmul.mubr.f32.vlgmr.msra.gmra.mrb[0].mxu0 %v22540_v49  ;;  %17294 = vmatpush1.bf16.msra.mxu1 %v17293_v50  ;;  %v17899_v50 = vunpack.c.l.s8.bf16 %v787_v42 }
 0x1b9   : > { %17870 = vmatpush1.bf16.msra.mxu0 %v17869_v54  ;;  %17296 = vmatprep.subr.bf16.mxu1 %v17295_v55  ;;  %v570_v54 = vld [vmem:[%s22382_s4 + $0x2a0] sm:$0xff] }
 0x1ba   : > { %17872 = vmatprep.subr.bf16.mxu0 %v17871_v56  ;;  %8727 = vmatprep.mubr.f32.mxu1 %v22602_v0  ;;  %v786_v55 = vld [vmem:[%s22382_s4 + $0x960] sm:$0xff]  ;;  %v17325_v56 = vunpack.c.l.s8.bf16 %v570_v54 }
 0x1bb   : > { %9366 = vmatprep.mubr.f32.mxu0 %v22606_v1  ;;  %v17901_v57 = vunpack.c.l.s8.bf16 %v786_v55  ;;  %v17905_v8 = vunpack.c.h.s8.bf16 %v786_v55 }
 0x1bc   : > { %17298 = vmatpush1.bf16.msra.mxu1 %v17297_v2  ;;  %v17903_v2 = vunpack.c.h.s8.bf16 %v787_v42 }
 0x1bd   : > { %17874 = vmatpush1.bf16.msra.mxu0 %v17873_v3  ;;  %17300 = vmatprep.subr.bf16.mxu1 %v17299_v6  ;;  %v574_v3 = vld [vmem:[%s22382_s4 + $0x2c0] sm:$0xff] }
 0x1be   : > { %17876 = vmatprep.subr.bf16.mxu0 %v17875_v7  ;;  %v790_v6 = vld [vmem:[%s22382_s4 + $0x980] sm:$0xff]  ;;  %v17329_v7 = vunpack.c.h.s8.bf16 %v570_v54  ;;  %v17331_v9 = vunpack.c.l.s8.bf16 %v574_v3  ;;  %v17335_v15 = vunpack.c.h.s8.bf16 %v574_v3 }
 0x1bf   : > { %v22643_v54 = vld [vmem:[%s22408_s17 + $0x10] sm:$0xff] }
 0x1c0   : > { %17302 = vmatpush1.bf16.msra.mxu1 %v17301_v10  ;;  %v17907_v10 = vunpack.c.l.s8.bf16 %v790_v6  ;;  %v798_v3 = vld [vmem:[%s22382_s4 + $0x9c0] sm:$0xff] }
 0x1c1   : > { %17878 = vmatpush1.bf16.msra.mxu0 %v17877_v11  ;;  %17304 = vmatprep.subr.bf16.mxu1 %v17303_v12  ;;  %v573_v11 = vld [vmem:[%s22382_s4 + $0x2b8] sm:$0xff] }
 0x1c2   : > { %17880 = vmatprep.subr.bf16.mxu0 %v17879_v13  ;;  %v789_v12 = vld [vmem:[%s22382_s4 + $0x978] sm:$0xff]  ;;  %v17333_v13 = vunpack.c.l.s8.bf16 %v573_v11 }
 0x1c3   : > { %v17909_v14 = vunpack.c.l.s8.bf16 %v789_v12  ;;  %v17913_v20 = vunpack.c.h.s8.bf16 %v789_v12  ;;  %v802_v12 = vld [vmem:[%s22382_s4 + $0x9e0] sm:$0xff] }
 0x1c4   : > { %17306 = vmatpush1.bf16.msra.mxu1 %v17305_v16  ;;  %v17911_v16 = vunpack.c.h.s8.bf16 %v790_v6  ;;  %v22649_v6 = vrot.slane %v22643_v54, %v22435_v51 }
 0x1c5   : > { %17882 = vmatpush1.bf16.msra.mxu0 %v17881_v17  ;;  %17308 = vmatprep.subr.bf16.mxu1 %v17307_v18  ;;  %v577_v17 = vld [vmem:[%s22382_s4 + $0x2d8] sm:$0xff] }
 0x1c6   : > { %17884 = vmatprep.subr.bf16.mxu0 %v17883_v19  ;;  %v793_v18 = vld [vmem:[%s22382_s4 + $0x998] sm:$0xff]  ;;  %v17337_v19 = vunpack.c.h.s8.bf16 %v573_v11  ;;  %v17339_v21 = vunpack.c.l.s8.bf16 %v577_v17  ;;  %v17343_v27 = vunpack.c.h.s8.bf16 %v577_v17  ;;  %v586_v11 = vld [vmem:[%s22382_s4 + $0x320] sm:$0xff] }
 0x1c7   : > { %v17363_v17 = vunpack.c.l.s8.bf16 %v586_v11 }
 0x1c8   : > { %17310 = vmatpush1.bf16.msra.mxu1 %v17309_v22  ;;  %v17915_v22 = vunpack.c.l.s8.bf16 %v793_v18 }
 0x1c9   : > { %17886 = vmatpush1.bf16.msra.mxu0 %v17885_v23  ;;  %17312 = vmatprep.subr.bf16.mxu1 %v17311_v24  ;;  %v576_v23 = vld [vmem:[%s22382_s4 + $0x2d0] sm:$0xff] }
 0x1ca   : > { %17888 = vmatprep.subr.bf16.mxu0 %v17887_v25  ;;  %v792_v24 = vld [vmem:[%s22382_s4 + $0x990] sm:$0xff]  ;;  %v17341_v25 = vunpack.c.l.s8.bf16 %v576_v23 }
 0x1cb   : > { %v17917_v26 = vunpack.c.l.s8.bf16 %v792_v24  ;;  %v17921_v32 = vunpack.c.h.s8.bf16 %v792_v24  ;;  %v17943_v24 = vunpack.c.h.s8.bf16 %v802_v12 }
 0x1cc   : > { %17314 = vmatpush1.bf16.msra.mxu1 %v17313_v28  ;;  %v17919_v28 = vunpack.c.h.s8.bf16 %v793_v18  ;;  %v17939_v18 = vunpack.c.l.s8.bf16 %v802_v12  ;;  %v594_v12 = vld [vmem:[%s22382_s4 + $0x360] sm:$0xff] }
 0x1cd   : > { %17890 = vmatpush1.bf16.msra.mxu0 %v17889_v29  ;;  %17316 = vmatprep.subr.bf16.mxu1 %v17315_v30  ;;  %v580_v29 = vld [vmem:[%s22382_s4 + $0x2f0] sm:$0xff] }
 0x1ce   : > { %17892 = vmatprep.subr.bf16.mxu0 %v17891_v31  ;;  %v796_v30 = vld [vmem:[%s22382_s4 + $0x9b0] sm:$0xff]  ;;  %v17345_v31 = vunpack.c.h.s8.bf16 %v576_v23  ;;  %v17347_v33 = vunpack.c.l.s8.bf16 %v580_v29  ;;  %v17351_v42 = vunpack.c.h.s8.bf16 %v580_v29  ;;  %v17367_v23 = vunpack.c.h.s8.bf16 %v586_v11 }
 0x1d0   : > { %17318 = vmatpush1.bf16.msra.mxu1 %v17317_v34  ;;  %v17923_v34 = vunpack.c.l.s8.bf16 %v796_v30 }
 0x1d1   : > { %17894 = vmatpush1.bf16.msra.mxu0 %v17893_v35  ;;  %17320 = vmatprep.subr.bf16.mxu1 %v17319_v36  ;;  %v579_v35 = vld [vmem:[%s22382_s4 + $0x2e8] sm:$0xff] }
 0x1d2   : > { %17896 = vmatprep.subr.bf16.mxu0 %v17895_v40  ;;  %v795_v36 = vld [vmem:[%s22382_s4 + $0x9a8] sm:$0xff]  ;;  %v17349_v40 = vunpack.c.l.s8.bf16 %v579_v35  ;;  %v17353_v55 = vunpack.c.h.s8.bf16 %v579_v35 }
 0x1d3   : > { %v17925_v41 = vunpack.c.l.s8.bf16 %v795_v36 }
 0x1d4   : > { %17322 = vmatpush1.bf16.msra.mxu1 %v17321_v43  ;;  %v17927_v43 = vunpack.c.h.s8.bf16 %v796_v30 }
 0x1d5   : > { %17898 = vmatpush1.bf16.msra.mxu0 %v17897_v44  ;;  %17324 = vmatprep.subr.bf16.mxu1 %v17323_v45  ;;  %v583_v44 = vld [vmem:[%s22382_s4 + $0x308] sm:$0xff] }
 0x1d6   : > { %17900 = vmatprep.subr.bf16.mxu0 %v17899_v50  ;;  %v799_v45 = vld [vmem:[%s22382_s4 + $0x9c8] sm:$0xff]  ;;  %v8185_v50 = vcombine.high %v22587_v37, %v22587_v37 }
 0x1d8   : > { %17326 = vmatpush1.bf16.msra.mxu1 %v17325_v56  ;;  %v17929_v56 = vunpack.c.h.s8.bf16 %v795_v36  ;;  %v22652_v37 = vrot.slane %v8185_v50, %v22435_v51  ;;  %v591_v50 = vld [vmem:[%s22382_s4 + $0x348] sm:$0xff] }
 0x1d9   : > { %17902 = vmatpush1.bf16.msra.mxu0 %v17901_v57  ;;  %17328 = vmatprep.subr.bf16.mxu1 %v17327_v63  ;;  %v17355_v57 = vunpack.c.l.s8.bf16 %v583_v44  ;;  %v17931_v63 = vunpack.c.l.s8.bf16 %v799_v45 }
 0x1da   : > { %17904 = vmatprep.subr.bf16.mxu0 %v17903_v2  ;;  %v582_v2 = vld [vmem:[%s22382_s4 + $0x300] sm:$0xff] }
 0x1dc   : > { %17330 = vmatpush1.bf16.msra.mxu1 %v17329_v7  ;;  %v17357_v7 = vunpack.c.l.s8.bf16 %v582_v2 }
 0x1dd   : > { %17906 = vmatpush1.bf16.msra.mxu0 %v17905_v8  ;;  %17332 = vmatprep.subr.bf16.mxu1 %v17331_v9  ;;  %v17933_v8 = vunpack.c.l.s8.bf16 %v798_v3  ;;  %v17359_v9 = vunpack.c.h.s8.bf16 %v583_v44 }
 0x1de   : > { %17908 = vmatprep.subr.bf16.mxu0 %v17907_v10  ;;  %v17935_v10 = vunpack.c.h.s8.bf16 %v799_v45 }
 0x1e0   : > { %17334 = vmatpush1.bf16.msra.mxu1 %v17333_v13  ;;  %v22658_v13 = vcombine.high %v22649_v6, %v22649_v6 }
 0x1e1   : > { %17910 = vmatpush1.bf16.msra.mxu0 %v17909_v14  ;;  %17336 = vmatprep.subr.bf16.mxu1 %v17335_v15  ;;  %v22662_v14 = vcombine.high %v22652_v37, %v22652_v37  ;;  %v17361_v15 = vunpack.c.h.s8.bf16 %v582_v2 }
 0x1e2   : > { %17912 = vmatprep.subr.bf16.mxu0 %v17911_v16  ;;  %v17937_v16 = vunpack.c.h.s8.bf16 %v798_v3  ;;  %v595_v3 = vld [vmem:[%s22382_s4 + $0x368] sm:$0xff] }
 0x1e4   : > { %17338 = vmatpush1.bf16.msra.mxu1 %v17337_v19  ;;  %v585_v19 = vld [vmem:[%s22382_s4 + $0x318] sm:$0xff] }
 0x1e5   : > { %17914 = vmatpush1.bf16.msra.mxu0 %v17913_v20  ;;  %17340 = vmatprep.subr.bf16.mxu1 %v17339_v21  ;;  %v801_v20 = vld [vmem:[%s22382_s4 + $0x9d8] sm:$0xff]  ;;  %v17365_v21 = vunpack.c.l.s8.bf16 %v585_v19 }
 0x1e6   : > { %17916 = vmatprep.subr.bf16.mxu0 %v17915_v22  ;;  %v17941_v22 = vunpack.c.l.s8.bf16 %v801_v20 }
 0x1e8   : > { %17342 = vmatpush1.bf16.msra.mxu1 %v17341_v25  ;;  %v589_v25 = vld [vmem:[%s22382_s4 + $0x338] sm:$0xff] }
 0x1e9   : > { %17918 = vmatpush1.bf16.msra.mxu0 %v17917_v26  ;;  %17344 = vmatprep.subr.bf16.mxu1 %v17343_v27  ;;  %v805_v26 = vld [vmem:[%s22382_s4 + $0x9f8] sm:$0xff]  ;;  %v17369_v27 = vunpack.c.h.s8.bf16 %v585_v19  ;;  %v17371_v29 = vunpack.c.l.s8.bf16 %v589_v25  ;;  %v17375_v35 = vunpack.c.h.s8.bf16 %v589_v25 }
 0x1ea   : > { %17920 = vmatprep.subr.bf16.mxu0 %v17919_v28  ;;  %v17945_v28 = vunpack.c.h.s8.bf16 %v801_v20  ;;  %v17947_v30 = vunpack.c.l.s8.bf16 %v805_v26  ;;  %v17951_v36 = vunpack.c.h.s8.bf16 %v805_v26  ;;  %v598_v20 = vld [vmem:[%s22382_s4 + $0x380] sm:$0xff]  ;;  %v597_v26 = vld [vmem:[%s22382_s4 + $0x378] sm:$0xff] }
 0x1ec   : > { %17346 = vmatpush1.bf16.msra.mxu1 %v17345_v31  ;;  %v588_v31 = vld [vmem:[%s22382_s4 + $0x330] sm:$0xff] }
 0x1ed   : > { %17922 = vmatpush1.bf16.msra.mxu0 %v17921_v32  ;;  %17348 = vmatprep.subr.bf16.mxu1 %v17347_v33  ;;  %v804_v32 = vld [vmem:[%s22382_s4 + $0x9f0] sm:$0xff]  ;;  %v17373_v33 = vunpack.c.l.s8.bf16 %v588_v31 }
 0x1ee   : > { %17924 = vmatprep.subr.bf16.mxu0 %v17923_v34  ;;  %v17949_v34 = vunpack.c.l.s8.bf16 %v804_v32 }
 0x1f0   : > { %17350 = vmatpush1.bf16.msra.mxu1 %v17349_v40  ;;  %v592_v40 = vld [vmem:[%s22382_s4 + $0x350] sm:$0xff] }
 0x1f1   : > { %17926 = vmatpush1.bf16.msra.mxu0 %v17925_v41  ;;  %17352 = vmatprep.subr.bf16.mxu1 %v17351_v42  ;;  %v808_v41 = vld [vmem:[%s22382_s4 + $0xa10] sm:$0xff]  ;;  %v17377_v42 = vunpack.c.h.s8.bf16 %v588_v31  ;;  %v17379_v44 = vunpack.c.l.s8.bf16 %v592_v40 }
 0x1f2   : > { %17928 = vmatprep.subr.bf16.mxu0 %v17927_v43  ;;  %v17953_v43 = vunpack.c.h.s8.bf16 %v804_v32  ;;  %v17955_v45 = vunpack.c.l.s8.bf16 %v808_v41  ;;  %v17959_v2 = vunpack.c.h.s8.bf16 %v808_v41  ;;  %v601_v32 = vld [vmem:[%s22382_s4 + $0x398] sm:$0xff]  ;;  %v600_v41 = vld [vmem:[%s22382_s4 + $0x390] sm:$0xff] }
 0x1f4   : > { %17354 = vmatpush1.bf16.msra.mxu1 %v17353_v55  ;;  %v807_v55 = vld [vmem:[%s22382_s4 + $0xa08] sm:$0xff] }
 0x1f5   : > { %17930 = vmatpush1.bf16.msra.mxu0 %v17929_v56  ;;  %17356 = vmatprep.subr.bf16.mxu1 %v17355_v57  ;;  %v17381_v56 = vunpack.c.l.s8.bf16 %v591_v50  ;;  %v17957_v57 = vunpack.c.l.s8.bf16 %v807_v55 }
 0x1f6   : > { %17932 = vmatprep.subr.bf16.mxu0 %v17931_v63  ;;  %v17383_v63 = vunpack.c.h.s8.bf16 %v592_v40 }
 0x1f7   : > { %8728 = vmatmul.mubr.f32.vlgmr.msra.gmra.mrb[0].mxu1 %v22592_v48 }
 0x1f8   : > { %9367 = vmatmul.mubr.f32.vlgmr.msra.gmra.mrb[0].mxu0 %v22596_v38  ;;  %17358 = vmatpush1.bf16.msra.mxu1 %v17357_v7  ;;  %v811_v7 = vld [vmem:[%s22382_s4 + $0xa28] sm:$0xff] }
 0x1f9   : > { %17934 = vmatpush1.bf16.msra.mxu0 %v17933_v8  ;;  %17360 = vmatprep.subr.bf16.mxu1 %v17359_v9  ;;  %v17385_v8 = vunpack.c.h.s8.bf16 %v591_v50  ;;  %v17961_v9 = vunpack.c.h.s8.bf16 %v807_v55  ;;  %v17963_v11 = vunpack.c.l.s8.bf16 %v811_v7  ;;  %v17967_v19 = vunpack.c.h.s8.bf16 %v811_v7  ;;  %v604_v55 = vld [vmem:[%s22382_s4 + $0x3b0] sm:$0xff]  ;;  %v603_v7 = vld [vmem:[%s22382_s4 + $0x3a8] sm:$0xff] }
 0x1fa   : > { %17936 = vmatprep.subr.bf16.mxu0 %v17935_v10  ;;  %8798 = vmatprep.mubr.f32.mxu1 %v22658_v13  ;;  %v17387_v10 = vunpack.c.l.s8.bf16 %v595_v3 }
 0x1fb   : > { %9437 = vmatprep.mubr.f32.mxu0 %v22662_v14 }
 0x1fc   : > { %17362 = vmatpush1.bf16.msra.mxu1 %v17361_v15  ;;  %v810_v15 = vld [vmem:[%s22382_s4 + $0xa20] sm:$0xff] }
 0x1fd   : > { %17938 = vmatpush1.bf16.msra.mxu0 %v17937_v16  ;;  %17364 = vmatprep.subr.bf16.mxu1 %v17363_v17  ;;  %v17389_v16 = vunpack.c.l.s8.bf16 %v594_v12  ;;  %v17965_v17 = vunpack.c.l.s8.bf16 %v810_v15 }
 0x1fe   : > { %17940 = vmatprep.subr.bf16.mxu0 %v17939_v18  ;;  %v17391_v18 = vunpack.c.h.s8.bf16 %v595_v3 }
 0x200   : > { %17366 = vmatpush1.bf16.msra.mxu1 %v17365_v21  ;;  %v814_v21 = vld [vmem:[%s22382_s4 + $0xa40] sm:$0xff] }
 0x201   : > { %17942 = vmatpush1.bf16.msra.mxu0 %v17941_v22  ;;  %17368 = vmatprep.subr.bf16.mxu1 %v17367_v23  ;;  %v17393_v22 = vunpack.c.h.s8.bf16 %v594_v12  ;;  %v17969_v23 = vunpack.c.h.s8.bf16 %v810_v15  ;;  %v17971_v25 = vunpack.c.l.s8.bf16 %v814_v21  ;;  %v17975_v31 = vunpack.c.h.s8.bf16 %v814_v21  ;;  %v607_v15 = vld [vmem:[%s22382_s4 + $0x3c8] sm:$0xff] }
 0x202   : > { %17944 = vmatprep.subr.bf16.mxu0 %v17943_v24  ;;  %v17395_v24 = vunpack.c.l.s8.bf16 %v598_v20  ;;  %v17419_v21 = vunpack.c.l.s8.bf16 %v607_v15 }
 0x204   : > { %17370 = vmatpush1.bf16.msra.mxu1 %v17369_v27  ;;  %v813_v27 = vld [vmem:[%s22382_s4 + $0xa38] sm:$0xff] }
 0x205   : > { %17946 = vmatpush1.bf16.msra.mxu0 %v17945_v28  ;;  %17372 = vmatprep.subr.bf16.mxu1 %v17371_v29  ;;  %v17397_v28 = vunpack.c.l.s8.bf16 %v597_v26  ;;  %v17973_v29 = vunpack.c.l.s8.bf16 %v813_v27 }
 0x206   : > { %17948 = vmatprep.subr.bf16.mxu0 %v17947_v30  ;;  %v17399_v30 = vunpack.c.h.s8.bf16 %v598_v20 }
 0x208   : > { %17374 = vmatpush1.bf16.msra.mxu1 %v17373_v33  ;;  %v817_v33 = vld [vmem:[%s22382_s4 + $0xa58] sm:$0xff] }
 0x209   : > { %17950 = vmatpush1.bf16.msra.mxu0 %v17949_v34  ;;  %17376 = vmatprep.subr.bf16.mxu1 %v17375_v35  ;;  %v17401_v34 = vunpack.c.h.s8.bf16 %v597_v26  ;;  %v17977_v35 = vunpack.c.h.s8.bf16 %v813_v27  ;;  %v17979_v40 = vunpack.c.l.s8.bf16 %v817_v33  ;;  %v17983_v50 = vunpack.c.h.s8.bf16 %v817_v33 }
 0x20a   : > { %17952 = vmatprep.subr.bf16.mxu0 %v17951_v36  ;;  %v17403_v36 = vunpack.c.l.s8.bf16 %v601_v32 }
 0x20c   : > { %17378 = vmatpush1.bf16.msra.mxu1 %v17377_v42  ;;  %v816_v42 = vld [vmem:[%s22382_s4 + $0xa50] sm:$0xff] }
 0x20d   : > { %17954 = vmatpush1.bf16.msra.mxu0 %v17953_v43  ;;  %17380 = vmatprep.subr.bf16.mxu1 %v17379_v44  ;;  %v17405_v43 = vunpack.c.l.s8.bf16 %v600_v41  ;;  %v17981_v44 = vunpack.c.l.s8.bf16 %v816_v42 }
 0x20e   : > { %17956 = vmatprep.subr.bf16.mxu0 %v17955_v45  ;;  %v17407_v45 = vunpack.c.h.s8.bf16 %v601_v32 }
 0x210   : > { %17382 = vmatpush1.bf16.msra.mxu1 %v17381_v56  ;;  %v820_v56 = vld [vmem:[%s22382_s4 + $0xa70] sm:$0xff] }
 0x211   : > { %17958 = vmatpush1.bf16.msra.mxu0 %v17957_v57  ;;  %17384 = vmatprep.subr.bf16.mxu1 %v17383_v63  ;;  %v17409_v57 = vunpack.c.h.s8.bf16 %v600_v41  ;;  %v17985_v63 = vunpack.c.h.s8.bf16 %v816_v42  ;;  %v17987_v3 = vunpack.c.l.s8.bf16 %v820_v56  ;;  %v17991_v12 = vunpack.c.h.s8.bf16 %v820_v56  ;;  %v609_v41 = vld [vmem:[%s22382_s4 + $0x3d8] sm:$0xff] }
 0x212   : > { %17960 = vmatprep.subr.bf16.mxu0 %v17959_v2  ;;  %v17411_v2 = vunpack.c.l.s8.bf16 %v604_v55  ;;  %v825_v42 = vld [vmem:[%s22382_s4 + $0xa98] sm:$0xff] }
 0x213   : > { %v829_v56 = vld [vmem:[%s22382_s4 + $0xab8] sm:$0xff] }
 0x214   : > { %17386 = vmatpush1.bf16.msra.mxu1 %v17385_v8  ;;  %v819_v8 = vld [vmem:[%s22382_s4 + $0xa68] sm:$0xff] }
 0x215   : > { %17962 = vmatpush1.bf16.msra.mxu0 %v17961_v9  ;;  %17388 = vmatprep.subr.bf16.mxu1 %v17387_v10  ;;  %v17413_v9 = vunpack.c.l.s8.bf16 %v603_v7  ;;  %v17989_v10 = vunpack.c.l.s8.bf16 %v819_v8  ;;  %v17993_v20 = vunpack.c.h.s8.bf16 %v819_v8  ;;  %v828_v8 = vld [vmem:[%s22382_s4 + $0xab0] sm:$0xff] }
 0x216   : > { %17964 = vmatprep.subr.bf16.mxu0 %v17963_v11  ;;  %v17415_v11 = vunpack.c.h.s8.bf16 %v604_v55  ;;  %v613_v55 = vld [vmem:[%s22382_s4 + $0x3f8] sm:$0xff] }
 0x218   : > { %17390 = vmatpush1.bf16.msra.mxu1 %v17389_v16  ;;  %v823_v16 = vld [vmem:[%s22382_s4 + $0xa88] sm:$0xff] }
 0x219   : > { %17966 = vmatpush1.bf16.msra.mxu0 %v17965_v17  ;;  %17392 = vmatprep.subr.bf16.mxu1 %v17391_v18  ;;  %v8117_v17 = vcombine.high %v22643_v54, %v22643_v54  ;;  %v22699_v18 = vld [vmem:[%s22408_s17 + $0x38] sm:$0xff] }
 0x21a   : > { %17968 = vmatprep.subr.bf16.mxu0 %v17967_v19  ;;  %v17417_v19 = vunpack.c.h.s8.bf16 %v603_v7  ;;  %v22708_v54 = vrot.slane %v22699_v18, %v22435_v51  ;;  %v612_v7 = vld [vmem:[%s22382_s4 + $0x3f0] sm:$0xff] }
 0x21c   : > { %17394 = vmatpush1.bf16.msra.mxu1 %v17393_v22  ;;  %v17995_v22 = vunpack.c.l.s8.bf16 %v823_v16  ;;  %v22718_v33 = vcombine.high %v22708_v54, %v22708_v54 }
 0x21d   : > { %17970 = vmatpush1.bf16.msra.mxu0 %v17969_v23  ;;  %17396 = vmatprep.subr.bf16.mxu1 %v17395_v24  ;;  %v606_v23 = vld [vmem:[%s22382_s4 + $0x3c0] sm:$0xff] }
 0x21e   : > { %17972 = vmatprep.subr.bf16.mxu0 %v17971_v25  ;;  %v822_v24 = vld [vmem:[%s22382_s4 + $0xa80] sm:$0xff]  ;;  %v22704_v25 = vrot.slane %v8117_v17, %v22435_v51  ;;  %v17421_v26 = vunpack.c.l.s8.bf16 %v606_v23  ;;  %v17441_v17 = vunpack.c.h.s8.bf16 %v612_v7 }
 0x21f   : > { %v17997_v27 = vunpack.c.l.s8.bf16 %v822_v24 }
 0x220   : > { %17398 = vmatpush1.bf16.msra.mxu1 %v17397_v28  ;;  %v17423_v28 = vunpack.c.h.s8.bf16 %v607_v15  ;;  %v22714_v32 = vcombine.high %v22704_v25, %v22704_v25  ;;  %v616_v15 = vld [vmem:[%s22382_s4 + $0x410] sm:$0xff] }
 0x221   : > { %17974 = vmatpush1.bf16.msra.mxu0 %v17973_v29  ;;  %17400 = vmatprep.subr.bf16.mxu1 %v17399_v30  ;;  %v17999_v29 = vunpack.c.h.s8.bf16 %v823_v16  ;;  %v610_v30 = vld [vmem:[%s22382_s4 + $0x3e0] sm:$0xff]  ;;  %v832_v16 = vld [vmem:[%s22382_s4 + $0xad0] sm:$0xff] }
 0x222   : > { %17976 = vmatprep.subr.bf16.mxu0 %v17975_v31  ;;  %v826_v31 = vld [vmem:[%s22382_s4 + $0xaa0] sm:$0xff] }
 0x224   : > { %17402 = vmatpush1.bf16.msra.mxu1 %v17401_v34  ;;  %v17425_v34 = vunpack.c.h.s8.bf16 %v606_v23  ;;  %v831_v23 = vld [vmem:[%s22382_s4 + $0xac8] sm:$0xff] }
 0x225   : > { %17978 = vmatpush1.bf16.msra.mxu0 %v17977_v35  ;;  %17404 = vmatprep.subr.bf16.mxu1 %v17403_v36  ;;  %v18001_v35 = vunpack.c.h.s8.bf16 %v822_v24  ;;  %v17427_v36 = vunpack.c.l.s8.bf16 %v610_v30 }
 0x226   : > { %17980 = vmatprep.subr.bf16.mxu0 %v17979_v40  ;;  %v18003_v40 = vunpack.c.l.s8.bf16 %v826_v31 }
 0x228   : > { %17406 = vmatpush1.bf16.msra.mxu1 %v17405_v43  ;;  %v17429_v43 = vunpack.c.l.s8.bf16 %v609_v41 }
 0x229   : > { %17982 = vmatpush1.bf16.msra.mxu0 %v17981_v44  ;;  %17408 = vmatprep.subr.bf16.mxu1 %v17407_v45  ;;  %v18005_v44 = vunpack.c.l.s8.bf16 %v825_v42  ;;  %v17431_v45 = vunpack.c.h.s8.bf16 %v610_v30  ;;  %v835_v30 = vld [vmem:[%s22382_s4 + $0xae8] sm:$0xff] }
 0x22a   : > { %17984 = vmatprep.subr.bf16.mxu0 %v17983_v50  ;;  %v18007_v50 = vunpack.c.h.s8.bf16 %v826_v31 }
 0x22c   : > { %17410 = vmatpush1.bf16.msra.mxu1 %v17409_v57  ;;  %v17433_v57 = vunpack.c.h.s8.bf16 %v609_v41  ;;  %v834_v41 = vld [vmem:[%s22382_s4 + $0xae0] sm:$0xff] }
 0x22d   : > { %17986 = vmatpush1.bf16.msra.mxu0 %v17985_v63  ;;  %17412 = vmatprep.subr.bf16.mxu1 %v17411_v2  ;;  %v18009_v63 = vunpack.c.h.s8.bf16 %v825_v42  ;;  %v17435_v2 = vunpack.c.l.s8.bf16 %v613_v55 }
 0x22e   : > { %17988 = vmatprep.subr.bf16.mxu0 %v17987_v3  ;;  %v18011_v3 = vunpack.c.l.s8.bf16 %v829_v56 }
 0x230   : > { %17414 = vmatpush1.bf16.msra.mxu1 %v17413_v9  ;;  %v17437_v9 = vunpack.c.l.s8.bf16 %v612_v7  ;;  %v837_v7 = vld [vmem:[%s22382_s4 + $0xaf8] sm:$0xff] }
 0x231   : > { %17990 = vmatpush1.bf16.msra.mxu0 %v17989_v10  ;;  %17416 = vmatprep.subr.bf16.mxu1 %v17415_v11  ;;  %v18013_v10 = vunpack.c.l.s8.bf16 %v828_v8  ;;  %v17439_v11 = vunpack.c.h.s8.bf16 %v613_v55  ;;  %v838_v55 = vld [vmem:[%s22382_s4 + $0xb00] sm:$0xff] }
 0x232   : > { %17992 = vmatprep.subr.bf16.mxu0 %v17991_v12  ;;  %v18015_v12 = vunpack.c.h.s8.bf16 %v829_v56 }
 0x234   : > { %17418 = vmatpush1.bf16.msra.mxu1 %v17417_v19  ;;  %v18017_v19 = vunpack.c.h.s8.bf16 %v828_v8 }
 0x235   : > { %17994 = vmatpush1.bf16.msra.mxu0 %v17993_v20  ;;  %17420 = vmatprep.subr.bf16.mxu1 %v17419_v21  ;;  %v17443_v20 = vunpack.c.l.s8.bf16 %v616_v15  ;;  %v18019_v21 = vunpack.c.l.s8.bf16 %v832_v16 }
 0x236   : > { %17996 = vmatprep.subr.bf16.mxu0 %v17995_v22  ;;  %v615_v22 = vld [vmem:[%s22382_s4 + $0x408] sm:$0xff] }
 0x237   : > { %8799 = vmatmul.mubr.f32.vlgmr.msra.gmra.mrb[0].mxu1 %v22649_v6  ;;  %v17445_v24 = vunpack.c.l.s8.bf16 %v615_v22  ;;  %v17449_v31 = vunpack.c.h.s8.bf16 %v615_v22  ;;  %v840_v22 = vld [vmem:[%s22382_s4 + $0xb10] sm:$0xff] }
 0x238   : > { %9438 = vmatmul.mubr.f32.vlgmr.msra.gmra.mrb[0].mxu0 %v22652_v37  ;;  %17422 = vmatpush1.bf16.msra.mxu1 %v17421_v26  ;;  %v18021_v26 = vunpack.c.l.s8.bf16 %v831_v23 }
 0x239   : > { %17998 = vmatpush1.bf16.msra.mxu0 %v17997_v27  ;;  %17424 = vmatprep.subr.bf16.mxu1 %v17423_v28  ;;  %v17447_v27 = vunpack.c.h.s8.bf16 %v616_v15  ;;  %v18023_v28 = vunpack.c.h.s8.bf16 %v832_v16  ;;  %v841_v15 = vld [vmem:[%s22382_s4 + $0xb18] sm:$0xff] }
 0x23a   : > { %18000 = vmatprep.subr.bf16.mxu0 %v17999_v29  ;;  %8869 = vmatprep.mubr.f32.mxu1 %v22714_v32  ;;  %v619_v29 = vld [vmem:[%s22382_s4 + $0x428] sm:$0xff] }
 0x23b   : > { %9508 = vmatprep.mubr.f32.mxu0 %v22718_v33 }
 0x23c   : > { %17426 = vmatpush1.bf16.msra.mxu1 %v17425_v34  ;;  %v18025_v34 = vunpack.c.h.s8.bf16 %v831_v23 }
 0x23d   : > { %18002 = vmatpush1.bf16.msra.mxu0 %v18001_v35  ;;  %17428 = vmatprep.subr.bf16.mxu1 %v17427_v36  ;;  %v17451_v35 = vunpack.c.l.s8.bf16 %v619_v29  ;;  %v18027_v36 = vunpack.c.l.s8.bf16 %v835_v30 }
 0x23e   : > { %18004 = vmatprep.subr.bf16.mxu0 %v18003_v40  ;;  %v618_v40 = vld [vmem:[%s22382_s4 + $0x420] sm:$0xff] }
 0x23f   : > { %v17453_v42 = vunpack.c.l.s8.bf16 %v618_v40  ;;  %v17457_v56 = vunpack.c.h.s8.bf16 %v618_v40  ;;  %v843_v40 = vld [vmem:[%s22382_s4 + $0xb28] sm:$0xff] }
 0x240   : > { %17430 = vmatpush1.bf16.msra.mxu1 %v17429_v43  ;;  %v18029_v43 = vunpack.c.l.s8.bf16 %v834_v41 }
 0x241   : > { %18006 = vmatpush1.bf16.msra.mxu0 %v18005_v44  ;;  %17432 = vmatprep.subr.bf16.mxu1 %v17431_v45  ;;  %v17455_v44 = vunpack.c.h.s8.bf16 %v619_v29  ;;  %v18031_v45 = vunpack.c.h.s8.bf16 %v835_v30  ;;  %v844_v29 = vld [vmem:[%s22382_s4 + $0xb30] sm:$0xff] }
 0x242   : > { %18008 = vmatprep.subr.bf16.mxu0 %v18007_v50  ;;  %v622_v50 = vld [vmem:[%s22382_s4 + $0x440] sm:$0xff] }
 0x244   : > { %17434 = vmatpush1.bf16.msra.mxu1 %v17433_v57  ;;  %v18033_v57 = vunpack.c.h.s8.bf16 %v834_v41 }
 0x245   : > { %18010 = vmatpush1.bf16.msra.mxu0 %v18009_v63  ;;  %17436 = vmatprep.subr.bf16.mxu1 %v17435_v2  ;;  %v17459_v63 = vunpack.c.l.s8.bf16 %v622_v50  ;;  %v18035_v2 = vunpack.c.l.s8.bf16 %v838_v55 }
 0x246   : > { %18012 = vmatprep.subr.bf16.mxu0 %v18011_v3  ;;  %v621_v3 = vld [vmem:[%s22382_s4 + $0x438] sm:$0xff] }
 0x247   : > { %v17461_v8 = vunpack.c.l.s8.bf16 %v621_v3  ;;  %v17465_v16 = vunpack.c.h.s8.bf16 %v621_v3 }
 0x248   : > { %17438 = vmatpush1.bf16.msra.mxu1 %v17437_v9  ;;  %v18037_v9 = vunpack.c.l.s8.bf16 %v837_v7 }
 0x249   : > { %18014 = vmatpush1.bf16.msra.mxu0 %v18013_v10  ;;  %17440 = vmatprep.subr.bf16.mxu1 %v17439_v11  ;;  %v17463_v10 = vunpack.c.h.s8.bf16 %v622_v50  ;;  %v18039_v11 = vunpack.c.h.s8.bf16 %v838_v55  ;;  %v847_v50 = vld [vmem:[%s22382_s4 + $0xb48] sm:$0xff]  ;;  %v8202_v55 = vcombine.high %v22699_v18, %v22699_v18 }
 0x24a   : > { %18016 = vmatprep.subr.bf16.mxu0 %v18015_v12  ;;  %v625_v12 = vld [vmem:[%s22382_s4 + $0x458] sm:$0xff]  ;;  %v18059_v3 = vunpack.c.l.s8.bf16 %v847_v50 }
 0x24b   : > { %v22764_v18 = vrot.slane %v8202_v55, %v22435_v51 }
 0x24c   : > { %17442 = vmatpush1.bf16.msra.mxu1 %v17441_v17  ;;  %v18041_v17 = vunpack.c.h.s8.bf16 %v837_v7  ;;  %v630_v7 = vld [vmem:[%s22382_s4 + $0x480] sm:$0xff] }
 0x24d   : > { %18018 = vmatpush1.bf16.msra.mxu0 %v18017_v19  ;;  %17444 = vmatprep.subr.bf16.mxu1 %v17443_v20  ;;  %v17467_v19 = vunpack.c.l.s8.bf16 %v625_v12  ;;  %v18043_v20 = vunpack.c.l.s8.bf16 %v841_v15 }
 0x24e   : > { %18020 = vmatprep.subr.bf16.mxu0 %v18019_v21  ;;  %v624_v21 = vld [vmem:[%s22382_s4 + $0x450] sm:$0xff] }
 0x24f   : > { %v17469_v23 = vunpack.c.l.s8.bf16 %v624_v21  ;;  %v17473_v30 = vunpack.c.h.s8.bf16 %v624_v21  ;;  %v17489_v21 = vunpack.c.h.s8.bf16 %v630_v7 }
 0x250   : > { %17446 = vmatpush1.bf16.msra.mxu1 %v17445_v24  ;;  %v18045_v24 = vunpack.c.l.s8.bf16 %v840_v22 }
 0x251   : > { %18022 = vmatpush1.bf16.msra.mxu0 %v18021_v26  ;;  %17448 = vmatprep.subr.bf16.mxu1 %v17447_v27  ;;  %v17471_v26 = vunpack.c.h.s8.bf16 %v625_v12  ;;  %v18047_v27 = vunpack.c.h.s8.bf16 %v841_v15  ;;  %v18063_v15 = vunpack.c.h.s8.bf16 %v847_v50 }
 0x252   : > { %18024 = vmatprep.subr.bf16.mxu0 %v18023_v28  ;;  %v628_v28 = vld [vmem:[%s22382_s4 + $0x470] sm:$0xff] }
 0x254   : > { %17450 = vmatpush1.bf16.msra.mxu1 %v17449_v31  ;;  %v18049_v31 = vunpack.c.h.s8.bf16 %v840_v22 }
 0x255   : > { %18026 = vmatpush1.bf16.msra.mxu0 %v18025_v34  ;;  %17452 = vmatprep.subr.bf16.mxu1 %v17451_v35  ;;  %v17475_v34 = vunpack.c.l.s8.bf16 %v628_v28  ;;  %v18051_v35 = vunpack.c.l.s8.bf16 %v844_v29 }
 0x256   : > { %18028 = vmatprep.subr.bf16.mxu0 %v18027_v36  ;;  %v627_v36 = vld [vmem:[%s22382_s4 + $0x468] sm:$0xff] }
 0x257   : > { %v17477_v41 = vunpack.c.l.s8.bf16 %v627_v36 }
 0x258   : > { %17454 = vmatpush1.bf16.msra.mxu1 %v17453_v42  ;;  %v18053_v42 = vunpack.c.l.s8.bf16 %v843_v40 }
 0x259   : > { %18030 = vmatpush1.bf16.msra.mxu0 %v18029_v43  ;;  %17456 = vmatprep.subr.bf16.mxu1 %v17455_v44  ;;  %v17479_v43 = vunpack.c.h.s8.bf16 %v628_v28  ;;  %v18055_v44 = vunpack.c.h.s8.bf16 %v844_v29 }
 0x25a   : > { %18032 = vmatprep.subr.bf16.mxu0 %v18031_v45  ;;  %v631_v45 = vld [vmem:[%s22382_s4 + $0x488] sm:$0xff] }
 0x25b   : > { %v17487_v12 = vunpack.c.h.s8.bf16 %v631_v45 }
 0x25c   : > { %17458 = vmatpush1.bf16.msra.mxu1 %v17457_v56  ;;  %v22755_v56 = vld [vmem:[%s22408_s17 + $0x18] sm:$0xff] }
 0x25d   : > { %18034 = vmatpush1.bf16.msra.mxu0 %v18033_v57  ;;  %17460 = vmatprep.subr.bf16.mxu1 %v17459_v63  ;;  %v17481_v57 = vunpack.c.h.s8.bf16 %v627_v36  ;;  %v18057_v63 = vunpack.c.h.s8.bf16 %v843_v40 }
 0x25e   : > { %18036 = vmatprep.subr.bf16.mxu0 %v18035_v2  ;;  %v17483_v2 = vunpack.c.l.s8.bf16 %v631_v45 }
 0x260   : > { %17462 = vmatpush1.bf16.msra.mxu1 %v17461_v8  ;;  %v846_v8 = vld [vmem:[%s22382_s4 + $0xb40] sm:$0xff] }
 0x261   : > { %18038 = vmatpush1.bf16.msra.mxu0 %v18037_v9  ;;  %17464 = vmatprep.subr.bf16.mxu1 %v17463_v10  ;;  %v22761_v9 = vrot.slane %v22755_v56, %v22435_v51  ;;  %v17485_v10 = vunpack.c.l.s8.bf16 %v630_v7  ;;  %v18065_v22 = vunpack.c.h.s8.bf16 %v846_v8 }
 0x262   : > { %18040 = vmatprep.subr.bf16.mxu0 %v18039_v11  ;;  %v18061_v11 = vunpack.c.l.s8.bf16 %v846_v8 }
 0x264   : > { %17466 = vmatpush1.bf16.msra.mxu1 %v17465_v16  ;;  %v634_v16 = vld [vmem:[%s22382_s4 + $0x4a0] sm:$0xff] }
 0x265   : > { %18042 = vmatpush1.bf16.msra.mxu0 %v18041_v17  ;;  %17468 = vmatprep.subr.bf16.mxu1 %v17467_v19  ;;  %v850_v17 = vld [vmem:[%s22382_s4 + $0xb60] sm:$0xff]  ;;  %v22770_v19 = vcombine.high %v22761_v9, %v22761_v9 }
 0x266   : > { %18044 = vmatprep.subr.bf16.mxu0 %v18043_v20  ;;  %v22774_v20 = vcombine.high %v22764_v18, %v22764_v18 }
 0x268   : > { %17470 = vmatpush1.bf16.msra.mxu1 %v17469_v23  ;;  %v17491_v23 = vunpack.c.l.s8.bf16 %v634_v16 }
 0x269   : > { %18046 = vmatpush1.bf16.msra.mxu0 %v18045_v24  ;;  %17472 = vmatprep.subr.bf16.mxu1 %v17471_v26  ;;  %v18067_v24 = vunpack.c.l.s8.bf16 %v850_v17  ;;  %v633_v26 = vld [vmem:[%s22382_s4 + $0x498] sm:$0xff] }
 0x26a   : > { %18048 = vmatprep.subr.bf16.mxu0 %v18047_v27  ;;  %v849_v27 = vld [vmem:[%s22382_s4 + $0xb58] sm:$0xff]  ;;  %v17493_v28 = vunpack.c.l.s8.bf16 %v633_v26  ;;  %v17497_v36 = vunpack.c.h.s8.bf16 %v633_v26 }
 0x26b   : > { %v18069_v29 = vunpack.c.l.s8.bf16 %v849_v27  ;;  %v18073_v40 = vunpack.c.h.s8.bf16 %v849_v27 }
 0x26c   : > { %17474 = vmatpush1.bf16.msra.mxu1 %v17473_v30  ;;  %v17495_v30 = vunpack.c.h.s8.bf16 %v634_v16 }
 0x26d   : > { %18050 = vmatpush1.bf16.msra.mxu0 %v18049_v31  ;;  %17476 = vmatprep.subr.bf16.mxu1 %v17475_v34  ;;  %v18071_v31 = vunpack.c.h.s8.bf16 %v850_v17  ;;  %v637_v34 = vld [vmem:[%s22382_s4 + $0x4b8] sm:$0xff] }
 0x26e   : > { %18052 = vmatprep.subr.bf16.mxu0 %v18051_v35  ;;  %v853_v35 = vld [vmem:[%s22382_s4 + $0xb78] sm:$0xff]  ;;  %v17503_v55 = vunpack.c.h.s8.bf16 %v637_v34 }
 0x270   : > { %17478 = vmatpush1.bf16.msra.mxu1 %v17477_v41  ;;  %v17499_v41 = vunpack.c.l.s8.bf16 %v637_v34 }
 0x271   : > { %18054 = vmatpush1.bf16.msra.mxu0 %v18053_v42  ;;  %17480 = vmatprep.subr.bf16.mxu1 %v17479_v43  ;;  %v18075_v42 = vunpack.c.l.s8.bf16 %v853_v35  ;;  %v636_v43 = vld [vmem:[%s22382_s4 + $0x4b0] sm:$0xff] }
 0x272   : > { %18056 = vmatprep.subr.bf16.mxu0 %v18055_v44  ;;  %v852_v44 = vld [vmem:[%s22382_s4 + $0xb70] sm:$0xff]  ;;  %v17501_v45 = vunpack.c.l.s8.bf16 %v636_v43 }
 0x273   : > { %v18077_v50 = vunpack.c.l.s8.bf16 %v852_v44  ;;  %v18081_v7 = vunpack.c.h.s8.bf16 %v852_v44 }
 0x274   : > { %17482 = vmatpush1.bf16.msra.mxu1 %v17481_v57  ;;  %v18079_v57 = vunpack.c.h.s8.bf16 %v853_v35 }
 0x275   : > { %18058 = vmatpush1.bf16.msra.mxu0 %v18057_v63  ;;  %17484 = vmatprep.subr.bf16.mxu1 %v17483_v2  ;;  %v640_v63 = vld [vmem:[%s22382_s4 + $0x4d0] sm:$0xff] }
 0x276   : > { %18060 = vmatprep.subr.bf16.mxu0 %v18059_v3  ;;  %v856_v2 = vld [vmem:[%s22382_s4 + $0xb90] sm:$0xff]  ;;  %v17505_v3 = vunpack.c.h.s8.bf16 %v636_v43  ;;  %v17507_v8 = vunpack.c.l.s8.bf16 %v640_v63  ;;  %v17511_v17 = vunpack.c.h.s8.bf16 %v640_v63 }
 0x277   : > { %8870 = vmatmul.mubr.f32.vlgmr.msra.gmra.mrb[0].mxu1 %v22704_v25 }
 0x278   : > { %9509 = vmatmul.mubr.f32.vlgmr.msra.gmra.mrb[0].mxu0 %v22708_v54  ;;  %17486 = vmatpush1.bf16.msra.mxu1 %v17485_v10  ;;  %v18083_v10 = vunpack.c.l.s8.bf16 %v856_v2 }
 0x279   : > { %18062 = vmatpush1.bf16.msra.mxu0 %v18061_v11  ;;  %17488 = vmatprep.subr.bf16.mxu1 %v17487_v12  ;;  %v639_v11 = vld [vmem:[%s22382_s4 + $0x4c8] sm:$0xff] }
 0x27a   : > { %18064 = vmatprep.subr.bf16.mxu0 %v18063_v15  ;;  %8940 = vmatprep.mubr.f32.mxu1 %v22770_v19  ;;  %v855_v12 = vld [vmem:[%s22382_s4 + $0xb88] sm:$0xff]  ;;  %v17509_v15 = vunpack.c.l.s8.bf16 %v639_v11 }
 0x27b   : > { %9579 = vmatprep.mubr.f32.mxu0 %v22774_v20  ;;  %v18085_v16 = vunpack.c.l.s8.bf16 %v855_v12  ;;  %v18089_v26 = vunpack.c.h.s8.bf16 %v855_v12 }
 0x27c   : > { %17490 = vmatpush1.bf16.msra.mxu1 %v17489_v21  ;;  %v18087_v21 = vunpack.c.h.s8.bf16 %v856_v2 }
 0x27d   : > { %18066 = vmatpush1.bf16.msra.mxu0 %v18065_v22  ;;  %17492 = vmatprep.subr.bf16.mxu1 %v17491_v23  ;;  %v643_v22 = vld [vmem:[%s22382_s4 + $0x4e8] sm:$0xff] }
 0x27e   : > { %18068 = vmatprep.subr.bf16.mxu0 %v18067_v24  ;;  %v859_v23 = vld [vmem:[%s22382_s4 + $0xba8] sm:$0xff]  ;;  %v17513_v24 = vunpack.c.h.s8.bf16 %v639_v11  ;;  %v17515_v27 = vunpack.c.l.s8.bf16 %v643_v22  ;;  %v17519_v35 = vunpack.c.h.s8.bf16 %v643_v22 }
 0x280   : > { %17494 = vmatpush1.bf16.msra.mxu1 %v17493_v28  ;;  %v18091_v28 = vunpack.c.l.s8.bf16 %v859_v23 }
 0x281   : > { %18070 = vmatpush1.bf16.msra.mxu0 %v18069_v29  ;;  %17496 = vmatprep.subr.bf16.mxu1 %v17495_v30  ;;  %v642_v29 = vld [vmem:[%s22382_s4 + $0x4e0] sm:$0xff] }
 0x282   : > { %18072 = vmatprep.subr.bf16.mxu0 %v18071_v31  ;;  %v858_v30 = vld [vmem:[%s22382_s4 + $0xba0] sm:$0xff]  ;;  %v17517_v31 = vunpack.c.l.s8.bf16 %v642_v29 }
 0x283   : > { %v18093_v34 = vunpack.c.l.s8.bf16 %v858_v30  ;;  %v18097_v43 = vunpack.c.h.s8.bf16 %v858_v30 }
 0x284   : > { %17498 = vmatpush1.bf16.msra.mxu1 %v17497_v36  ;;  %v18095_v36 = vunpack.c.h.s8.bf16 %v859_v23 }
 0x285   : > { %18074 = vmatpush1.bf16.msra.mxu0 %v18073_v40  ;;  %17500 = vmatprep.subr.bf16.mxu1 %v17499_v41  ;;  %v646_v40 = vld [vmem:[%s22382_s4 + $0x500] sm:$0xff] }
 0x286   : > { %18076 = vmatprep.subr.bf16.mxu0 %v18075_v42  ;;  %v862_v41 = vld [vmem:[%s22382_s4 + $0xbc0] sm:$0xff]  ;;  %v17521_v42 = vunpack.c.h.s8.bf16 %v642_v29  ;;  %v17523_v44 = vunpack.c.l.s8.bf16 %v646_v40  ;;  %v17527_v2 = vunpack.c.h.s8.bf16 %v646_v40 }
 0x288   : > { %17502 = vmatpush1.bf16.msra.mxu1 %v17501_v45  ;;  %v18099_v45 = vunpack.c.l.s8.bf16 %v862_v41 }
 0x289   : > { %18078 = vmatpush1.bf16.msra.mxu0 %v18077_v50  ;;  %17504 = vmatprep.subr.bf16.mxu1 %v17503_v55  ;;  %v645_v50 = vld [vmem:[%s22382_s4 + $0x4f8] sm:$0xff] }
 0x28a   : > { %18080 = vmatprep.subr.bf16.mxu0 %v18079_v57  ;;  %v861_v55 = vld [vmem:[%s22382_s4 + $0xbb8] sm:$0xff]  ;;  %v17525_v57 = vunpack.c.l.s8.bf16 %v645_v50 }
 0x28b   : > { %v18101_v63 = vunpack.c.l.s8.bf16 %v861_v55  ;;  %v18105_v11 = vunpack.c.h.s8.bf16 %v861_v55 }
 0x28c   : > { %17506 = vmatpush1.bf16.msra.mxu1 %v17505_v3  ;;  %v18103_v3 = vunpack.c.h.s8.bf16 %v862_v41 }
 0x28d   : > { %18082 = vmatpush1.bf16.msra.mxu0 %v18081_v7  ;;  %17508 = vmatprep.subr.bf16.mxu1 %v17507_v8  ;;  %v649_v7 = vld [vmem:[%s22382_s4 + $0x518] sm:$0xff] }
 0x28e   : > { %18084 = vmatprep.subr.bf16.mxu0 %v18083_v10  ;;  %v865_v8 = vld [vmem:[%s22382_s4 + $0xbd8] sm:$0xff]  ;;  %v17529_v10 = vunpack.c.h.s8.bf16 %v645_v50  ;;  %v17531_v12 = vunpack.c.l.s8.bf16 %v649_v7  ;;  %v17535_v23 = vunpack.c.h.s8.bf16 %v649_v7  ;;  %v870_v7 = vld [vmem:[%s22382_s4 + $0xc00] sm:$0xff] }
 0x28f   : > { %v22811_v50 = vld [vmem:[%s22408_s17 + $0x40] sm:$0xff] }
 0x290   : > { %17510 = vmatpush1.bf16.msra.mxu1 %v17509_v15  ;;  %v18107_v15 = vunpack.c.l.s8.bf16 %v865_v8 }
 0x291   : > { %18086 = vmatpush1.bf16.msra.mxu0 %v18085_v16  ;;  %17512 = vmatprep.subr.bf16.mxu1 %v17511_v17  ;;  %v648_v16 = vld [vmem:[%s22382_s4 + $0x510] sm:$0xff] }
 0x292   : > { %18088 = vmatprep.subr.bf16.mxu0 %v18087_v21  ;;  %v864_v17 = vld [vmem:[%s22382_s4 + $0xbd0] sm:$0xff]  ;;  %v17533_v21 = vunpack.c.l.s8.bf16 %v648_v16 }
 0x293   : > { %v18109_v22 = vunpack.c.l.s8.bf16 %v864_v17  ;;  %v18113_v29 = vunpack.c.h.s8.bf16 %v864_v17  ;;  %v874_v17 = vld [vmem:[%s22382_s4 + $0xc20] sm:$0xff] }
 0x294   : > { %17514 = vmatpush1.bf16.msra.mxu1 %v17513_v24  ;;  %v18111_v24 = vunpack.c.h.s8.bf16 %v865_v8 }
 0x295   : > { %18090 = vmatpush1.bf16.msra.mxu0 %v18089_v26  ;;  %17516 = vmatprep.subr.bf16.mxu1 %v17515_v27  ;;  %v652_v26 = vld [vmem:[%s22382_s4 + $0x530] sm:$0xff] }
 0x296   : > { %18092 = vmatprep.subr.bf16.mxu0 %v18091_v28  ;;  %v868_v27 = vld [vmem:[%s22382_s4 + $0xbf0] sm:$0xff]  ;;  %v17537_v28 = vunpack.c.h.s8.bf16 %v648_v16  ;;  %v17539_v30 = vunpack.c.l.s8.bf16 %v652_v26  ;;  %v17543_v41 = vunpack.c.h.s8.bf16 %v652_v26  ;;  %v658_v16 = vld [vmem:[%s22382_s4 + $0x560] sm:$0xff] }
 0x297   : > { %v17555_v26 = vunpack.c.l.s8.bf16 %v658_v16 }
 0x298   : > { %17518 = vmatpush1.bf16.msra.mxu1 %v17517_v31  ;;  %v18115_v31 = vunpack.c.l.s8.bf16 %v868_v27 }
 0x299   : > { %18094 = vmatpush1.bf16.msra.mxu0 %v18093_v34  ;;  %17520 = vmatprep.subr.bf16.mxu1 %v17519_v35  ;;  %v651_v34 = vld [vmem:[%s22382_s4 + $0x528] sm:$0xff] }
 0x29a   : > { %18096 = vmatprep.subr.bf16.mxu0 %v18095_v36  ;;  %v867_v35 = vld [vmem:[%s22382_s4 + $0xbe8] sm:$0xff]  ;;  %v17541_v36 = vunpack.c.l.s8.bf16 %v651_v34  ;;  %v17545_v55 = vunpack.c.h.s8.bf16 %v651_v34  ;;  %v17559_v34 = vunpack.c.h.s8.bf16 %v658_v16 }
 0x29b   : > { %v18117_v40 = vunpack.c.l.s8.bf16 %v867_v35 }
 0x29c   : > { %17522 = vmatpush1.bf16.msra.mxu1 %v17521_v42  ;;  %v18119_v42 = vunpack.c.h.s8.bf16 %v868_v27  ;;  %v18131_v27 = vunpack.c.l.s8.bf16 %v874_v17 }
 0x29d   : > { %18098 = vmatpush1.bf16.msra.mxu0 %v18097_v43  ;;  %17524 = vmatprep.subr.bf16.mxu1 %v17523_v44  ;;  %v655_v43 = vld [vmem:[%s22382_s4 + $0x548] sm:$0xff] }
 0x29e   : > { %18100 = vmatprep.subr.bf16.mxu0 %v18099_v45  ;;  %v871_v44 = vld [vmem:[%s22382_s4 + $0xc08] sm:$0xff]  ;;  %v8134_v45 = vcombine.high %v22755_v56, %v22755_v56  ;;  %v22820_v56 = vrot.slane %v22811_v50, %v22435_v51 }
 0x2a0   : > { %17526 = vmatpush1.bf16.msra.mxu1 %v17525_v57  ;;  %v18121_v57 = vunpack.c.h.s8.bf16 %v867_v35  ;;  %v22816_v8 = vrot.slane %v8134_v45, %v22435_v51  ;;  %v18135_v35 = vunpack.c.h.s8.bf16 %v874_v17  ;;  %v660_v45 = vld [vmem:[%s22382_s4 + $0x570] sm:$0xff]  ;;  %v663_v17 = vld [vmem:[%s22382_s4 + $0x588] sm:$0xff] }
 0x2a1   : > { %18102 = vmatpush1.bf16.msra.mxu0 %v18101_v63  ;;  %17528 = vmatprep.subr.bf16.mxu1 %v17527_v2  ;;  %v17547_v63 = vunpack.c.l.s8.bf16 %v655_v43  ;;  %v18123_v2 = vunpack.c.l.s8.bf16 %v871_v44 }
 0x2a2   : > { %18104 = vmatprep.subr.bf16.mxu0 %v18103_v3  ;;  %v654_v3 = vld [vmem:[%s22382_s4 + $0x540] sm:$0xff] }
 0x2a4   : > { %17530 = vmatpush1.bf16.msra.mxu1 %v17529_v10  ;;  %v17549_v10 = vunpack.c.l.s8.bf16 %v654_v3 }
 0x2a5   : > { %18106 = vmatpush1.bf16.msra.mxu0 %v18105_v11  ;;  %17532 = vmatprep.subr.bf16.mxu1 %v17531_v12  ;;  %v18125_v11 = vunpack.c.l.s8.bf16 %v870_v7  ;;  %v17551_v12 = vunpack.c.h.s8.bf16 %v655_v43 }
 0x2a6   : > { %18108 = vmatprep.subr.bf16.mxu0 %v18107_v15  ;;  %v18127_v15 = vunpack.c.h.s8.bf16 %v871_v44 }
 0x2a8   : > { %17534 = vmatpush1.bf16.msra.mxu1 %v17533_v21  ;;  %v22826_v21 = vcombine.high %v22816_v8, %v22816_v8 }
 0x2a9   : > { %18110 = vmatpush1.bf16.msra.mxu0 %v18109_v22  ;;  %17536 = vmatprep.subr.bf16.mxu1 %v17535_v23  ;;  %v22830_v22 = vcombine.high %v22820_v56, %v22820_v56  ;;  %v17553_v23 = vunpack.c.h.s8.bf16 %v654_v3 }
 0x2aa   : > { %18112 = vmatprep.subr.bf16.mxu0 %v18111_v24  ;;  %v18129_v24 = vunpack.c.h.s8.bf16 %v870_v7  ;;  %v664_v7 = vld [vmem:[%s22382_s4 + $0x590] sm:$0xff] }
 0x2ac   : > { %17538 = vmatpush1.bf16.msra.mxu1 %v17537_v28  ;;  %v657_v28 = vld [vmem:[%s22382_s4 + $0x558] sm:$0xff] }
 0x2ad   : > { %18114 = vmatpush1.bf16.msra.mxu0 %v18113_v29  ;;  %17540 = vmatprep.subr.bf16.mxu1 %v17539_v30  ;;  %v873_v29 = vld [vmem:[%s22382_s4 + $0xc18] sm:$0xff]  ;;  %v17557_v30 = vunpack.c.l.s8.bf16 %v657_v28 }
 0x2ae   : > { %18116 = vmatprep.subr.bf16.mxu0 %v18115_v31  ;;  %v18133_v31 = vunpack.c.l.s8.bf16 %v873_v29 }
 0x2b0   : > { %17542 = vmatpush1.bf16.msra.mxu1 %v17541_v36  ;;  %v661_v36 = vld [vmem:[%s22382_s4 + $0x578] sm:$0xff] }
 0x2b1   : > { %18118 = vmatpush1.bf16.msra.mxu0 %v18117_v40  ;;  %17544 = vmatprep.subr.bf16.mxu1 %v17543_v41  ;;  %v877_v40 = vld [vmem:[%s22382_s4 + $0xc38] sm:$0xff]  ;;  %v17561_v41 = vunpack.c.h.s8.bf16 %v657_v28  ;;  %v17563_v43 = vunpack.c.l.s8.bf16 %v661_v36 }
 0x2b2   : > { %18120 = vmatprep.subr.bf16.mxu0 %v18119_v42  ;;  %v18137_v42 = vunpack.c.h.s8.bf16 %v873_v29  ;;  %v18139_v44 = vunpack.c.l.s8.bf16 %v877_v40  ;;  %v18143_v3 = vunpack.c.h.s8.bf16 %v877_v40  ;;  %v667_v29 = vld [vmem:[%s22382_s4 + $0x5a8] sm:$0xff]  ;;  %v666_v40 = vld [vmem:[%s22382_s4 + $0x5a0] sm:$0xff] }
 0x2b4   : > { %17546 = vmatpush1.bf16.msra.mxu1 %v17545_v55  ;;  %v876_v55 = vld [vmem:[%s22382_s4 + $0xc30] sm:$0xff] }
 0x2b5   : > { %18122 = vmatpush1.bf16.msra.mxu0 %v18121_v57  ;;  %17548 = vmatprep.subr.bf16.mxu1 %v17547_v63  ;;  %v17565_v57 = vunpack.c.l.s8.bf16 %v660_v45  ;;  %v18141_v63 = vunpack.c.l.s8.bf16 %v876_v55 }
 0x2b6   : > { %18124 = vmatprep.subr.bf16.mxu0 %v18123_v2  ;;  %v17567_v2 = vunpack.c.h.s8.bf16 %v661_v36 }
 0x2b7   : > { %8941 = vmatmul.mubr.f32.vlgmr.msra.gmra.mrb[0].mxu1 %v22761_v9 }
 0x2b8   : > { %9580 = vmatmul.mubr.f32.vlgmr.msra.gmra.mrb[0].mxu0 %v22764_v18  ;;  %17550 = vmatpush1.bf16.msra.mxu1 %v17549_v10  ;;  %v880_v10 = vld [vmem:[%s22382_s4 + $0xc50] sm:$0xff] }
 0x2b9   : > { %18126 = vmatpush1.bf16.msra.mxu0 %v18125_v11  ;;  %17552 = vmatprep.subr.bf16.mxu1 %v17551_v12  ;;  %v17569_v11 = vunpack.c.h.s8.bf16 %v660_v45  ;;  %v18145_v12 = vunpack.c.h.s8.bf16 %v876_v55  ;;  %v18147_v16 = vunpack.c.l.s8.bf16 %v880_v10  ;;  %v18151_v28 = vunpack.c.h.s8.bf16 %v880_v10  ;;  %v670_v55 = vld [vmem:[%s22382_s4 + $0x5c0] sm:$0xff]  ;;  %v669_v10 = vld [vmem:[%s22382_s4 + $0x5b8] sm:$0xff] }
 0x2ba   : > { %18128 = vmatprep.subr.bf16.mxu0 %v18127_v15  ;;  %9011 = vmatprep.mubr.f32.mxu1 %v22826_v21  ;;  %v17571_v15 = vunpack.c.l.s8.bf16 %v664_v7 }
 0x2bb   : > { %9650 = vmatprep.mubr.f32.mxu0 %v22830_v22 }
 0x2bc   : > { %17554 = vmatpush1.bf16.msra.mxu1 %v17553_v23  ;;  %v879_v23 = vld [vmem:[%s22382_s4 + $0xc48] sm:$0xff] }
 0x2bd   : > { %18130 = vmatpush1.bf16.msra.mxu0 %v18129_v24  ;;  %17556 = vmatprep.subr.bf16.mxu1 %v17555_v26  ;;  %v17573_v24 = vunpack.c.l.s8.bf16 %v663_v17  ;;  %v18149_v26 = vunpack.c.l.s8.bf16 %v879_v23 }
 0x2be   : > { %18132 = vmatprep.subr.bf16.mxu0 %v18131_v27  ;;  %v17575_v27 = vunpack.c.h.s8.bf16 %v664_v7 }
 0x2c0   : > { %17558 = vmatpush1.bf16.msra.mxu1 %v17557_v30  ;;  %v883_v30 = vld [vmem:[%s22382_s4 + $0xc68] sm:$0xff] }
 0x2c1   : > { %18134 = vmatpush1.bf16.msra.mxu0 %v18133_v31  ;;  %17560 = vmatprep.subr.bf16.mxu1 %v17559_v34  ;;  %v17577_v31 = vunpack.c.h.s8.bf16 %v663_v17  ;;  %v18153_v34 = vunpack.c.h.s8.bf16 %v879_v23  ;;  %v18155_v36 = vunpack.c.l.s8.bf16 %v883_v30  ;;  %v18159_v45 = vunpack.c.h.s8.bf16 %v883_v30  ;;  %v673_v23 = vld [vmem:[%s22382_s4 + $0x5d8] sm:$0xff]  ;;  %v672_v30 = vld [vmem:[%s22382_s4 + $0x5d0] sm:$0xff] }
 0x2c2   : > { %18136 = vmatprep.subr.bf16.mxu0 %v18135_v35  ;;  %v17579_v35 = vunpack.c.l.s8.bf16 %v667_v29 }
 0x2c4   : > { %17562 = vmatpush1.bf16.msra.mxu1 %v17561_v41  ;;  %v882_v41 = vld [vmem:[%s22382_s4 + $0xc60] sm:$0xff] }
 0x2c5   : > { %18138 = vmatpush1.bf16.msra.mxu0 %v18137_v42  ;;  %17564 = vmatprep.subr.bf16.mxu1 %v17563_v43  ;;  %v17581_v42 = vunpack.c.l.s8.bf16 %v666_v40  ;;  %v18157_v43 = vunpack.c.l.s8.bf16 %v882_v41 }
 0x2c6   : > { %18140 = vmatprep.subr.bf16.mxu0 %v18139_v44  ;;  %v17583_v44 = vunpack.c.h.s8.bf16 %v667_v29 }
 0x2c8   : > { %17566 = vmatpush1.bf16.msra.mxu1 %v17565_v57  ;;  %v886_v57 = vld [vmem:[%s22382_s4 + $0xc80] sm:$0xff] }
 0x2c9   : > { %18142 = vmatpush1.bf16.msra.mxu0 %v18141_v63  ;;  %17568 = vmatprep.subr.bf16.mxu1 %v17567_v2  ;;  %v17585_v63 = vunpack.c.h.s8.bf16 %v666_v40  ;;  %v18161_v2 = vunpack.c.h.s8.bf16 %v882_v41  ;;  %v18163_v7 = vunpack.c.l.s8.bf16 %v886_v57  ;;  %v18167_v17 = vunpack.c.h.s8.bf16 %v886_v57  ;;  %v676_v41 = vld [vmem:[%s22382_s4 + $0x5f0] sm:$0xff]  ;;  %v675_v57 = vld [vmem:[%s22382_s4 + $0x5e8] sm:$0xff] }
 0x2ca   : > { %18144 = vmatprep.subr.bf16.mxu0 %v18143_v3  ;;  %v17587_v3 = vunpack.c.l.s8.bf16 %v670_v55 }
 0x2cc   : > { %17570 = vmatpush1.bf16.msra.mxu1 %v17569_v11  ;;  %v885_v11 = vld [vmem:[%s22382_s4 + $0xc78] sm:$0xff] }
 0x2cd   : > { %18146 = vmatpush1.bf16.msra.mxu0 %v18145_v12  ;;  %17572 = vmatprep.subr.bf16.mxu1 %v17571_v15  ;;  %v17589_v12 = vunpack.c.l.s8.bf16 %v669_v10  ;;  %v18165_v15 = vunpack.c.l.s8.bf16 %v885_v11 }
 0x2ce   : > { %18148 = vmatprep.subr.bf16.mxu0 %v18147_v16  ;;  %v17591_v16 = vunpack.c.h.s8.bf16 %v670_v55 }
 0x2d0   : > { %17574 = vmatpush1.bf16.msra.mxu1 %v17573_v24  ;;  %v889_v24 = vld [vmem:[%s22382_s4 + $0xc98] sm:$0xff] }
 0x2d1   : > { %18150 = vmatpush1.bf16.msra.mxu0 %v18149_v26  ;;  %17576 = vmatprep.subr.bf16.mxu1 %v17575_v27  ;;  %v17593_v26 = vunpack.c.h.s8.bf16 %v669_v10  ;;  %v18169_v27 = vunpack.c.h.s8.bf16 %v885_v11  ;;  %v18171_v29 = vunpack.c.l.s8.bf16 %v889_v24  ;;  %v18175_v40 = vunpack.c.h.s8.bf16 %v889_v24  ;;  %v679_v11 = vld [vmem:[%s22382_s4 + $0x608] sm:$0xff] }
 0x2d2   : > { %18152 = vmatprep.subr.bf16.mxu0 %v18151_v28  ;;  %v17595_v28 = vunpack.c.l.s8.bf16 %v673_v23 }
 0x2d4   : > { %17578 = vmatpush1.bf16.msra.mxu1 %v17577_v31  ;;  %v888_v31 = vld [vmem:[%s22382_s4 + $0xc90] sm:$0xff] }
 0x2d5   : > { %18154 = vmatpush1.bf16.msra.mxu0 %v18153_v34  ;;  %17580 = vmatprep.subr.bf16.mxu1 %v17579_v35  ;;  %v17597_v34 = vunpack.c.l.s8.bf16 %v672_v30  ;;  %v18173_v35 = vunpack.c.l.s8.bf16 %v888_v31 }
 0x2d6   : > { %18156 = vmatprep.subr.bf16.mxu0 %v18155_v36  ;;  %v17599_v36 = vunpack.c.h.s8.bf16 %v673_v23  ;;  %v17611_v23 = vunpack.c.l.s8.bf16 %v679_v11 }
 0x2d8   : > { %17582 = vmatpush1.bf16.msra.mxu1 %v17581_v42  ;;  %v892_v42 = vld [vmem:[%s22382_s4 + $0xcb0] sm:$0xff] }
 0x2d9   : > { %18158 = vmatpush1.bf16.msra.mxu0 %v18157_v43  ;;  %17584 = vmatprep.subr.bf16.mxu1 %v17583_v44  ;;  %v17601_v43 = vunpack.c.h.s8.bf16 %v672_v30  ;;  %v18177_v44 = vunpack.c.h.s8.bf16 %v888_v31  ;;  %v18179_v55 = vunpack.c.l.s8.bf16 %v892_v42  ;;  %v18183_v10 = vunpack.c.h.s8.bf16 %v892_v42 }
 0x2da   : > { %18160 = vmatprep.subr.bf16.mxu0 %v18159_v45  ;;  %v17603_v45 = vunpack.c.l.s8.bf16 %v676_v41  ;;  %v17615_v31 = vunpack.c.h.s8.bf16 %v679_v11  ;;  %v901_v11 = vld [vmem:[%s22382_s4 + $0xcf8] sm:$0xff] }
 0x2dc   : > { %17586 = vmatpush1.bf16.msra.mxu1 %v17585_v63  ;;  %v891_v63 = vld [vmem:[%s22382_s4 + $0xca8] sm:$0xff] }
 0x2dd   : > { %18162 = vmatpush1.bf16.msra.mxu0 %v18161_v2  ;;  %17588 = vmatprep.subr.bf16.mxu1 %v17587_v3  ;;  %v17605_v2 = vunpack.c.l.s8.bf16 %v675_v57  ;;  %v18181_v3 = vunpack.c.l.s8.bf16 %v891_v63 }
 0x2de   : > { %18164 = vmatprep.subr.bf16.mxu0 %v18163_v7  ;;  %v17607_v7 = vunpack.c.h.s8.bf16 %v676_v41 }
 0x2e0   : > { %17590 = vmatpush1.bf16.msra.mxu1 %v17589_v12  ;;  %v895_v12 = vld [vmem:[%s22382_s4 + $0xcc8] sm:$0xff] }
 0x2e1   : > { %18166 = vmatpush1.bf16.msra.mxu0 %v18165_v15  ;;  %17592 = vmatprep.subr.bf16.mxu1 %v17591_v16  ;;  %v8219_v15 = vcombine.high %v22811_v50, %v22811_v50  ;;  %v17609_v16 = vunpack.c.h.s8.bf16 %v675_v57  ;;  %v18187_v24 = vunpack.c.l.s8.bf16 %v895_v12  ;;  %v897_v57 = vld [vmem:[%s22382_s4 + $0xcd8] sm:$0xff] }
 0x2e2   : > { %18168 = vmatprep.subr.bf16.mxu0 %v18167_v17  ;;  %v18185_v17 = vunpack.c.h.s8.bf16 %v891_v63 }
 0x2e4   : > { %17594 = vmatpush1.bf16.msra.mxu1 %v17593_v26  ;;  %v678_v26 = vld [vmem:[%s22382_s4 + $0x600] sm:$0xff] }
 0x2e5   : > { %18170 = vmatpush1.bf16.msra.mxu0 %v18169_v27  ;;  %17596 = vmatprep.subr.bf16.mxu1 %v17595_v28  ;;  %v894_v27 = vld [vmem:[%s22382_s4 + $0xcc0] sm:$0xff]  ;;  %v22869_v28 = vld.sshfl [vmem:[%s22408_s17 + $0x20] sm:$0xff pattern:$0x76325410]  ;;  %v17613_v50 = vunpack.c.l.s8.bf16 %v678_v26  ;;  %v17617_v42 = vunpack.c.h.s8.bf16 %v678_v26 }
 0x2e6   : > { %18172 = vmatprep.subr.bf16.mxu0 %v18171_v29  ;;  %v22872_v29 = vrot.slane %v8219_v15, %v22435_v51  ;;  %v18189_v30 = vunpack.c.l.s8.bf16 %v894_v27  ;;  %v18201_v15 = vunpack.c.h.s8.bf16 %v897_v57 }
 0x2e8   : > { %17598 = vmatpush1.bf16.msra.mxu1 %v17597_v34  ;;  %v18191_v34 = vunpack.c.h.s8.bf16 %v895_v12  ;;  %v22882_v41 = vcombine.high %v22872_v29, %v22872_v29 }
 0x2e9   : > { %18174 = vmatpush1.bf16.msra.mxu0 %v18173_v35  ;;  %17600 = vmatprep.subr.bf16.mxu1 %v17599_v36  ;;  %v682_v35 = vld [vmem:[%s22382_s4 + $0x620] sm:$0xff] }
 0x2ea   : > { %18176 = vmatprep.subr.bf16.mxu0 %v18175_v40  ;;  %v898_v36 = vld [vmem:[%s22382_s4 + $0xce0] sm:$0xff]  ;;  %v22878_v40 = vcombine.high %v22869_v28, %v22869_v28 }
 0x2ec   : > { %17602 = vmatpush1.bf16.msra.mxu1 %v17601_v43  ;;  %v18193_v43 = vunpack.c.h.s8.bf16 %v894_v27 }
 0x2ed   : > { %18178 = vmatpush1.bf16.msra.mxu0 %v18177_v44  ;;  %17604 = vmatprep.subr.bf16.mxu1 %v17603_v45  ;;  %v17619_v44 = vunpack.c.l.s8.bf16 %v682_v35  ;;  %v18195_v45 = vunpack.c.l.s8.bf16 %v898_v36 }
 0x2ee   : > { %18180 = vmatprep.subr.bf16.mxu0 %v18179_v55  ;;  %v681_v55 = vld [vmem:[%s22382_s4 + $0x618] sm:$0xff] }
 0x2ef   : > { %v17621_v63 = vunpack.c.l.s8.bf16 %v681_v55  ;;  %v17625_v12 = vunpack.c.h.s8.bf16 %v681_v55 }
 0x2f0   : > { %17606 = vmatpush1.bf16.msra.mxu1 %v17605_v2  ;;  %v18197_v2 = vunpack.c.l.s8.bf16 %v897_v57 }
 0x2f1   : > { %18182 = vmatpush1.bf16.msra.mxu0 %v18181_v3  ;;  %17608 = vmatprep.subr.bf16.mxu1 %v17607_v7  ;;  %v17623_v3 = vunpack.c.h.s8.bf16 %v682_v35  ;;  %v18199_v7 = vunpack.c.h.s8.bf16 %v898_v36 }
 0x2f2   : > { %18184 = vmatprep.subr.bf16.mxu0 %v18183_v10  ;;  %v685_v10 = vld [vmem:[%s22382_s4 + $0x638] sm:$0xff] }
 0x2f4   : > { %17610 = vmatpush1.bf16.msra.mxu1 %v17609_v16  ;;  %v17627_v16 = vunpack.c.l.s8.bf16 %v685_v10 }
 0x2f5   : > { %18186 = vmatpush1.bf16.msra.mxu0 %v18185_v17  ;;  %17612 = vmatprep.subr.bf16.mxu1 %v17611_v23  ;;  %v18203_v17 = vunpack.c.l.s8.bf16 %v901_v11  ;;  %v684_v23 = vld [vmem:[%s22382_s4 + $0x630] sm:$0xff] }
 0x2f6   : > { %18188 = vmatprep.subr.bf16.mxu0 %v18187_v24  ;;  %v900_v24 = vld [vmem:[%s22382_s4 + $0xcf0] sm:$0xff]  ;;  %v17629_v26 = vunpack.c.l.s8.bf16 %v684_v23  ;;  %v17633_v35 = vunpack.c.h.s8.bf16 %v684_v23 }
 0x2f7   : > { %9012 = vmatmul.mubr.f32.vlgmr.msra.gmra.mrb[0].mxu1 %v22816_v8  ;;  %v18205_v27 = vunpack.c.l.s8.bf16 %v900_v24  ;;  %v18209_v36 = vunpack.c.h.s8.bf16 %v900_v24 }
 0x2f8   : > { %9651 = vmatmul.mubr.f32.vlgmr.msra.gmra.mrb[0].mxu0 %v22820_v56  ;;  %17614 = vmatpush1.bf16.msra.mxu1 %v17613_v50  ;;  %v17631_v50 = vunpack.c.h.s8.bf16 %v685_v10 }
 0x2f9   : > { %18190 = vmatpush1.bf16.msra.mxu0 %v18189_v30  ;;  %17616 = vmatprep.subr.bf16.mxu1 %v17615_v31  ;;  %v18207_v30 = vunpack.c.h.s8.bf16 %v901_v11  ;;  %v688_v31 = vld [vmem:[%s22382_s4 + $0x650] sm:$0xff] }
 0x2fa   : > { %18192 = vmatprep.subr.bf16.mxu0 %v18191_v34  ;;  %9082 = vmatprep.mubr.f32.mxu1 %v22878_v40  ;;  %v904_v34 = vld [vmem:[%s22382_s4 + $0xd10] sm:$0xff] }
 0x2fb   : > { %9721 = vmatprep.mubr.f32.mxu0 %v22882_v41 }
 0x2fc   : > { %17618 = vmatpush1.bf16.msra.mxu1 %v17617_v42  ;;  %v17635_v42 = vunpack.c.l.s8.bf16 %v688_v31 }
 0x2fd   : > { %18194 = vmatpush1.bf16.msra.mxu0 %v18193_v43  ;;  %17620 = vmatprep.subr.bf16.mxu1 %v17619_v44  ;;  %v18211_v43 = vunpack.c.l.s8.bf16 %v904_v34  ;;  %v687_v44 = vld [vmem:[%s22382_s4 + $0x648] sm:$0xff] }
 0x2fe   : > { %18196 = vmatprep.subr.bf16.mxu0 %v18195_v45  ;;  %v903_v45 = vld [vmem:[%s22382_s4 + $0xd08] sm:$0xff]  ;;  %v17637_v55 = vunpack.c.l.s8.bf16 %v687_v44  ;;  %v17641_v10 = vunpack.c.h.s8.bf16 %v687_v44 }
 0x2ff   : > { %v18213_v57 = vunpack.c.l.s8.bf16 %v903_v45  ;;  %v18217_v11 = vunpack.c.h.s8.bf16 %v903_v45 }
 0x300   : > { %17622 = vmatpush1.bf16.msra.mxu1 %v17621_v63  ;;  %v17639_v63 = vunpack.c.h.s8.bf16 %v688_v31 }
 0x301   : > { %18198 = vmatpush1.bf16.msra.mxu0 %v18197_v2  ;;  %17624 = vmatprep.subr.bf16.mxu1 %v17623_v3  ;;  %v18215_v2 = vunpack.c.h.s8.bf16 %v904_v34  ;;  %v691_v3 = vld [vmem:[%s22382_s4 + $0x668] sm:$0xff] }
 0x302   : > { %18200 = vmatprep.subr.bf16.mxu0 %v18199_v7  ;;  %v907_v7 = vld [vmem:[%s22382_s4 + $0xd28] sm:$0xff] }
 0x304   : > { %17626 = vmatpush1.bf16.msra.mxu1 %v17625_v12  ;;  %v17643_v12 = vunpack.c.l.s8.bf16 %v691_v3 }
 0x305   : > { %18202 = vmatpush1.bf16.msra.mxu0 %v18201_v15  ;;  %17628 = vmatprep.subr.bf16.mxu1 %v17627_v16  ;;  %v18219_v15 = vunpack.c.l.s8.bf16 %v907_v7  ;;  %v690_v16 = vld [vmem:[%s22382_s4 + $0x660] sm:$0xff] }
 0x306   : > { %18204 = vmatprep.subr.bf16.mxu0 %v18203_v17  ;;  %v906_v17 = vld [vmem:[%s22382_s4 + $0xd20] sm:$0xff]  ;;  %v17645_v23 = vunpack.c.l.s8.bf16 %v690_v16  ;;  %v17649_v31 = vunpack.c.h.s8.bf16 %v690_v16 }
 0x307   : > { %v18221_v24 = vunpack.c.l.s8.bf16 %v906_v17  ;;  %v18225_v34 = vunpack.c.h.s8.bf16 %v906_v17 }
 0x308   : > { %17630 = vmatpush1.bf16.msra.mxu1 %v17629_v26  ;;  %v17647_v26 = vunpack.c.h.s8.bf16 %v691_v3 }
 0x309   : > { %18206 = vmatpush1.bf16.msra.mxu0 %v18205_v27  ;;  %17632 = vmatprep.subr.bf16.mxu1 %v17631_v50  ;;  %v18223_v27 = vunpack.c.h.s8.bf16 %v907_v7  ;;  %v694_v50 = vld [vmem:[%s22382_s4 + $0x680] sm:$0xff] }
 0x30a   : > { %18208 = vmatprep.subr.bf16.mxu0 %v18207_v30  ;;  %v910_v30 = vld [vmem:[%s22382_s4 + $0xd40] sm:$0xff] }
 0x30c   : > { %17634 = vmatpush1.bf16.msra.mxu1 %v17633_v35  ;;  %v17651_v35 = vunpack.c.l.s8.bf16 %v694_v50 }
 0x30d   : > { %18210 = vmatpush1.bf16.msra.mxu0 %v18209_v36  ;;  %17636 = vmatprep.subr.bf16.mxu1 %v17635_v42  ;;  %v18227_v36 = vunpack.c.l.s8.bf16 %v910_v30  ;;  %v693_v42 = vld [vmem:[%s22382_s4 + $0x678] sm:$0xff] }
 0x30e   : > { %18212 = vmatprep.subr.bf16.mxu0 %v18211_v43  ;;  %v909_v43 = vld [vmem:[%s22382_s4 + $0xd38] sm:$0xff]  ;;  %v17653_v44 = vunpack.c.l.s8.bf16 %v693_v42  ;;  %v17657_v3 = vunpack.c.h.s8.bf16 %v693_v42 }
 0x30f   : > { %v18229_v45 = vunpack.c.l.s8.bf16 %v909_v43  ;;  %v18233_v7 = vunpack.c.h.s8.bf16 %v909_v43 }
 0x310   : > { %17638 = vmatpush1.bf16.msra.mxu1 %v17637_v55  ;;  %v17655_v55 = vunpack.c.h.s8.bf16 %v694_v50 }
 0x311   : > { %18214 = vmatpush1.bf16.msra.mxu0 %v18213_v57  ;;  %17640 = vmatprep.subr.bf16.mxu1 %v17639_v63  ;;  %v18231_v57 = vunpack.c.h.s8.bf16 %v910_v30  ;;  %v697_v63 = vld [vmem:[%s22382_s4 + $0x698] sm:$0xff] }
 0x312   : > { %18216 = vmatprep.subr.bf16.mxu0 %v18215_v2  ;;  %v913_v2 = vld [vmem:[%s22382_s4 + $0xd58] sm:$0xff] }
 0x314   : > { %17642 = vmatpush1.bf16.msra.mxu1 %v17641_v10  ;;  %v17659_v10 = vunpack.c.l.s8.bf16 %v697_v63 }
 0x315   : > { %18218 = vmatpush1.bf16.msra.mxu0 %v18217_v11  ;;  %17644 = vmatprep.subr.bf16.mxu1 %v17643_v12  ;;  %v18235_v11 = vunpack.c.l.s8.bf16 %v913_v2  ;;  %v696_v12 = vld [vmem:[%s22382_s4 + $0x690] sm:$0xff] }
 0x316   : > { %18220 = vmatprep.subr.bf16.mxu0 %v18219_v15  ;;  %v912_v15 = vld [vmem:[%s22382_s4 + $0xd50] sm:$0xff]  ;;  %v17661_v16 = vunpack.c.l.s8.bf16 %v696_v12  ;;  %v17665_v50 = vunpack.c.h.s8.bf16 %v696_v12 }
 0x317   : > { %v18237_v17 = vunpack.c.l.s8.bf16 %v912_v15  ;;  %v18241_v30 = vunpack.c.h.s8.bf16 %v912_v15  ;;  %v488_v12 = vld [vmem:[%s22382_s4 + $0x10] sm:$0xff] }
 0x318   : > { %17646 = vmatpush1.bf16.msra.mxu1 %v17645_v23  ;;  %v17663_v23 = vunpack.c.h.s8.bf16 %v697_v63  ;;  %v22917_v63 = vld [vmem:[%s22408_s17 + $0x48] sm:$0xff] }
 0x319   : > { %18222 = vmatpush1.bf16.msra.mxu0 %v18221_v24  ;;  %17648 = vmatprep.subr.bf16.mxu1 %v17647_v26  ;;  %v18239_v24 = vunpack.c.h.s8.bf16 %v913_v2  ;;  %v700_v26 = vld [vmem:[%s22382_s4 + $0x6b0] sm:$0xff]  ;;  %v22923_v15 = vrot.slane %v22917_v63, %v22435_v51 }
 0x31a   : > { %18224 = vmatprep.subr.bf16.mxu0 %v18223_v27  ;;  %v916_v27 = vld [vmem:[%s22382_s4 + $0xd70] sm:$0xff] }
 0x31c   : > { %17650 = vmatpush1.bf16.msra.mxu1 %v17649_v31  ;;  %v17667_v31 = vunpack.c.l.s8.bf16 %v700_v26 }
 0x31d   : > { %18226 = vmatpush1.bf16.msra.mxu0 %v18225_v34  ;;  %17652 = vmatprep.subr.bf16.mxu1 %v17651_v35  ;;  %v18243_v34 = vunpack.c.l.s8.bf16 %v916_v27  ;;  %v699_v35 = vld [vmem:[%s22382_s4 + $0x6a8] sm:$0xff] }
 0x31e   : > { %18228 = vmatprep.subr.bf16.mxu0 %v18227_v36  ;;  %v915_v36 = vld [vmem:[%s22382_s4 + $0xd68] sm:$0xff]  ;;  %v17669_v42 = vunpack.c.l.s8.bf16 %v699_v35  ;;  %v17673_v2 = vunpack.c.h.s8.bf16 %v699_v35 }
 0x31f   : > { %v18245_v43 = vunpack.c.l.s8.bf16 %v915_v36 }
 0x320   : > { %17654 = vmatpush1.bf16.msra.mxu1 %v17653_v44  ;;  %v17671_v44 = vunpack.c.h.s8.bf16 %v700_v26  ;;  %v922_v26 = vld [vmem:[%s22382_s4 + $0xda0] sm:$0xff] }
 0x321   : > { %18230 = vmatpush1.bf16.msra.mxu0 %v18229_v45  ;;  %17656 = vmatprep.subr.bf16.mxu1 %v17655_v55  ;;  %v18247_v45 = vunpack.c.h.s8.bf16 %v916_v27  ;;  %v919_v55 = vld [vmem:[%s22382_s4 + $0xd88] sm:$0xff] }
 0x322   : > { %18232 = vmatprep.subr.bf16.mxu0 %v18231_v57  ;;  %v500_v57 = vld [vmem:[%s22382_s4 + $0x70] sm:$0xff]  ;;  %v503_v27 = vld [vmem:[%s22382_s4 + $0x88] sm:$0xff] }
 0x323   : > { %v19347_v35 = vunpack.c.l.s8.bf16 %v503_v27 }
 0x324   : > { %17658 = vmatpush1.bf16.msra.mxu1 %v17657_v3  ;;  %v18249_v3 = vunpack.c.h.s8.bf16 %v915_v36  ;;  %v921_v36 = vld [vmem:[%s22382_s4 + $0xd98] sm:$0xff] }
 0x325   : > { %18234 = vmatpush1.bf16.msra.mxu0 %v18233_v7  ;;  %17660 = vmatprep.subr.bf16.mxu1 %v17659_v10  ;;  %v18251_v7 = vunpack.c.l.s8.bf16 %v919_v55  ;;  %v19339_v10 = vunpack.c.l.s8.bf16 %v500_v57 }
 0x326   : > { %18236 = vmatprep.subr.bf16.mxu0 %v18235_v11  ;;  %v918_v11 = vld [vmem:[%s22382_s4 + $0xd80] sm:$0xff] }
 0x328   : > { %17662 = vmatpush1.bf16.msra.mxu1 %v17661_v16  ;;  %v18253_v16 = vunpack.c.l.s8.bf16 %v918_v11 }
 0x329   : > { %18238 = vmatpush1.bf16.msra.mxu0 %v18237_v17  ;;  %17664 = vmatprep.subr.bf16.mxu1 %v17663_v23  ;;  %v19341_v17 = vunpack.c.l.s8.bf16 %v488_v12  ;;  %v18255_v23 = vunpack.c.h.s8.bf16 %v919_v55  ;;  %v19351_v55 = vunpack.c.h.s8.bf16 %v503_v27  ;;  %v509_v27 = vld [vmem:[%s22382_s4 + $0xb8] sm:$0xff] }
 0x32a   : > { %18240 = vmatprep.subr.bf16.mxu0 %v18239_v24  ;;  %v19343_v24 = vunpack.c.h.s8.bf16 %v500_v57  ;;  %v925_v57 = vld [vmem:[%s22382_s4 + $0xdb8] sm:$0xff] }
 0x32c   : > { %17666 = vmatpush1.bf16.msra.mxu1 %v17665_v50  ;;  %v22929_v50 = vcombine.high %v22923_v15, %v22923_v15 }
 0x32d   : > { %18242 = vmatpush1.bf16.msra.mxu0 %v18241_v30  ;;  %17668 = vmatprep.subr.bf16.mxu1 %v17667_v31  ;;  %v18257_v30 = vunpack.c.h.s8.bf16 %v918_v11  ;;  %v19345_v31 = vunpack.c.h.s8.bf16 %v488_v12  ;;  %v924_v11 = vld [vmem:[%s22382_s4 + $0xdb0] sm:$0xff]  ;;  %v494_v12 = vld [vmem:[%s22382_s4 + $0x40] sm:$0xff] }
 0x32e   : > { %18244 = vmatprep.subr.bf16.mxu0 %v18243_v34  ;;  %v18259_v34 = vunpack.c.l.s8.bf16 %v922_v26 }
 0x330   : > { %17670 = vmatpush1.bf16.msra.mxu1 %v17669_v42  ;;  %v491_v42 = vld [vmem:[%s22382_s4 + $0x28] sm:$0xff] }
 0x331   : > { %18246 = vmatpush1.bf16.msra.mxu0 %v18245_v43  ;;  %17672 = vmatprep.subr.bf16.mxu1 %v17671_v44  ;;  %v18261_v43 = vunpack.c.l.s8.bf16 %v921_v36  ;;  %v19349_v44 = vunpack.c.l.s8.bf16 %v491_v42 }
 0x332   : > { %18248 = vmatprep.subr.bf16.mxu0 %v18247_v45  ;;  %v18263_v45 = vunpack.c.h.s8.bf16 %v922_v26  ;;  %v928_v26 = vld [vmem:[%s22382_s4 + $0xdd0] sm:$0xff] }
 0x334   : > { %17674 = vmatpush1.bf16.msra.mxu1 %v17673_v2  ;;  %v506_v2 = vld [vmem:[%s22382_s4 + $0xa0] sm:$0xff] }
 0x335   : > { %18250 = vmatpush1.bf16.msra.mxu0 %v18249_v3  ;;  %19340 = vmatprep.subr.bf16.mxu1 %v19339_v10  ;;  %v18265_v3 = vunpack.c.h.s8.bf16 %v921_v36  ;;  %v19355_v10 = vunpack.c.l.s8.bf16 %v506_v2  ;;  %v927_v36 = vld [vmem:[%s22382_s4 + $0xdc8] sm:$0xff] }
 0x336   : > { %18252 = vmatprep.subr.bf16.mxu0 %v18251_v7  ;;  %v19353_v7 = vunpack.c.h.s8.bf16 %v491_v42  ;;  %v497_v42 = vld [vmem:[%s22382_s4 + $0x58] sm:$0xff] }
 0x337   : > { %9083 = vmatmul.mubr.f32.vlgmr.msra.gmra.mrb[0].mxu1 %v22869_v28 }
 0x338   : > { %9722 = vmatmul.mubr.f32.vlgmr.msra.gmra.mrb[0].mxu0 %v22872_v29  ;;  %19342 = vmatpush3.bf16.msra.mxu1 %v19341_v17  ;;  %v19357_v17 = vunpack.c.l.s8.bf16 %v494_v12 }
 0x339   : > { %18254 = vmatpush1.bf16.msra.mxu0 %v18253_v16  ;;  %19344 = vmatprep.subr.bf16.mxu1 %v19343_v24  ;;  %v18269_v16 = vunpack.c.l.s8.bf16 %v924_v11  ;;  %v19359_v24 = vunpack.c.h.s8.bf16 %v506_v2  ;;  %v524_v2 = vld [vmem:[%s22382_s4 + $0x130] sm:$0xff] }
 0x33a   : > { %18256 = vmatprep.subr.bf16.mxu0 %v18255_v23  ;;  %10999 = vmatprep.mubr.f32.mxu1 %v22446_v58  ;;  %v18267_v58 = vunpack.c.l.s8.bf16 %v925_v57  ;;  %v18271_v23 = vunpack.c.h.s8.bf16 %v925_v57  ;;  %v931_v57 = vld [vmem:[%s22382_s4 + $0xde8] sm:$0xff] }
 0x33b   : > { %9792 = vmatprep.mubr.f32.mxu0 %v22929_v50 }
 0x33c   : > { %19346 = vmatpush3.bf16.msra.mxu1 %v19345_v31  ;;  %v19361_v31 = vunpack.c.h.s8.bf16 %v494_v12  ;;  %v512_v12 = vld [vmem:[%s22382_s4 + $0xd0] sm:$0xff] }
 0x33d   : > { %18258 = vmatpush1.bf16.msra.mxu0 %v18257_v30  ;;  %19348 = vmatprep.subr.bf16.mxu1 %v19347_v35  ;;  %v18273_v30 = vunpack.c.h.s8.bf16 %v924_v11  ;;  %v19363_v35 = vunpack.c.l.s8.bf16 %v509_v27  ;;  %v930_v11 = vld [vmem:[%s22382_s4 + $0xde0] sm:$0xff] }
 0x33e   : > { %18260 = vmatprep.subr.bf16.mxu0 %v18259_v34  ;;  %v18275_v34 = vunpack.c.l.s8.bf16 %v928_v26 }
 0x340   : > { %19350 = vmatpush3.bf16.msra.mxu1 %v19349_v44  ;;  %v19365_v44 = vunpack.c.l.s8.bf16 %v497_v42 }
 0x341   : > { %18262 = vmatpush1.bf16.msra.mxu0 %v18261_v43  ;;  %19352 = vmatprep.subr.bf16.mxu1 %v19351_v55  ;;  %v18277_v43 = vunpack.c.l.s8.bf16 %v927_v36  ;;  %v19367_v55 = vunpack.c.h.s8.bf16 %v509_v27  ;;  %v527_v27 = vld [vmem:[%s22382_s4 + $0x148] sm:$0xff] }
 0x342   : > { %18264 = vmatprep.subr.bf16.mxu0 %v18263_v45  ;;  %v18279_v45 = vunpack.c.h.s8.bf16 %v928_v26  ;;  %v934_v26 = vld [vmem:[%s22382_s4 + $0xe00] sm:$0xff] }
 0x344   : > { %19354 = vmatpush3.bf16.msra.mxu1 %v19353_v7  ;;  %v19369_v7 = vunpack.c.h.s8.bf16 %v497_v42  ;;  %v515_v42 = vld [vmem:[%s22382_s4 + $0xe8] sm:$0xff] }
 0x345   : > { %18266 = vmatpush1.bf16.msra.mxu0 %v18265_v3  ;;  %19356 = vmatprep.subr.bf16.mxu1 %v19355_v10  ;;  %v18281_v3 = vunpack.c.h.s8.bf16 %v927_v36  ;;  %v19371_v10 = vunpack.c.l.s8.bf16 %v524_v2  ;;  %v933_v36 = vld [vmem:[%s22382_s4 + $0xdf8] sm:$0xff] }
 0x346   : > { %18268 = vmatprep.subr.bf16.mxu0 %v18267_v58  ;;  %v18283_v58 = vunpack.c.l.s8.bf16 %v931_v57 }
 0x348   : > { %19358 = vmatpush3.bf16.msra.mxu1 %v19357_v17  ;;  %v19373_v17 = vunpack.c.l.s8.bf16 %v512_v12 }
 0x349   : > { %18270 = vmatpush1.bf16.msra.mxu0 %v18269_v16  ;;  %19360 = vmatprep.subr.bf16.mxu1 %v19359_v24  ;;  %v18285_v16 = vunpack.c.l.s8.bf16 %v930_v11  ;;  %v19375_v24 = vunpack.c.h.s8.bf16 %v524_v2  ;;  %v18297_v2 = vunpack.c.h.s8.bf16 %v933_v36 }
 0x34a   : > { %18272 = vmatprep.subr.bf16.mxu0 %v18271_v23  ;;  %v18287_v23 = vunpack.c.h.s8.bf16 %v931_v57  ;;  %v530_v57 = vld [vmem:[%s22382_s4 + $0x160] sm:$0xff] }
 0x34c   : > { %19362 = vmatpush3.bf16.msra.mxu1 %v19361_v31  ;;  %v19377_v31 = vunpack.c.h.s8.bf16 %v512_v12 }
 0x34d   : > { %18274 = vmatpush1.bf16.msra.mxu0 %v18273_v30  ;;  %19364 = vmatprep.subr.bf16.mxu1 %v19363_v35  ;;  %v18289_v30 = vunpack.c.h.s8.bf16 %v930_v11  ;;  %v19379_v35 = vunpack.c.l.s8.bf16 %v527_v27 }
 0x34e   : > { %18276 = vmatprep.subr.bf16.mxu0 %v18275_v34  ;;  %v18291_v34 = vunpack.c.l.s8.bf16 %v934_v26 }
 0x350   : > { %19366 = vmatpush3.bf16.msra.mxu1 %v19365_v44  ;;  %v19381_v44 = vunpack.c.l.s8.bf16 %v515_v42 }
 0x351   : > { %18278 = vmatpush1.bf16.msra.mxu0 %v18277_v43  ;;  %19368 = vmatprep.subr.bf16.mxu1 %v19367_v55  ;;  %v18293_v43 = vunpack.c.l.s8.bf16 %v933_v36  ;;  %v937_v55 = vld [vmem:[%s22382_s4 + $0xe18] sm:$0xff] }
 0x352   : > { %18280 = vmatprep.subr.bf16.mxu0 %v18279_v45  ;;  %v19383_v45 = vunpack.c.h.s8.bf16 %v527_v27 }
 0x354   : > { %19370 = vmatpush3.bf16.msra.mxu1 %v19369_v7  ;;  %v19387_v7 = vunpack.c.l.s8.bf16 %v530_v57 }
 0x355   : > { %18282 = vmatpush1.bf16.msra.mxu0 %v18281_v3  ;;  %19372 = vmatprep.subr.bf16.mxu1 %v19371_v10  ;;  %v19385_v3 = vunpack.c.h.s8.bf16 %v515_v42  ;;  %v518_v10 = vld [vmem:[%s22382_s4 + $0x100] sm:$0xff] }
 0x356   : > { %18284 = vmatprep.subr.bf16.mxu0 %v18283_v58  ;;  %v936_v58 = vld [vmem:[%s22382_s4 + $0xe10] sm:$0xff]  ;;  %v19389_v12 = vunpack.c.l.s8.bf16 %v518_v10  ;;  %v19393_v27 = vunpack.c.h.s8.bf16 %v518_v10 }
 0x357   : > { %11000 = vmatmul.mubr.f32.vlgmr.msra.gmra.mrb[2].mxu1 %v22439_v52  ;;  %v18295_v52 = vunpack.c.h.s8.bf16 %v934_v26  ;;  %v18301_v11 = vunpack.c.l.s8.bf16 %v936_v58  ;;  %v18305_v26 = vunpack.c.h.s8.bf16 %v936_v58  ;;  %v536_v58 = vld [vmem:[%s22382_s4 + $0x190] sm:$0xff] }
 0x358   : > { %19374 = vmatpush3.bf16.msra.mxu1 %v19373_v17  ;;  %11069 = vmatprep.mubr.f32.mxu1 %v22490_v4  ;;  %v18299_v4 = vunpack.c.l.s8.bf16 %v937_v55  ;;  %v19391_v17 = vunpack.c.h.s8.bf16 %v530_v57 }
 0x359   : > { %18286 = vmatpush1.bf16.msra.mxu0 %v18285_v16  ;;  %19376 = vmatprep.subr.bf16.mxu1 %v19375_v24  ;;  %v18303_v16 = vunpack.c.h.s8.bf16 %v937_v55  ;;  %v533_v24 = vld [vmem:[%s22382_s4 + $0x178] sm:$0xff]  ;;  %v8236_v55 = vcombine.high %v22917_v63, %v22917_v63 }
 0x35a   : > { %18288 = vmatprep.subr.bf16.mxu0 %v18287_v23  ;;  %v940_v23 = vld [vmem:[%s22382_s4 + $0xe30] sm:$0xff] }
 0x35b   : > { %v22970_v10 = vrot.slane %v8236_v55, %v22435_v51 }
 0x35c   : > { %19378 = vmatpush3.bf16.msra.mxu1 %v19377_v31  ;;  %v19395_v31 = vunpack.c.l.s8.bf16 %v533_v24 }
 0x35d   : > { %18290 = vmatpush1.bf16.msra.mxu0 %v18289_v30  ;;  %19380 = vmatprep.subr.bf16.mxu1 %v19379_v35  ;;  %v18307_v30 = vunpack.c.l.s8.bf16 %v940_v23  ;;  %v521_v35 = vld [vmem:[%s22382_s4 + $0x118] sm:$0xff] }
 0x35e   : > { %18292 = vmatprep.subr.bf16.mxu0 %v18291_v34  ;;  %v939_v34 = vld [vmem:[%s22382_s4 + $0xe28] sm:$0xff]  ;;  %v19397_v42 = vunpack.c.l.s8.bf16 %v521_v35 }
 0x35f   : > { %v18309_v36 = vunpack.c.l.s8.bf16 %v939_v34  ;;  %v18313_v57 = vunpack.c.h.s8.bf16 %v939_v34  ;;  %v945_v34 = vld [vmem:[%s22382_s4 + $0xe58] sm:$0xff] }
 0x360   : > { %19382 = vmatpush3.bf16.msra.mxu1 %v19381_v44  ;;  %v19399_v44 = vunpack.c.h.s8.bf16 %v533_v24  ;;  %v22976_v24 = vcombine.high %v22970_v10, %v22970_v10 }
 0x361   : > { %18294 = vmatpush1.bf16.msra.mxu0 %v18293_v43  ;;  %19384 = vmatprep.subr.bf16.mxu1 %v19383_v45  ;;  %v18311_v43 = vunpack.c.h.s8.bf16 %v940_v23  ;;  %v548_v45 = vld [vmem:[%s22382_s4 + $0x1f0] sm:$0xff]  ;;  %v551_v23 = vld [vmem:[%s22382_s4 + $0x208] sm:$0xff] }
 0x362   : > { %18296 = vmatprep.subr.bf16.mxu0 %v18295_v52  ;;  %v943_v52 = vld [vmem:[%s22382_s4 + $0xe48] sm:$0xff] }
 0x363   : > { %v18319_v63 = vunpack.c.h.s8.bf16 %v943_v52 }
 0x364   : > { %19386 = vmatpush3.bf16.msra.mxu1 %v19385_v3  ;;  %v18315_v3 = vunpack.c.l.s8.bf16 %v943_v52  ;;  %v554_v52 = vld [vmem:[%s22382_s4 + $0x220] sm:$0xff] }
 0x365   : > { %18298 = vmatpush1.bf16.msra.mxu0 %v18297_v2  ;;  %19388 = vmatprep.subr.bf16.mxu1 %v19387_v7  ;;  %v19401_v2 = vunpack.c.h.s8.bf16 %v521_v35  ;;  %v942_v7 = vld [vmem:[%s22382_s4 + $0xe40] sm:$0xff]  ;;  %v539_v35 = vld [vmem:[%s22382_s4 + $0x1a8] sm:$0xff] }
 0x366   : > { %18300 = vmatprep.subr.bf16.mxu0 %v18299_v4  ;;  %v19403_v4 = vunpack.c.l.s8.bf16 %v548_v45  ;;  %v19417_v55 = vunpack.c.h.s8.bf16 %v539_v35 }
 0x368   : > { %19390 = vmatpush3.bf16.msra.mxu1 %v19389_v12  ;;  %v19405_v12 = vunpack.c.l.s8.bf16 %v536_v58 }
 0x369   : > { %18302 = vmatpush1.bf16.msra.mxu0 %v18301_v11  ;;  %19392 = vmatprep.subr.bf16.mxu1 %v19391_v17  ;;  %v18317_v11 = vunpack.c.l.s8.bf16 %v942_v7  ;;  %v946_v17 = vld [vmem:[%s22382_s4 + $0xe60] sm:$0xff] }
 0x36a   : > { %18304 = vmatprep.subr.bf16.mxu0 %v18303_v16  ;;  %v19407_v16 = vunpack.c.h.s8.bf16 %v548_v45  ;;  %v18329_v45 = vunpack.c.h.s8.bf16 %v945_v34 }
 0x36c   : > { %19394 = vmatpush3.bf16.msra.mxu1 %v19393_v27  ;;  %v19409_v27 = vunpack.c.h.s8.bf16 %v536_v58 }
 0x36d   : > { %18306 = vmatpush1.bf16.msra.mxu0 %v18305_v26  ;;  %19396 = vmatprep.subr.bf16.mxu1 %v19395_v31  ;;  %v18321_v26 = vunpack.c.h.s8.bf16 %v942_v7  ;;  %v19411_v31 = vunpack.c.l.s8.bf16 %v551_v23 }
 0x36e   : > { %18308 = vmatprep.subr.bf16.mxu0 %v18307_v30  ;;  %v18323_v30 = vunpack.c.l.s8.bf16 %v946_v17 }
 0x370   : > { %19398 = vmatpush3.bf16.msra.mxu1 %v19397_v42  ;;  %v18327_v42 = vunpack.c.h.s8.bf16 %v946_v17 }
 0x371   : > { %18310 = vmatpush1.bf16.msra.mxu0 %v18309_v36  ;;  %19400 = vmatprep.subr.bf16.mxu1 %v19399_v44  ;;  %v19413_v36 = vunpack.c.l.s8.bf16 %v539_v35  ;;  %v949_v44 = vld [vmem:[%s22382_s4 + $0xe78] sm:$0xff] }
 0x372   : > { %18312 = vmatprep.subr.bf16.mxu0 %v18311_v43  ;;  %v19415_v43 = vunpack.c.h.s8.bf16 %v551_v23  ;;  %v18335_v58 = vunpack.c.h.s8.bf16 %v949_v44 }
 0x374   : > { %19402 = vmatpush3.bf16.msra.mxu1 %v19401_v2  ;;  %v948_v2 = vld [vmem:[%s22382_s4 + $0xe70] sm:$0xff] }
 0x375   : > { %18314 = vmatpush1.bf16.msra.mxu0 %v18313_v57  ;;  %19404 = vmatprep.subr.bf16.mxu1 %v19403_v4  ;;  %v19419_v57 = vunpack.c.l.s8.bf16 %v554_v52  ;;  %v18333_v4 = vunpack.c.l.s8.bf16 %v948_v2 }
 0x376   : > { %18316 = vmatprep.subr.bf16.mxu0 %v18315_v3  ;;  %v542_v3 = vld [vmem:[%s22382_s4 + $0x1c0] sm:$0xff] }
 0x377   : > { %11070 = vmatmul.mubr.f32.vlgmr.msra.gmra.mrb[4].mxu1 %v22480_v61  ;;  %v18325_v61 = vunpack.c.l.s8.bf16 %v945_v34  ;;  %v19421_v7 = vunpack.c.l.s8.bf16 %v542_v3  ;;  %v19425_v17 = vunpack.c.h.s8.bf16 %v542_v3 }
 0x378   : > { %9793 = vmatmul.mubr.f32.vlgmr.msra.gmra.mrb[0].mxu0 %v22923_v15  ;;  %19406 = vmatpush3.bf16.msra.mxu1 %v19405_v12  ;;  %v952_v12 = vld [vmem:[%s22382_s4 + $0xe90] sm:$0xff] }
 0x379   : > { %18318 = vmatpush1.bf16.msra.mxu0 %v18317_v11  ;;  %19408 = vmatprep.subr.bf16.mxu1 %v19407_v16  ;;  %v19423_v11 = vunpack.c.h.s8.bf16 %v554_v52  ;;  %v18337_v16 = vunpack.c.h.s8.bf16 %v948_v2  ;;  %v18339_v23 = vunpack.c.l.s8.bf16 %v952_v12  ;;  %v18343_v35 = vunpack.c.h.s8.bf16 %v952_v12 }
 0x37a   : > { %18320 = vmatprep.subr.bf16.mxu0 %v18319_v63  ;;  %11139 = vmatprep.mubr.f32.mxu1 %v22546_v60  ;;  %v18331_v60 = vunpack.c.l.s8.bf16 %v949_v44  ;;  %v557_v63 = vld [vmem:[%s22382_s4 + $0x238] sm:$0xff] }
 0x37b   : > { %9863 = vmatprep.mubr.f32.mxu0 %v22976_v24 }
 0x37c   : > { %19410 = vmatpush3.bf16.msra.mxu1 %v19409_v27  ;;  %v951_v27 = vld [vmem:[%s22382_s4 + $0xe88] sm:$0xff] }
 0x37d   : > { %18322 = vmatpush1.bf16.msra.mxu0 %v18321_v26  ;;  %19412 = vmatprep.subr.bf16.mxu1 %v19411_v31  ;;  %v19427_v26 = vunpack.c.l.s8.bf16 %v557_v63  ;;  %v18341_v31 = vunpack.c.l.s8.bf16 %v951_v27 }
 0x37e   : > { %18324 = vmatprep.subr.bf16.mxu0 %v18323_v30  ;;  %v545_v30 = vld [vmem:[%s22382_s4 + $0x1d8] sm:$0xff] }
 0x37f   : > { %v19429_v34 = vunpack.c.l.s8.bf16 %v545_v30  ;;  %v19433_v44 = vunpack.c.h.s8.bf16 %v545_v30 }
 0x380   : > { %19414 = vmatpush3.bf16.msra.mxu1 %v19413_v36  ;;  %v955_v36 = vld [vmem:[%s22382_s4 + $0xea8] sm:$0xff] }
 0x381   : > { %18326 = vmatpush1.bf16.msra.mxu0 %v18325_v61  ;;  %19416 = vmatprep.subr.bf16.mxu1 %v19415_v43  ;;  %v19431_v61 = vunpack.c.h.s8.bf16 %v557_v63  ;;  %v18345_v43 = vunpack.c.h.s8.bf16 %v951_v27  ;;  %v18347_v52 = vunpack.c.l.s8.bf16 %v955_v36  ;;  %v18351_v3 = vunpack.c.h.s8.bf16 %v955_v36 }
 0x382   : > { %18328 = vmatprep.subr.bf16.mxu0 %v18327_v42  ;;  %v572_v42 = vld [vmem:[%s22382_s4 + $0x2b0] sm:$0xff] }
 0x384   : > { %19418 = vmatpush3.bf16.msra.mxu1 %v19417_v55  ;;  %v954_v55 = vld [vmem:[%s22382_s4 + $0xea0] sm:$0xff] }
 0x385   : > { %18330 = vmatpush1.bf16.msra.mxu0 %v18329_v45  ;;  %19420 = vmatprep.subr.bf16.mxu1 %v19419_v57  ;;  %v19435_v45 = vunpack.c.l.s8.bf16 %v572_v42  ;;  %v18349_v57 = vunpack.c.l.s8.bf16 %v954_v55 }
 0x386   : > { %18332 = vmatprep.subr.bf16.mxu0 %v18331_v60  ;;  %v560_v60 = vld [vmem:[%s22382_s4 + $0x250] sm:$0xff] }
 0x387   : > { %v19437_v2 = vunpack.c.l.s8.bf16 %v560_v60  ;;  %v19441_v12 = vunpack.c.h.s8.bf16 %v560_v60  ;;  %v964_v60 = vld [vmem:[%s22382_s4 + $0xef0] sm:$0xff] }
 0x388   : > { %19422 = vmatpush3.bf16.msra.mxu1 %v19421_v7  ;;  %v958_v7 = vld [vmem:[%s22382_s4 + $0xec0] sm:$0xff] }
 0x389   : > { %18334 = vmatpush1.bf16.msra.mxu0 %v18333_v4  ;;  %19424 = vmatprep.subr.bf16.mxu1 %v19423_v11  ;;  %v19439_v4 = vunpack.c.h.s8.bf16 %v572_v42  ;;  %v18353_v11 = vunpack.c.h.s8.bf16 %v954_v55  ;;  %v18355_v63 = vunpack.c.l.s8.bf16 %v958_v7  ;;  %v960_v42 = vld [vmem:[%s22382_s4 + $0xed0] sm:$0xff] }
 0x38a   : > { %18336 = vmatprep.subr.bf16.mxu0 %v18335_v58  ;;  %v575_v58 = vld [vmem:[%s22382_s4 + $0x2c8] sm:$0xff] }
 0x38b   : > { %v19447_v30 = vunpack.c.h.s8.bf16 %v575_v58 }
 0x38c   : > { %19426 = vmatpush3.bf16.msra.mxu1 %v19425_v17  ;;  %v957_v17 = vld [vmem:[%s22382_s4 + $0xeb8] sm:$0xff] }
 0x38d   : > { %18338 = vmatpush1.bf16.msra.mxu0 %v18337_v16  ;;  %19428 = vmatprep.subr.bf16.mxu1 %v19427_v26  ;;  %v19443_v16 = vunpack.c.l.s8.bf16 %v575_v58  ;;  %v18357_v26 = vunpack.c.l.s8.bf16 %v957_v17  ;;  %v963_v58 = vld [vmem:[%s22382_s4 + $0xee8] sm:$0xff] }
 0x38e   : > { %18340 = vmatprep.subr.bf16.mxu0 %v18339_v23  ;;  %v563_v23 = vld [vmem:[%s22382_s4 + $0x268] sm:$0xff] }
 0x38f   : > { %v19445_v27 = vunpack.c.l.s8.bf16 %v563_v23 }
 0x390   : > { %19430 = vmatpush3.bf16.msra.mxu1 %v19429_v34  ;;  %v578_v34 = vld [vmem:[%s22382_s4 + $0x2e0] sm:$0xff] }
 0x391   : > { %18342 = vmatpush1.bf16.msra.mxu0 %v18341_v31  ;;  %19432 = vmatprep.subr.bf16.mxu1 %v19431_v61  ;;  %v961_v31 = vld [vmem:[%s22382_s4 + $0xed8] sm:$0xff]  ;;  %v19449_v61 = vunpack.c.h.s8.bf16 %v563_v23  ;;  %v19451_v36 = vunpack.c.l.s8.bf16 %v578_v34  ;;  %v19455_v55 = vunpack.c.h.s8.bf16 %v578_v34  ;;  %v967_v23 = vld [vmem:[%s22382_s4 + $0xf08] sm:$0xff] }
 0x392   : > { %18344 = vmatprep.subr.bf16.mxu0 %v18343_v35  ;;  %v18361_v35 = vunpack.c.h.s8.bf16 %v957_v17 }
 0x394   : > { %19434 = vmatpush3.bf16.msra.mxu1 %v19433_v44  ;;  %v18365_v44 = vunpack.c.l.s8.bf16 %v960_v42 }
 0x395   : > { %18346 = vmatpush1.bf16.msra.mxu0 %v18345_v43  ;;  %19436 = vmatprep.subr.bf16.mxu1 %v19435_v45  ;;  %v566_v43 = vld [vmem:[%s22382_s4 + $0x280] sm:$0xff]  ;;  %v18367_v45 = vunpack.c.h.s8.bf16 %v961_v31 }
 0x396   : > { %18348 = vmatprep.subr.bf16.mxu0 %v18347_v52  ;;  %v19453_v52 = vunpack.c.l.s8.bf16 %v566_v43 }
 0x397   : > { %11140 = vmatmul.mubr.f32.vlgmr.msra.gmra.mrb[6].mxu1 %v22537_v47  ;;  %v18359_v47 = vunpack.c.h.s8.bf16 %v958_v7 }
 0x398   : > { %19438 = vmatpush3.bf16.msra.mxu1 %v19437_v2  ;;  %11209 = vmatprep.mubr.f32.mxu1 %v22602_v0  ;;  %v18363_v0 = vunpack.c.l.s8.bf16 %v961_v31  ;;  %v18369_v2 = vunpack.c.h.s8.bf16 %v960_v42  ;;  %v18379_v31 = vunpack.c.l.s8.bf16 %v967_v23 }
 0x399   : > { %18350 = vmatpush1.bf16.msra.mxu0 %v18349_v57  ;;  %19440 = vmatprep.subr.bf16.mxu1 %v19439_v4  ;;  %v581_v57 = vld [vmem:[%s22382_s4 + $0x2f8] sm:$0xff]  ;;  %v18371_v4 = vunpack.c.l.s8.bf16 %v964_v60 }
 0x39a   : > { %18352 = vmatprep.subr.bf16.mxu0 %v18351_v3  ;;  %v19457_v3 = vunpack.c.h.s8.bf16 %v566_v43  ;;  %v19459_v7 = vunpack.c.l.s8.bf16 %v581_v57  ;;  %v19463_v17 = vunpack.c.h.s8.bf16 %v581_v57  ;;  %v18383_v43 = vunpack.c.h.s8.bf16 %v967_v23 }
 0x39c   : > { %19442 = vmatpush3.bf16.msra.mxu1 %v19441_v12  ;;  %v18373_v12 = vunpack.c.l.s8.bf16 %v963_v58 }
 0x39d   : > { %18354 = vmatpush1.bf16.msra.mxu0 %v18353_v11  ;;  %19444 = vmatprep.subr.bf16.mxu1 %v19443_v16  ;;  %v569_v11 = vld [vmem:[%s22382_s4 + $0x298] sm:$0xff]  ;;  %v18375_v16 = vunpack.c.h.s8.bf16 %v964_v60 }
 0x39e   : > { %18356 = vmatprep.subr.bf16.mxu0 %v18355_v63  ;;  %v19461_v63 = vunpack.c.l.s8.bf16 %v569_v11 }
 0x3a0   : > { %19446 = vmatpush3.bf16.msra.mxu1 %v19445_v27  ;;  %v23013_v27 = vld [vmem:[%s22408_s17 + $0x50] sm:$0xff] }
 0x3a1   : > { %18358 = vmatpush1.bf16.msra.mxu0 %v18357_v26  ;;  %19448 = vmatprep.subr.bf16.mxu1 %v19447_v30  ;;  %v596_v26 = vld [vmem:[%s22382_s4 + $0x370] sm:$0xff]  ;;  %v19465_v30 = vunpack.c.h.s8.bf16 %v569_v11 }
 0x3a2   : > { %18360 = vmatprep.subr.bf16.mxu0 %v18359_v47  ;;  %v18377_v47 = vunpack.c.h.s8.bf16 %v963_v58  ;;  %v19467_v34 = vunpack.c.l.s8.bf16 %v596_v26 }
 0x3a4   : > { %19450 = vmatpush3.bf16.msra.mxu1 %v19449_v61  ;;  %v584_v61 = vld [vmem:[%s22382_s4 + $0x310] sm:$0xff] }
 0x3a5   : > { %18362 = vmatpush1.bf16.msra.mxu0 %v18361_v35  ;;  %19452 = vmatprep.subr.bf16.mxu1 %v19451_v36  ;;  %v966_v35 = vld [vmem:[%s22382_s4 + $0xf00] sm:$0xff]  ;;  %v19469_v42 = vunpack.c.l.s8.bf16 %v584_v61  ;;  %v19473_v57 = vunpack.c.h.s8.bf16 %v584_v61 }
 0x3a6   : > { %18364 = vmatprep.subr.bf16.mxu0 %v18363_v0  ;;  %v23019_v0 = vrot.slane %v23013_v27, %v22435_v51  ;;  %v18381_v36 = vunpack.c.l.s8.bf16 %v966_v35  ;;  %v18385_v60 = vunpack.c.h.s8.bf16 %v966_v35 }
 0x3a8   : > { %19454 = vmatpush3.bf16.msra.mxu1 %v19453_v52  ;;  %v970_v52 = vld [vmem:[%s22382_s4 + $0xf20] sm:$0xff] }
 0x3a9   : > { %18366 = vmatpush1.bf16.msra.mxu0 %v18365_v44  ;;  %19456 = vmatprep.subr.bf16.mxu1 %v19455_v55  ;;  %v19471_v44 = vunpack.c.h.s8.bf16 %v596_v26  ;;  %v23025_v55 = vcombine.high %v23019_v0, %v23019_v0  ;;  %v18391_v11 = vunpack.c.h.s8.bf16 %v970_v52 }
 0x3aa   : > { %18368 = vmatprep.subr.bf16.mxu0 %v18367_v45  ;;  %v599_v45 = vld [vmem:[%s22382_s4 + $0x388] sm:$0xff] }
 0x3ac   : > { %19458 = vmatpush3.bf16.msra.mxu1 %v19457_v3  ;;  %v19475_v3 = vunpack.c.l.s8.bf16 %v599_v45 }
 0x3ad   : > { %18370 = vmatpush1.bf16.msra.mxu0 %v18369_v2  ;;  %19460 = vmatprep.subr.bf16.mxu1 %v19459_v7  ;;  %v18387_v2 = vunpack.c.l.s8.bf16 %v970_v52  ;;  %v587_v7 = vld [vmem:[%s22382_s4 + $0x328] sm:$0xff] }
 0x3ae   : > { %18372 = vmatprep.subr.bf16.mxu0 %v18371_v4  ;;  %v969_v4 = vld [vmem:[%s22382_s4 + $0xf18] sm:$0xff]  ;;  %v19477_v58 = vunpack.c.l.s8.bf16 %v587_v7  ;;  %v19481_v23 = vunpack.c.h.s8.bf16 %v587_v7 }
 0x3b0   : > { %19462 = vmatpush3.bf16.msra.mxu1 %v19461_v63  ;;  %v973_v63 = vld [vmem:[%s22382_s4 + $0xf38] sm:$0xff] }
 0x3b1   : > { %18374 = vmatpush1.bf16.msra.mxu0 %v18373_v12  ;;  %19464 = vmatprep.subr.bf16.mxu1 %v19463_v17  ;;  %v19479_v12 = vunpack.c.h.s8.bf16 %v599_v45  ;;  %v18393_v17 = vunpack.c.h.s8.bf16 %v969_v4  ;;  %v18399_v35 = vunpack.c.h.s8.bf16 %v973_v63 }
 0x3b2   : > { %18376 = vmatprep.subr.bf16.mxu0 %v18375_v16  ;;  %v602_v16 = vld [vmem:[%s22382_s4 + $0x3a0] sm:$0xff] }
 0x3b3   : > { %v19483_v26 = vunpack.c.l.s8.bf16 %v602_v16  ;;  %v19487_v61 = vunpack.c.h.s8.bf16 %v602_v16 }
 0x3b4   : > { %19466 = vmatpush3.bf16.msra.mxu1 %v19465_v30  ;;  %v590_v30 = vld [vmem:[%s22382_s4 + $0x340] sm:$0xff] }
 0x3b5   : > { %18378 = vmatpush1.bf16.msra.mxu0 %v18377_v47  ;;  %19468 = vmatprep.subr.bf16.mxu1 %v19467_v34  ;;  %v972_v47 = vld [vmem:[%s22382_s4 + $0xf30] sm:$0xff]  ;;  %v19485_v34 = vunpack.c.l.s8.bf16 %v590_v30 }
 0x3b6   : > { %18380 = vmatprep.subr.bf16.mxu0 %v18379_v31  ;;  %v18397_v31 = vunpack.c.l.s8.bf16 %v972_v47 }
 0x3b7   : > { %11210 = vmatmul.mubr.f32.vlgmr.msra.gmra.mrb[8].mxu1 %v22592_v48  ;;  %v18389_v48 = vunpack.c.l.s8.bf16 %v969_v4 }
 0x3b8   : > { %9864 = vmatmul.mubr.f32.vlgmr.msra.gmra.mrb[0].mxu0 %v22970_v10  ;;  %19470 = vmatpush3.bf16.msra.mxu1 %v19469_v42  ;;  %v605_v42 = vld [vmem:[%s22382_s4 + $0x3b8] sm:$0xff] }
 0x3b9   : > { %18382 = vmatpush1.bf16.msra.mxu0 %v18381_v36  ;;  %19472 = vmatprep.subr.bf16.mxu1 %v19471_v44  ;;  %v976_v36 = vld [vmem:[%s22382_s4 + $0xf50] sm:$0xff]  ;;  %v19489_v44 = vunpack.c.h.s8.bf16 %v590_v30  ;;  %v19491_v45 = vunpack.c.l.s8.bf16 %v605_v42  ;;  %v19495_v7 = vunpack.c.h.s8.bf16 %v605_v42 }
 0x3ba   : > { %18384 = vmatprep.subr.bf16.mxu0 %v18383_v43  ;;  %11279 = vmatprep.mubr.f32.mxu1 %v22658_v13  ;;  %v18395_v13 = vunpack.c.l.s8.bf16 %v973_v63  ;;  %v18401_v43 = vunpack.c.h.s8.bf16 %v972_v47  ;;  %v18403_v52 = vunpack.c.l.s8.bf16 %v976_v36  ;;  %v18407_v4 = vunpack.c.h.s8.bf16 %v976_v36 }
 0x3bb   : > { %9934 = vmatprep.mubr.f32.mxu0 %v23025_v55 }
 0x3bc   : > { %19474 = vmatpush3.bf16.msra.mxu1 %v19473_v57  ;;  %v593_v57 = vld [vmem:[%s22382_s4 + $0x358] sm:$0xff] }
 0x3bd   : > { %18386 = vmatpush1.bf16.msra.mxu0 %v18385_v60  ;;  %19476 = vmatprep.subr.bf16.mxu1 %v19475_v3  ;;  %v975_v60 = vld [vmem:[%s22382_s4 + $0xf48] sm:$0xff]  ;;  %v19493_v3 = vunpack.c.l.s8.bf16 %v593_v57 }
 0x3be   : > { %18388 = vmatprep.subr.bf16.mxu0 %v18387_v2  ;;  %v18405_v2 = vunpack.c.l.s8.bf16 %v975_v60 }
 0x3c0   : > { %19478 = vmatpush3.bf16.msra.mxu1 %v19477_v58  ;;  %v620_v58 = vld [vmem:[%s22382_s4 + $0x430] sm:$0xff] }
 0x3c1   : > { %18390 = vmatpush1.bf16.msra.mxu0 %v18389_v48  ;;  %19480 = vmatprep.subr.bf16.mxu1 %v19479_v12  ;;  %v979_v48 = vld [vmem:[%s22382_s4 + $0xf68] sm:$0xff]  ;;  %v19497_v12 = vunpack.c.h.s8.bf16 %v593_v57  ;;  %v19499_v16 = vunpack.c.l.s8.bf16 %v620_v58  ;;  %v19503_v30 = vunpack.c.h.s8.bf16 %v620_v58  ;;  %v985_v57 = vld [vmem:[%s22382_s4 + $0xf98] sm:$0xff]  ;;  %v614_v58 = vld [vmem:[%s22382_s4 + $0x400] sm:$0xff] }
 0x3c2   : > { %18392 = vmatprep.subr.bf16.mxu0 %v18391_v11  ;;  %v18409_v11 = vunpack.c.h.s8.bf16 %v975_v60  ;;  %v18411_v63 = vunpack.c.l.s8.bf16 %v979_v48  ;;  %v18415_v47 = vunpack.c.h.s8.bf16 %v979_v48  ;;  %v984_v48 = vld [vmem:[%s22382_s4 + $0xf90] sm:$0xff] }
 0x3c4   : > { %19482 = vmatpush3.bf16.msra.mxu1 %v19481_v23  ;;  %v608_v23 = vld [vmem:[%s22382_s4 + $0x3d0] sm:$0xff] }
 0x3c5   : > { %18394 = vmatpush1.bf16.msra.mxu0 %v18393_v17  ;;  %19484 = vmatprep.subr.bf16.mxu1 %v19483_v26  ;;  %v978_v17 = vld [vmem:[%s22382_s4 + $0xf60] sm:$0xff]  ;;  %v19501_v26 = vunpack.c.l.s8.bf16 %v608_v23 }
 0x3c6   : > { %18396 = vmatprep.subr.bf16.mxu0 %v18395_v13  ;;  %v18413_v13 = vunpack.c.l.s8.bf16 %v978_v17 }
 0x3c8   : > { %19486 = vmatpush3.bf16.msra.mxu1 %v19485_v34  ;;  %v623_v34 = vld [vmem:[%s22382_s4 + $0x448] sm:$0xff] }
 0x3c9   : > { %18398 = vmatpush1.bf16.msra.mxu0 %v18397_v31  ;;  %19488 = vmatprep.subr.bf16.mxu1 %v19487_v61  ;;  %v982_v31 = vld [vmem:[%s22382_s4 + $0xf80] sm:$0xff]  ;;  %v19505_v61 = vunpack.c.h.s8.bf16 %v608_v23  ;;  %v19507_v42 = vunpack.c.l.s8.bf16 %v623_v34  ;;  %v19511_v60 = vunpack.c.h.s8.bf16 %v623_v34  ;;  %v629_v23 = vld [vmem:[%s22382_s4 + $0x478] sm:$0xff] }
 0x3ca   : > { %18400 = vmatprep.subr.bf16.mxu0 %v18399_v35  ;;  %v18417_v35 = vunpack.c.h.s8.bf16 %v978_v17  ;;  %v18419_v36 = vunpack.c.l.s8.bf16 %v982_v31  ;;  %v988_v17 = vld [vmem:[%s22382_s4 + $0xfb0] sm:$0xff]  ;;  %v617_v34 = vld [vmem:[%s22382_s4 + $0x418] sm:$0xff] }
 0x3cc   : > { %19490 = vmatpush3.bf16.msra.mxu1 %v19489_v44  ;;  %v611_v44 = vld [vmem:[%s22382_s4 + $0x3e8] sm:$0xff] }
 0x3cd   : > { %18402 = vmatpush1.bf16.msra.mxu0 %v18401_v43  ;;  %19492 = vmatprep.subr.bf16.mxu1 %v19491_v45  ;;  %v981_v43 = vld [vmem:[%s22382_s4 + $0xf78] sm:$0xff]  ;;  %v19509_v45 = vunpack.c.l.s8.bf16 %v611_v44 }
 0x3ce   : > { %18404 = vmatprep.subr.bf16.mxu0 %v18403_v52  ;;  %v18421_v52 = vunpack.c.l.s8.bf16 %v981_v43 }
 0x3d0   : > { %19494 = vmatpush3.bf16.msra.mxu1 %v19493_v3  ;;  %v18425_v3 = vunpack.c.h.s8.bf16 %v981_v43  ;;  %v991_v43 = vld [vmem:[%s22382_s4 + $0xfc8] sm:$0xff] }
 0x3d1   : > { %18406 = vmatpush1.bf16.msra.mxu0 %v18405_v2  ;;  %19496 = vmatprep.subr.bf16.mxu1 %v19495_v7  ;;  %v626_v2 = vld [vmem:[%s22382_s4 + $0x460] sm:$0xff] }
 0x3d2   : > { %18408 = vmatprep.subr.bf16.mxu0 %v18407_v4  ;;  %v19513_v4 = vunpack.c.h.s8.bf16 %v611_v44  ;;  %v19515_v7 = vunpack.c.l.s8.bf16 %v626_v2  ;;  %v644_v44 = vld [vmem:[%s22382_s4 + $0x4f0] sm:$0xff] }
 0x3d4   : > { %19498 = vmatpush3.bf16.msra.mxu1 %v19497_v12  ;;  %v19517_v12 = vunpack.c.l.s8.bf16 %v614_v58 }
 0x3d5   : > { %18410 = vmatpush1.bf16.msra.mxu0 %v18409_v11  ;;  %19500 = vmatprep.subr.bf16.mxu1 %v19499_v16  ;;  %v18429_v11 = vunpack.c.l.s8.bf16 %v984_v48  ;;  %v19519_v16 = vunpack.c.h.s8.bf16 %v626_v2  ;;  %v990_v2 = vld [vmem:[%s22382_s4 + $0xfc0] sm:$0xff] }
 0x3d6   : > { %18412 = vmatprep.subr.bf16.mxu0 %v18411_v63  ;;  %v18431_v63 = vunpack.c.h.s8.bf16 %v985_v57 }
 0x3d7   : > { %11280 = vmatmul.mubr.f32.vlgmr.msra.gmra.mrb[10].mxu1 %v22649_v6  ;;  %v18423_v6 = vunpack.c.h.s8.bf16 %v982_v31  ;;  %v987_v31 = vld [vmem:[%s22382_s4 + $0xfa8] sm:$0xff] }
 0x3d8   : > { %19502 = vmatpush3.bf16.msra.mxu1 %v19501_v26  ;;  %11349 = vmatprep.mubr.f32.mxu1 %v22714_v32  ;;  %v18427_v32 = vunpack.c.l.s8.bf16 %v985_v57  ;;  %v19521_v26 = vunpack.c.h.s8.bf16 %v614_v58  ;;  %v19531_v57 = vunpack.c.l.s8.bf16 %v644_v44  ;;  %v994_v58 = vld [vmem:[%s22382_s4 + $0xfe0] sm:$0xff] }
 0x3d9   : > { %18414 = vmatpush1.bf16.msra.mxu0 %v18413_v13  ;;  %19504 = vmatprep.subr.bf16.mxu1 %v19503_v30  ;;  %v18433_v13 = vunpack.c.h.s8.bf16 %v984_v48  ;;  %v19523_v30 = vunpack.c.l.s8.bf16 %v629_v23  ;;  %v19535_v48 = vunpack.c.h.s8.bf16 %v644_v44  ;;  %v638_v44 = vld [vmem:[%s22382_s4 + $0x4c0] sm:$0xff] }
 0x3da   : > { %18416 = vmatprep.subr.bf16.mxu0 %v18415_v47  ;;  %v18435_v47 = vunpack.c.l.s8.bf16 %v988_v17 }
 0x3dc   : > { %19506 = vmatpush3.bf16.msra.mxu1 %v19505_v61  ;;  %v19525_v61 = vunpack.c.l.s8.bf16 %v617_v34 }
 0x3dd   : > { %18418 = vmatpush1.bf16.msra.mxu0 %v18417_v35  ;;  %19508 = vmatprep.subr.bf16.mxu1 %v19507_v42  ;;  %v18437_v35 = vunpack.c.l.s8.bf16 %v987_v31  ;;  %v19527_v42 = vunpack.c.h.s8.bf16 %v629_v23 }
 0x3de   : > { %18420 = vmatprep.subr.bf16.mxu0 %v18419_v36  ;;  %v18439_v36 = vunpack.c.h.s8.bf16 %v988_v17  ;;  %v18451_v17 = vunpack.c.l.s8.bf16 %v994_v58 }
 0x3e0   : > { %19510 = vmatpush3.bf16.msra.mxu1 %v19509_v45  ;;  %v18441_v45 = vunpack.c.h.s8.bf16 %v987_v31 }
 0x3e1   : > { %18422 = vmatpush1.bf16.msra.mxu0 %v18421_v52  ;;  %19512 = vmatprep.subr.bf16.mxu1 %v19511_v60  ;;  %v8253_v52 = vcombine.high %v23013_v27, %v23013_v27  ;;  %v18443_v60 = vunpack.c.l.s8.bf16 %v991_v43  ;;  %v18447_v27 = vunpack.c.h.s8.bf16 %v991_v43  ;;  %v996_v43 = vld [vmem:[%s22382_s4 + $0xff0] sm:$0xff] }
 0x3e2   : > { %18424 = vmatprep.subr.bf16.mxu0 %v18423_v6  ;;  %v19529_v6 = vunpack.c.h.s8.bf16 %v617_v34  ;;  %v997_v34 = vld [vmem:[%s22382_s4 + $0xff8] sm:$0xff] }
 0x3e4   : > { %19514 = vmatpush3.bf16.msra.mxu1 %v19513_v4  ;;  %v23066_v4 = vrot.slane %v8253_v52, %v22435_v51  ;;  %v18461_v52 = vunpack.c.l.s8.bf16 %v996_v43 }
 0x3e5   : > { %18426 = vmatpush1.bf16.msra.mxu0 %v18425_v3  ;;  %19516 = vmatprep.subr.bf16.mxu1 %v19515_v7  ;;  %v632_v3 = vld [vmem:[%s22382_s4 + $0x490] sm:$0xff] }
 0x3e6   : > { %18428 = vmatprep.subr.bf16.mxu0 %v18427_v32  ;;  %v18445_v32 = vunpack.c.l.s8.bf16 %v990_v2  ;;  %v19533_v7 = vunpack.c.l.s8.bf16 %v632_v3 }
 0x3e8   : > { %19518 = vmatpush3.bf16.msra.mxu1 %v19517_v12  ;;  %v23072_v12 = vcombine.high %v23066_v4, %v23066_v4 }
 0x3e9   : > { %18430 = vmatpush1.bf16.msra.mxu0 %v18429_v11  ;;  %19520 = vmatprep.subr.bf16.mxu1 %v19519_v16  ;;  %v647_v11 = vld [vmem:[%s22382_s4 + $0x508] sm:$0xff]  ;;  %v19537_v16 = vunpack.c.h.s8.bf16 %v632_v3  ;;  %v18465_v3 = vunpack.c.h.s8.bf16 %v996_v43 }
 0x3ea   : > { %18432 = vmatprep.subr.bf16.mxu0 %v18431_v63  ;;  %v18449_v63 = vunpack.c.h.s8.bf16 %v990_v2  ;;  %v19539_v23 = vunpack.c.l.s8.bf16 %v647_v11  ;;  %v19543_v31 = vunpack.c.h.s8.bf16 %v647_v11  ;;  %v653_v2 = vld [vmem:[%s22382_s4 + $0x538] sm:$0xff] }
 0x3ec   : > { %19522 = vmatpush3.bf16.msra.mxu1 %v19521_v26  ;;  %v635_v26 = vld [vmem:[%s22382_s4 + $0x4a8] sm:$0xff] }
 0x3ed   : > { %18434 = vmatpush1.bf16.msra.mxu0 %v18433_v13  ;;  %19524 = vmatprep.subr.bf16.mxu1 %v19523_v30  ;;  %v993_v13 = vld [vmem:[%s22382_s4 + $0xfd8] sm:$0xff]  ;;  %v18455_v30 = vunpack.c.h.s8.bf16 %v994_v58 }
 0x3ee   : > { %18436 = vmatprep.subr.bf16.mxu0 %v18435_v47  ;;  %v19541_v47 = vunpack.c.l.s8.bf16 %v635_v26  ;;  %v641_v58 = vld [vmem:[%s22382_s4 + $0x4d8] sm:$0xff] }
 0x3f0   : > { %19526 = vmatpush3.bf16.msra.mxu1 %v19525_v61  ;;  %v18457_v61 = vunpack.c.h.s8.bf16 %v993_v13 }
 0x3f1   : > { %18438 = vmatpush1.bf16.msra.mxu0 %v18437_v35  ;;  %19528 = vmatprep.subr.bf16.mxu1 %v19527_v42  ;;  %v650_v35 = vld [vmem:[%s22382_s4 + $0x520] sm:$0xff] }
 0x3f2   : > { %18440 = vmatprep.subr.bf16.mxu0 %v18439_v36  ;;  %v19545_v36 = vunpack.c.h.s8.bf16 %v635_v26  ;;  %v19547_v42 = vunpack.c.l.s8.bf16 %v650_v35  ;;  %v1003_v26 = vld [vmem:[%s22382_s4 + $0x1028] sm:$0xff] }
 0x3f4   : > { %19530 = vmatpush3.bf16.msra.mxu1 %v19529_v6  ;;  %v18463_v6 = vunpack.c.h.s8.bf16 %v997_v34 }
 0x3f5   : > { %18442 = vmatpush1.bf16.msra.mxu0 %v18441_v45  ;;  %19532 = vmatprep.subr.bf16.mxu1 %v19531_v57  ;;  %v19549_v45 = vunpack.c.l.s8.bf16 %v638_v44  ;;  %v1000_v57 = vld [vmem:[%s22382_s4 + $0x1010] sm:$0xff] }
 0x3f6   : > { %18444 = vmatprep.subr.bf16.mxu0 %v18443_v60  ;;  %v19551_v60 = vunpack.c.h.s8.bf16 %v650_v35  ;;  %v1002_v35 = vld [vmem:[%s22382_s4 + $0x1020] sm:$0xff] }
 0x3f7   : > { %11350 = vmatmul.mubr.f32.vlgmr.msra.gmra.mrb[12].mxu1 %v22704_v25  ;;  %v18453_v25 = vunpack.c.l.s8.bf16 %v993_v13  ;;  %v19559_v13 = vunpack.c.h.s8.bf16 %v653_v2 }
 0x3f8   : > { %9935 = vmatmul.mubr.f32.vlgmr.msra.gmra.mrb[0].mxu0 %v23019_v0  ;;  %19534 = vmatpush3.bf16.msra.mxu1 %v19533_v7  ;;  %v18467_v7 = vunpack.c.l.s8.bf16 %v1000_v57 }
 0x3f9   : > { %18446 = vmatpush1.bf16.msra.mxu0 %v18445_v32  ;;  %19536 = vmatprep.subr.bf16.mxu1 %v19535_v48  ;;  %v19553_v32 = vunpack.c.h.s8.bf16 %v638_v44  ;;  %v999_v48 = vld [vmem:[%s22382_s4 + $0x1008] sm:$0xff]  ;;  %v1006_v44 = vld [vmem:[%s22382_s4 + $0x1040] sm:$0xff] }
 0x3fa   : > { %18448 = vmatprep.subr.bf16.mxu0 %v18447_v27  ;;  %11419 = vmatprep.mubr.f32.mxu1 %v22770_v19  ;;  %v18459_v19 = vunpack.c.l.s8.bf16 %v997_v34  ;;  %v19555_v27 = vunpack.c.l.s8.bf16 %v653_v2  ;;  %v1005_v2 = vld [vmem:[%s22382_s4 + $0x1038] sm:$0xff] }
 0x3fb   : > { %10005 = vmatprep.mubr.f32.mxu0 %v23072_v12 }
 0x3fc   : > { %19538 = vmatpush3.bf16.msra.mxu1 %v19537_v16  ;;  %v18469_v16 = vunpack.c.l.s8.bf16 %v999_v48 }
 0x3fd   : > { %18450 = vmatpush1.bf16.msra.mxu0 %v18449_v63  ;;  %19540 = vmatprep.subr.bf16.mxu1 %v19539_v23  ;;  %v18471_v23 = vunpack.c.h.s8.bf16 %v1000_v57 }
 0x3fe   : > { %18452 = vmatprep.subr.bf16.mxu0 %v18451_v17  ;;  %v19557_v17 = vunpack.c.l.s8.bf16 %v641_v58 }
 0x400   : > { %19542 = vmatpush3.bf16.msra.mxu1 %v19541_v47  ;;  %v18473_v47 = vunpack.c.h.s8.bf16 %v999_v48  ;;  %v1009_v48 = vld [vmem:[%s22382_s4 + $0x1058] sm:$0xff] }
 0x401   : > { %18454 = vmatpush1.bf16.msra.mxu0 %v18453_v25  ;;  %19544 = vmatprep.subr.bf16.mxu1 %v19543_v31  ;;  %v668_v25 = vld [vmem:[%s22382_s4 + $0x5b0] sm:$0xff]  ;;  %v18475_v31 = vunpack.c.l.s8.bf16 %v1003_v26 }
 0x402   : > { %18456 = vmatprep.subr.bf16.mxu0 %v18455_v30  ;;  %v19561_v30 = vunpack.c.h.s8.bf16 %v641_v58  ;;  %v19563_v34 = vunpack.c.l.s8.bf16 %v668_v25  ;;  %v19567_v43 = vunpack.c.h.s8.bf16 %v668_v25  ;;  %v674_v58 = vld [vmem:[%s22382_s4 + $0x5e0] sm:$0xff] }
 0x404   : > { %19546 = vmatpush3.bf16.msra.mxu1 %v19545_v36  ;;  %v18477_v36 = vunpack.c.l.s8.bf16 %v1002_v35 }
 0x405   : > { %18458 = vmatpush1.bf16.msra.mxu0 %v18457_v61  ;;  %19548 = vmatprep.subr.bf16.mxu1 %v19547_v42  ;;  %v656_v61 = vld [vmem:[%s22382_s4 + $0x550] sm:$0xff]  ;;  %v18479_v42 = vunpack.c.h.s8.bf16 %v1003_v26  ;;  %v662_v26 = vld [vmem:[%s22382_s4 + $0x580] sm:$0xff] }
 0x406   : > { %18460 = vmatprep.subr.bf16.mxu0 %v18459_v19  ;;  %v19565_v19 = vunpack.c.l.s8.bf16 %v656_v61 }
 0x408   : > { %19550 = vmatpush3.bf16.msra.mxu1 %v19549_v45  ;;  %v18481_v45 = vunpack.c.h.s8.bf16 %v1002_v35  ;;  %v677_v35 = vld [vmem:[%s22382_s4 + $0x5f8] sm:$0xff] }
 0x409   : > { %18462 = vmatpush1.bf16.msra.mxu0 %v18461_v52  ;;  %19552 = vmatprep.subr.bf16.mxu1 %v19551_v60  ;;  %v671_v52 = vld [vmem:[%s22382_s4 + $0x5c8] sm:$0xff]  ;;  %v18483_v60 = vunpack.c.l.s8.bf16 %v1006_v44 }
 0x40a   : > { %18464 = vmatprep.subr.bf16.mxu0 %v18463_v6  ;;  %v23088_v11 = vpop.f32.mrb[0].mxu1  ;;  %v19569_v6 = vunpack.c.h.s8.bf16 %v656_v61  ;;  %v19571_v57 = vunpack.c.l.s8.bf16 %v671_v52 }
 0x40b   : > { %v23090_v63 = vpop.f32.mrb[1].mxu1 }
 0x40c   : > { %19554 = vmatpush3.bf16.msra.mxu1 %v19553_v32  ;;  %v18485_v32 = vunpack.c.l.s8.bf16 %v1005_v2 }
 0x40d   : > { %18466 = vmatpush1.bf16.msra.mxu0 %v18465_v3  ;;  %19556 = vmatprep.subr.bf16.mxu1 %v19555_v27  ;;  %v659_v3 = vld [vmem:[%s22382_s4 + $0x568] sm:$0xff]  ;;  %v19575_v27 = vunpack.c.h.s8.bf16 %v671_v52 }
 0x40e   : > { %18468 = vmatprep.subr.bf16.mxu0 %v18467_v7  ;;  %v19573_v7 = vunpack.c.l.s8.bf16 %v659_v3 }
 0x410   : > { %19558 = vmatpush3.bf16.msra.mxu1 %v19557_v17  ;;  %v19577_v17 = vunpack.c.h.s8.bf16 %v659_v3  ;;  %v19591_v3 = vunpack.c.h.s8.bf16 %v677_v35 }
 0x411   : > { %18470 = vmatpush1.bf16.msra.mxu0 %v18469_v16  ;;  %19560 = vmatprep.subr.bf16.mxu1 %v19559_v13  ;;  %v18489_v16 = vunpack.c.h.s8.bf16 %v1005_v2  ;;  %v1008_v13 = vld [vmem:[%s22382_s4 + $0x1050] sm:$0xff] }
 0x412   : > { %18472 = vmatprep.subr.bf16.mxu0 %v18471_v23  ;;  %v19579_v23 = vunpack.c.l.s8.bf16 %v674_v58  ;;  %v18493_v25 = vunpack.c.l.s8.bf16 %v1008_v13  ;;  %v18497_v61 = vunpack.c.h.s8.bf16 %v1008_v13 }
 0x414   : > { %19562 = vmatpush3.bf16.msra.mxu1 %v19561_v30  ;;  %v18495_v30 = vunpack.c.h.s8.bf16 %v1009_v48 }
 0x415   : > { %18474 = vmatpush1.bf16.msra.mxu0 %v18473_v47  ;;  %19564 = vmatprep.subr.bf16.mxu1 %v19563_v34  ;;  %v19581_v47 = vunpack.c.l.s8.bf16 %v662_v26  ;;  %v1012_v34 = vld [vmem:[%s22382_s4 + $0x1070] sm:$0xff] }
 0x416   : > { %18476 = vmatprep.subr.bf16.mxu0 %v18475_v31  ;;  %v19583_v31 = vunpack.c.h.s8.bf16 %v674_v58  ;;  %v18503_v2 = vunpack.c.h.s8.bf16 %v1012_v34 }
 0x417   : > { %11420 = vmatmul.mubr.f32.vlgmr.msra.gmra.mrb[14].mxu1 %v22761_v9  ;;  %v18487_v9 = vunpack.c.h.s8.bf16 %v1006_v44  ;;  %v665_v44 = vld [vmem:[%s22382_s4 + $0x598] sm:$0xff] }
 0x418   : > { %19566 = vmatpush3.bf16.msra.mxu1 %v19565_v19  ;;  %11489 = vmatprep.mubr.f32.mxu1 %v22826_v21  ;;  %v18491_v21 = vunpack.c.l.s8.bf16 %v1009_v48  ;;  %v18499_v19 = vunpack.c.l.s8.bf16 %v1012_v34  ;;  %v19593_v48 = vunpack.c.h.s8.bf16 %v665_v44 }
 0x419   : > { %18478 = vmatpush1.bf16.msra.mxu0 %v18477_v36  ;;  %19568 = vmatprep.subr.bf16.mxu1 %v19567_v43  ;;  %v19585_v36 = vunpack.c.h.s8.bf16 %v662_v26  ;;  %v1011_v43 = vld [vmem:[%s22382_s4 + $0x1068] sm:$0xff] }
 0x41a   : > { %18480 = vmatprep.subr.bf16.mxu0 %v18479_v42  ;;  %v19587_v42 = vunpack.c.l.s8.bf16 %v677_v35 }
 0x41c   : > { %19570 = vmatpush3.bf16.msra.mxu1 %v19569_v6 }
 0x41d   : > { %18482 = vmatpush1.bf16.msra.mxu0 %v18481_v45  ;;  %19572 = vmatprep.subr.bf16.mxu1 %v19571_v57  ;;  %v19589_v57 = vunpack.c.l.s8.bf16 %v665_v44 }
 0x41e   : > { %18484 = vmatprep.subr.bf16.mxu0 %v18483_v60  ;;  %v18501_v60 = vunpack.c.l.s8.bf16 %v1011_v43 }
 0x420   : > { %19574 = vmatpush3.bf16.msra.mxu1 %v19573_v7  ;;  %v692_v7 = vld [vmem:[%s22382_s4 + $0x670] sm:$0xff] }
 0x421   : > { %18486 = vmatpush1.bf16.msra.mxu0 %v18485_v32  ;;  %19576 = vmatprep.subr.bf16.mxu1 %v19575_v27  ;;  %v1015_v32 = vld [vmem:[%s22382_s4 + $0x1088] sm:$0xff]  ;;  %v18505_v27 = vunpack.c.h.s8.bf16 %v1011_v43 }
 0x422   : > { %18488 = vmatprep.subr.bf16.mxu0 %v18487_v9  ;;  %v23115_v9 = vld [vmem:[%s22408_s17 + $0x58] sm:$0xff]  ;;  %v18507_v58 = vunpack.c.l.s8.bf16 %v1015_v32 }
 0x423   : > { %v683_v43 = vld [vmem:[%s22382_s4 + $0x628] sm:$0xff] }
 0x424   : > { %19578 = vmatpush3.bf16.msra.mxu1 %v19577_v17  ;;  %v1014_v17 = vld [vmem:[%s22382_s4 + $0x1080] sm:$0xff]  ;;  %v19605_v44 = vunpack.c.l.s8.bf16 %v683_v43 }
 0x425   : > { %18490 = vmatpush1.bf16.msra.mxu0 %v18489_v16  ;;  %19580 = vmatprep.subr.bf16.mxu1 %v19579_v23  ;;  %v19595_v16 = vunpack.c.l.s8.bf16 %v692_v7  ;;  %v23121_v23 = vrot.slane %v23115_v9, %v22435_v51  ;;  %v18509_v13 = vunpack.c.l.s8.bf16 %v1014_v17  ;;  %v18513_v35 = vunpack.c.h.s8.bf16 %v1014_v17 }
 0x426   : > { %18492 = vmatprep.subr.bf16.mxu0 %v18491_v21  ;;  %v680_v21 = vld [vmem:[%s22382_s4 + $0x610] sm:$0xff] }
 0x427   : > { %v19597_v26 = vunpack.c.l.s8.bf16 %v680_v21  ;;  %v23127_v34 = vcombine.high %v23121_v23, %v23121_v23 }
 0x428   : > { %19582 = vmatpush3.bf16.msra.mxu1 %v19581_v47  ;;  %v19599_v47 = vunpack.c.h.s8.bf16 %v692_v7  ;;  %v1020_v7 = vld [vmem:[%s22382_s4 + $0x10b0] sm:$0xff] }
 0x429   : > { %18494 = vmatpush1.bf16.msra.mxu0 %v18493_v25  ;;  %19584 = vmatprep.subr.bf16.mxu1 %v19583_v31  ;;  %v18511_v25 = vunpack.c.h.s8.bf16 %v1015_v32  ;;  %v695_v31 = vld [vmem:[%s22382_s4 + $0x688] sm:$0xff] }
 0x42a   : > { %18496 = vmatprep.subr.bf16.mxu0 %v18495_v30  ;;  %v15646_v52 = vpop.f32.mrb[2].mxu1  ;;  %v1018_v30 = vld [vmem:[%s22382_s4 + $0x10a0] sm:$0xff] }
 0x42b   : > { %v15647_v45 = vpop.f32.mrb[3].mxu1 }
 0x42c   : > { %v23110_v6 = vadd.f32 %v15647_v45, %v15646_v52  ;;  %19586 = vmatpush3.bf16.msra.mxu1 %v19585_v36  ;;  %v18515_v36 = vunpack.c.l.s8.bf16 %v1018_v30  ;;  %v18519_v52 = vunpack.c.h.s8.bf16 %v1018_v30  ;;  %v19607_v45 = vunpack.c.h.s8.bf16 %v695_v31 }
 0x42d   : > { %18498 = vmatpush1.bf16.msra.mxu0 %v18497_v61  ;;  %19588 = vmatprep.subr.bf16.mxu1 %v19587_v42  ;;  %v19601_v61 = vunpack.c.h.s8.bf16 %v680_v21  ;;  %v1017_v42 = vld [vmem:[%s22382_s4 + $0x1098] sm:$0xff]  ;;  %v1024_v21 = vld [vmem:[%s22382_s4 + $0x10d0] sm:$0xff] }
 0x42e   : > { %18500 = vmatprep.subr.bf16.mxu0 %v18499_v19  ;;  %v19603_v19 = vunpack.c.l.s8.bf16 %v695_v31  ;;  %v1023_v31 = vld [vmem:[%s22382_s4 + $0x10c8] sm:$0xff] }
 0x430   : > { %19590 = vmatpush3.bf16.msra.mxu1 %v19589_v57  ;;  %v698_v57 = vld [vmem:[%s22382_s4 + $0x6a0] sm:$0xff] }
 0x431   : > { %18502 = vmatpush1.bf16.msra.mxu0 %v18501_v60  ;;  %19592 = vmatprep.subr.bf16.mxu1 %v19591_v3  ;;  %v1021_v60 = vld [vmem:[%s22382_s4 + $0x10b8] sm:$0xff]  ;;  %v19609_v3 = vunpack.c.h.s8.bf16 %v683_v43  ;;  %v19611_v32 = vunpack.c.l.s8.bf16 %v698_v57  ;;  %v19615_v17 = vunpack.c.h.s8.bf16 %v698_v57  ;;  %v18537_v57 = vunpack.c.h.s8.bf16 %v1023_v31 }
 0x432   : > { %18504 = vmatprep.subr.bf16.mxu0 %v18503_v2  ;;  %v18521_v2 = vunpack.c.h.s8.bf16 %v1017_v42 }
 0x434   : > { %19594 = vmatpush3.bf16.msra.mxu1 %v19593_v48  ;;  %v18525_v48 = vunpack.c.l.s8.bf16 %v1020_v7 }
 0x435   : > { %18506 = vmatpush1.bf16.msra.mxu0 %v18505_v27  ;;  %19596 = vmatprep.subr.bf16.mxu1 %v19595_v16  ;;  %v686_v27 = vld [vmem:[%s22382_s4 + $0x640] sm:$0xff]  ;;  %v18527_v16 = vunpack.c.h.s8.bf16 %v1021_v60 }
 0x436   : > { %18508 = vmatprep.subr.bf16.mxu0 %v18507_v58  ;;  %v19613_v58 = vunpack.c.l.s8.bf16 %v686_v27 }
 0x437   : > { %11490 = vmatmul.mubr.f32.vlgmr.msra.gmra.mrb[16].mxu1 %v22816_v8  ;;  %v18517_v8 = vunpack.c.l.s8.bf16 %v1017_v42  ;;  %v18533_v42 = vunpack.c.l.s8.bf16 %v1023_v31 }
 0x438   : > { %10006 = vmatmul.mubr.f32.vlgmr.msra.gmra.mrb[0].mxu0 %v23066_v4  ;;  %19598 = vmatpush3.bf16.msra.mxu1 %v19597_v26  ;;  %v18529_v26 = vunpack.c.h.s8.bf16 %v1020_v7  ;;  %v704_v7 = vld [vmem:[%s22382_s4 + $0x6d0] sm:$0xff] }
 0x439   : > { %18510 = vmatpush1.bf16.msra.mxu0 %v18509_v13  ;;  %19600 = vmatprep.subr.bf16.mxu1 %v19599_v47  ;;  %v701_v13 = vld [vmem:[%s22382_s4 + $0x6b8] sm:$0xff]  ;;  %v18531_v47 = vunpack.c.l.s8.bf16 %v1024_v21 }
 0x43a   : > { %18512 = vmatprep.subr.bf16.mxu0 %v18511_v25  ;;  %11559 = vmatprep.mubr.f32.mxu1 %v22878_v40  ;;  %v18523_v40 = vunpack.c.l.s8.bf16 %v1021_v60  ;;  %v19617_v25 = vunpack.c.h.s8.bf16 %v686_v27  ;;  %v19619_v30 = vunpack.c.l.s8.bf16 %v701_v13  ;;  %v716_v60 = vld [vmem:[%s22382_s4 + $0x730] sm:$0xff] }
 0x43b   : > { %10076 = vmatprep.mubr.f32.mxu0 %v23127_v34 }
 0x43c   : > { %19602 = vmatpush3.bf16.msra.mxu1 %v19601_v61 }
 0x43d   : > { %18514 = vmatpush1.bf16.msra.mxu0 %v18513_v35  ;;  %19604 = vmatprep.subr.bf16.mxu1 %v19603_v19  ;;  %v689_v35 = vld [vmem:[%s22382_s4 + $0x658] sm:$0xff] }
 0x43e   : > { %18516 = vmatprep.subr.bf16.mxu0 %v18515_v36  ;;  %v19621_v43 = vunpack.c.l.s8.bf16 %v689_v35 }
 0x440   : > { %19606 = vmatpush3.bf16.msra.mxu1 %v19605_v44  ;;  %v19623_v44 = vunpack.c.h.s8.bf16 %v701_v13  ;;  %v19633_v13 = vunpack.c.h.s8.bf16 %v704_v7 }
 0x441   : > { %18518 = vmatpush1.bf16.msra.mxu0 %v18517_v8  ;;  %19608 = vmatprep.subr.bf16.mxu1 %v19607_v45  ;;  %v18535_v8 = vunpack.c.h.s8.bf16 %v1024_v21  ;;  %v1027_v45 = vld [vmem:[%s22382_s4 + $0x10e8] sm:$0xff] }
 0x442   : > { %18520 = vmatprep.subr.bf16.mxu0 %v18519_v52 }
 0x444   : > { %19610 = vmatpush3.bf16.msra.mxu1 %v19609_v3  ;;  %v18539_v3 = vunpack.c.l.s8.bf16 %v1027_v45 }
 0x445   : > { %18522 = vmatpush1.bf16.msra.mxu0 %v18521_v2  ;;  %19612 = vmatprep.subr.bf16.mxu1 %v19611_v32  ;;  %v19625_v2 = vunpack.c.h.s8.bf16 %v689_v35  ;;  %v1026_v32 = vld [vmem:[%s22382_s4 + $0x10e0] sm:$0xff] }
 0x446   : > { %18524 = vmatprep.subr.bf16.mxu0 %v18523_v40  ;;  %v19627_v40 = vunpack.c.l.s8.bf16 %v716_v60  ;;  %v18541_v27 = vunpack.c.l.s8.bf16 %v1026_v32  ;;  %v18545_v21 = vunpack.c.h.s8.bf16 %v1026_v32  ;;  %v725_v32 = vld [vmem:[%s22382_s4 + $0x778] sm:$0xff] }
 0x448   : > { %19614 = vmatpush3.bf16.msra.mxu1 %v19613_v58  ;;  %v19631_v58 = vunpack.c.h.s8.bf16 %v716_v60 }
 0x449   : > { %18526 = vmatpush1.bf16.msra.mxu0 %v18525_v48  ;;  %19616 = vmatprep.subr.bf16.mxu1 %v19615_v17  ;;  %v19629_v48 = vunpack.c.l.s8.bf16 %v704_v7  ;;  %v719_v17 = vld [vmem:[%s22382_s4 + $0x748] sm:$0xff] }
 0x44a   : > { %18528 = vmatprep.subr.bf16.mxu0 %v18527_v16  ;;  %v15681_v61 = vpop.f32.mrb[4].mxu1  ;;  %v1030_v16 = vld [vmem:[%s22382_s4 + $0x1100] sm:$0xff] }
 0x44b   : > { %v15682_v36 = vpop.f32.mrb[5].mxu1 }
 0x44c   : > { %v15683_v19 = vadd.f32 %v15682_v36, %v15681_v61  ;;  %19618 = vmatpush3.bf16.msra.mxu1 %v19617_v25  ;;  %v19635_v25 = vunpack.c.l.s8.bf16 %v719_v17  ;;  %v19639_v61 = vunpack.c.h.s8.bf16 %v719_v17  ;;  %v1033_v36 = vld [vmem:[%s22382_s4 + $0x1118] sm:$0xff] }
 0x44d   : > { %18530 = vmatpush1.bf16.msra.mxu0 %v18529_v26  ;;  %19620 = vmatprep.subr.bf16.mxu1 %v19619_v30  ;;  %v18547_v26 = vunpack.c.l.s8.bf16 %v1030_v16  ;;  %v707_v30 = vld [vmem:[%s22382_s4 + $0x6e8] sm:$0xff] }
 0x44e   : > { %18532 = vmatprep.subr.bf16.mxu0 %v18531_v47  ;;  %v23144_v52 = vadd.f32 %v15683_v19, %v23110_v6  ;;  %v18543_v6 = vunpack.c.h.s8.bf16 %v1027_v45  ;;  %v1029_v47 = vld [vmem:[%s22382_s4 + $0x10f8] sm:$0xff]  ;;  %v19637_v35 = vunpack.c.l.s8.bf16 %v707_v30  ;;  %v722_v19 = vld [vmem:[%s22382_s4 + $0x760] sm:$0xff] }
 0x44f   : > { %v18549_v31 = vunpack.c.l.s8.bf16 %v1029_v47  ;;  %v710_v45 = vld [vmem:[%s22382_s4 + $0x700] sm:$0xff] }
 0x450   : > { %19622 = vmatpush3.bf16.msra.mxu1 %v19621_v43  ;;  %v19641_v43 = vunpack.c.h.s8.bf16 %v707_v30  ;;  %v19655_v30 = vunpack.c.h.s8.bf16 %v725_v32 }
 0x451   : > { %18534 = vmatpush1.bf16.msra.mxu0 %v18533_v42  ;;  %19624 = vmatprep.subr.bf16.mxu1 %v19623_v44  ;;  %v18553_v42 = vunpack.c.h.s8.bf16 %v1029_v47  ;;  %v1032_v44 = vld [vmem:[%s22382_s4 + $0x1110] sm:$0xff] }
 0x452   : > { %18536 = vmatprep.subr.bf16.mxu0 %v18535_v8  ;;  %v19643_v8 = vunpack.c.l.s8.bf16 %v722_v19  ;;  %v18557_v60 = vunpack.c.l.s8.bf16 %v1032_v44  ;;  %v18561_v7 = vunpack.c.h.s8.bf16 %v1032_v44 }
 0x454   : > { %19626 = vmatpush3.bf16.msra.mxu1 %v19625_v2  ;;  %v18559_v2 = vunpack.c.h.s8.bf16 %v1033_v36 }
 0x455   : > { %18538 = vmatpush1.bf16.msra.mxu0 %v18537_v57  ;;  %19628 = vmatprep.subr.bf16.mxu1 %v19627_v40  ;;  %v19645_v57 = vunpack.c.l.s8.bf16 %v710_v45  ;;  %v1036_v40 = vld [vmem:[%s22382_s4 + $0x1130] sm:$0xff] }
 0x456   : > { %18540 = vmatprep.subr.bf16.mxu0 %v18539_v3  ;;  %v19647_v3 = vunpack.c.h.s8.bf16 %v722_v19  ;;  %v18567_v47 = vunpack.c.h.s8.bf16 %v1036_v40 }
 0x457   : > { %11560 = vmatmul.mubr.f32.vlgmr.msra.gmra.mrb[18].mxu1 %v22869_v28  ;;  %v18551_v28 = vunpack.c.h.s8.bf16 %v1030_v16  ;;  %v713_v16 = vld [vmem:[%s22382_s4 + $0x718] sm:$0xff] }
 0x458   : > { %19630 = vmatpush3.bf16.msra.mxu1 %v19629_v48  ;;  %11629 = vmatprep.mubr.f32.mxu1 %v22450_v59  ;;  %v18555_v59 = vunpack.c.l.s8.bf16 %v1033_v36  ;;  %v18563_v48 = vunpack.c.l.s8.bf16 %v1036_v40  ;;  %v19657_v19 = vunpack.c.h.s8.bf16 %v713_v16 }
 0x459   : > { %18542 = vmatpush1.bf16.msra.mxu0 %v18541_v27  ;;  %19632 = vmatprep.subr.bf16.mxu1 %v19631_v58  ;;  %v19649_v27 = vunpack.c.h.s8.bf16 %v710_v45  ;;  %v1035_v58 = vld [vmem:[%s22382_s4 + $0x1128] sm:$0xff] }
 0x45a   : > { %18544 = vmatprep.subr.bf16.mxu0 %v18543_v6  ;;  %v19651_v6 = vunpack.c.l.s8.bf16 %v725_v32  ;;  %v18569_v36 = vunpack.c.h.s8.bf16 %v1035_v58 }
 0x45c   : > { %19634 = vmatpush3.bf16.msra.mxu1 %v19633_v13 }
 0x45d   : > { %18546 = vmatpush1.bf16.msra.mxu0 %v18545_v21  ;;  %19636 = vmatprep.subr.bf16.mxu1 %v19635_v25  ;;  %v19653_v25 = vunpack.c.l.s8.bf16 %v713_v16 }
 0x45e   : > { %18548 = vmatprep.subr.bf16.mxu0 %v18547_v26  ;;  %v18565_v26 = vunpack.c.l.s8.bf16 %v1035_v58 }
 0x460   : > { %19638 = vmatpush3.bf16.msra.mxu1 %v19637_v35  ;;  %v1039_v35 = vld [vmem:[%s22382_s4 + $0x1148] sm:$0xff] }
 0x461   : > { %18550 = vmatpush1.bf16.msra.mxu0 %v18549_v31  ;;  %19640 = vmatprep.subr.bf16.mxu1 %v19639_v61  ;;  %v8270_v61 = vcombine.high %v23115_v9, %v23115_v9  ;;  %v18575_v9 = vunpack.c.h.s8.bf16 %v1039_v35 }
 0x462   : > { %18552 = vmatprep.subr.bf16.mxu0 %v18551_v28  ;;  %v740_v28 = vld [vmem:[%s22382_s4 + $0x7f0] sm:$0xff] }
 0x464   : > { %19642 = vmatpush3.bf16.msra.mxu1 %v19641_v43  ;;  %v19659_v43 = vunpack.c.l.s8.bf16 %v740_v28 }
 0x465   : > { %18554 = vmatpush1.bf16.msra.mxu0 %v18553_v42  ;;  %19644 = vmatprep.subr.bf16.mxu1 %v19643_v8  ;;  %v18571_v42 = vunpack.c.l.s8.bf16 %v1039_v35  ;;  %v728_v8 = vld [vmem:[%s22382_s4 + $0x790] sm:$0xff]  ;;  %v734_v35 = vld [vmem:[%s22382_s4 + $0x7c0] sm:$0xff] }
 0x466   : > { %18556 = vmatprep.subr.bf16.mxu0 %v18555_v59  ;;  %v1038_v59 = vld [vmem:[%s22382_s4 + $0x1140] sm:$0xff]  ;;  %v19661_v45 = vunpack.c.l.s8.bf16 %v728_v8  ;;  %v19665_v32 = vunpack.c.h.s8.bf16 %v728_v8  ;;  %v19681_v8 = vunpack.c.h.s8.bf16 %v734_v35 }
 0x467   : > { %v18573_v44 = vunpack.c.l.s8.bf16 %v1038_v59  ;;  %v18577_v40 = vunpack.c.h.s8.bf16 %v1038_v59 }
 0x468   : > { %19646 = vmatpush3.bf16.msra.mxu1 %v19645_v57  ;;  %v1042_v57 = vld [vmem:[%s22382_s4 + $0x1160] sm:$0xff] }
 0x469   : > { %18558 = vmatpush1.bf16.msra.mxu0 %v18557_v60  ;;  %19648 = vmatprep.subr.bf16.mxu1 %v19647_v3  ;;  %v19663_v60 = vunpack.c.h.s8.bf16 %v740_v28  ;;  %v18583_v16 = vunpack.c.h.s8.bf16 %v1042_v57 }
 0x46a   : > { %18560 = vmatprep.subr.bf16.mxu0 %v18559_v2  ;;  %v15716_v17 = vpop.f32.mrb[6].mxu1  ;;  %v743_v2 = vld [vmem:[%s22382_s4 + $0x808] sm:$0xff] }
 0x46b   : > { %v15717_v21 = vpop.f32.mrb[7].mxu1 }
 0x46c   : > { %v15718_v13 = vadd.f32 %v15717_v21, %v15716_v17  ;;  %19650 = vmatpush3.bf16.msra.mxu1 %v19649_v27  ;;  %v19667_v27 = vunpack.c.l.s8.bf16 %v743_v2  ;;  %v19671_v17 = vunpack.c.h.s8.bf16 %v743_v2  ;;  %v1045_v21 = vld [vmem:[%s22382_s4 + $0x1178] sm:$0xff] }
 0x46d   : > { %18562 = vmatpush1.bf16.msra.mxu0 %v18561_v7  ;;  %19652 = vmatprep.subr.bf16.mxu1 %v19651_v6  ;;  %v18579_v7 = vunpack.c.l.s8.bf16 %v1042_v57  ;;  %v731_v6 = vld [vmem:[%s22382_s4 + $0x7a8] sm:$0xff] }
 0x46e   : > { %18564 = vmatprep.subr.bf16.mxu0 %v18563_v48  ;;  %v23165_v31 = vadd.f32 %v15718_v13, %v23144_v52  ;;  %v23174_v52 = vrot.slane %v8270_v61, %v22435_v51  ;;  %v1041_v48 = vld [vmem:[%s22382_s4 + $0x1158] sm:$0xff]  ;;  %v19669_v58 = vunpack.c.l.s8.bf16 %v731_v6  ;;  %v746_v13 = vld [vmem:[%s22382_s4 + $0x820] sm:$0xff]  ;;  %v19677_v61 = vunpack.c.l.s8.bf16 %v734_v35 }
 0x46f   : > { %v1054_v35 = vld [vmem:[%s22382_s4 + $0x11c0] sm:$0xff] }
 0x470   : > { %19654 = vmatpush3.bf16.msra.mxu1 %v19653_v25  ;;  %v23180_v3 = vcombine.high %v23174_v52, %v23174_v52  ;;  %v19673_v25 = vunpack.c.h.s8.bf16 %v731_v6 }
 0x471   : > { %18566 = vmatpush1.bf16.msra.mxu0 %v18565_v26  ;;  %19656 = vmatprep.subr.bf16.mxu1 %v19655_v30  ;;  %v18585_v26 = vunpack.c.h.s8.bf16 %v1041_v48  ;;  %v1044_v30 = vld [vmem:[%s22382_s4 + $0x1170] sm:$0xff] }
 0x472   : > { %18568 = vmatprep.subr.bf16.mxu0 %v18567_v47  ;;  %v19675_v47 = vunpack.c.l.s8.bf16 %v746_v13  ;;  %v18589_v28 = vunpack.c.l.s8.bf16 %v1044_v30  ;;  %v18593_v59 = vunpack.c.h.s8.bf16 %v1044_v30 }
 0x474   : > { %19658 = vmatpush3.bf16.msra.mxu1 %v19657_v19  ;;  %v19679_v19 = vunpack.c.h.s8.bf16 %v746_v13 }
 0x475   : > { %18570 = vmatpush1.bf16.msra.mxu0 %v18569_v36  ;;  %19660 = vmatprep.subr.bf16.mxu1 %v19659_v43  ;;  %v18591_v36 = vunpack.c.h.s8.bf16 %v1045_v21  ;;  %v749_v43 = vld [vmem:[%s22382_s4 + $0x838] sm:$0xff] }
 0x476   : > { %18572 = vmatprep.subr.bf16.mxu0 %v18571_v42  ;;  %v1048_v42 = vld [vmem:[%s22382_s4 + $0x1190] sm:$0xff] }
 0x477   : > { %11630 = vmatmul.mubr.f32.vlgmr.msra.gmra.mrb[20].mxu1 %v22442_v53  ;;  %v18581_v53 = vunpack.c.l.s8.bf16 %v1041_v48  ;;  %v19687_v48 = vunpack.c.h.s8.bf16 %v749_v43 }
 0x478   : > { %10077 = vmatmul.mubr.f32.vlgmr.msra.gmra.mrb[0].mxu0 %v23121_v23  ;;  %19662 = vmatpush3.bf16.msra.mxu1 %v19661_v45  ;;  %v19683_v45 = vunpack.c.l.s8.bf16 %v749_v43  ;;  %v1053_v43 = vld [vmem:[%s22382_s4 + $0x11b8] sm:$0xff] }
 0x479   : > { %18574 = vmatpush1.bf16.msra.mxu0 %v18573_v44  ;;  %19664 = vmatprep.subr.bf16.mxu1 %v19663_v60  ;;  %v18595_v44 = vunpack.c.l.s8.bf16 %v1048_v42  ;;  %v737_v60 = vld [vmem:[%s22382_s4 + $0x7d8] sm:$0xff] }
 0x47a   : > { %18576 = vmatprep.subr.bf16.mxu0 %v18575_v9  ;;  %11699 = vmatprep.mubr.f32.mxu1 %v22494_v5  ;;  %v18587_v5 = vunpack.c.l.s8.bf16 %v1045_v21  ;;  %v1047_v9 = vld [vmem:[%s22382_s4 + $0x1188] sm:$0xff] }
 0x47b   : > { %10147 = vmatprep.mubr.f32.mxu0 %v23180_v3 }
 0x47c   : > { %19666 = vmatpush3.bf16.msra.mxu1 %v19665_v32  ;;  %v18597_v32 = vunpack.c.l.s8.bf16 %v1047_v9 }
 0x47d   : > { %18578 = vmatpush1.bf16.msra.mxu0 %v18577_v40  ;;  %19668 = vmatprep.subr.bf16.mxu1 %v19667_v27  ;;  %v18599_v27 = vunpack.c.h.s8.bf16 %v1048_v42 }
 0x47e   : > { %18580 = vmatprep.subr.bf16.mxu0 %v18579_v7  ;;  %v19685_v7 = vunpack.c.l.s8.bf16 %v737_v60 }
 0x480   : > { %19670 = vmatpush3.bf16.msra.mxu1 %v19669_v58  ;;  %v764_v58 = vld [vmem:[%s22382_s4 + $0x8b0] sm:$0xff] }
 0x481   : > { %18582 = vmatpush1.bf16.msra.mxu0 %v18581_v53  ;;  %19672 = vmatprep.subr.bf16.mxu1 %v19671_v17  ;;  %v1051_v53 = vld [vmem:[%s22382_s4 + $0x11a8] sm:$0xff]  ;;  %v19689_v17 = vunpack.c.h.s8.bf16 %v737_v60  ;;  %v19691_v13 = vunpack.c.l.s8.bf16 %v764_v58  ;;  %v19695_v30 = vunpack.c.h.s8.bf16 %v764_v58  ;;  %v770_v60 = vld [vmem:[%s22382_s4 + $0x8e0] sm:$0xff] }
 0x482   : > { %18584 = vmatprep.subr.bf16.mxu0 %v18583_v16  ;;  %v18601_v16 = vunpack.c.h.s8.bf16 %v1047_v9  ;;  %v18603_v21 = vunpack.c.l.s8.bf16 %v1051_v53  ;;  %v1057_v9 = vld [vmem:[%s22382_s4 + $0x11d8] sm:$0xff]  ;;  %v19711_v58 = vunpack.c.h.s8.bf16 %v770_v60 }
 0x484   : > { %19674 = vmatpush3.bf16.msra.mxu1 %v19673_v25  ;;  %v752_v25 = vld [vmem:[%s22382_s4 + $0x850] sm:$0xff] }
 0x485   : > { %18586 = vmatpush1.bf16.msra.mxu0 %v18585_v26  ;;  %19676 = vmatprep.subr.bf16.mxu1 %v19675_v47  ;;  %v1050_v26 = vld [vmem:[%s22382_s4 + $0x11a0] sm:$0xff]  ;;  %v19693_v47 = vunpack.c.l.s8.bf16 %v752_v25 }
 0x486   : > { %18588 = vmatprep.subr.bf16.mxu0 %v18587_v5  ;;  %v18605_v5 = vunpack.c.l.s8.bf16 %v1050_v26 }
 0x488   : > { %19678 = vmatpush3.bf16.msra.mxu1 %v19677_v61  ;;  %v18609_v61 = vunpack.c.h.s8.bf16 %v1050_v26 }
 0x489   : > { %18590 = vmatpush1.bf16.msra.mxu0 %v18589_v28  ;;  %19680 = vmatprep.subr.bf16.mxu1 %v19679_v19  ;;  %v767_v28 = vld [vmem:[%s22382_s4 + $0x8c8] sm:$0xff]  ;;  %v18611_v19 = vunpack.c.l.s8.bf16 %v1054_v35 }
 0x48a   : > { %18592 = vmatprep.subr.bf16.mxu0 %v18591_v36  ;;  %v15751_v57 = vpop.f32.mrb[8].mxu1  ;;  %v19697_v36 = vunpack.c.h.s8.bf16 %v752_v25  ;;  %v19699_v42 = vunpack.c.l.s8.bf16 %v767_v28 }
 0x48b   : > { %v15752_v2 = vpop.f32.mrb[9].mxu1 }
 0x48c   : > { %v15753_v40 = vadd.f32 %v15752_v2, %v15751_v57  ;;  %19682 = vmatpush3.bf16.msra.mxu1 %v19681_v8  ;;  %v18613_v8 = vunpack.c.l.s8.bf16 %v1053_v43  ;;  %v18617_v57 = vunpack.c.h.s8.bf16 %v1053_v43  ;;  %v1063_v43 = vld [vmem:[%s22382_s4 + $0x1208] sm:$0xff] }
 0x48d   : > { %18594 = vmatpush1.bf16.msra.mxu0 %v18593_v59  ;;  %19684 = vmatprep.subr.bf16.mxu1 %v19683_v45  ;;  %v755_v59 = vld [vmem:[%s22382_s4 + $0x868] sm:$0xff]  ;;  %v19703_v45 = vunpack.c.h.s8.bf16 %v767_v28 }
 0x48e   : > { %18596 = vmatprep.subr.bf16.mxu0 %v18595_v44  ;;  %v23197_v6 = vadd.f32 %v15753_v40, %v23165_v31  ;;  %v18607_v31 = vunpack.c.h.s8.bf16 %v1051_v53  ;;  %v19701_v44 = vunpack.c.l.s8.bf16 %v755_v59  ;;  %v19705_v2 = vunpack.c.h.s8.bf16 %v755_v59  ;;  %v788_v59 = vld [vmem:[%s22382_s4 + $0x970] sm:$0xff] }
 0x48f   : > { %v19707_v40 = vunpack.c.l.s8.bf16 %v770_v60  ;;  %v18623_v53 = vunpack.c.h.s8.bf16 %v1057_v9  ;;  %v1062_v60 = vld [vmem:[%s22382_s4 + $0x1200] sm:$0xff] }
 0x490   : > { %19686 = vmatpush3.bf16.msra.mxu1 %v19685_v7  ;;  %v758_v7 = vld [vmem:[%s22382_s4 + $0x880] sm:$0xff] }
 0x491   : > { %18598 = vmatpush1.bf16.msra.mxu0 %v18597_v32  ;;  %19688 = vmatprep.subr.bf16.mxu1 %v19687_v48  ;;  %v1056_v32 = vld [vmem:[%s22382_s4 + $0x11d0] sm:$0xff]  ;;  %v19709_v48 = vunpack.c.l.s8.bf16 %v758_v7 }
 0x492   : > { %18600 = vmatprep.subr.bf16.mxu0 %v18599_v27  ;;  %v18621_v27 = vunpack.c.l.s8.bf16 %v1056_v32 }
 0x494   : > { %19690 = vmatpush3.bf16.msra.mxu1 %v19689_v17  ;;  %v773_v17 = vld [vmem:[%s22382_s4 + $0x8f8] sm:$0xff] }
 0x495   : > { %18602 = vmatpush1.bf16.msra.mxu0 %v18601_v16  ;;  %19692 = vmatprep.subr.bf16.mxu1 %v19691_v13  ;;  %v1060_v16 = vld [vmem:[%s22382_s4 + $0x11f0] sm:$0xff]  ;;  %v19713_v13 = vunpack.c.h.s8.bf16 %v758_v7  ;;  %v19715_v25 = vunpack.c.l.s8.bf16 %v773_v17  ;;  %v1066_v7 = vld [vmem:[%s22382_s4 + $0x1220] sm:$0xff] }
 0x496   : > { %18604 = vmatprep.subr.bf16.mxu0 %v18603_v21  ;;  %v18625_v21 = vunpack.c.h.s8.bf16 %v1056_v32  ;;  %v18627_v26 = vunpack.c.l.s8.bf16 %v1060_v16  ;;  %v19727_v32 = vunpack.c.h.s8.bf16 %v788_v59 }
 0x497   : > { %11700 = vmatmul.mubr.f32.vlgmr.msra.gmra.mrb[22].mxu1 %v22484_v46  ;;  %v18615_v46 = vunpack.c.h.s8.bf16 %v1054_v35 }
 0x498   : > { %19694 = vmatpush3.bf16.msra.mxu1 %v19693_v47  ;;  %11769 = vmatprep.mubr.f32.mxu1 %v22550_v62  ;;  %v18619_v62 = vunpack.c.l.s8.bf16 %v1057_v9  ;;  %v761_v47 = vld [vmem:[%s22382_s4 + $0x898] sm:$0xff]  ;;  %v19723_v9 = vunpack.c.l.s8.bf16 %v788_v59 }
 0x499   : > { %18606 = vmatpush1.bf16.msra.mxu0 %v18605_v5  ;;  %19696 = vmatprep.subr.bf16.mxu1 %v19695_v30  ;;  %v1059_v5 = vld [vmem:[%s22382_s4 + $0x11e8] sm:$0xff] }
 0x49a   : > { %18608 = vmatprep.subr.bf16.mxu0 %v18607_v31  ;;  %v18629_v28 = vunpack.c.l.s8.bf16 %v1059_v5 }
 0x49c   : > { %19698 = vmatpush3.bf16.msra.mxu1 %v19697_v36  ;;  %v18631_v36 = vunpack.c.h.s8.bf16 %v1060_v16  ;;  %v18643_v16 = vunpack.c.l.s8.bf16 %v1066_v7 }
 0x49d   : > { %18610 = vmatpush1.bf16.msra.mxu0 %v18609_v61  ;;  %19700 = vmatprep.subr.bf16.mxu1 %v19699_v42  ;;  %v19717_v61 = vunpack.c.l.s8.bf16 %v761_v47 }
 0x49e   : > { %18612 = vmatprep.subr.bf16.mxu0 %v18611_v19  ;;  %v19719_v19 = vunpack.c.h.s8.bf16 %v773_v17 }
 0x4a0   : > { %19702 = vmatpush3.bf16.msra.mxu1 %v19701_v44  ;;  %v18633_v44 = vunpack.c.h.s8.bf16 %v1059_v5 }
 0x4a1   : > { %18614 = vmatpush1.bf16.msra.mxu0 %v18613_v8  ;;  %19704 = vmatprep.subr.bf16.mxu1 %v19703_v45  ;;  %v23223_v8 = vld [vmem:[%s22408_s17 + $0x60] sm:$0xff]  ;;  %v18635_v45 = vunpack.c.l.s8.bf16 %v1063_v43 }
 0x4a2   : > { %18616 = vmatprep.subr.bf16.mxu0 %v18615_v46  ;;  %v19721_v46 = vunpack.c.h.s8.bf16 %v761_v47  ;;  %v1069_v47 = vld [vmem:[%s22382_s4 + $0x1238] sm:$0xff] }
 0x4a3   : > { %v18655_v59 = vunpack.c.h.s8.bf16 %v1069_v47 }
 0x4a4   : > { %19706 = vmatpush3.bf16.msra.mxu1 %v19705_v2  ;;  %v18637_v2 = vunpack.c.l.s8.bf16 %v1062_v60 }
 0x4a5   : > { %18618 = vmatpush1.bf16.msra.mxu0 %v18617_v57  ;;  %19708 = vmatprep.subr.bf16.mxu1 %v19707_v40  ;;  %v776_v57 = vld [vmem:[%s22382_s4 + $0x910] sm:$0xff]  ;;  %v18639_v40 = vunpack.c.h.s8.bf16 %v1063_v43 }
 0x4a6   : > { %18620 = vmatprep.subr.bf16.mxu0 %v18619_v62  ;;  %v19725_v62 = vunpack.c.l.s8.bf16 %v776_v57 }
 0x4a8   : > { %19710 = vmatpush3.bf16.msra.mxu1 %v19709_v48 }
 0x4a9   : > { %18622 = vmatpush1.bf16.msra.mxu0 %v18621_v27  ;;  %19712 = vmatprep.subr.bf16.mxu1 %v19711_v58  ;;  %v791_v27 = vld [vmem:[%s22382_s4 + $0x988] sm:$0xff]  ;;  %v19729_v58 = vunpack.c.h.s8.bf16 %v776_v57 }
 0x4aa   : > { %18624 = vmatprep.subr.bf16.mxu0 %v18623_v53  ;;  %v15786_v31 = vpop.f32.mrb[10].mxu1  ;;  %v18641_v53 = vunpack.c.h.s8.bf16 %v1062_v60  ;;  %v19731_v17 = vunpack.c.l.s8.bf16 %v791_v27  ;;  %v19735_v5 = vunpack.c.h.s8.bf16 %v791_v27 }
 0x4ab   : > { %v15787_v30 = vpop.f32.mrb[11].mxu1 }
 0x4ac   : > { %v15788_v35 = vadd.f32 %v15787_v30, %v15786_v31  ;;  %19714 = vmatpush3.bf16.msra.mxu1 %v19713_v13  ;;  %v779_v13 = vld [vmem:[%s22382_s4 + $0x928] sm:$0xff]  ;;  %v794_v31 = vld [vmem:[%s22382_s4 + $0x9a0] sm:$0xff] }
 0x4ad   : > { %18626 = vmatpush1.bf16.msra.mxu0 %v18625_v21  ;;  %19716 = vmatprep.subr.bf16.mxu1 %v19715_v25  ;;  %v1065_v21 = vld [vmem:[%s22382_s4 + $0x1218] sm:$0xff]  ;;  %v18647_v25 = vunpack.c.h.s8.bf16 %v1066_v7 }
 0x4ae   : > { %18628 = vmatprep.subr.bf16.mxu0 %v18627_v26  ;;  %v23218_v42 = vadd.f32 %v15788_v35, %v23197_v6  ;;  %v23229_v6 = vrot.slane %v23223_v8, %v22435_v51  ;;  %v19733_v26 = vunpack.c.l.s8.bf16 %v779_v13  ;;  %v18649_v30 = vunpack.c.h.s8.bf16 %v1065_v21 }
 0x4af   : > { %v19737_v35 = vunpack.c.h.s8.bf16 %v779_v13  ;;  %v1075_v13 = vld [vmem:[%s22382_s4 + $0x1268] sm:$0xff] }
 0x4b0   : > { %19718 = vmatpush3.bf16.msra.mxu1 %v19717_v61  ;;  %v23235_v48 = vcombine.high %v23229_v6, %v23229_v6  ;;  %v1068_v61 = vld [vmem:[%s22382_s4 + $0x1230] sm:$0xff] }
 0x4b1   : > { %18630 = vmatpush1.bf16.msra.mxu0 %v18629_v28  ;;  %19720 = vmatprep.subr.bf16.mxu1 %v19719_v19  ;;  %v19739_v28 = vunpack.c.l.s8.bf16 %v794_v31  ;;  %v18653_v19 = vunpack.c.l.s8.bf16 %v1068_v61 }
 0x4b2   : > { %18632 = vmatprep.subr.bf16.mxu0 %v18631_v36  ;;  %v782_v36 = vld [vmem:[%s22382_s4 + $0x940] sm:$0xff] }
 0x4b3   : > { %v19741_v43 = vunpack.c.l.s8.bf16 %v782_v36  ;;  %v19745_v60 = vunpack.c.h.s8.bf16 %v782_v36  ;;  %v815_v36 = vld [vmem:[%s22382_s4 + $0xa48] sm:$0xff] }
 0x4b4   : > { %19722 = vmatpush3.bf16.msra.mxu1 %v19721_v46  ;;  %v1072_v46 = vld [vmem:[%s22382_s4 + $0x1250] sm:$0xff] }
 0x4b5   : > { %18634 = vmatpush1.bf16.msra.mxu0 %v18633_v44  ;;  %19724 = vmatprep.subr.bf16.mxu1 %v19723_v9  ;;  %v19743_v44 = vunpack.c.h.s8.bf16 %v794_v31  ;;  %v18657_v9 = vunpack.c.h.s8.bf16 %v1068_v61  ;;  %v18659_v57 = vunpack.c.l.s8.bf16 %v1072_v46  ;;  %v1074_v31 = vld [vmem:[%s22382_s4 + $0x1260] sm:$0xff] }
 0x4b6   : > { %18636 = vmatprep.subr.bf16.mxu0 %v18635_v45  ;;  %v797_v45 = vld [vmem:[%s22382_s4 + $0x9b8] sm:$0xff]  ;;  %v1078_v61 = vld [vmem:[%s22382_s4 + $0x1280] sm:$0xff] }
 0x4b7   : > { %11770 = vmatmul.mubr.f32.vlgmr.msra.gmra.mrb[24].mxu1 %v22540_v49  ;;  %v18645_v49 = vunpack.c.l.s8.bf16 %v1065_v21 }
 0x4b8   : > { %10148 = vmatmul.mubr.f32.vlgmr.msra.gmra.mrb[0].mxu0 %v23174_v52  ;;  %19726 = vmatpush3.bf16.msra.mxu1 %v19725_v62  ;;  %v1071_v62 = vld [vmem:[%s22382_s4 + $0x1248] sm:$0xff] }
 0x4b9   : > { %18638 = vmatpush1.bf16.msra.mxu0 %v18637_v2  ;;  %19728 = vmatprep.subr.bf16.mxu1 %v19727_v32  ;;  %v19747_v2 = vunpack.c.l.s8.bf16 %v797_v45 }
 0x4ba   : > { %18640 = vmatprep.subr.bf16.mxu0 %v18639_v40  ;;  %11839 = vmatprep.mubr.f32.mxu1 %v22606_v1  ;;  %v18651_v1 = vunpack.c.l.s8.bf16 %v1069_v47  ;;  %v785_v40 = vld [vmem:[%s22382_s4 + $0x958] sm:$0xff] }
 0x4bb   : > { %10218 = vmatprep.mubr.f32.mxu0 %v23235_v48 }
 0x4bc   : > { %19730 = vmatpush3.bf16.msra.mxu1 %v19729_v58  ;;  %v19749_v58 = vunpack.c.l.s8.bf16 %v785_v40 }
 0x4bd   : > { %18642 = vmatpush1.bf16.msra.mxu0 %v18641_v53  ;;  %19732 = vmatprep.subr.bf16.mxu1 %v19731_v17  ;;  %v18661_v53 = vunpack.c.l.s8.bf16 %v1071_v62  ;;  %v19751_v17 = vunpack.c.h.s8.bf16 %v797_v45  ;;  %v803_v45 = vld [vmem:[%s22382_s4 + $0x9e8] sm:$0xff] }
 0x4be   : > { %18644 = vmatprep.subr.bf16.mxu0 %v18643_v16  ;;  %v18663_v16 = vunpack.c.h.s8.bf16 %v1072_v46  ;;  %v1077_v46 = vld [vmem:[%s22382_s4 + $0x1278] sm:$0xff] }
 0x4c0   : > { %19734 = vmatpush3.bf16.msra.mxu1 %v19733_v26  ;;  %v18665_v26 = vunpack.c.h.s8.bf16 %v1071_v62  ;;  %v818_v62 = vld [vmem:[%s22382_s4 + $0xa60] sm:$0xff] }
 0x4c1   : > { %18646 = vmatpush1.bf16.msra.mxu0 %v18645_v49  ;;  %19736 = vmatprep.subr.bf16.mxu1 %v19735_v5  ;;  %v812_v49 = vld [vmem:[%s22382_s4 + $0xa30] sm:$0xff]  ;;  %v18667_v5 = vunpack.c.l.s8.bf16 %v1075_v13 }
 0x4c2   : > { %18648 = vmatprep.subr.bf16.mxu0 %v18647_v25  ;;  %v19753_v25 = vunpack.c.h.s8.bf16 %v785_v40  ;;  %v19755_v47 = vunpack.c.l.s8.bf16 %v812_v49  ;;  %v18681_v40 = vunpack.c.h.s8.bf16 %v1077_v46 }
 0x4c4   : > { %19738 = vmatpush3.bf16.msra.mxu1 %v19737_v35  ;;  %v18669_v35 = vunpack.c.l.s8.bf16 %v1074_v31 }
 0x4c5   : > { %18650 = vmatpush1.bf16.msra.mxu0 %v18649_v30  ;;  %19740 = vmatprep.subr.bf16.mxu1 %v19739_v28  ;;  %v800_v30 = vld [vmem:[%s22382_s4 + $0x9d0] sm:$0xff]  ;;  %v19759_v28 = vunpack.c.h.s8.bf16 %v812_v49 }
 0x4c6   : > { %18652 = vmatprep.subr.bf16.mxu0 %v18651_v1  ;;  %v19757_v1 = vunpack.c.l.s8.bf16 %v800_v30  ;;  %v1084_v49 = vld [vmem:[%s22382_s4 + $0x12b0] sm:$0xff] }
 0x4c8   : > { %19742 = vmatpush3.bf16.msra.mxu1 %v19741_v43  ;;  %v19761_v43 = vunpack.c.h.s8.bf16 %v800_v30  ;;  %v1083_v30 = vld [vmem:[%s22382_s4 + $0x12a8] sm:$0xff] }
 0x4c9   : > { %18654 = vmatpush1.bf16.msra.mxu0 %v18653_v19  ;;  %19744 = vmatprep.subr.bf16.mxu1 %v19743_v44  ;;  %v18673_v19 = vunpack.c.h.s8.bf16 %v1074_v31  ;;  %v19763_v44 = vunpack.c.l.s8.bf16 %v815_v36 }
 0x4ca   : > { %18656 = vmatprep.subr.bf16.mxu0 %v18655_v59  ;;  %v15821_v32 = vpop.f32.mrb[12].mxu1  ;;  %v18675_v59 = vunpack.c.l.s8.bf16 %v1078_v61 }
 0x4cb   : > { %v15822_v7 = vpop.f32.mrb[13].mxu1 }
 0x4cc   : > { %v15823_v27 = vadd.f32 %v15822_v7, %v15821_v32  ;;  %19746 = vmatpush3.bf16.msra.mxu1 %v19745_v60  ;;  %v19765_v60 = vunpack.c.l.s8.bf16 %v803_v45  ;;  %v19769_v32 = vunpack.c.h.s8.bf16 %v803_v45  ;;  %v19771_v7 = vunpack.c.l.s8.bf16 %v818_v62 }
 0x4cd   : > { %18658 = vmatpush1.bf16.msra.mxu0 %v18657_v9  ;;  %19748 = vmatprep.subr.bf16.mxu1 %v19747_v2  ;;  %v18677_v9 = vunpack.c.l.s8.bf16 %v1077_v46  ;;  %v1081_v2 = vld [vmem:[%s22382_s4 + $0x1298] sm:$0xff]  ;;  %v836_v46 = vld [vmem:[%s22382_s4 + $0xaf0] sm:$0xff]  ;;  %v8287_v45 = vcombine.high %v23223_v8, %v23223_v8 }
 0x4ce   : > { %18660 = vmatprep.subr.bf16.mxu0 %v18659_v57  ;;  %v23252_v21 = vadd.f32 %v15823_v27, %v23218_v42  ;;  %v18671_v42 = vunpack.c.h.s8.bf16 %v1075_v13  ;;  %v19767_v57 = vunpack.c.h.s8.bf16 %v815_v36  ;;  %v1080_v27 = vld [vmem:[%s22382_s4 + $0x1290] sm:$0xff]  ;;  %v19775_v13 = vunpack.c.h.s8.bf16 %v818_v62 }
 0x4cf   : > { %v824_v62 = vld [vmem:[%s22382_s4 + $0xa90] sm:$0xff] }
 0x4d0   : > { %19750 = vmatpush3.bf16.msra.mxu1 %v19749_v58  ;;  %v18685_v58 = vunpack.c.l.s8.bf16 %v1080_v27 }
 0x4d1   : > { %18662 = vmatpush1.bf16.msra.mxu0 %v18661_v53  ;;  %19752 = vmatprep.subr.bf16.mxu1 %v19751_v17  ;;  %v806_v53 = vld [vmem:[%s22382_s4 + $0xa00] sm:$0xff]  ;;  %v18687_v17 = vunpack.c.h.s8.bf16 %v1081_v2 }
 0x4d2   : > { %18664 = vmatprep.subr.bf16.mxu0 %v18663_v16  ;;  %v19773_v16 = vunpack.c.l.s8.bf16 %v806_v53 }
 0x4d4   : > { %19754 = vmatpush3.bf16.msra.mxu1 %v19753_v25  ;;  %v18689_v25 = vunpack.c.h.s8.bf16 %v1080_v27  ;;  %v839_v27 = vld [vmem:[%s22382_s4 + $0xb08] sm:$0xff] }
 0x4d5   : > { %18666 = vmatpush1.bf16.msra.mxu0 %v18665_v26  ;;  %19756 = vmatprep.subr.bf16.mxu1 %v19755_v47  ;;  %v821_v26 = vld [vmem:[%s22382_s4 + $0xa78] sm:$0xff]  ;;  %v18691_v47 = vunpack.c.l.s8.bf16 %v1084_v49 }
 0x4d6   : > { %18668 = vmatprep.subr.bf16.mxu0 %v18667_v5  ;;  %v19777_v5 = vunpack.c.h.s8.bf16 %v806_v53  ;;  %v19779_v31 = vunpack.c.l.s8.bf16 %v821_v26 }
 0x4d7   : > { %11840 = vmatmul.mubr.f32.vlgmr.msra.gmra.mrb[26].mxu1 %v22596_v38  ;;  %v18679_v38 = vunpack.c.h.s8.bf16 %v1078_v61  ;;  %v18693_v61 = vunpack.c.l.s8.bf16 %v1083_v30 }
 0x4d8   : > { %19758 = vmatpush3.bf16.msra.mxu1 %v19757_v1  ;;  %11909 = vmatprep.mubr.f32.mxu1 %v22662_v14  ;;  %v18683_v14 = vunpack.c.l.s8.bf16 %v1081_v2  ;;  %v1086_v2 = vld [vmem:[%s22382_s4 + $0x12c0] sm:$0xff] }
 0x4d9   : > { %18670 = vmatpush1.bf16.msra.mxu0 %v18669_v35  ;;  %19760 = vmatprep.subr.bf16.mxu1 %v19759_v28  ;;  %v809_v35 = vld [vmem:[%s22382_s4 + $0xa18] sm:$0xff] }
 0x4da   : > { %18672 = vmatprep.subr.bf16.mxu0 %v18671_v42  ;;  %v19781_v36 = vunpack.c.l.s8.bf16 %v809_v35 }
 0x4dc   : > { %19762 = vmatpush3.bf16.msra.mxu1 %v19761_v43  ;;  %v19783_v43 = vunpack.c.h.s8.bf16 %v821_v26  ;;  %v827_v26 = vld [vmem:[%s22382_s4 + $0xaa8] sm:$0xff] }
 0x4dd   : > { %18674 = vmatpush1.bf16.msra.mxu0 %v18673_v19  ;;  %19764 = vmatprep.subr.bf16.mxu1 %v19763_v44  ;;  %v18695_v19 = vunpack.c.h.s8.bf16 %v1084_v49  ;;  %v1087_v44 = vld [vmem:[%s22382_s4 + $0x12c8] sm:$0xff]  ;;  %v1089_v49 = vld [vmem:[%s22382_s4 + $0x12d8] sm:$0xff] }
 0x4de   : > { %18676 = vmatprep.subr.bf16.mxu0 %v18675_v59  ;;  %v18703_v8 = vunpack.c.h.s8.bf16 %v1087_v44 }
 0x4e0   : > { %19766 = vmatpush3.bf16.msra.mxu1 %v19765_v60  ;;  %v19785_v60 = vunpack.c.h.s8.bf16 %v809_v35  ;;  %v18713_v35 = vunpack.c.h.s8.bf16 %v1089_v49 }
 0x4e1   : > { %18678 = vmatpush1.bf16.msra.mxu0 %v18677_v9  ;;  %19768 = vmatprep.subr.bf16.mxu1 %v19767_v57  ;;  %v18697_v9 = vunpack.c.h.s8.bf16 %v1083_v30  ;;  %v19787_v57 = vunpack.c.l.s8.bf16 %v836_v46  ;;  %v842_v30 = vld [vmem:[%s22382_s4 + $0xb20] sm:$0xff] }
 0x4e2   : > { %18680 = vmatprep.subr.bf16.mxu0 %v18679_v38  ;;  %v18699_v38 = vunpack.c.l.s8.bf16 %v1087_v44  ;;  %v19807_v44 = vunpack.c.h.s8.bf16 %v842_v30 }
 0x4e4   : > { %19770 = vmatpush3.bf16.msra.mxu1 %v19769_v32  ;;  %v19789_v32 = vunpack.c.l.s8.bf16 %v824_v62 }
 0x4e5   : > { %18682 = vmatpush1.bf16.msra.mxu0 %v18681_v40  ;;  %19772 = vmatprep.subr.bf16.mxu1 %v19771_v7  ;;  %v18701_v40 = vunpack.c.l.s8.bf16 %v1086_v2  ;;  %v1090_v7 = vld [vmem:[%s22382_s4 + $0x12e0] sm:$0xff] }
 0x4e6   : > { %18684 = vmatprep.subr.bf16.mxu0 %v18683_v14  ;;  %v19791_v14 = vunpack.c.h.s8.bf16 %v836_v46  ;;  %v1096_v46 = vld [vmem:[%s22382_s4 + $0x1310] sm:$0xff] }
 0x4e8   : > { %19774 = vmatpush3.bf16.msra.mxu1 %v19773_v16  ;;  %v19793_v16 = vunpack.c.h.s8.bf16 %v824_v62  ;;  %v833_v62 = vld [vmem:[%s22382_s4 + $0xad8] sm:$0xff] }
 0x4e9   : > { %18686 = vmatpush1.bf16.msra.mxu0 %v18685_v58  ;;  %19776 = vmatprep.subr.bf16.mxu1 %v19775_v13  ;;  %v18705_v58 = vunpack.c.h.s8.bf16 %v1086_v2  ;;  %v19795_v13 = vunpack.c.l.s8.bf16 %v839_v27  ;;  %v1095_v2 = vld [vmem:[%s22382_s4 + $0x1308] sm:$0xff] }
 0x4ea   : > { %18688 = vmatprep.subr.bf16.mxu0 %v18687_v17  ;;  %v15856_v1 = vpop.f32.mrb[14].mxu1  ;;  %v18707_v17 = vunpack.c.l.s8.bf16 %v1090_v7 }
 0x4eb   : > { %v15857_v42 = vpop.f32.mrb[15].mxu1 }
 0x4ec   : > { %v15858_v28 = vadd.f32 %v15857_v42, %v15856_v1  ;;  %19778 = vmatpush3.bf16.msra.mxu1 %v19777_v5  ;;  %v18711_v5 = vunpack.c.h.s8.bf16 %v1090_v7  ;;  %v19801_v1 = vunpack.c.h.s8.bf16 %v827_v26  ;;  %v19803_v42 = vunpack.c.l.s8.bf16 %v842_v30 }
 0x4ed   : > { %18690 = vmatpush1.bf16.msra.mxu0 %v18689_v25  ;;  %19780 = vmatprep.subr.bf16.mxu1 %v19779_v31  ;;  %v19797_v25 = vunpack.c.l.s8.bf16 %v827_v26  ;;  %v1093_v31 = vld [vmem:[%s22382_s4 + $0x12f8] sm:$0xff]  ;;  %v19813_v7 = vunpack.c.l.s8.bf16 %v833_v62  ;;  %v19817_v26 = vunpack.c.h.s8.bf16 %v833_v62  ;;  %v1104_v62 = vld [vmem:[%s22382_s4 + $0x1350] sm:$0xff] }
 0x4ee   : > { %18692 = vmatprep.subr.bf16.mxu0 %v18691_v47  ;;  %v23273_v59 = vadd.f32 %v15858_v28, %v23252_v21  ;;  %v23282_v21 = vrot.slane %v8287_v45, %v22435_v51  ;;  %v19799_v47 = vunpack.c.h.s8.bf16 %v839_v27  ;;  %v1092_v28 = vld [vmem:[%s22382_s4 + $0x12f0] sm:$0xff]  ;;  %v845_v45 = vld [vmem:[%s22382_s4 + $0xb38] sm:$0xff]  ;;  %v18727_v27 = vunpack.c.h.s8.bf16 %v1096_v46 }
 0x4f0   : > { %19782 = vmatpush3.bf16.msra.mxu1 %v19781_v36  ;;  %v23288_v53 = vcombine.high %v23282_v21, %v23282_v21  ;;  %v18717_v36 = vunpack.c.l.s8.bf16 %v1092_v28 }
 0x4f1   : > { %18694 = vmatpush1.bf16.msra.mxu0 %v18693_v61  ;;  %19784 = vmatprep.subr.bf16.mxu1 %v19783_v43  ;;  %v830_v61 = vld [vmem:[%s22382_s4 + $0xac0] sm:$0xff]  ;;  %v18719_v43 = vunpack.c.h.s8.bf16 %v1093_v31 }
 0x4f2   : > { %18696 = vmatprep.subr.bf16.mxu0 %v18695_v19  ;;  %v19805_v19 = vunpack.c.l.s8.bf16 %v830_v61 }
 0x4f4   : > { %19786 = vmatpush3.bf16.msra.mxu1 %v19785_v60  ;;  %v19809_v60 = vunpack.c.h.s8.bf16 %v830_v61 }
 0x4f5   : > { %18698 = vmatpush1.bf16.msra.mxu0 %v18697_v9  ;;  %19788 = vmatprep.subr.bf16.mxu1 %v19787_v57  ;;  %v18721_v9 = vunpack.c.h.s8.bf16 %v1092_v28  ;;  %v19811_v57 = vunpack.c.l.s8.bf16 %v845_v45 }
 0x4f6   : > { %18700 = vmatprep.subr.bf16.mxu0 %v18699_v38  ;;  %v18723_v38 = vunpack.c.l.s8.bf16 %v1096_v46 }
 0x4f7   : > { %11910 = vmatmul.mubr.f32.vlgmr.msra.gmra.mrb[28].mxu1 %v22652_v37  ;;  %v18709_v37 = vunpack.c.l.s8.bf16 %v1089_v49  ;;  %v18729_v49 = vunpack.c.h.s8.bf16 %v1095_v2 }
 0x4f8   : > { %10219 = vmatmul.mubr.f32.vlgmr.msra.gmra.mrb[0].mxu0 %v23229_v6  ;;  %19790 = vmatpush3.bf16.msra.mxu1 %v19789_v32 }
 0x4f9   : > { %18702 = vmatpush1.bf16.msra.mxu0 %v18701_v40  ;;  %19792 = vmatprep.subr.bf16.mxu1 %v19791_v14  ;;  %v18725_v14 = vunpack.c.l.s8.bf16 %v1095_v2 }
 0x4fa   : > { %18704 = vmatprep.subr.bf16.mxu0 %v18703_v8  ;;  %11979 = vmatprep.mubr.f32.mxu1 %v22718_v33  ;;  %v18715_v33 = vunpack.c.l.s8.bf16 %v1093_v31 }
 0x4fb   : > { %10289 = vmatprep.mubr.f32.mxu0 %v23288_v53 }
 0x4fc   : > { %19794 = vmatpush3.bf16.msra.mxu1 %v19793_v16 }
 0x4fd   : > { %18706 = vmatpush1.bf16.msra.mxu0 %v18705_v58  ;;  %19796 = vmatprep.subr.bf16.mxu1 %v19795_v13  ;;  %v19815_v58 = vunpack.c.h.s8.bf16 %v845_v45  ;;  %v860_v13 = vld [vmem:[%s22382_s4 + $0xbb0] sm:$0xff] }
 0x4fe   : > { %18708 = vmatprep.subr.bf16.mxu0 %v18707_v17  ;;  %v1099_v17 = vld [vmem:[%s22382_s4 + $0x1328] sm:$0xff] }
 0x500   : > { %19798 = vmatpush3.bf16.msra.mxu1 %v19797_v25  ;;  %v19819_v25 = vunpack.c.l.s8.bf16 %v860_v13 }
 0x501   : > { %18710 = vmatpush1.bf16.msra.mxu0 %v18709_v37  ;;  %19800 = vmatprep.subr.bf16.mxu1 %v19799_v47  ;;  %v18731_v37 = vunpack.c.l.s8.bf16 %v1099_v17  ;;  %v848_v47 = vld [vmem:[%s22382_s4 + $0xb50] sm:$0xff] }
 0x502   : > { %18712 = vmatprep.subr.bf16.mxu0 %v18711_v5  ;;  %v1098_v5 = vld [vmem:[%s22382_s4 + $0x1320] sm:$0xff]  ;;  %v19821_v30 = vunpack.c.l.s8.bf16 %v848_v47  ;;  %v19825_v28 = vunpack.c.h.s8.bf16 %v848_v47 }
 0x503   : > { %v18733_v31 = vunpack.c.l.s8.bf16 %v1098_v5 }
 0x504   : > { %19802 = vmatpush3.bf16.msra.mxu1 %v19801_v1  ;;  %v1102_v1 = vld [vmem:[%s22382_s4 + $0x1340] sm:$0xff] }
 0x505   : > { %18714 = vmatpush1.bf16.msra.mxu0 %v18713_v35  ;;  %19804 = vmatprep.subr.bf16.mxu1 %v19803_v42  ;;  %v19823_v35 = vunpack.c.h.s8.bf16 %v860_v13  ;;  %v18737_v42 = vunpack.c.h.s8.bf16 %v1098_v5  ;;  %v18739_v61 = vunpack.c.l.s8.bf16 %v1102_v1 }
 0x506   : > { %18716 = vmatprep.subr.bf16.mxu0 %v18715_v33  ;;  %v863_v33 = vld [vmem:[%s22382_s4 + $0xbc8] sm:$0xff] }
 0x507   : > { %v19831_v45 = vunpack.c.h.s8.bf16 %v863_v33 }
 0x508   : > { %19806 = vmatpush3.bf16.msra.mxu1 %v19805_v19  ;;  %v1101_v19 = vld [vmem:[%s22382_s4 + $0x1338] sm:$0xff] }
 0x509   : > { %18718 = vmatpush1.bf16.msra.mxu0 %v18717_v36  ;;  %19808 = vmatprep.subr.bf16.mxu1 %v19807_v44  ;;  %v19827_v36 = vunpack.c.l.s8.bf16 %v863_v33  ;;  %v18741_v44 = vunpack.c.l.s8.bf16 %v1101_v19 }
 0x50a   : > { %18720 = vmatprep.subr.bf16.mxu0 %v18719_v43  ;;  %v15891_v40 = vpop.f32.mrb[16].mxu1  ;;  %v851_v43 = vld [vmem:[%s22382_s4 + $0xb68] sm:$0xff] }
 0x50b   : > { %v15892_v32 = vpop.f32.mrb[17].mxu1  ;;  %v19829_v46 = vunpack.c.l.s8.bf16 %v851_v43 }
 0x50c   : > { %v15893_v8 = vadd.f32 %v15892_v32, %v15891_v40  ;;  %19810 = vmatpush3.bf16.msra.mxu1 %v19809_v60  ;;  %v866_v60 = vld [vmem:[%s22382_s4 + $0xbe0] sm:$0xff]  ;;  %v18749_v32 = vunpack.c.l.s8.bf16 %v1104_v62 }
 0x50d   : > { %18722 = vmatpush1.bf16.msra.mxu0 %v18721_v9  ;;  %19812 = vmatprep.subr.bf16.mxu1 %v19811_v57  ;;  %v1105_v9 = vld [vmem:[%s22382_s4 + $0x1358] sm:$0xff]  ;;  %v19833_v57 = vunpack.c.h.s8.bf16 %v851_v43  ;;  %v19835_v2 = vunpack.c.l.s8.bf16 %v866_v60  ;;  %v854_v40 = vld [vmem:[%s22382_s4 + $0xb80] sm:$0xff] }
 0x50e   : > { %18724 = vmatprep.subr.bf16.mxu0 %v18723_v38  ;;  %v23305_v16 = vadd.f32 %v15893_v8, %v23273_v59  ;;  %v18735_v59 = vunpack.c.h.s8.bf16 %v1099_v17  ;;  %v18745_v38 = vunpack.c.h.s8.bf16 %v1101_v19  ;;  %v19837_v8 = vunpack.c.l.s8.bf16 %v854_v40 }
 0x50f   : > { %v18753_v17 = vunpack.c.h.s8.bf16 %v1104_v62  ;;  %v19841_v13 = vunpack.c.h.s8.bf16 %v854_v40 }
 0x510   : > { %19814 = vmatpush3.bf16.msra.mxu1 %v19813_v7  ;;  %v19839_v7 = vunpack.c.h.s8.bf16 %v866_v60 }
 0x511   : > { %18726 = vmatpush1.bf16.msra.mxu0 %v18725_v14  ;;  %19816 = vmatprep.subr.bf16.mxu1 %v19815_v58  ;;  %v18751_v14 = vunpack.c.h.s8.bf16 %v1105_v9  ;;  %v869_v58 = vld [vmem:[%s22382_s4 + $0xbf8] sm:$0xff] }
 0x512   : > { %18728 = vmatprep.subr.bf16.mxu0 %v18727_v27  ;;  %v1108_v27 = vld [vmem:[%s22382_s4 + $0x1370] sm:$0xff] }
 0x514   : > { %19818 = vmatpush3.bf16.msra.mxu1 %v19817_v26  ;;  %v19843_v26 = vunpack.c.l.s8.bf16 %v869_v58 }
 0x515   : > { %18730 = vmatpush1.bf16.msra.mxu0 %v18729_v49  ;;  %19820 = vmatprep.subr.bf16.mxu1 %v19819_v25  ;;  %v18755_v49 = vunpack.c.l.s8.bf16 %v1108_v27  ;;  %v857_v25 = vld [vmem:[%s22382_s4 + $0xb98] sm:$0xff] }
 0x516   : > { %18732 = vmatprep.subr.bf16.mxu0 %v18731_v37  ;;  %v1107_v37 = vld [vmem:[%s22382_s4 + $0x1368] sm:$0xff]  ;;  %v19849_v19 = vunpack.c.h.s8.bf16 %v857_v25 }
 0x517   : > { %11980 = vmatmul.mubr.f32.vlgmr.msra.gmra.mrb[30].mxu1 %v22708_v54  ;;  %v18743_v54 = vunpack.c.h.s8.bf16 %v1102_v1  ;;  %v19847_v1 = vunpack.c.h.s8.bf16 %v869_v58 }
 0x518   : > { %19822 = vmatpush3.bf16.msra.mxu1 %v19821_v30  ;;  %12049 = vmatprep.mubr.f32.mxu1 %v22774_v20  ;;  %v18747_v20 = vunpack.c.l.s8.bf16 %v1105_v9  ;;  %v18757_v30 = vunpack.c.l.s8.bf16 %v1107_v37 }
 0x519   : > { %18734 = vmatpush1.bf16.msra.mxu0 %v18733_v31  ;;  %19824 = vmatprep.subr.bf16.mxu1 %v19823_v35  ;;  %v18759_v35 = vunpack.c.h.s8.bf16 %v1108_v27 }
 0x51a   : > { %18736 = vmatprep.subr.bf16.mxu0 %v18735_v59  ;;  %v19845_v59 = vunpack.c.l.s8.bf16 %v857_v25 }
 0x51c   : > { %19826 = vmatpush3.bf16.msra.mxu1 %v19825_v28  ;;  %v884_v28 = vld [vmem:[%s22382_s4 + $0xc70] sm:$0xff] }
 0x51d   : > { %18738 = vmatpush1.bf16.msra.mxu0 %v18737_v42  ;;  %19828 = vmatprep.subr.bf16.mxu1 %v19827_v36  ;;  %v1111_v42 = vld [vmem:[%s22382_s4 + $0x1388] sm:$0xff]  ;;  %v18761_v36 = vunpack.c.h.s8.bf16 %v1107_v37 }
 0x51e   : > { %18740 = vmatprep.subr.bf16.mxu0 %v18739_v61  ;;  %v23331_v61 = vld [vmem:[%s22408_s17 + $0x68] sm:$0xff]  ;;  %v18763_v43 = vunpack.c.l.s8.bf16 %v1111_v42  ;;  %v18767_v60 = vunpack.c.h.s8.bf16 %v1111_v42 }
 0x51f   : > { %v893_v42 = vld [vmem:[%s22382_s4 + $0xcb8] sm:$0xff] }
 0x520   : > { %19830 = vmatpush3.bf16.msra.mxu1 %v19829_v46  ;;  %v1110_v46 = vld [vmem:[%s22382_s4 + $0x1380] sm:$0xff] }
 0x521   : > { %18742 = vmatpush1.bf16.msra.mxu0 %v18741_v44  ;;  %19832 = vmatprep.subr.bf16.mxu1 %v19831_v45  ;;  %v19851_v44 = vunpack.c.l.s8.bf16 %v884_v28  ;;  %v18765_v45 = vunpack.c.l.s8.bf16 %v1110_v46  ;;  %v18769_v62 = vunpack.c.h.s8.bf16 %v1110_v46  ;;  %v881_v46 = vld [vmem:[%s22382_s4 + $0xc58] sm:$0xff] }
 0x522   : > { %18744 = vmatprep.subr.bf16.mxu0 %v18743_v54  ;;  %v872_v54 = vld [vmem:[%s22382_s4 + $0xc10] sm:$0xff] }
 0x523   : > { %v19853_v9 = vunpack.c.l.s8.bf16 %v872_v54  ;;  %v19857_v40 = vunpack.c.h.s8.bf16 %v872_v54 }
 0x524   : > { %19834 = vmatpush3.bf16.msra.mxu1 %v19833_v57  ;;  %v1114_v57 = vld [vmem:[%s22382_s4 + $0x13a0] sm:$0xff] }
 0x525   : > { %18746 = vmatpush1.bf16.msra.mxu0 %v18745_v38  ;;  %19836 = vmatprep.subr.bf16.mxu1 %v19835_v2  ;;  %v19855_v38 = vunpack.c.h.s8.bf16 %v884_v28  ;;  %v18775_v58 = vunpack.c.h.s8.bf16 %v1114_v57 }
 0x526   : > { %18748 = vmatprep.subr.bf16.mxu0 %v18747_v20  ;;  %v887_v20 = vld [vmem:[%s22382_s4 + $0xc88] sm:$0xff] }
 0x528   : > { %19838 = vmatpush3.bf16.msra.mxu1 %v19837_v8  ;;  %v19859_v8 = vunpack.c.l.s8.bf16 %v887_v20 }
 0x529   : > { %18750 = vmatpush1.bf16.msra.mxu0 %v18749_v32  ;;  %19840 = vmatprep.subr.bf16.mxu1 %v19839_v7  ;;  %v18771_v32 = vunpack.c.l.s8.bf16 %v1114_v57  ;;  %v875_v7 = vld [vmem:[%s22382_s4 + $0xc28] sm:$0xff] }
 0x52a   : > { %18752 = vmatprep.subr.bf16.mxu0 %v18751_v14  ;;  %v15926_v5 = vpop.f32.mrb[18].mxu1  ;;  %v1113_v14 = vld [vmem:[%s22382_s4 + $0x1398] sm:$0xff]  ;;  %v19861_v27 = vunpack.c.l.s8.bf16 %v875_v7  ;;  %v19865_v37 = vunpack.c.h.s8.bf16 %v875_v7 }
 0x52b   : > { %v15927_v47 = vpop.f32.mrb[19].mxu1 }
 0x52c   : > { %v15928_v31 = vadd.f32 %v15927_v47, %v15926_v5  ;;  %19842 = vmatpush3.bf16.msra.mxu1 %v19841_v13  ;;  %v1117_v13 = vld [vmem:[%s22382_s4 + $0x13b8] sm:$0xff]  ;;  %v1116_v5 = vld [vmem:[%s22382_s4 + $0x13b0] sm:$0xff]  ;;  %v878_v47 = vld [vmem:[%s22382_s4 + $0xc40] sm:$0xff] }
 0x52d   : > { %18754 = vmatpush1.bf16.msra.mxu0 %v18753_v17  ;;  %19844 = vmatprep.subr.bf16.mxu1 %v19843_v26  ;;  %v19863_v17 = vunpack.c.h.s8.bf16 %v887_v20  ;;  %v18777_v26 = vunpack.c.h.s8.bf16 %v1113_v14  ;;  %v18785_v28 = vunpack.c.h.s8.bf16 %v1116_v5  ;;  %v19879_v20 = vunpack.c.h.s8.bf16 %v893_v42 }
 0x52e   : > { %18756 = vmatprep.subr.bf16.mxu0 %v18755_v49  ;;  %v23326_v33 = vadd.f32 %v15928_v31, %v23305_v16  ;;  %v23337_v16 = vrot.slane %v23331_v61, %v22435_v51  ;;  %v890_v49 = vld [vmem:[%s22382_s4 + $0xca0] sm:$0xff]  ;;  %v18781_v31 = vunpack.c.l.s8.bf16 %v1116_v5 }
 0x52f   : > { %v19867_v25 = vunpack.c.l.s8.bf16 %v890_v49 }
 0x530   : > { %19846 = vmatpush3.bf16.msra.mxu1 %v19845_v59  ;;  %v23343_v2 = vcombine.high %v23337_v16, %v23337_v16  ;;  %v18783_v59 = vunpack.c.h.s8.bf16 %v1117_v13 }
 0x531   : > { %18758 = vmatpush1.bf16.msra.mxu0 %v18757_v30  ;;  %19848 = vmatprep.subr.bf16.mxu1 %v19847_v1  ;;  %v19869_v30 = vunpack.c.l.s8.bf16 %v878_v47  ;;  %v1120_v1 = vld [vmem:[%s22382_s4 + $0x13d0] sm:$0xff] }
 0x532   : > { %18760 = vmatprep.subr.bf16.mxu0 %v18759_v35  ;;  %v19871_v35 = vunpack.c.h.s8.bf16 %v890_v49  ;;  %v18791_v57 = vunpack.c.h.s8.bf16 %v1120_v1 }
 0x534   : > { %19850 = vmatpush3.bf16.msra.mxu1 %v19849_v19  ;;  %v18787_v19 = vunpack.c.l.s8.bf16 %v1120_v1 }
 0x535   : > { %18762 = vmatpush1.bf16.msra.mxu0 %v18761_v36  ;;  %19852 = vmatprep.subr.bf16.mxu1 %v19851_v44  ;;  %v19873_v36 = vunpack.c.h.s8.bf16 %v878_v47  ;;  %v1119_v44 = vld [vmem:[%s22382_s4 + $0x13c8] sm:$0xff] }
 0x536   : > { %18764 = vmatprep.subr.bf16.mxu0 %v18763_v43  ;;  %v19875_v43 = vunpack.c.l.s8.bf16 %v893_v42  ;;  %v1129_v42 = vld [vmem:[%s22382_s4 + $0x1418] sm:$0xff] }
 0x537   : > { %12050 = vmatmul.mubr.f32.vlgmr.msra.gmra.mrb[32].mxu1 %v22764_v18  ;;  %v18773_v18 = vunpack.c.l.s8.bf16 %v1113_v14  ;;  %v19881_v14 = vunpack.c.h.s8.bf16 %v881_v46 }
 0x538   : > { %10290 = vmatmul.mubr.f32.vlgmr.msra.gmra.mrb[0].mxu0 %v23282_v21  ;;  %19854 = vmatpush3.bf16.msra.mxu1 %v19853_v9 }
 0x539   : > { %18766 = vmatpush1.bf16.msra.mxu0 %v18765_v45  ;;  %19856 = vmatprep.subr.bf16.mxu1 %v19855_v38  ;;  %v19877_v38 = vunpack.c.l.s8.bf16 %v881_v46  ;;  %v902_v46 = vld [vmem:[%s22382_s4 + $0xd00] sm:$0xff] }
 0x53a   : > { %18768 = vmatprep.subr.bf16.mxu0 %v18767_v60  ;;  %12119 = vmatprep.mubr.f32.mxu1 %v22830_v22  ;;  %v18779_v22 = vunpack.c.l.s8.bf16 %v1117_v13  ;;  %v18789_v60 = vunpack.c.l.s8.bf16 %v1119_v44 }
 0x53b   : > { %10360 = vmatprep.mubr.f32.mxu0 %v23343_v2 }
 0x53c   : > { %19858 = vmatpush3.bf16.msra.mxu1 %v19857_v40  ;;  %v1123_v40 = vld [vmem:[%s22382_s4 + $0x13e8] sm:$0xff] }
 0x53d   : > { %18770 = vmatpush1.bf16.msra.mxu0 %v18769_v62  ;;  %19860 = vmatprep.subr.bf16.mxu1 %v19859_v8  ;;  %v18793_v8 = vunpack.c.h.s8.bf16 %v1119_v44  ;;  %v18795_v7 = vunpack.c.l.s8.bf16 %v1123_v40  ;;  %v1128_v44 = vld [vmem:[%s22382_s4 + $0x1410] sm:$0xff] }
 0x53e   : > { %18772 = vmatprep.subr.bf16.mxu0 %v18771_v32  ;;  %v908_v32 = vld [vmem:[%s22382_s4 + $0xd30] sm:$0xff] }
 0x53f   : > { %v19887_v49 = vunpack.c.h.s8.bf16 %v908_v32 }
 0x540   : > { %19862 = vmatpush3.bf16.msra.mxu1 %v19861_v27  ;;  %v1122_v27 = vld [vmem:[%s22382_s4 + $0x13e0] sm:$0xff] }
 0x541   : > { %18774 = vmatpush1.bf16.msra.mxu0 %v18773_v18  ;;  %19864 = vmatprep.subr.bf16.mxu1 %v19863_v17  ;;  %v19883_v18 = vunpack.c.l.s8.bf16 %v908_v32  ;;  %v18797_v17 = vunpack.c.l.s8.bf16 %v1122_v27 }
 0x542   : > { %18776 = vmatprep.subr.bf16.mxu0 %v18775_v58  ;;  %v896_v58 = vld [vmem:[%s22382_s4 + $0xcd0] sm:$0xff] }
 0x543   : > { %v19885_v13 = vunpack.c.l.s8.bf16 %v896_v58 }
 0x544   : > { %19866 = vmatpush3.bf16.msra.mxu1 %v19865_v37  ;;  %v911_v37 = vld [vmem:[%s22382_s4 + $0xd48] sm:$0xff] }
 0x545   : > { %18778 = vmatpush1.bf16.msra.mxu0 %v18777_v26  ;;  %19868 = vmatprep.subr.bf16.mxu1 %v19867_v25  ;;  %v1126_v26 = vld [vmem:[%s22382_s4 + $0x1400] sm:$0xff]  ;;  %v19889_v25 = vunpack.c.h.s8.bf16 %v896_v58  ;;  %v19891_v47 = vunpack.c.l.s8.bf16 %v911_v37  ;;  %v19895_v1 = vunpack.c.h.s8.bf16 %v911_v37  ;;  %v1135_v37 = vld [vmem:[%s22382_s4 + $0x1448] sm:$0xff] }
 0x546   : > { %18780 = vmatprep.subr.bf16.mxu0 %v18779_v22  ;;  %v18801_v22 = vunpack.c.h.s8.bf16 %v1122_v27  ;;  %v18803_v5 = vunpack.c.l.s8.bf16 %v1126_v26 }
 0x548   : > { %19870 = vmatpush3.bf16.msra.mxu1 %v19869_v30  ;;  %v899_v30 = vld [vmem:[%s22382_s4 + $0xce8] sm:$0xff] }
 0x549   : > { %18782 = vmatpush1.bf16.msra.mxu0 %v18781_v31  ;;  %19872 = vmatprep.subr.bf16.mxu1 %v19871_v35  ;;  %v1125_v31 = vld [vmem:[%s22382_s4 + $0x13f8] sm:$0xff]  ;;  %v19893_v35 = vunpack.c.l.s8.bf16 %v899_v30 }
 0x54a   : > { %18784 = vmatprep.subr.bf16.mxu0 %v18783_v59  ;;  %v15961_v54 = vpop.f32.mrb[20].mxu1  ;;  %v18805_v59 = vunpack.c.l.s8.bf16 %v1125_v31 }
 0x54b   : > { %v15962_v45 = vpop.f32.mrb[21].mxu1 }
 0x54c   : > { %v15963_v9 = vadd.f32 %v15962_v45, %v15961_v54  ;;  %19874 = vmatpush3.bf16.msra.mxu1 %v19873_v36  ;;  %v18809_v36 = vunpack.c.h.s8.bf16 %v1125_v31  ;;  %v18813_v54 = vunpack.c.l.s8.bf16 %v1128_v44  ;;  %v19901_v45 = vunpack.c.l.s8.bf16 %v902_v46 }
 0x54d   : > { %18786 = vmatpush1.bf16.msra.mxu0 %v18785_v28  ;;  %19876 = vmatprep.subr.bf16.mxu1 %v19875_v43  ;;  %v914_v28 = vld [vmem:[%s22382_s4 + $0xd60] sm:$0xff]  ;;  %v18827_v31 = vunpack.c.l.s8.bf16 %v1135_v37 }
 0x54e   : > { %18788 = vmatprep.subr.bf16.mxu0 %v18787_v19  ;;  %v23360_v62 = vadd.f32 %v15963_v9, %v23326_v33  ;;  %v18799_v33 = vunpack.c.h.s8.bf16 %v1123_v40  ;;  %v19897_v19 = vunpack.c.h.s8.bf16 %v899_v30  ;;  %v19899_v43 = vunpack.c.l.s8.bf16 %v914_v28 }
 0x54f   : > { %v18815_v9 = vunpack.c.h.s8.bf16 %v1129_v42  ;;  %v19905_v40 = vunpack.c.h.s8.bf16 %v902_v46 }
 0x550   : > { %19878 = vmatpush3.bf16.msra.mxu1 %v19877_v38  ;;  %v1132_v38 = vld [vmem:[%s22382_s4 + $0x1430] sm:$0xff] }
 0x551   : > { %18790 = vmatpush1.bf16.msra.mxu0 %v18789_v60  ;;  %19880 = vmatprep.subr.bf16.mxu1 %v19879_v20  ;;  %v19903_v60 = vunpack.c.h.s8.bf16 %v914_v28  ;;  %v18817_v20 = vunpack.c.h.s8.bf16 %v1128_v44  ;;  %v18819_v32 = vunpack.c.l.s8.bf16 %v1132_v38  ;;  %v1138_v28 = vld [vmem:[%s22382_s4 + $0x1460] sm:$0xff] }
 0x552   : > { %18792 = vmatprep.subr.bf16.mxu0 %v18791_v57  ;;  %v917_v57 = vld [vmem:[%s22382_s4 + $0xd78] sm:$0xff]  ;;  %v18835_v44 = vunpack.c.l.s8.bf16 %v1138_v28 }
 0x554   : > { %19882 = vmatpush3.bf16.msra.mxu1 %v19881_v14  ;;  %v1131_v14 = vld [vmem:[%s22382_s4 + $0x1428] sm:$0xff] }
 0x555   : > { %18794 = vmatpush1.bf16.msra.mxu0 %v18793_v8  ;;  %19884 = vmatprep.subr.bf16.mxu1 %v19883_v18  ;;  %v19907_v8 = vunpack.c.l.s8.bf16 %v917_v57 }
 0x556   : > { %18796 = vmatprep.subr.bf16.mxu0 %v18795_v7  ;;  %v905_v7 = vld [vmem:[%s22382_s4 + $0xd18] sm:$0xff] }
 0x557   : > { %12120 = vmatmul.mubr.f32.vlgmr.msra.gmra.mrb[34].mxu1 %v22820_v56  ;;  %v18807_v56 = vunpack.c.h.s8.bf16 %v1126_v26 }
 0x558   : > { %19886 = vmatpush3.bf16.msra.mxu1 %v19885_v13  ;;  %12189 = vmatprep.mubr.f32.mxu1 %v22882_v41  ;;  %v18811_v41 = vunpack.c.l.s8.bf16 %v1129_v42  ;;  %v19909_v13 = vunpack.c.l.s8.bf16 %v905_v7 }
 0x559   : > { %18798 = vmatpush1.bf16.msra.mxu0 %v18797_v17  ;;  %19888 = vmatprep.subr.bf16.mxu1 %v19887_v49  ;;  %v18821_v17 = vunpack.c.l.s8.bf16 %v1131_v14  ;;  %v19911_v49 = vunpack.c.h.s8.bf16 %v917_v57  ;;  %v1141_v57 = vld [vmem:[%s22382_s4 + $0x1478] sm:$0xff] }
 0x55a   : > { %18800 = vmatprep.subr.bf16.mxu0 %v18799_v33  ;;  %v18823_v33 = vunpack.c.h.s8.bf16 %v1132_v38 }
 0x55c   : > { %19890 = vmatpush3.bf16.msra.mxu1 %v19889_v25  ;;  %v8304_v25 = vcombine.high %v23331_v61, %v23331_v61  ;;  %v18831_v61 = vunpack.c.h.s8.bf16 %v1135_v37 }
 0x55d   : > { %18802 = vmatpush1.bf16.msra.mxu0 %v18801_v22  ;;  %19892 = vmatprep.subr.bf16.mxu1 %v19891_v47  ;;  %v932_v22 = vld [vmem:[%s22382_s4 + $0xdf0] sm:$0xff]  ;;  %v19913_v47 = vunpack.c.h.s8.bf16 %v905_v7  ;;  %v926_v7 = vld [vmem:[%s22382_s4 + $0xdc0] sm:$0xff] }
 0x55e   : > { %18804 = vmatprep.subr.bf16.mxu0 %v18803_v5  ;;  %v18825_v5 = vunpack.c.h.s8.bf16 %v1131_v14  ;;  %v19915_v30 = vunpack.c.l.s8.bf16 %v932_v22  ;;  %v19919_v42 = vunpack.c.h.s8.bf16 %v932_v22  ;;  %v1140_v14 = vld [vmem:[%s22382_s4 + $0x1470] sm:$0xff]  ;;  %v19937_v37 = vunpack.c.h.s8.bf16 %v926_v7 }
 0x560   : > { %19894 = vmatpush3.bf16.msra.mxu1 %v19893_v35  ;;  %v920_v35 = vld [vmem:[%s22382_s4 + $0xd90] sm:$0xff] }
 0x561   : > { %18806 = vmatpush1.bf16.msra.mxu0 %v18805_v59  ;;  %19896 = vmatprep.subr.bf16.mxu1 %v19895_v1  ;;  %v1134_v59 = vld [vmem:[%s22382_s4 + $0x1440] sm:$0xff]  ;;  %v19917_v1 = vunpack.c.l.s8.bf16 %v920_v35 }
 0x562   : > { %18808 = vmatprep.subr.bf16.mxu0 %v18807_v56  ;;  %v18829_v56 = vunpack.c.l.s8.bf16 %v1134_v59 }
 0x564   : > { %19898 = vmatpush3.bf16.msra.mxu1 %v19897_v19 }
 0x565   : > { %18810 = vmatpush1.bf16.msra.mxu0 %v18809_v36  ;;  %19900 = vmatprep.subr.bf16.mxu1 %v19899_v43  ;;  %v935_v36 = vld [vmem:[%s22382_s4 + $0xe08] sm:$0xff]  ;;  %v19921_v43 = vunpack.c.h.s8.bf16 %v920_v35 }
 0x566   : > { %18812 = vmatprep.subr.bf16.mxu0 %v18811_v41  ;;  %v18833_v41 = vunpack.c.h.s8.bf16 %v1134_v59  ;;  %v19923_v46 = vunpack.c.l.s8.bf16 %v935_v36  ;;  %v19927_v38 = vunpack.c.h.s8.bf16 %v935_v36  ;;  %v956_v36 = vld [vmem:[%s22382_s4 + $0xeb0] sm:$0xff] }
 0x568   : > { %19902 = vmatpush3.bf16.msra.mxu1 %v19901_v45  ;;  %v923_v45 = vld [vmem:[%s22382_s4 + $0xda8] sm:$0xff] }
 0x569   : > { %18814 = vmatpush1.bf16.msra.mxu0 %v18813_v54  ;;  %19904 = vmatprep.subr.bf16.mxu1 %v19903_v60  ;;  %v1137_v54 = vld [vmem:[%s22382_s4 + $0x1458] sm:$0xff]  ;;  %v18839_v60 = vunpack.c.h.s8.bf16 %v1138_v28  ;;  %v1147_v28 = vld [vmem:[%s22382_s4 + $0x14a8] sm:$0xff] }
 0x56a   : > { %18816 = vmatprep.subr.bf16.mxu0 %v18815_v9  ;;  %v15996_v18 = vpop.f32.mrb[22].mxu1  ;;  %v19925_v9 = vunpack.c.l.s8.bf16 %v923_v45 }
 0x56b   : > { %v15997_v27 = vpop.f32.mrb[23].mxu1 }
 0x56c   : > { %v15998_v58 = vadd.f32 %v15997_v27, %v15996_v18  ;;  %19906 = vmatpush3.bf16.msra.mxu1 %v19905_v40  ;;  %v18841_v40 = vunpack.c.h.s8.bf16 %v1137_v54  ;;  %v18845_v18 = vunpack.c.l.s8.bf16 %v1140_v14  ;;  %v19933_v27 = vunpack.c.l.s8.bf16 %v926_v7 }
 0x56d   : > { %18818 = vmatpush1.bf16.msra.mxu0 %v18817_v20  ;;  %19908 = vmatprep.subr.bf16.mxu1 %v19907_v8  ;;  %v938_v20 = vld [vmem:[%s22382_s4 + $0xe20] sm:$0xff] }
 0x56e   : > { %18820 = vmatprep.subr.bf16.mxu0 %v18819_v32  ;;  %v23381_v26 = vadd.f32 %v15998_v58, %v23360_v62  ;;  %v23390_v62 = vrot.slane %v8304_v25, %v22435_v51  ;;  %v19929_v32 = vunpack.c.h.s8.bf16 %v923_v45  ;;  %v19931_v8 = vunpack.c.l.s8.bf16 %v938_v20  ;;  %v944_v45 = vld [vmem:[%s22382_s4 + $0xe50] sm:$0xff] }
 0x56f   : > { %v18847_v58 = vunpack.c.h.s8.bf16 %v1141_v57 }
 0x570   : > { %19910 = vmatpush3.bf16.msra.mxu1 %v19909_v13  ;;  %v23396_v19 = vcombine.high %v23390_v62, %v23390_v62  ;;  %v1144_v13 = vld [vmem:[%s22382_s4 + $0x1490] sm:$0xff] }
 0x571   : > { %18822 = vmatpush1.bf16.msra.mxu0 %v18821_v17  ;;  %19912 = vmatprep.subr.bf16.mxu1 %v19911_v49  ;;  %v19935_v17 = vunpack.c.h.s8.bf16 %v938_v20  ;;  %v18849_v49 = vunpack.c.h.s8.bf16 %v1140_v14  ;;  %v18851_v22 = vunpack.c.l.s8.bf16 %v1144_v13  ;;  %v947_v14 = vld [vmem:[%s22382_s4 + $0xe68] sm:$0xff] }
 0x572   : > { %18824 = vmatprep.subr.bf16.mxu0 %v18823_v33  ;;  %v941_v33 = vld [vmem:[%s22382_s4 + $0xe38] sm:$0xff] }
 0x573   : > { %v19939_v25 = vunpack.c.l.s8.bf16 %v941_v33 }
 0x574   : > { %19914 = vmatpush3.bf16.msra.mxu1 %v19913_v47  ;;  %v929_v47 = vld [vmem:[%s22382_s4 + $0xdd8] sm:$0xff] }
 0x575   : > { %18826 = vmatpush1.bf16.msra.mxu0 %v18825_v5  ;;  %19916 = vmatprep.subr.bf16.mxu1 %v19915_v30  ;;  %v1143_v5 = vld [vmem:[%s22382_s4 + $0x1488] sm:$0xff] }
 0x576   : > { %18828 = vmatprep.subr.bf16.mxu0 %v18827_v31  ;;  %v18853_v35 = vunpack.c.l.s8.bf16 %v1143_v5 }
 0x577   : > { %12190 = vmatmul.mubr.f32.vlgmr.msra.gmra.mrb[36].mxu1 %v22872_v29  ;;  %v18837_v29 = vunpack.c.l.s8.bf16 %v1137_v54  ;;  %v1146_v54 = vld [vmem:[%s22382_s4 + $0x14a0] sm:$0xff] }
 0x578   : > { %10361 = vmatmul.mubr.f32.vlgmr.msra.gmra.mrb[0].mxu0 %v23337_v16  ;;  %19918 = vmatpush3.bf16.msra.mxu1 %v19917_v1  ;;  %v18855_v1 = vunpack.c.h.s8.bf16 %v1144_v13  ;;  %v18865_v20 = vunpack.c.h.s8.bf16 %v1146_v54 }
 0x579   : > { %18830 = vmatpush1.bf16.msra.mxu0 %v18829_v56  ;;  %19920 = vmatprep.subr.bf16.mxu1 %v19919_v42  ;;  %v19941_v56 = vunpack.c.l.s8.bf16 %v929_v47 }
 0x57a   : > { %18832 = vmatprep.subr.bf16.mxu0 %v18831_v61  ;;  %12259 = vmatprep.mubr.f32.mxu1 %v22929_v50  ;;  %v18843_v50 = vunpack.c.l.s8.bf16 %v1141_v57  ;;  %v19943_v61 = vunpack.c.h.s8.bf16 %v941_v33  ;;  %v959_v57 = vld [vmem:[%s22382_s4 + $0xec8] sm:$0xff]  ;;  %v19961_v33 = vunpack.c.h.s8.bf16 %v947_v14 }
 0x57b   : > { %10431 = vmatprep.mubr.f32.mxu0 %v23396_v19 }
 0x57c   : > { %19922 = vmatpush3.bf16.msra.mxu1 %v19921_v43  ;;  %v19945_v43 = vunpack.c.h.s8.bf16 %v929_v47 }
 0x57d   : > { %18834 = vmatpush1.bf16.msra.mxu0 %v18833_v41  ;;  %19924 = vmatprep.subr.bf16.mxu1 %v19923_v46  ;;  %v18857_v41 = vunpack.c.h.s8.bf16 %v1143_v5  ;;  %v19947_v46 = vunpack.c.l.s8.bf16 %v956_v36 }
 0x57e   : > { %18836 = vmatprep.subr.bf16.mxu0 %v18835_v44  ;;  %v18859_v44 = vunpack.c.l.s8.bf16 %v1147_v28 }
 0x580   : > { %19926 = vmatpush3.bf16.msra.mxu1 %v19925_v9  ;;  %v19949_v9 = vunpack.c.l.s8.bf16 %v944_v45 }
 0x581   : > { %18838 = vmatpush1.bf16.msra.mxu0 %v18837_v29  ;;  %19928 = vmatprep.subr.bf16.mxu1 %v19927_v38  ;;  %v18861_v29 = vunpack.c.l.s8.bf16 %v1146_v54  ;;  %v1150_v38 = vld [vmem:[%s22382_s4 + $0x14c0] sm:$0xff] }
 0x582   : > { %18840 = vmatprep.subr.bf16.mxu0 %v18839_v60  ;;  %v19951_v60 = vunpack.c.h.s8.bf16 %v956_v36  ;;  %v953_v36 = vld [vmem:[%s22382_s4 + $0xe98] sm:$0xff] }
 0x583   : > { %v19973_v54 = vunpack.c.l.s8.bf16 %v953_v36 }
 0x584   : > { %19930 = vmatpush3.bf16.msra.mxu1 %v19929_v32  ;;  %v18867_v32 = vunpack.c.l.s8.bf16 %v1150_v38 }
 0x585   : > { %18842 = vmatpush1.bf16.msra.mxu0 %v18841_v40  ;;  %19932 = vmatprep.subr.bf16.mxu1 %v19931_v8  ;;  %v19953_v40 = vunpack.c.h.s8.bf16 %v944_v45  ;;  %v1149_v8 = vld [vmem:[%s22382_s4 + $0x14b8] sm:$0xff] }
 0x586   : > { %18844 = vmatprep.subr.bf16.mxu0 %v18843_v50  ;;  %v19955_v50 = vunpack.c.l.s8.bf16 %v959_v57  ;;  %v18869_v7 = vunpack.c.l.s8.bf16 %v1149_v8  ;;  %v18873_v13 = vunpack.c.h.s8.bf16 %v1149_v8  ;;  %v968_v8 = vld [vmem:[%s22382_s4 + $0xf10] sm:$0xff] }
 0x588   : > { %19934 = vmatpush3.bf16.msra.mxu1 %v19933_v27  ;;  %v19959_v27 = vunpack.c.h.s8.bf16 %v959_v57 }
 0x589   : > { %18846 = vmatpush1.bf16.msra.mxu0 %v18845_v18  ;;  %19936 = vmatprep.subr.bf16.mxu1 %v19935_v17  ;;  %v19957_v18 = vunpack.c.l.s8.bf16 %v947_v14  ;;  %v962_v17 = vld [vmem:[%s22382_s4 + $0xee0] sm:$0xff] }
 0x58a   : > { %18848 = vmatprep.subr.bf16.mxu0 %v18847_v58  ;;  %v16031_v31 = vpop.f32.mrb[24].mxu1  ;;  %v1153_v58 = vld [vmem:[%s22382_s4 + $0x14d8] sm:$0xff] }
 0x58b   : > { %v16032_v30 = vpop.f32.mrb[25].mxu1  ;;  %v18879_v47 = vunpack.c.h.s8.bf16 %v1153_v58 }
 0x58c   : > { %v16033_v59 = vadd.f32 %v16032_v30, %v16031_v31  ;;  %19938 = vmatpush3.bf16.msra.mxu1 %v19937_v37  ;;  %v1152_v37 = vld [vmem:[%s22382_s4 + $0x14d0] sm:$0xff]  ;;  %v19967_v31 = vunpack.c.h.s8.bf16 %v962_v17 }
 0x58d   : > { %18850 = vmatpush1.bf16.msra.mxu0 %v18849_v49  ;;  %19940 = vmatprep.subr.bf16.mxu1 %v19939_v25  ;;  %v19963_v49 = vunpack.c.l.s8.bf16 %v962_v17  ;;  %v18877_v25 = vunpack.c.l.s8.bf16 %v1152_v37  ;;  %v1156_v30 = vld [vmem:[%s22382_s4 + $0x14f0] sm:$0xff] }
 0x58e   : > { %18852 = vmatprep.subr.bf16.mxu0 %v18851_v22  ;;  %v23413_v42 = vadd.f32 %v16033_v59, %v23381_v26  ;;  %v18863_v26 = vunpack.c.h.s8.bf16 %v1147_v28  ;;  %v950_v22 = vld [vmem:[%s22382_s4 + $0xe80] sm:$0xff]  ;;  %v965_v59 = vld [vmem:[%s22382_s4 + $0xef8] sm:$0xff]  ;;  %v1155_v28 = vld [vmem:[%s22382_s4 + $0x14e8] sm:$0xff]  ;;  %v18887_v45 = vunpack.c.h.s8.bf16 %v1156_v30 }
 0x58f   : > { %v19965_v5 = vunpack.c.l.s8.bf16 %v950_v22  ;;  %v18889_v57 = vunpack.c.h.s8.bf16 %v1155_v28 }
 0x590   : > { %19942 = vmatpush3.bf16.msra.mxu1 %v19941_v56  ;;  %v19969_v56 = vunpack.c.h.s8.bf16 %v950_v22  ;;  %v971_v22 = vld [vmem:[%s22382_s4 + $0xf28] sm:$0xff] }
 0x591   : > { %18854 = vmatpush1.bf16.msra.mxu0 %v18853_v35  ;;  %19944 = vmatprep.subr.bf16.mxu1 %v19943_v61  ;;  %v18881_v35 = vunpack.c.h.s8.bf16 %v1152_v37  ;;  %v19971_v61 = vunpack.c.l.s8.bf16 %v965_v59  ;;  %v1161_v37 = vld [vmem:[%s22382_s4 + $0x1518] sm:$0xff] }
 0x592   : > { %18856 = vmatprep.subr.bf16.mxu0 %v18855_v1  ;;  %v18883_v1 = vunpack.c.l.s8.bf16 %v1156_v30  ;;  %v986_v30 = vld [vmem:[%s22382_s4 + $0xfa0] sm:$0xff] }
 0x594   : > { %19946 = vmatpush3.bf16.msra.mxu1 %v19945_v43 }
 0x595   : > { %18858 = vmatpush1.bf16.msra.mxu0 %v18857_v41  ;;  %19948 = vmatprep.subr.bf16.mxu1 %v19947_v46  ;;  %v18885_v46 = vunpack.c.l.s8.bf16 %v1155_v28 }
 0x596   : > { %18860 = vmatprep.subr.bf16.mxu0 %v18859_v44 }
 0x597   : > { %12260 = vmatmul.mubr.f32.vlgmr.msra.gmra.mrb[38].mxu1 %v22923_v15  ;;  %v18871_v15 = vunpack.c.h.s8.bf16 %v1150_v38  ;;  %v23439_v38 = vld [vmem:[%s22408_s17 + $0x70] sm:$0xff] }
 0x598   : > { %19950 = vmatpush3.bf16.msra.mxu1 %v19949_v9  ;;  %12329 = vmatprep.mubr.f32.mxu1 %v22976_v24  ;;  %v18875_v24 = vunpack.c.l.s8.bf16 %v1153_v58  ;;  %v983_v58 = vld [vmem:[%s22382_s4 + $0xf88] sm:$0xff] }
 0x599   : > { %18862 = vmatpush1.bf16.msra.mxu0 %v18861_v29  ;;  %19952 = vmatprep.subr.bf16.mxu1 %v19951_v60  ;;  %v19975_v29 = vunpack.c.h.s8.bf16 %v965_v59  ;;  %v980_v60 = vld [vmem:[%s22382_s4 + $0xf70] sm:$0xff]  ;;  %v18905_v59 = vunpack.c.h.s8.bf16 %v1161_v37 }
 0x59a   : > { %18864 = vmatprep.subr.bf16.mxu0 %v18863_v26  ;;  %v1159_v26 = vld [vmem:[%s22382_s4 + $0x1508] sm:$0xff] }
 0x59c   : > { %19954 = vmatpush3.bf16.msra.mxu1 %v19953_v40  ;;  %v18891_v40 = vunpack.c.l.s8.bf16 %v1159_v26 }
 0x59d   : > { %18866 = vmatpush1.bf16.msra.mxu0 %v18865_v20  ;;  %19956 = vmatprep.subr.bf16.mxu1 %v19955_v50  ;;  %v19977_v20 = vunpack.c.h.s8.bf16 %v953_v36  ;;  %v1158_v50 = vld [vmem:[%s22382_s4 + $0x1500] sm:$0xff] }
 0x59e   : > { %18868 = vmatprep.subr.bf16.mxu0 %v18867_v32  ;;  %v19979_v32 = vunpack.c.l.s8.bf16 %v980_v60  ;;  %v18893_v14 = vunpack.c.l.s8.bf16 %v1158_v50 }
 0x5a0   : > { %19958 = vmatpush3.bf16.msra.mxu1 %v19957_v18  ;;  %v18895_v18 = vunpack.c.h.s8.bf16 %v1159_v26 }
 0x5a1   : > { %18870 = vmatpush1.bf16.msra.mxu0 %v18869_v7  ;;  %19960 = vmatprep.subr.bf16.mxu1 %v19959_v27  ;;  %v19981_v7 = vunpack.c.l.s8.bf16 %v968_v8  ;;  %v1162_v27 = vld [vmem:[%s22382_s4 + $0x1520] sm:$0xff] }
 0x5a2   : > { %18872 = vmatprep.subr.bf16.mxu0 %v18871_v15  ;;  %v19983_v15 = vunpack.c.h.s8.bf16 %v980_v60  ;;  %v1167_v60 = vld [vmem:[%s22382_s4 + $0x1548] sm:$0xff] }
 0x5a4   : > { %19962 = vmatpush3.bf16.msra.mxu1 %v19961_v33  ;;  %v19985_v33 = vunpack.c.h.s8.bf16 %v968_v8 }
 0x5a5   : > { %18874 = vmatpush1.bf16.msra.mxu0 %v18873_v13  ;;  %19964 = vmatprep.subr.bf16.mxu1 %v19963_v49  ;;  %v18897_v13 = vunpack.c.h.s8.bf16 %v1158_v50  ;;  %v19987_v49 = vunpack.c.l.s8.bf16 %v983_v58  ;;  %v18917_v50 = vunpack.c.l.s8.bf16 %v1167_v60 }
 0x5a6   : > { %18876 = vmatprep.subr.bf16.mxu0 %v18875_v24  ;;  %v18899_v24 = vunpack.c.l.s8.bf16 %v1162_v27 }
 0x5a8   : > { %19966 = vmatpush3.bf16.msra.mxu1 %v19965_v5  ;;  %v18903_v5 = vunpack.c.h.s8.bf16 %v1162_v27  ;;  %v1004_v27 = vld [vmem:[%s22382_s4 + $0x1030] sm:$0xff] }
 0x5a9   : > { %18878 = vmatpush1.bf16.msra.mxu0 %v18877_v25  ;;  %19968 = vmatprep.subr.bf16.mxu1 %v19967_v31  ;;  %v19989_v25 = vunpack.c.l.s8.bf16 %v971_v22  ;;  %v1165_v31 = vld [vmem:[%s22382_s4 + $0x1538] sm:$0xff] }
 0x5aa   : > { %18880 = vmatprep.subr.bf16.mxu0 %v18879_v47  ;;  %v16066_v41 = vpop.f32.mrb[26].mxu1  ;;  %v19991_v47 = vunpack.c.h.s8.bf16 %v983_v58  ;;  %v18921_v58 = vunpack.c.h.s8.bf16 %v1167_v60 }
 0x5ab   : > { %v16067_v43 = vpop.f32.mrb[27].mxu1 }
 0x5ac   : > { %v16068_v44 = vadd.f32 %v16067_v43, %v16066_v41  ;;  %19970 = vmatpush3.bf16.msra.mxu1 %v19969_v56  ;;  %v19995_v56 = vunpack.c.l.s8.bf16 %v986_v30  ;;  %v18911_v41 = vunpack.c.h.s8.bf16 %v1165_v31  ;;  %v19999_v43 = vunpack.c.h.s8.bf16 %v986_v30 }
 0x5ad   : > { %18882 = vmatpush1.bf16.msra.mxu0 %v18881_v35  ;;  %19972 = vmatprep.subr.bf16.mxu1 %v19971_v61  ;;  %v19993_v35 = vunpack.c.h.s8.bf16 %v971_v22  ;;  %v974_v61 = vld [vmem:[%s22382_s4 + $0xf40] sm:$0xff] }
 0x5ae   : > { %18884 = vmatprep.subr.bf16.mxu0 %v18883_v1  ;;  %v23434_v9 = vadd.f32 %v16068_v44, %v23413_v42  ;;  %v23445_v42 = vrot.slane %v23439_v38, %v22435_v51  ;;  %v1164_v1 = vld [vmem:[%s22382_s4 + $0x1530] sm:$0xff]  ;;  %v19997_v36 = vunpack.c.l.s8.bf16 %v974_v61 }
 0x5af   : > { %v18909_v28 = vunpack.c.l.s8.bf16 %v1164_v1  ;;  %v1168_v44 = vld [vmem:[%s22382_s4 + $0x1550] sm:$0xff] }
 0x5b0   : > { %19974 = vmatpush3.bf16.msra.mxu1 %v19973_v54  ;;  %v23451_v17 = vcombine.high %v23445_v42, %v23445_v42  ;;  %v18913_v54 = vunpack.c.h.s8.bf16 %v1164_v1 }
 0x5b1   : > { %18886 = vmatpush1.bf16.msra.mxu0 %v18885_v46  ;;  %19976 = vmatprep.subr.bf16.mxu1 %v19975_v29  ;;  %v989_v46 = vld [vmem:[%s22382_s4 + $0xfb8] sm:$0xff]  ;;  %v18915_v29 = vunpack.c.l.s8.bf16 %v1168_v44 }
 0x5b2   : > { %18888 = vmatprep.subr.bf16.mxu0 %v18887_v45  ;;  %v20001_v45 = vunpack.c.h.s8.bf16 %v974_v61  ;;  %v20003_v26 = vunpack.c.l.s8.bf16 %v989_v46 }
 0x5b4   : > { %19978 = vmatpush3.bf16.msra.mxu1 %v19977_v20 }
 0x5b5   : > { %18890 = vmatpush1.bf16.msra.mxu0 %v18889_v57  ;;  %19980 = vmatprep.subr.bf16.mxu1 %v19979_v32  ;;  %v977_v57 = vld [vmem:[%s22382_s4 + $0xf58] sm:$0xff] }
 0x5b6   : > { %18892 = vmatprep.subr.bf16.mxu0 %v18891_v40  ;;  %v20005_v8 = vunpack.c.l.s8.bf16 %v977_v57 }
 0x5b7   : > { %12330 = vmatmul.mubr.f32.vlgmr.msra.gmra.mrb[40].mxu1 %v22970_v10  ;;  %v18901_v10 = vunpack.c.l.s8.bf16 %v1161_v37  ;;  %v992_v37 = vld [vmem:[%s22382_s4 + $0xfd0] sm:$0xff] }
 0x5b8   : > { %10432 = vmatmul.mubr.f32.vlgmr.msra.gmra.mrb[0].mxu0 %v23390_v62  ;;  %19982 = vmatpush3.bf16.msra.mxu1 %v19981_v7  ;;  %v20007_v7 = vunpack.c.h.s8.bf16 %v989_v46  ;;  %v20017_v30 = vunpack.c.h.s8.bf16 %v992_v37 }
 0x5b9   : > { %18894 = vmatpush1.bf16.msra.mxu0 %v18893_v14  ;;  %19984 = vmatprep.subr.bf16.mxu1 %v19983_v15  ;;  %v18919_v14 = vunpack.c.h.s8.bf16 %v1168_v44  ;;  %v1171_v15 = vld [vmem:[%s22382_s4 + $0x1568] sm:$0xff] }
 0x5ba   : > { %18896 = vmatprep.subr.bf16.mxu0 %v18895_v18  ;;  %12399 = vmatprep.mubr.f32.mxu1 %v23025_v55  ;;  %v18907_v55 = vunpack.c.l.s8.bf16 %v1165_v31 }
 0x5bb   : > { %10502 = vmatprep.mubr.f32.mxu0 %v23451_v17 }
 0x5bc   : > { %19986 = vmatpush3.bf16.msra.mxu1 %v19985_v33  ;;  %v18923_v33 = vunpack.c.l.s8.bf16 %v1171_v15 }
 0x5bd   : > { %18898 = vmatpush1.bf16.msra.mxu0 %v18897_v13  ;;  %19988 = vmatprep.subr.bf16.mxu1 %v19987_v49  ;;  %v20009_v13 = vunpack.c.h.s8.bf16 %v977_v57  ;;  %v1170_v49 = vld [vmem:[%s22382_s4 + $0x1560] sm:$0xff] }
 0x5be   : > { %18900 = vmatprep.subr.bf16.mxu0 %v18899_v24  ;;  %v20011_v24 = vunpack.c.l.s8.bf16 %v1004_v27  ;;  %v18925_v22 = vunpack.c.l.s8.bf16 %v1170_v49  ;;  %v18929_v31 = vunpack.c.h.s8.bf16 %v1170_v49 }
 0x5c0   : > { %19990 = vmatpush3.bf16.msra.mxu1 %v19989_v25  ;;  %v20015_v25 = vunpack.c.h.s8.bf16 %v1004_v27 }
 0x5c1   : > { %18902 = vmatpush1.bf16.msra.mxu0 %v18901_v10  ;;  %19992 = vmatprep.subr.bf16.mxu1 %v19991_v47  ;;  %v20013_v10 = vunpack.c.l.s8.bf16 %v992_v37  ;;  %v1007_v47 = vld [vmem:[%s22382_s4 + $0x1048] sm:$0xff] }
 0x5c2   : > { %18904 = vmatprep.subr.bf16.mxu0 %v18903_v5  ;;  %v1174_v5 = vld [vmem:[%s22382_s4 + $0x1580] sm:$0xff] }
 0x5c4   : > { %19994 = vmatpush3.bf16.msra.mxu1 %v19993_v35  ;;  %v20019_v35 = vunpack.c.l.s8.bf16 %v1007_v47 }
 0x5c5   : > { %18906 = vmatpush1.bf16.msra.mxu0 %v18905_v59  ;;  %19996 = vmatprep.subr.bf16.mxu1 %v19995_v56  ;;  %v18931_v59 = vunpack.c.l.s8.bf16 %v1174_v5  ;;  %v995_v56 = vld [vmem:[%s22382_s4 + $0xfe8] sm:$0xff] }
 0x5c6   : > { %18908 = vmatprep.subr.bf16.mxu0 %v18907_v55  ;;  %v1173_v55 = vld [vmem:[%s22382_s4 + $0x1578] sm:$0xff]  ;;  %v20021_v61 = vunpack.c.l.s8.bf16 %v995_v56  ;;  %v20025_v44 = vunpack.c.h.s8.bf16 %v995_v56 }
 0x5c7   : > { %v18933_v1 = vunpack.c.l.s8.bf16 %v1173_v55 }
 0x5c8   : > { %19998 = vmatpush3.bf16.msra.mxu1 %v19997_v36  ;;  %v1177_v36 = vld [vmem:[%s22382_s4 + $0x1598] sm:$0xff] }
 0x5c9   : > { %18910 = vmatpush1.bf16.msra.mxu0 %v18909_v28  ;;  %20000 = vmatprep.subr.bf16.mxu1 %v19999_v43  ;;  %v20023_v28 = vunpack.c.h.s8.bf16 %v1007_v47  ;;  %v18937_v43 = vunpack.c.h.s8.bf16 %v1173_v55  ;;  %v18943_v60 = vunpack.c.h.s8.bf16 %v1177_v36 }
 0x5ca   : > { %18912 = vmatprep.subr.bf16.mxu0 %v18911_v41  ;;  %v16101_v20 = vpop.f32.mrb[28].mxu1  ;;  %v1010_v41 = vld [vmem:[%s22382_s4 + $0x1060] sm:$0xff] }
 0x5cb   : > { %v16102_v40 = vpop.f32.mrb[29].mxu1  ;;  %v20027_v46 = vunpack.c.l.s8.bf16 %v1010_v41  ;;  %v20031_v57 = vunpack.c.h.s8.bf16 %v1010_v41 }
 0x5cc   : > { %v16103_v32 = vadd.f32 %v16102_v40, %v16101_v20  ;;  %20002 = vmatpush3.bf16.msra.mxu1 %v20001_v45  ;;  %v998_v45 = vld [vmem:[%s22382_s4 + $0x1000] sm:$0xff]  ;;  %v1180_v20 = vld [vmem:[%s22382_s4 + $0x15b0] sm:$0xff]  ;;  %v1013_v40 = vld [vmem:[%s22382_s4 + $0x1078] sm:$0xff] }
 0x5cd   : > { %18914 = vmatpush1.bf16.msra.mxu0 %v18913_v54  ;;  %20004 = vmatprep.subr.bf16.mxu1 %v20003_v26  ;;  %v1176_v54 = vld [vmem:[%s22382_s4 + $0x1590] sm:$0xff]  ;;  %v20029_v26 = vunpack.c.l.s8.bf16 %v998_v45  ;;  %v18951_v49 = vunpack.c.h.s8.bf16 %v1180_v20  ;;  %v20039_v37 = vunpack.c.h.s8.bf16 %v1013_v40 }
 0x5ce   : > { %18916 = vmatprep.subr.bf16.mxu0 %v18915_v29  ;;  %v23468_v18 = vadd.f32 %v16103_v32, %v23434_v9  ;;  %v18927_v9 = vunpack.c.h.s8.bf16 %v1171_v15  ;;  %v18941_v29 = vunpack.c.l.s8.bf16 %v1176_v54  ;;  %v18945_v32 = vunpack.c.h.s8.bf16 %v1176_v54  ;;  %v1001_v15 = vld [vmem:[%s22382_s4 + $0x1018] sm:$0xff] }
 0x5cf   : > { %v20041_v47 = vunpack.c.h.s8.bf16 %v1001_v15 }
 0x5d0   : > { %20006 = vmatpush3.bf16.msra.mxu1 %v20005_v8  ;;  %v18947_v8 = vunpack.c.l.s8.bf16 %v1180_v20 }
 0x5d1   : > { %18918 = vmatpush1.bf16.msra.mxu0 %v18917_v50  ;;  %20008 = vmatprep.subr.bf16.mxu1 %v20007_v7  ;;  %v20033_v50 = vunpack.c.h.s8.bf16 %v998_v45  ;;  %v1179_v7 = vld [vmem:[%s22382_s4 + $0x15a8] sm:$0xff] }
 0x5d2   : > { %18920 = vmatprep.subr.bf16.mxu0 %v18919_v14  ;;  %v20035_v14 = vunpack.c.l.s8.bf16 %v1013_v40 }
 0x5d4   : > { %20010 = vmatpush3.bf16.msra.mxu1 %v20009_v13 }
 0x5d5   : > { %18922 = vmatpush1.bf16.msra.mxu0 %v18921_v58  ;;  %20012 = vmatprep.subr.bf16.mxu1 %v20011_v24  ;;  %v20037_v24 = vunpack.c.l.s8.bf16 %v1001_v15 }
 0x5d6   : > { %18924 = vmatprep.subr.bf16.mxu0 %v18923_v33  ;;  %v18949_v33 = vunpack.c.l.s8.bf16 %v1179_v7 }
 0x5d7   : > { %12400 = vmatmul.mubr.f32.vlgmr.msra.gmra.mrb[42].mxu1 %v23019_v0  ;;  %v18935_v0 = vunpack.c.h.s8.bf16 %v1174_v5  ;;  %v18953_v5 = vunpack.c.h.s8.bf16 %v1179_v7 }
 0x5d8   : > { %20014 = vmatpush3.bf16.msra.mxu1 %v20013_v10  ;;  %12469 = vmatprep.mubr.f32.mxu1 %v23072_v12  ;;  %v18939_v12 = vunpack.c.l.s8.bf16 %v1177_v36  ;;  %v1183_v10 = vld [vmem:[%s22382_s4 + $0x15c8] sm:$0xff] }
 0x5d9   : > { %18926 = vmatpush1.bf16.msra.mxu0 %v18925_v22  ;;  %20016 = vmatprep.subr.bf16.mxu1 %v20015_v25  ;;  %v8321_v25 = vcombine.high %v23439_v38, %v23439_v38  ;;  %v18959_v38 = vunpack.c.h.s8.bf16 %v1183_v10 }
 0x5da   : > { %18928 = vmatprep.subr.bf16.mxu0 %v18927_v9  ;;  %v1028_v9 = vld [vmem:[%s22382_s4 + $0x10f0] sm:$0xff] }
 0x5dc   : > { %20018 = vmatpush3.bf16.msra.mxu1 %v20017_v30  ;;  %v20043_v30 = vunpack.c.l.s8.bf16 %v1028_v9 }
 0x5dd   : > { %18930 = vmatpush1.bf16.msra.mxu0 %v18929_v31  ;;  %20020 = vmatprep.subr.bf16.mxu1 %v20019_v35  ;;  %v18955_v31 = vunpack.c.l.s8.bf16 %v1183_v10  ;;  %v1016_v35 = vld [vmem:[%s22382_s4 + $0x1090] sm:$0xff]  ;;  %v1025_v10 = vld [vmem:[%s22382_s4 + $0x10d8] sm:$0xff] }
 0x5de   : > { %18932 = vmatprep.subr.bf16.mxu0 %v18931_v59  ;;  %v1182_v59 = vld [vmem:[%s22382_s4 + $0x15c0] sm:$0xff]  ;;  %v20045_v56 = vunpack.c.l.s8.bf16 %v1016_v35  ;;  %v20049_v41 = vunpack.c.h.s8.bf16 %v1016_v35 }
 0x5df   : > { %v18957_v55 = vunpack.c.l.s8.bf16 %v1182_v59  ;;  %v18961_v36 = vunpack.c.h.s8.bf16 %v1182_v59 }
 0x5e0   : > { %20022 = vmatpush3.bf16.msra.mxu1 %v20021_v61  ;;  %v1186_v61 = vld [vmem:[%s22382_s4 + $0x15e0] sm:$0xff] }
 0x5e1   : > { %18934 = vmatpush1.bf16.msra.mxu0 %v18933_v1  ;;  %20024 = vmatprep.subr.bf16.mxu1 %v20023_v28  ;;  %v20047_v1 = vunpack.c.h.s8.bf16 %v1028_v9  ;;  %v18967_v45 = vunpack.c.h.s8.bf16 %v1186_v61 }
 0x5e2   : > { %18936 = vmatprep.subr.bf16.mxu0 %v18935_v0  ;;  %v1031_v0 = vld [vmem:[%s22382_s4 + $0x1108] sm:$0xff] }
 0x5e4   : > { %20026 = vmatpush3.bf16.msra.mxu1 %v20025_v44  ;;  %v20051_v44 = vunpack.c.l.s8.bf16 %v1031_v0 }
 0x5e5   : > { %18938 = vmatpush1.bf16.msra.mxu0 %v18937_v43  ;;  %20028 = vmatprep.subr.bf16.mxu1 %v20027_v46  ;;  %v18963_v43 = vunpack.c.l.s8.bf16 %v1186_v61  ;;  %v1019_v46 = vld [vmem:[%s22382_s4 + $0x10a8] sm:$0xff] }
 0x5e6   : > { %18940 = vmatprep.subr.bf16.mxu0 %v18939_v12  ;;  %v1185_v12 = vld [vmem:[%s22382_s4 + $0x15d8] sm:$0xff]  ;;  %v20053_v54 = vunpack.c.l.s8.bf16 %v1019_v46  ;;  %v20057_v20 = vunpack.c.h.s8.bf16 %v1019_v46  ;;  %v1198_v46 = vld [vmem:[%s22382_s4 + $0x1640] sm:$0xff] }
 0x5e8   : > { %20030 = vmatpush3.bf16.msra.mxu1 %v20029_v26  ;;  %v1189_v26 = vld [vmem:[%s22382_s4 + $0x15f8] sm:$0xff] }
 0x5e9   : > { %18942 = vmatpush1.bf16.msra.mxu0 %v18941_v29  ;;  %20032 = vmatprep.subr.bf16.mxu1 %v20031_v57  ;;  %v20055_v29 = vunpack.c.h.s8.bf16 %v1031_v0  ;;  %v18969_v57 = vunpack.c.h.s8.bf16 %v1185_v12  ;;  %v18975_v7 = vunpack.c.h.s8.bf16 %v1189_v26 }
 0x5ea   : > { %18944 = vmatprep.subr.bf16.mxu0 %v18943_v60  ;;  %v16136_v27 = vpop.f32.mrb[30].mxu1  ;;  %v1034_v60 = vld [vmem:[%s22382_s4 + $0x1120] sm:$0xff] }
 0x5eb   : > { %v16137_v58 = vpop.f32.mrb[31].mxu1  ;;  %v20059_v40 = vunpack.c.l.s8.bf16 %v1034_v60  ;;  %v20063_v15 = vunpack.c.h.s8.bf16 %v1034_v60  ;;  %v1197_v60 = vld [vmem:[%s22382_s4 + $0x1638] sm:$0xff] }
 0x5ec   : > { %v16138_v13 = vadd.f32 %v16137_v58, %v16136_v27  ;;  %20034 = vmatpush3.bf16.msra.mxu1 %v20033_v50  ;;  %v1022_v50 = vld [vmem:[%s22382_s4 + $0x10c0] sm:$0xff]  ;;  %v1192_v27 = vld [vmem:[%s22382_s4 + $0x1610] sm:$0xff]  ;;  %v1037_v58 = vld [vmem:[%s22382_s4 + $0x1138] sm:$0xff] }
 0x5ed   : > { %18946 = vmatpush1.bf16.msra.mxu0 %v18945_v32  ;;  %20036 = vmatprep.subr.bf16.mxu1 %v20035_v14  ;;  %v1188_v32 = vld [vmem:[%s22382_s4 + $0x15f0] sm:$0xff]  ;;  %v20061_v14 = vunpack.c.l.s8.bf16 %v1022_v50  ;;  %v20071_v59 = vunpack.c.h.s8.bf16 %v1037_v58 }
 0x5ee   : > { %18948 = vmatprep.subr.bf16.mxu0 %v18947_v8  ;;  %v23489_v22 = vadd.f32 %v16138_v13, %v23468_v18  ;;  %v23498_v18 = vrot.slane %v8321_v25, %v22435_v51  ;;  %v18973_v8 = vunpack.c.l.s8.bf16 %v1188_v32  ;;  %v18977_v13 = vunpack.c.h.s8.bf16 %v1188_v32  ;;  %v1201_v32 = vld [vmem:[%s22382_s4 + $0x1658] sm:$0xff] }
 0x5f0   : > { %20038 = vmatpush3.bf16.msra.mxu1 %v20037_v24  ;;  %v23504_v28 = vcombine.high %v23498_v18, %v23498_v18  ;;  %v18979_v24 = vunpack.c.l.s8.bf16 %v1192_v27 }
 0x5f1   : > { %18950 = vmatpush1.bf16.msra.mxu0 %v18949_v33  ;;  %20040 = vmatprep.subr.bf16.mxu1 %v20039_v37  ;;  %v20065_v33 = vunpack.c.h.s8.bf16 %v1022_v50  ;;  %v1191_v37 = vld [vmem:[%s22382_s4 + $0x1608] sm:$0xff]  ;;  %v1058_v50 = vld [vmem:[%s22382_s4 + $0x11e0] sm:$0xff] }
 0x5f2   : > { %18952 = vmatprep.subr.bf16.mxu0 %v18951_v49  ;;  %v20067_v49 = vunpack.c.l.s8.bf16 %v1037_v58 }
 0x5f4   : > { %20042 = vmatpush3.bf16.msra.mxu1 %v20041_v47  ;;  %v18981_v47 = vunpack.c.l.s8.bf16 %v1191_v37 }
 0x5f5   : > { %18954 = vmatpush1.bf16.msra.mxu0 %v18953_v5  ;;  %20044 = vmatprep.subr.bf16.mxu1 %v20043_v30  ;;  %v18983_v30 = vunpack.c.h.s8.bf16 %v1192_v27  ;;  %v1046_v27 = vld [vmem:[%s22382_s4 + $0x1180] sm:$0xff] }
 0x5f6   : > { %18956 = vmatprep.subr.bf16.mxu0 %v18955_v31  ;;  %v20069_v31 = vunpack.c.l.s8.bf16 %v1025_v10 }
 0x5f7   : > { %12470 = vmatmul.mubr.f32.vlgmr.msra.gmra.mrb[44].mxu1 %v23066_v4  ;;  %v18965_v4 = vunpack.c.l.s8.bf16 %v1185_v12 }
 0x5f8   : > { %10503 = vmatmul.mubr.f32.vlgmr.msra.gmra.mrb[0].mxu0 %v23445_v42  ;;  %20046 = vmatpush3.bf16.msra.mxu1 %v20045_v56  ;;  %v1052_v56 = vld [vmem:[%s22382_s4 + $0x11b0] sm:$0xff] }
 0x5f9   : > { %18958 = vmatpush1.bf16.msra.mxu0 %v18957_v55  ;;  %20048 = vmatprep.subr.bf16.mxu1 %v20047_v1  ;;  %v1195_v55 = vld [vmem:[%s22382_s4 + $0x1628] sm:$0xff]  ;;  %v20073_v1 = vunpack.c.h.s8.bf16 %v1025_v10  ;;  %v20075_v0 = vunpack.c.l.s8.bf16 %v1052_v56  ;;  %v20079_v12 = vunpack.c.h.s8.bf16 %v1052_v56 }
 0x5fa   : > { %18960 = vmatprep.subr.bf16.mxu0 %v18959_v38  ;;  %12539 = vmatprep.mubr.f32.mxu1 %v23127_v34  ;;  %v18971_v34 = vunpack.c.l.s8.bf16 %v1189_v26  ;;  %v18985_v38 = vunpack.c.h.s8.bf16 %v1191_v37  ;;  %v18987_v61 = vunpack.c.l.s8.bf16 %v1195_v55  ;;  %v1061_v37 = vld [vmem:[%s22382_s4 + $0x11f8] sm:$0xff] }
 0x5fb   : > { %10573 = vmatprep.mubr.f32.mxu0 %v23504_v28 }
 0x5fc   : > { %20050 = vmatpush3.bf16.msra.mxu1 %v20049_v41  ;;  %v1040_v41 = vld [vmem:[%s22382_s4 + $0x1150] sm:$0xff] }
 0x5fd   : > { %18962 = vmatpush1.bf16.msra.mxu0 %v18961_v36  ;;  %20052 = vmatprep.subr.bf16.mxu1 %v20051_v44  ;;  %v1194_v36 = vld [vmem:[%s22382_s4 + $0x1620] sm:$0xff]  ;;  %v20077_v44 = vunpack.c.l.s8.bf16 %v1040_v41 }
 0x5fe   : > { %18964 = vmatprep.subr.bf16.mxu0 %v18963_v43  ;;  %v18989_v43 = vunpack.c.l.s8.bf16 %v1194_v36 }
 0x600   : > { %20054 = vmatpush3.bf16.msra.mxu1 %v20053_v54  ;;  %v18993_v54 = vunpack.c.h.s8.bf16 %v1194_v36  ;;  %v1207_v36 = vld [vmem:[%s22382_s4 + $0x1688] sm:$0xff] }
 0x601   : > { %18966 = vmatpush1.bf16.msra.mxu0 %v18965_v4  ;;  %20056 = vmatprep.subr.bf16.mxu1 %v20055_v29  ;;  %v1055_v4 = vld [vmem:[%s22382_s4 + $0x11c8] sm:$0xff]  ;;  %v18995_v29 = vunpack.c.l.s8.bf16 %v1198_v46 }
 0x602   : > { %18968 = vmatprep.subr.bf16.mxu0 %v18967_v45  ;;  %v20081_v45 = vunpack.c.h.s8.bf16 %v1040_v41  ;;  %v20083_v26 = vunpack.c.l.s8.bf16 %v1055_v4  ;;  %v1076_v41 = vld [vmem:[%s22382_s4 + $0x1270] sm:$0xff] }
 0x604   : > { %20058 = vmatpush3.bf16.msra.mxu1 %v20057_v20  ;;  %v18997_v20 = vunpack.c.l.s8.bf16 %v1197_v60 }
 0x605   : > { %18970 = vmatpush1.bf16.msra.mxu0 %v18969_v57  ;;  %20060 = vmatprep.subr.bf16.mxu1 %v20059_v40  ;;  %v1043_v57 = vld [vmem:[%s22382_s4 + $0x1168] sm:$0xff]  ;;  %v20087_v40 = vunpack.c.h.s8.bf16 %v1055_v4  ;;  %v1206_v4 = vld [vmem:[%s22382_s4 + $0x1680] sm:$0xff] }
 0x606   : > { %18972 = vmatprep.subr.bf16.mxu0 %v18971_v34  ;;  %v20085_v34 = vunpack.c.l.s8.bf16 %v1043_v57 }
 0x608   : > { %20062 = vmatpush3.bf16.msra.mxu1 %v20061_v14  ;;  %v20089_v14 = vunpack.c.h.s8.bf16 %v1043_v57  ;;  %v1210_v57 = vld [vmem:[%s22382_s4 + $0x16a0] sm:$0xff] }
 0x609   : > { %18974 = vmatpush1.bf16.msra.mxu0 %v18973_v8  ;;  %20064 = vmatprep.subr.bf16.mxu1 %v20063_v15  ;;  %v19001_v8 = vunpack.c.h.s8.bf16 %v1197_v60  ;;  %v1200_v15 = vld [vmem:[%s22382_s4 + $0x1650] sm:$0xff]  ;;  %v20111_v60 = vunpack.c.h.s8.bf16 %v1076_v41 }
 0x60a   : > { %18976 = vmatprep.subr.bf16.mxu0 %v18975_v7  ;;  %v16171_v9 = vpop.f32.mrb[32].mxu1  ;;  %v20091_v7 = vunpack.c.l.s8.bf16 %v1058_v50  ;;  %v19005_v58 = vunpack.c.l.s8.bf16 %v1200_v15  ;;  %v19009_v10 = vunpack.c.h.s8.bf16 %v1200_v15 }
 0x60b   : > { %v16172_v25 = vpop.f32.mrb[33].mxu1 }
 0x60c   : > { %v16173_v5 = vadd.f32 %v16172_v25, %v16171_v9  ;;  %20066 = vmatpush3.bf16.msra.mxu1 %v20065_v33  ;;  %v19007_v33 = vunpack.c.h.s8.bf16 %v1201_v32  ;;  %v20097_v9 = vunpack.c.h.s8.bf16 %v1046_v27 }
 0x60d   : > { %18978 = vmatpush1.bf16.msra.mxu0 %v18977_v13  ;;  %20068 = vmatprep.subr.bf16.mxu1 %v20067_v49  ;;  %v20093_v13 = vunpack.c.l.s8.bf16 %v1046_v27  ;;  %v1204_v49 = vld [vmem:[%s22382_s4 + $0x1670] sm:$0xff]  ;;  %v1213_v27 = vld [vmem:[%s22382_s4 + $0x16b8] sm:$0xff] }
 0x60e   : > { %18980 = vmatprep.subr.bf16.mxu0 %v18979_v24  ;;  %v23521_v35 = vadd.f32 %v16173_v5, %v23489_v22  ;;  %v18991_v22 = vunpack.c.h.s8.bf16 %v1195_v55  ;;  %v20095_v24 = vunpack.c.h.s8.bf16 %v1058_v50  ;;  %v19011_v25 = vunpack.c.l.s8.bf16 %v1204_v49 }
 0x60f   : > { %v20099_v5 = vunpack.c.l.s8.bf16 %v1061_v37 }
 0x610   : > { %20070 = vmatpush3.bf16.msra.mxu1 %v20069_v31  ;;  %v1049_v31 = vld [vmem:[%s22382_s4 + $0x1198] sm:$0xff] }
 0x611   : > { %18982 = vmatpush1.bf16.msra.mxu0 %v18981_v47  ;;  %20072 = vmatprep.subr.bf16.mxu1 %v20071_v59  ;;  %v1203_v47 = vld [vmem:[%s22382_s4 + $0x1668] sm:$0xff] }
 0x612   : > { %18984 = vmatprep.subr.bf16.mxu0 %v18983_v30  ;;  %v19013_v56 = vunpack.c.l.s8.bf16 %v1203_v47 }
 0x614   : > { %20074 = vmatpush3.bf16.msra.mxu1 %v20073_v1  ;;  %v19015_v1 = vunpack.c.h.s8.bf16 %v1204_v49  ;;  %v1212_v49 = vld [vmem:[%s22382_s4 + $0x16b0] sm:$0xff] }
 0x615   : > { %18986 = vmatpush1.bf16.msra.mxu0 %v18985_v38  ;;  %20076 = vmatprep.subr.bf16.mxu1 %v20075_v0  ;;  %v20101_v38 = vunpack.c.l.s8.bf16 %v1049_v31 }
 0x616   : > { %18988 = vmatprep.subr.bf16.mxu0 %v18987_v61  ;;  %v20103_v61 = vunpack.c.h.s8.bf16 %v1061_v37  ;;  %v1070_v37 = vld [vmem:[%s22382_s4 + $0x1240] sm:$0xff] }
 0x617   : > { %12540 = vmatmul.mubr.f32.vlgmr.msra.gmra.mrb[46].mxu1 %v23121_v23  ;;  %v18999_v23 = vunpack.c.h.s8.bf16 %v1198_v46  ;;  %v20107_v46 = vunpack.c.l.s8.bf16 %v1076_v41 }
 0x618   : > { %20078 = vmatpush3.bf16.msra.mxu1 %v20077_v44  ;;  %12609 = vmatprep.mubr.f32.mxu1 %v23180_v3  ;;  %v19003_v3 = vunpack.c.l.s8.bf16 %v1201_v32  ;;  %v19017_v44 = vunpack.c.h.s8.bf16 %v1203_v47  ;;  %v19027_v32 = vunpack.c.l.s8.bf16 %v1210_v57  ;;  %v1216_v47 = vld [vmem:[%s22382_s4 + $0x16d0] sm:$0xff] }
 0x619   : > { %18990 = vmatpush1.bf16.msra.mxu0 %v18989_v43  ;;  %20080 = vmatprep.subr.bf16.mxu1 %v20079_v12  ;;  %v23547_v43 = vld [vmem:[%s22408_s17 + $0x78] sm:$0xff]  ;;  %v19019_v12 = vunpack.c.l.s8.bf16 %v1207_v36 }
 0x61a   : > { %18992 = vmatprep.subr.bf16.mxu0 %v18991_v22  ;;  %v20105_v22 = vunpack.c.h.s8.bf16 %v1049_v31  ;;  %v1085_v31 = vld [vmem:[%s22382_s4 + $0x12b8] sm:$0xff] }
 0x61c   : > { %20082 = vmatpush3.bf16.msra.mxu1 %v20081_v45  ;;  %v19021_v45 = vunpack.c.l.s8.bf16 %v1206_v4 }
 0x61d   : > { %18994 = vmatpush1.bf16.msra.mxu0 %v18993_v54  ;;  %20084 = vmatprep.subr.bf16.mxu1 %v20083_v26  ;;  %v1064_v54 = vld [vmem:[%s22382_s4 + $0x1210] sm:$0xff]  ;;  %v19023_v26 = vunpack.c.h.s8.bf16 %v1207_v36 }
 0x61e   : > { %18996 = vmatprep.subr.bf16.mxu0 %v18995_v29  ;;  %v20109_v29 = vunpack.c.l.s8.bf16 %v1064_v54 }
 0x620   : > { %20086 = vmatpush3.bf16.msra.mxu1 %v20085_v34 }
 0x621   : > { %18998 = vmatpush1.bf16.msra.mxu0 %v18997_v20  ;;  %20088 = vmatprep.subr.bf16.mxu1 %v20087_v40  ;;  %v1079_v20 = vld [vmem:[%s22382_s4 + $0x1288] sm:$0xff]  ;;  %v20113_v40 = vunpack.c.h.s8.bf16 %v1064_v54 }
 0x622   : > { %19000 = vmatprep.subr.bf16.mxu0 %v18999_v23  ;;  %v19025_v23 = vunpack.c.h.s8.bf16 %v1206_v4  ;;  %v20115_v50 = vunpack.c.l.s8.bf16 %v1079_v20  ;;  %v20119_v15 = vunpack.c.h.s8.bf16 %v1079_v20  ;;  %v1219_v54 = vld [vmem:[%s22382_s4 + $0x16e8] sm:$0xff]  ;;  %v1218_v20 = vld [vmem:[%s22382_s4 + $0x16e0] sm:$0xff] }
 0x624   : > { %20090 = vmatpush3.bf16.msra.mxu1 %v20089_v14  ;;  %v1067_v14 = vld [vmem:[%s22382_s4 + $0x1228] sm:$0xff] }
 0x625   : > { %19002 = vmatpush1.bf16.msra.mxu0 %v19001_v8  ;;  %20092 = vmatprep.subr.bf16.mxu1 %v20091_v7  ;;  %v1209_v8 = vld [vmem:[%s22382_s4 + $0x1698] sm:$0xff]  ;;  %v19031_v7 = vunpack.c.h.s8.bf16 %v1210_v57 }
 0x626   : > { %19004 = vmatprep.subr.bf16.mxu0 %v19003_v3  ;;  %v20117_v3 = vunpack.c.l.s8.bf16 %v1067_v14 }
 0x628   : > { %20094 = vmatpush3.bf16.msra.mxu1 %v20093_v13  ;;  %v19033_v13 = vunpack.c.h.s8.bf16 %v1209_v8 }
 0x629   : > { %19006 = vmatpush1.bf16.msra.mxu0 %v19005_v58  ;;  %20096 = vmatprep.subr.bf16.mxu1 %v20095_v24  ;;  %v1082_v58 = vld [vmem:[%s22382_s4 + $0x12a0] sm:$0xff] }
 0x62a   : > { %19008 = vmatprep.subr.bf16.mxu0 %v19007_v33  ;;  %v16206_v30 = vpop.f32.mrb[34].mxu1  ;;  %v20121_v33 = vunpack.c.h.s8.bf16 %v1067_v14  ;;  %v20123_v24 = vunpack.c.l.s8.bf16 %v1082_v58  ;;  %v1103_v14 = vld [vmem:[%s22382_s4 + $0x1348] sm:$0xff] }
 0x62b   : > { %v16207_v59 = vpop.f32.mrb[35].mxu1 }
 0x62c   : > { %v16208_v55 = vadd.f32 %v16207_v59, %v16206_v30  ;;  %20098 = vmatpush3.bf16.msra.mxu1 %v20097_v9  ;;  %v20125_v9 = vunpack.c.l.s8.bf16 %v1070_v37  ;;  %v19041_v30 = vunpack.c.h.s8.bf16 %v1212_v49  ;;  %v20129_v59 = vunpack.c.h.s8.bf16 %v1070_v37 }
 0x62d   : > { %19010 = vmatpush1.bf16.msra.mxu0 %v19009_v10  ;;  %20100 = vmatprep.subr.bf16.mxu1 %v20099_v5  ;;  %v19037_v10 = vunpack.c.l.s8.bf16 %v1212_v49  ;;  %v20127_v5 = vunpack.c.h.s8.bf16 %v1082_v58  ;;  %v1091_v58 = vld [vmem:[%s22382_s4 + $0x12e8] sm:$0xff]  ;;  %v1106_v49 = vld [vmem:[%s22382_s4 + $0x1360] sm:$0xff] }
 0x62e   : > { %19012 = vmatprep.subr.bf16.mxu0 %v19011_v25  ;;  %v23542_v0 = vadd.f32 %v16208_v55, %v23521_v35  ;;  %v23553_v35 = vrot.slane %v23547_v43, %v22435_v51  ;;  %v19039_v25 = vunpack.c.h.s8.bf16 %v1213_v27  ;;  %v19043_v55 = vunpack.c.l.s8.bf16 %v1216_v47 }
 0x630   : > { %20102 = vmatpush3.bf16.msra.mxu1 %v20101_v38  ;;  %v23559_v34 = vcombine.high %v23553_v35, %v23553_v35  ;;  %v1215_v38 = vld [vmem:[%s22382_s4 + $0x16c8] sm:$0xff] }
 0x631   : > { %19014 = vmatpush1.bf16.msra.mxu0 %v19013_v56  ;;  %20104 = vmatprep.subr.bf16.mxu1 %v20103_v61  ;;  %v20131_v56 = vunpack.c.l.s8.bf16 %v1085_v31 }
 0x632   : > { %19016 = vmatprep.subr.bf16.mxu0 %v19015_v1  ;;  %v1073_v1 = vld [vmem:[%s22382_s4 + $0x1258] sm:$0xff] }
 0x634   : > { %20106 = vmatpush3.bf16.msra.mxu1 %v20105_v22  ;;  %v20133_v22 = vunpack.c.l.s8.bf16 %v1073_v1 }
 0x635   : > { %19018 = vmatpush1.bf16.msra.mxu0 %v19017_v44  ;;  %20108 = vmatprep.subr.bf16.mxu1 %v20107_v46  ;;  %v19045_v44 = vunpack.c.l.s8.bf16 %v1215_v38  ;;  %v20135_v46 = vunpack.c.h.s8.bf16 %v1085_v31 }
 0x636   : > { %19020 = vmatprep.subr.bf16.mxu0 %v19019_v12  ;;  %v19047_v12 = vunpack.c.h.s8.bf16 %v1216_v47 }
 0x637   : > { %12610 = vmatmul.mubr.f32.vlgmr.msra.gmra.mrb[48].mxu1 %v23174_v52  ;;  %v19029_v52 = vunpack.c.l.s8.bf16 %v1209_v8  ;;  %v1222_v8 = vld [vmem:[%s22382_s4 + $0x1700] sm:$0xff] }
 0x638   : > { %10574 = vmatmul.mubr.f32.vlgmr.msra.gmra.mrb[0].mxu0 %v23498_v18  ;;  %20110 = vmatpush3.bf16.msra.mxu1 %v20109_v29  ;;  %v19049_v29 = vunpack.c.h.s8.bf16 %v1215_v38 }
 0x639   : > { %19022 = vmatpush1.bf16.msra.mxu0 %v19021_v45  ;;  %20112 = vmatprep.subr.bf16.mxu1 %v20111_v60  ;;  %v1100_v45 = vld [vmem:[%s22382_s4 + $0x1330] sm:$0xff]  ;;  %v19051_v60 = vunpack.c.l.s8.bf16 %v1219_v54 }
 0x63a   : > { %19024 = vmatprep.subr.bf16.mxu0 %v19023_v26  ;;  %12679 = vmatprep.mubr.f32.mxu1 %v23235_v48  ;;  %v19035_v48 = vunpack.c.l.s8.bf16 %v1213_v27  ;;  %v20137_v26 = vunpack.c.h.s8.bf16 %v1073_v1  ;;  %v20139_v57 = vunpack.c.l.s8.bf16 %v1100_v45  ;;  %v1221_v27 = vld [vmem:[%s22382_s4 + $0x16f8] sm:$0xff] }
 0x63b   : > { %10644 = vmatprep.mubr.f32.mxu0 %v23559_v34  ;;  %v19065_v37 = vunpack.c.h.s8.bf16 %v1221_v27 }
 0x63c   : > { %20114 = vmatpush3.bf16.msra.mxu1 %v20113_v40  ;;  %v19053_v40 = vunpack.c.l.s8.bf16 %v1218_v20 }
 0x63d   : > { %19026 = vmatpush1.bf16.msra.mxu0 %v19025_v23  ;;  %20116 = vmatprep.subr.bf16.mxu1 %v20115_v50  ;;  %v1088_v23 = vld [vmem:[%s22382_s4 + $0x12d0] sm:$0xff]  ;;  %v20143_v50 = vunpack.c.h.s8.bf16 %v1100_v45 }
 0x63e   : > { %19028 = vmatprep.subr.bf16.mxu0 %v19027_v32  ;;  %v20141_v32 = vunpack.c.l.s8.bf16 %v1088_v23 }
 0x640   : > { %20118 = vmatpush3.bf16.msra.mxu1 %v20117_v3  ;;  %v20145_v3 = vunpack.c.h.s8.bf16 %v1088_v23  ;;  %v8338_v23 = vcombine.high %v23547_v43, %v23547_v43 }
 0x641   : > { %19030 = vmatpush1.bf16.msra.mxu0 %v19029_v52  ;;  %20120 = vmatprep.subr.bf16.mxu1 %v20119_v15  ;;  %v19057_v52 = vunpack.c.h.s8.bf16 %v1218_v20  ;;  %v20147_v15 = vunpack.c.l.s8.bf16 %v1103_v14  ;;  %v1124_v20 = vld [vmem:[%s22382_s4 + $0x13f0] sm:$0xff] }
 0x642   : > { %19032 = vmatprep.subr.bf16.mxu0 %v19031_v7  ;;  %v19059_v7 = vunpack.c.l.s8.bf16 %v1222_v8 }
 0x644   : > { %20122 = vmatpush3.bf16.msra.mxu1 %v20121_v33  ;;  %v20149_v33 = vunpack.c.l.s8.bf16 %v1091_v58 }
 0x645   : > { %19034 = vmatpush1.bf16.msra.mxu0 %v19033_v13  ;;  %20124 = vmatprep.subr.bf16.mxu1 %v20123_v24  ;;  %v19061_v13 = vunpack.c.l.s8.bf16 %v1221_v27  ;;  %v1225_v24 = vld [vmem:[%s22382_s4 + $0x1718] sm:$0xff]  ;;  %v1127_v27 = vld [vmem:[%s22382_s4 + $0x1408] sm:$0xff] }
 0x646   : > { %19036 = vmatprep.subr.bf16.mxu0 %v19035_v48  ;;  %v20151_v48 = vunpack.c.h.s8.bf16 %v1103_v14  ;;  %v1112_v14 = vld [vmem:[%s22382_s4 + $0x1390] sm:$0xff] }
 0x648   : > { %20126 = vmatpush3.bf16.msra.mxu1 %v20125_v9  ;;  %v20155_v9 = vunpack.c.l.s8.bf16 %v1106_v49 }
 0x649   : > { %19038 = vmatpush1.bf16.msra.mxu0 %v19037_v10  ;;  %20128 = vmatprep.subr.bf16.mxu1 %v20127_v5  ;;  %v20153_v10 = vunpack.c.h.s8.bf16 %v1091_v58  ;;  %v1094_v5 = vld [vmem:[%s22382_s4 + $0x1300] sm:$0xff] }
 0x64a   : > { %19040 = vmatprep.subr.bf16.mxu0 %v19039_v25  ;;  %v16241_v61 = vpop.f32.mrb[36].mxu1  ;;  %v1224_v25 = vld [vmem:[%s22382_s4 + $0x1710] sm:$0xff]  ;;  %v20157_v31 = vunpack.c.l.s8.bf16 %v1094_v5  ;;  %v20161_v1 = vunpack.c.h.s8.bf16 %v1094_v5 }
 0x64b   : > { %v16242_v36 = vpop.f32.mrb[37].mxu1  ;;  %v19069_v47 = vunpack.c.l.s8.bf16 %v1224_v25  ;;  %v19073_v38 = vunpack.c.h.s8.bf16 %v1224_v25  ;;  %v1130_v25 = vld [vmem:[%s22382_s4 + $0x1420] sm:$0xff] }
 0x64c   : > { %v16243_v41 = vadd.f32 %v16242_v36, %v16241_v61  ;;  %20130 = vmatpush3.bf16.msra.mxu1 %v20129_v59  ;;  %v20159_v59 = vunpack.c.h.s8.bf16 %v1106_v49  ;;  %v1115_v49 = vld [vmem:[%s22382_s4 + $0x13a8] sm:$0xff] }
 0x64d   : > { %19042 = vmatpush1.bf16.msra.mxu0 %v19041_v30  ;;  %20132 = vmatprep.subr.bf16.mxu1 %v20131_v56  ;;  %v19071_v30 = vunpack.c.h.s8.bf16 %v1225_v24  ;;  %v1109_v56 = vld [vmem:[%s22382_s4 + $0x1378] sm:$0xff] }
 0x64e   : > { %19044 = vmatprep.subr.bf16.mxu0 %v19043_v55  ;;  %v23576_v4 = vadd.f32 %v16243_v41, %v23542_v0  ;;  %v19055_v0 = vunpack.c.h.s8.bf16 %v1219_v54  ;;  %v1228_v55 = vld [vmem:[%s22382_s4 + $0x1730] sm:$0xff]  ;;  %v20163_v36 = vunpack.c.l.s8.bf16 %v1109_v56  ;;  %v1227_v41 = vld [vmem:[%s22382_s4 + $0x1728] sm:$0xff] }
 0x64f   : > { %v19075_v61 = vunpack.c.l.s8.bf16 %v1228_v55  ;;  %v19077_v54 = vunpack.c.l.s8.bf16 %v1227_v41 }
 0x650   : > { %20134 = vmatpush3.bf16.msra.mxu1 %v20133_v22 }
 0x651   : > { %19046 = vmatpush1.bf16.msra.mxu0 %v19045_v44  ;;  %20136 = vmatprep.subr.bf16.mxu1 %v20135_v46  ;;  %v1097_v44 = vld [vmem:[%s22382_s4 + $0x1318] sm:$0xff] }
 0x652   : > { %19048 = vmatprep.subr.bf16.mxu0 %v19047_v12  ;;  %v20165_v45 = vunpack.c.l.s8.bf16 %v1097_v44 }
 0x654   : > { %20138 = vmatpush3.bf16.msra.mxu1 %v20137_v26  ;;  %v20167_v26 = vunpack.c.h.s8.bf16 %v1109_v56 }
 0x655   : > { %19050 = vmatpush1.bf16.msra.mxu0 %v19049_v29  ;;  %20140 = vmatprep.subr.bf16.mxu1 %v20139_v57  ;;  %v19079_v29 = vunpack.c.h.s8.bf16 %v1228_v55  ;;  %v1231_v57 = vld [vmem:[%s22382_s4 + $0x1748] sm:$0xff] }
 0x656   : > { %19052 = vmatprep.subr.bf16.mxu0 %v19051_v60  ;;  %v19087_v43 = vunpack.c.h.s8.bf16 %v1231_v57 }
 0x657   : > { %12680 = vmatmul.mubr.f32.vlgmr.msra.gmra.mrb[50].mxu1 %v23229_v6  ;;  %v19063_v6 = vunpack.c.h.s8.bf16 %v1222_v8  ;;  %v1230_v8 = vld [vmem:[%s22382_s4 + $0x1740] sm:$0xff] }
 0x658   : > { %20142 = vmatpush3.bf16.msra.mxu1 %v20141_v32  ;;  %12749 = vmatprep.mubr.f32.mxu1 %v23288_v53  ;;  %v19067_v53 = vunpack.c.l.s8.bf16 %v1225_v24  ;;  %v20169_v32 = vunpack.c.h.s8.bf16 %v1097_v44  ;;  %v1233_v24 = vld [vmem:[%s22382_s4 + $0x1758] sm:$0xff] }
 0x659   : > { %19054 = vmatpush1.bf16.msra.mxu0 %v19053_v40  ;;  %20144 = vmatprep.subr.bf16.mxu1 %v20143_v50  ;;  %v19081_v40 = vunpack.c.h.s8.bf16 %v1227_v41  ;;  %v20171_v50 = vunpack.c.l.s8.bf16 %v1124_v20  ;;  %v19097_v5 = vunpack.c.h.s8.bf16 %v1233_v24 }
 0x65a   : > { %19056 = vmatprep.subr.bf16.mxu0 %v19055_v0  ;;  %v19083_v0 = vunpack.c.l.s8.bf16 %v1231_v57 }
 0x65c   : > { %20146 = vmatpush3.bf16.msra.mxu1 %v20145_v3  ;;  %v20173_v3 = vunpack.c.l.s8.bf16 %v1112_v14 }
 0x65d   : > { %19058 = vmatpush1.bf16.msra.mxu0 %v19057_v52  ;;  %20148 = vmatprep.subr.bf16.mxu1 %v20147_v15  ;;  %v19085_v52 = vunpack.c.l.s8.bf16 %v1230_v8  ;;  %v1234_v15 = vld [vmem:[%s22382_s4 + $0x1760] sm:$0xff] }
 0x65e   : > { %19060 = vmatprep.subr.bf16.mxu0 %v19059_v7  ;;  %v20175_v7 = vunpack.c.h.s8.bf16 %v1124_v20 }
 0x660   : > { %20150 = vmatpush3.bf16.msra.mxu1 %v20149_v33  ;;  %v20177_v33 = vunpack.c.h.s8.bf16 %v1112_v14 }
 0x661   : > { %19062 = vmatpush1.bf16.msra.mxu0 %v19061_v13  ;;  %20152 = vmatprep.subr.bf16.mxu1 %v20151_v48  ;;  %v19089_v13 = vunpack.c.h.s8.bf16 %v1230_v8  ;;  %v20179_v48 = vunpack.c.l.s8.bf16 %v1127_v27 }
 0x662   : > { %19064 = vmatprep.subr.bf16.mxu0 %v19063_v6  ;;  %v19091_v6 = vunpack.c.l.s8.bf16 %v1234_v15 }
 0x664   : > { %20154 = vmatpush3.bf16.msra.mxu1 %v20153_v10  ;;  %v19095_v10 = vunpack.c.h.s8.bf16 %v1234_v15 }
 0x665   : > { %19066 = vmatpush1.bf16.msra.mxu0 %v19065_v37  ;;  %20156 = vmatprep.subr.bf16.mxu1 %v20155_v9  ;;  %v20181_v37 = vunpack.c.l.s8.bf16 %v1115_v49  ;;  %v1237_v9 = vld [vmem:[%s22382_s4 + $0x1778] sm:$0xff] }
 0x666   : > { %19068 = vmatprep.subr.bf16.mxu0 %v19067_v53  ;;  %v20183_v53 = vunpack.c.h.s8.bf16 %v1127_v27 }
 0x668   : > { %20158 = vmatpush3.bf16.msra.mxu1 %v20157_v31  ;;  %v20187_v31 = vunpack.c.l.s8.bf16 %v1130_v25 }
 0x669   : > { %19070 = vmatpush1.bf16.msra.mxu0 %v19069_v47  ;;  %20160 = vmatprep.subr.bf16.mxu1 %v20159_v59  ;;  %v20185_v47 = vunpack.c.h.s8.bf16 %v1115_v49  ;;  %v1118_v59 = vld [vmem:[%s22382_s4 + $0x13c0] sm:$0xff] }
 0x66a   : > { %19072 = vmatprep.subr.bf16.mxu0 %v19071_v30  ;;  %v16276_v22 = vpop.f32.mrb[38].mxu1  ;;  %v1236_v30 = vld [vmem:[%s22382_s4 + $0x1770] sm:$0xff]  ;;  %v20189_v56 = vunpack.c.l.s8.bf16 %v1118_v59  ;;  %v20193_v44 = vunpack.c.h.s8.bf16 %v1118_v59 }
 0x66b   : > { %v16277_v12 = vpop.f32.mrb[39].mxu1  ;;  %v19101_v55 = vunpack.c.l.s8.bf16 %v1236_v30  ;;  %v19105_v41 = vunpack.c.h.s8.bf16 %v1236_v30  ;;  %v1248_v59 = vld [vmem:[%s22382_s4 + $0x17d0] sm:$0xff] }
 0x66c   : > { %v16278_v46 = vadd.f32 %v16277_v12, %v16276_v22  ;;  %20162 = vmatpush3.bf16.msra.mxu1 %v20161_v1  ;;  %v20191_v1 = vunpack.c.h.s8.bf16 %v1130_v25 }
 0x66d   : > { %19074 = vmatpush1.bf16.msra.mxu0 %v19073_v38  ;;  %20164 = vmatprep.subr.bf16.mxu1 %v20163_v36  ;;  %v19103_v38 = vunpack.c.h.s8.bf16 %v1237_v9  ;;  %v1133_v36 = vld [vmem:[%s22382_s4 + $0x1438] sm:$0xff] }
 0x66e   : > { %19076 = vmatprep.subr.bf16.mxu0 %v19075_v61  ;;  %v23597_v60 = vadd.f32 %v16278_v46, %v23576_v4  ;;  %v23606_v4 = vrot.slane %v8338_v23, %v22435_v51  ;;  %v1240_v61 = vld [vmem:[%s22382_s4 + $0x1790] sm:$0xff]  ;;  %v20195_v12 = vunpack.c.l.s8.bf16 %v1133_v36  ;;  %v1239_v46 = vld [vmem:[%s22382_s4 + $0x1788] sm:$0xff] }
 0x66f   : > { %v19107_v22 = vunpack.c.l.s8.bf16 %v1240_v61  ;;  %v19109_v57 = vunpack.c.l.s8.bf16 %v1239_v46  ;;  %v19111_v23 = vunpack.c.h.s8.bf16 %v1240_v61  ;;  %v19113_v8 = vunpack.c.h.s8.bf16 %v1239_v46 }
 0x670   : > { %20166 = vmatpush3.bf16.msra.mxu1 %v20165_v45  ;;  %v23612_v58 = vcombine.high %v23606_v4, %v23606_v4 }
 0x671   : > { %19078 = vmatpush1.bf16.msra.mxu0 %v19077_v54  ;;  %20168 = vmatprep.subr.bf16.mxu1 %v20167_v26  ;;  %v1121_v54 = vld [vmem:[%s22382_s4 + $0x13d8] sm:$0xff] }
 0x672   : > { %19080 = vmatprep.subr.bf16.mxu0 %v19079_v29  ;;  %v20197_v20 = vunpack.c.l.s8.bf16 %v1121_v54  ;;  %v20201_v14 = vunpack.c.h.s8.bf16 %v1121_v54  ;;  %v1251_v54 = vld [vmem:[%s22382_s4 + $0x17e8] sm:$0xff] }
 0x674   : > { %20170 = vmatpush3.bf16.msra.mxu1 %v20169_v32 }
 0x675   : > { %19082 = vmatpush1.bf16.msra.mxu0 %v19081_v40  ;;  %20172 = vmatprep.subr.bf16.mxu1 %v20171_v50  ;;  %v20199_v40 = vunpack.c.h.s8.bf16 %v1133_v36  ;;  %v1148_v50 = vld [vmem:[%s22382_s4 + $0x14b0] sm:$0xff] }
 0x676   : > { %19084 = vmatprep.subr.bf16.mxu0 %v19083_v0  ;;  %v1243_v0 = vld [vmem:[%s22382_s4 + $0x17a8] sm:$0xff]  ;;  %v1252_v36 = vld [vmem:[%s22382_s4 + $0x17f0] sm:$0xff] }
 0x677   : > { %12750 = vmatmul.mubr.f32.vlgmr.msra.gmra.mrb[52].mxu1 %v23282_v21  ;;  %v19093_v21 = vunpack.c.l.s8.bf16 %v1233_v24 }
 0x678   : > { %10645 = vmatmul.mubr.f32.vlgmr.msra.gmra.mrb[0].mxu0 %v23553_v35  ;;  %20174 = vmatpush3.bf16.msra.mxu1 %v20173_v3  ;;  %v20203_v3 = vunpack.c.l.s8.bf16 %v1148_v50 }
 0x679   : > { %19086 = vmatpush1.bf16.msra.mxu0 %v19085_v52  ;;  %20176 = vmatprep.subr.bf16.mxu1 %v20175_v7  ;;  %v19115_v52 = vunpack.c.l.s8.bf16 %v1243_v0  ;;  %v1136_v7 = vld [vmem:[%s22382_s4 + $0x1450] sm:$0xff] }
 0x67a   : > { %19088 = vmatprep.subr.bf16.mxu0 %v19087_v43  ;;  %12819 = vmatprep.mubr.f32.mxu1 %v23343_v2  ;;  %v19099_v2 = vunpack.c.l.s8.bf16 %v1237_v9  ;;  %v1242_v43 = vld [vmem:[%s22382_s4 + $0x17a0] sm:$0xff]  ;;  %v20205_v27 = vunpack.c.l.s8.bf16 %v1136_v7  ;;  %v20209_v24 = vunpack.c.h.s8.bf16 %v1136_v7 }
 0x67b   : > { %10715 = vmatprep.mubr.f32.mxu0 %v23612_v58  ;;  %v19117_v15 = vunpack.c.l.s8.bf16 %v1242_v43 }
 0x67c   : > { %20178 = vmatpush3.bf16.msra.mxu1 %v20177_v33  ;;  %v1246_v33 = vld [vmem:[%s22382_s4 + $0x17c0] sm:$0xff] }
 0x67d   : > { %19090 = vmatpush1.bf16.msra.mxu0 %v19089_v13  ;;  %20180 = vmatprep.subr.bf16.mxu1 %v20179_v48  ;;  %v20207_v13 = vunpack.c.h.s8.bf16 %v1148_v50  ;;  %v19121_v48 = vunpack.c.h.s8.bf16 %v1242_v43  ;;  %v19123_v49 = vunpack.c.l.s8.bf16 %v1246_v33 }
 0x67e   : > { %19092 = vmatprep.subr.bf16.mxu0 %v19091_v6  ;;  %v1151_v6 = vld [vmem:[%s22382_s4 + $0x14c8] sm:$0xff] }
 0x67f   : > { %v20215_v25 = vunpack.c.h.s8.bf16 %v1151_v6 }
 0x680   : > { %20182 = vmatpush3.bf16.msra.mxu1 %v20181_v37  ;;  %v1245_v37 = vld [vmem:[%s22382_s4 + $0x17b8] sm:$0xff] }
 0x681   : > { %19094 = vmatpush1.bf16.msra.mxu0 %v19093_v21  ;;  %20184 = vmatprep.subr.bf16.mxu1 %v20183_v53  ;;  %v20211_v21 = vunpack.c.l.s8.bf16 %v1151_v6  ;;  %v19125_v53 = vunpack.c.l.s8.bf16 %v1245_v37 }
 0x682   : > { %19096 = vmatprep.subr.bf16.mxu0 %v19095_v10  ;;  %v1139_v10 = vld [vmem:[%s22382_s4 + $0x1468] sm:$0xff] }
 0x683   : > { %v20213_v9 = vunpack.c.l.s8.bf16 %v1139_v10 }
 0x684   : > { %20186 = vmatpush3.bf16.msra.mxu1 %v20185_v47  ;;  %v1154_v47 = vld [vmem:[%s22382_s4 + $0x14e0] sm:$0xff] }
 0x685   : > { %19098 = vmatpush1.bf16.msra.mxu0 %v19097_v5  ;;  %20188 = vmatprep.subr.bf16.mxu1 %v20187_v31  ;;  %v1249_v5 = vld [vmem:[%s22382_s4 + $0x17d8] sm:$0xff]  ;;  %v20217_v31 = vunpack.c.h.s8.bf16 %v1139_v10  ;;  %v20219_v30 = vunpack.c.l.s8.bf16 %v1154_v47  ;;  %v20223_v61 = vunpack.c.h.s8.bf16 %v1154_v47 }
 0x686   : > { %19100 = vmatprep.subr.bf16.mxu0 %v19099_v2  ;;  %v19129_v2 = vunpack.c.h.s8.bf16 %v1245_v37 }
 0x688   : > { %20190 = vmatpush3.bf16.msra.mxu1 %v20189_v56  ;;  %v19133_v56 = vunpack.c.l.s8.bf16 %v1248_v59 }
 0x689   : > { %19102 = vmatpush1.bf16.msra.mxu0 %v19101_v55  ;;  %20192 = vmatprep.subr.bf16.mxu1 %v20191_v1  ;;  %v1142_v55 = vld [vmem:[%s22382_s4 + $0x1480] sm:$0xff]  ;;  %v19135_v1 = vunpack.c.h.s8.bf16 %v1249_v5 }
 0x68a   : > { %19104 = vmatprep.subr.bf16.mxu0 %v19103_v38  ;;  %v16311_v45 = vpop.f32.mrb[40].mxu1  ;;  %v20221_v38 = vunpack.c.l.s8.bf16 %v1142_v55 }
 0x68b   : > { %v16312_v29 = vpop.f32.mrb[41].mxu1 }
 0x68c   : > { %v16313_v26 = vadd.f32 %v16312_v29, %v16311_v45  ;;  %20194 = vmatpush3.bf16.msra.mxu1 %v20193_v44  ;;  %v19137_v44 = vunpack.c.h.s8.bf16 %v1248_v59  ;;  %v1145_v45 = vld [vmem:[%s22382_s4 + $0x1498] sm:$0xff] }
 0x68d   : > { %19106 = vmatpush1.bf16.msra.mxu0 %v19105_v41  ;;  %20196 = vmatprep.subr.bf16.mxu1 %v20195_v12  ;;  %v1157_v41 = vld [vmem:[%s22382_s4 + $0x14f8] sm:$0xff]  ;;  %v19139_v12 = vunpack.c.l.s8.bf16 %v1252_v36  ;;  %v20233_v43 = vunpack.c.h.s8.bf16 %v1145_v45 }
 0x68e   : > { %19108 = vmatprep.subr.bf16.mxu0 %v19107_v22  ;;  %v23629_v32 = vadd.f32 %v16313_v26, %v23597_v60  ;;  %v19119_v60 = vunpack.c.h.s8.bf16 %v1243_v0  ;;  %v20225_v22 = vunpack.c.h.s8.bf16 %v1142_v55  ;;  %v20227_v46 = vunpack.c.l.s8.bf16 %v1157_v41 }
 0x68f   : > { %v20231_v0 = vunpack.c.h.s8.bf16 %v1157_v41 }
 0x690   : > { %20198 = vmatpush3.bf16.msra.mxu1 %v20197_v20  ;;  %v19141_v20 = vunpack.c.l.s8.bf16 %v1251_v54 }
 0x691   : > { %19110 = vmatpush1.bf16.msra.mxu0 %v19109_v57  ;;  %20200 = vmatprep.subr.bf16.mxu1 %v20199_v40  ;;  %v19143_v40 = vunpack.c.h.s8.bf16 %v1252_v36 }
 0x692   : > { %19112 = vmatprep.subr.bf16.mxu0 %v19111_v23  ;;  %v20229_v23 = vunpack.c.l.s8.bf16 %v1145_v45 }
 0x694   : > { %20202 = vmatpush3.bf16.msra.mxu1 %v20201_v14  ;;  %v1172_v14 = vld [vmem:[%s22382_s4 + $0x1570] sm:$0xff] }
 0x695   : > { %19114 = vmatpush1.bf16.msra.mxu0 %v19113_v8  ;;  %20204 = vmatprep.subr.bf16.mxu1 %v20203_v3  ;;  %v1255_v8 = vld [vmem:[%s22382_s4 + $0x1808] sm:$0xff]  ;;  %v19145_v3 = vunpack.c.h.s8.bf16 %v1251_v54 }
 0x696   : > { %19116 = vmatprep.subr.bf16.mxu0 %v19115_v52  ;;  %v23655_v52 = vld [vmem:[%s22408_s17 + $0x80] sm:$0xff]  ;;  %v19147_v7 = vunpack.c.l.s8.bf16 %v1255_v8  ;;  %v19151_v6 = vunpack.c.h.s8.bf16 %v1255_v8 }
 0x697   : > { %12820 = vmatmul.mubr.f32.vlgmr.msra.gmra.mrb[54].mxu1 %v23337_v16  ;;  %v19127_v16 = vunpack.c.h.s8.bf16 %v1246_v33 }
 0x698   : > { %20206 = vmatpush3.bf16.msra.mxu1 %v20205_v27  ;;  %12889 = vmatprep.mubr.f32.mxu1 %v23396_v19  ;;  %v19131_v19 = vunpack.c.l.s8.bf16 %v1249_v5  ;;  %v1254_v27 = vld [vmem:[%s22382_s4 + $0x1800] sm:$0xff] }
 0x699   : > { %19118 = vmatpush1.bf16.msra.mxu0 %v19117_v15  ;;  %20208 = vmatprep.subr.bf16.mxu1 %v20207_v13  ;;  %v20235_v15 = vunpack.c.l.s8.bf16 %v1172_v14  ;;  %v19149_v13 = vunpack.c.l.s8.bf16 %v1254_v27  ;;  %v19153_v37 = vunpack.c.h.s8.bf16 %v1254_v27 }
 0x69a   : > { %19120 = vmatprep.subr.bf16.mxu0 %v19119_v60  ;;  %v1160_v60 = vld [vmem:[%s22382_s4 + $0x1510] sm:$0xff] }
 0x69b   : > { %v20237_v33 = vunpack.c.l.s8.bf16 %v1160_v60  ;;  %v20241_v10 = vunpack.c.h.s8.bf16 %v1160_v60 }
 0x69c   : > { %20210 = vmatpush3.bf16.msra.mxu1 %v20209_v24  ;;  %v1258_v24 = vld [vmem:[%s22382_s4 + $0x1820] sm:$0xff] }
 0x69d   : > { %19122 = vmatpush1.bf16.msra.mxu0 %v19121_v48  ;;  %20212 = vmatprep.subr.bf16.mxu1 %v20211_v21  ;;  %v20239_v48 = vunpack.c.h.s8.bf16 %v1172_v14  ;;  %v19159_v47 = vunpack.c.h.s8.bf16 %v1258_v24 }
 0x69e   : > { %19124 = vmatprep.subr.bf16.mxu0 %v19123_v49  ;;  %v1175_v49 = vld [vmem:[%s22382_s4 + $0x1588] sm:$0xff] }
 0x6a0   : > { %20214 = vmatpush3.bf16.msra.mxu1 %v20213_v9  ;;  %v20243_v9 = vunpack.c.l.s8.bf16 %v1175_v49 }
 0x6a1   : > { %19126 = vmatpush1.bf16.msra.mxu0 %v19125_v53  ;;  %20216 = vmatprep.subr.bf16.mxu1 %v20215_v25  ;;  %v19155_v53 = vunpack.c.l.s8.bf16 %v1258_v24  ;;  %v1163_v25 = vld [vmem:[%s22382_s4 + $0x1528] sm:$0xff] }
 0x6a2   : > { %19128 = vmatprep.subr.bf16.mxu0 %v19127_v16  ;;  %v1257_v16 = vld [vmem:[%s22382_s4 + $0x1818] sm:$0xff]  ;;  %v20245_v5 = vunpack.c.l.s8.bf16 %v1163_v25  ;;  %v20249_v59 = vunpack.c.h.s8.bf16 %v1163_v25 }
 0x6a4   : > { %20218 = vmatpush3.bf16.msra.mxu1 %v20217_v31  ;;  %v1261_v31 = vld [vmem:[%s22382_s4 + $0x1838] sm:$0xff] }
 0x6a5   : > { %19130 = vmatpush1.bf16.msra.mxu0 %v19129_v2  ;;  %20220 = vmatprep.subr.bf16.mxu1 %v20219_v30  ;;  %v20247_v2 = vunpack.c.h.s8.bf16 %v1175_v49  ;;  %v19161_v30 = vunpack.c.h.s8.bf16 %v1257_v16  ;;  %v19167_v36 = vunpack.c.h.s8.bf16 %v1261_v31 }
 0x6a6   : > { %19132 = vmatprep.subr.bf16.mxu0 %v19131_v19  ;;  %v1178_v19 = vld [vmem:[%s22382_s4 + $0x15a0] sm:$0xff] }
 0x6a7   : > { %v20251_v55 = vunpack.c.l.s8.bf16 %v1178_v19  ;;  %v20255_v41 = vunpack.c.h.s8.bf16 %v1178_v19  ;;  %v1273_v19 = vld [vmem:[%s22382_s4 + $0x1898] sm:$0xff] }
 0x6a8   : > { %20222 = vmatpush3.bf16.msra.mxu1 %v20221_v38  ;;  %v1166_v38 = vld [vmem:[%s22382_s4 + $0x1540] sm:$0xff] }
 0x6a9   : > { %19134 = vmatpush1.bf16.msra.mxu0 %v19133_v56  ;;  %20224 = vmatprep.subr.bf16.mxu1 %v20223_v61  ;;  %v1260_v56 = vld [vmem:[%s22382_s4 + $0x1830] sm:$0xff]  ;;  %v20253_v61 = vunpack.c.l.s8.bf16 %v1166_v38 }
 0x6aa   : > { %19136 = vmatprep.subr.bf16.mxu0 %v19135_v1  ;;  %v16346_v29 = vpop.f32.mrb[42].mxu1  ;;  %v19165_v1 = vunpack.c.l.s8.bf16 %v1260_v56 }
 0x6ab   : > { %v16347_v26 = vpop.f32.mrb[43].mxu1 }
 0x6ac   : > { %v16348_v57 = vadd.f32 %v16347_v26, %v16346_v29  ;;  %20226 = vmatpush3.bf16.msra.mxu1 %v20225_v22  ;;  %v1181_v22 = vld [vmem:[%s22382_s4 + $0x15b8] sm:$0xff]  ;;  %v1263_v29 = vld [vmem:[%s22382_s4 + $0x1848] sm:$0xff] }
 0x6ad   : > { %19138 = vmatpush1.bf16.msra.mxu0 %v19137_v44  ;;  %20228 = vmatprep.subr.bf16.mxu1 %v20227_v46  ;;  %v1264_v44 = vld [vmem:[%s22382_s4 + $0x1850] sm:$0xff]  ;;  %v20257_v46 = vunpack.c.h.s8.bf16 %v1166_v38  ;;  %v20259_v45 = vunpack.c.l.s8.bf16 %v1181_v22  ;;  %v1169_v26 = vld [vmem:[%s22382_s4 + $0x1558] sm:$0xff]  ;;  %v20263_v14 = vunpack.c.h.s8.bf16 %v1181_v22  ;;  %v1190_v38 = vld [vmem:[%s22382_s4 + $0x1600] sm:$0xff] }
 0x6ae   : > { %19140 = vmatprep.subr.bf16.mxu0 %v19139_v12  ;;  %v23650_v50 = vadd.f32 %v16348_v57, %v23629_v32  ;;  %v23661_v32 = vrot.slane %v23655_v52, %v22435_v51  ;;  %v19169_v12 = vunpack.c.h.s8.bf16 %v1260_v56  ;;  %v19171_v54 = vunpack.c.l.s8.bf16 %v1264_v44  ;;  %v1272_v56 = vld [vmem:[%s22382_s4 + $0x1890] sm:$0xff]  ;;  %v1205_v22 = vld [vmem:[%s22382_s4 + $0x1678] sm:$0xff] }
 0x6af   : > { %v19175_v8 = vunpack.c.h.s8.bf16 %v1264_v44  ;;  %v20265_v27 = vunpack.c.h.s8.bf16 %v1169_v26  ;;  %v1276_v44 = vld [vmem:[%s22382_s4 + $0x18b0] sm:$0xff] }
 0x6b0   : > { %20230 = vmatpush3.bf16.msra.mxu1 %v20229_v23  ;;  %v23667_v21 = vcombine.high %v23661_v32, %v23661_v32 }
 0x6b1   : > { %19142 = vmatpush1.bf16.msra.mxu0 %v19141_v20  ;;  %20232 = vmatprep.subr.bf16.mxu1 %v20231_v0  ;;  %v20261_v0 = vunpack.c.l.s8.bf16 %v1169_v26  ;;  %v1193_v26 = vld [vmem:[%s22382_s4 + $0x1618] sm:$0xff] }
 0x6b2   : > { %19144 = vmatprep.subr.bf16.mxu0 %v19143_v40  ;;  %v19173_v40 = vunpack.c.l.s8.bf16 %v1263_v29 }
 0x6b4   : > { %20234 = vmatpush3.bf16.msra.mxu1 %v20233_v43  ;;  %v1267_v43 = vld [vmem:[%s22382_s4 + $0x1868] sm:$0xff] }
 0x6b5   : > { %19146 = vmatpush1.bf16.msra.mxu0 %v19145_v3  ;;  %20236 = vmatprep.subr.bf16.mxu1 %v20235_v15  ;;  %v19177_v15 = vunpack.c.h.s8.bf16 %v1263_v29  ;;  %v19179_v60 = vunpack.c.l.s8.bf16 %v1267_v43  ;;  %v1275_v29 = vld [vmem:[%s22382_s4 + $0x18a8] sm:$0xff] }
 0x6b6   : > { %19148 = vmatprep.subr.bf16.mxu0 %v19147_v7  ;;  %v1196_v7 = vld [vmem:[%s22382_s4 + $0x1630] sm:$0xff] }
 0x6b7   : > { %12890 = vmatmul.mubr.f32.vlgmr.msra.gmra.mrb[56].mxu1 %v23390_v62  ;;  %v19157_v62 = vunpack.c.l.s8.bf16 %v1257_v16  ;;  %v20271_v49 = vunpack.c.h.s8.bf16 %v1196_v7 }
 0x6b8   : > { %10716 = vmatmul.mubr.f32.vlgmr.msra.gmra.mrb[0].mxu0 %v23606_v4  ;;  %20238 = vmatpush3.bf16.msra.mxu1 %v20237_v33  ;;  %v1266_v33 = vld [vmem:[%s22382_s4 + $0x1860] sm:$0xff] }
 0x6b9   : > { %19150 = vmatpush1.bf16.msra.mxu0 %v19149_v13  ;;  %20240 = vmatprep.subr.bf16.mxu1 %v20239_v48  ;;  %v20267_v13 = vunpack.c.l.s8.bf16 %v1196_v7  ;;  %v19181_v48 = vunpack.c.l.s8.bf16 %v1266_v33  ;;  %v1279_v7 = vld [vmem:[%s22382_s4 + $0x18c8] sm:$0xff] }
 0x6ba   : > { %19152 = vmatprep.subr.bf16.mxu0 %v19151_v6  ;;  %12959 = vmatprep.mubr.f32.mxu1 %v23451_v17  ;;  %v19163_v17 = vunpack.c.l.s8.bf16 %v1261_v31  ;;  %v1184_v6 = vld [vmem:[%s22382_s4 + $0x15d0] sm:$0xff] }
 0x6bb   : > { %10786 = vmatprep.mubr.f32.mxu0 %v23667_v21  ;;  %v20269_v24 = vunpack.c.l.s8.bf16 %v1184_v6 }
 0x6bc   : > { %20242 = vmatpush3.bf16.msra.mxu1 %v20241_v10  ;;  %v1199_v10 = vld [vmem:[%s22382_s4 + $0x1648] sm:$0xff] }
 0x6bd   : > { %19154 = vmatpush1.bf16.msra.mxu0 %v19153_v37  ;;  %20244 = vmatprep.subr.bf16.mxu1 %v20243_v9  ;;  %v1270_v37 = vld [vmem:[%s22382_s4 + $0x1880] sm:$0xff]  ;;  %v20273_v9 = vunpack.c.h.s8.bf16 %v1184_v6  ;;  %v20275_v25 = vunpack.c.l.s8.bf16 %v1199_v10  ;;  %v20279_v31 = vunpack.c.h.s8.bf16 %v1199_v10 }
 0x6be   : > { %19156 = vmatprep.subr.bf16.mxu0 %v19155_v53  ;;  %v19185_v53 = vunpack.c.h.s8.bf16 %v1266_v33  ;;  %v19187_v16 = vunpack.c.l.s8.bf16 %v1270_v37  ;;  %v19211_v33 = vunpack.c.l.s8.bf16 %v1279_v7  ;;  %v1282_v10 = vld [vmem:[%s22382_s4 + $0x18e0] sm:$0xff] }
 0x6c0   : > { %20246 = vmatpush3.bf16.msra.mxu1 %v20245_v5  ;;  %v1187_v5 = vld [vmem:[%s22382_s4 + $0x15e8] sm:$0xff] }
 0x6c1   : > { %19158 = vmatpush1.bf16.msra.mxu0 %v19157_v62  ;;  %20248 = vmatprep.subr.bf16.mxu1 %v20247_v2  ;;  %v1269_v62 = vld [vmem:[%s22382_s4 + $0x1878] sm:$0xff]  ;;  %v20277_v2 = vunpack.c.l.s8.bf16 %v1187_v5 }
 0x6c2   : > { %19160 = vmatprep.subr.bf16.mxu0 %v19159_v47  ;;  %v19189_v47 = vunpack.c.l.s8.bf16 %v1269_v62 }
 0x6c4   : > { %20250 = vmatpush3.bf16.msra.mxu1 %v20249_v59  ;;  %v19193_v59 = vunpack.c.h.s8.bf16 %v1269_v62  ;;  %v19219_v62 = vunpack.c.l.s8.bf16 %v1282_v10 }
 0x6c5   : > { %19162 = vmatpush1.bf16.msra.mxu0 %v19161_v30  ;;  %20252 = vmatprep.subr.bf16.mxu1 %v20251_v55  ;;  %v1202_v30 = vld [vmem:[%s22382_s4 + $0x1660] sm:$0xff] }
 0x6c6   : > { %19164 = vmatprep.subr.bf16.mxu0 %v19163_v17  ;;  %v20281_v17 = vunpack.c.h.s8.bf16 %v1187_v5  ;;  %v20283_v55 = vunpack.c.l.s8.bf16 %v1202_v30 }
 0x6c8   : > { %20254 = vmatpush3.bf16.msra.mxu1 %v20253_v61  ;;  %v20285_v61 = vunpack.c.l.s8.bf16 %v1190_v38 }
 0x6c9   : > { %19166 = vmatpush1.bf16.msra.mxu0 %v19165_v1  ;;  %20256 = vmatprep.subr.bf16.mxu1 %v20255_v41  ;;  %v19197_v1 = vunpack.c.l.s8.bf16 %v1272_v56  ;;  %v20287_v41 = vunpack.c.h.s8.bf16 %v1202_v30  ;;  %v1285_v30 = vld [vmem:[%s22382_s4 + $0x18f8] sm:$0xff] }
 0x6ca   : > { %19168 = vmatprep.subr.bf16.mxu0 %v19167_v36  ;;  %v16381_v57 = vpop.f32.mrb[44].mxu1  ;;  %v19199_v36 = vunpack.c.h.s8.bf16 %v1273_v19 }
 0x6cb   : > { %v16382_v20 = vpop.f32.mrb[45].mxu1 }
 0x6cc   : > { %v16383_v23 = vadd.f32 %v16382_v20, %v16381_v57  ;;  %20258 = vmatpush3.bf16.msra.mxu1 %v20257_v46  ;;  %v20289_v46 = vunpack.c.h.s8.bf16 %v1190_v38  ;;  %v1214_v38 = vld [vmem:[%s22382_s4 + $0x16c0] sm:$0xff] }
 0x6cd   : > { %19170 = vmatpush1.bf16.msra.mxu0 %v19169_v12  ;;  %20260 = vmatprep.subr.bf16.mxu1 %v20259_v45  ;;  %v19201_v12 = vunpack.c.h.s8.bf16 %v1272_v56  ;;  %v20291_v45 = vunpack.c.l.s8.bf16 %v1205_v22  ;;  %v1284_v56 = vld [vmem:[%s22382_s4 + $0x18f0] sm:$0xff] }
 0x6ce   : > { %19172 = vmatprep.subr.bf16.mxu0 %v19171_v54  ;;  %v23684_v3 = vadd.f32 %v16383_v23, %v23650_v50  ;;  %v19183_v50 = vunpack.c.h.s8.bf16 %v1267_v43  ;;  %v19203_v54 = vunpack.c.l.s8.bf16 %v1276_v44 }
 0x6d0   : > { %20262 = vmatpush3.bf16.msra.mxu1 %v20261_v0  ;;  %v20293_v0 = vunpack.c.l.s8.bf16 %v1193_v26 }
 0x6d1   : > { %19174 = vmatpush1.bf16.msra.mxu0 %v19173_v40  ;;  %20264 = vmatprep.subr.bf16.mxu1 %v20263_v14  ;;  %v19205_v40 = vunpack.c.l.s8.bf16 %v1275_v29  ;;  %v20295_v14 = vunpack.c.h.s8.bf16 %v1205_v22  ;;  %v1229_v22 = vld [vmem:[%s22382_s4 + $0x1738] sm:$0xff] }
 0x6d2   : > { %19176 = vmatprep.subr.bf16.mxu0 %v19175_v8  ;;  %v19207_v8 = vunpack.c.h.s8.bf16 %v1276_v44  ;;  %v1288_v44 = vld [vmem:[%s22382_s4 + $0x1910] sm:$0xff] }
 0x6d4   : > { %20266 = vmatpush3.bf16.msra.mxu1 %v20265_v27  ;;  %v8355_v27 = vcombine.high %v23655_v52, %v23655_v52  ;;  %v19215_v52 = vunpack.c.h.s8.bf16 %v1279_v7 }
 0x6d5   : > { %19178 = vmatpush1.bf16.msra.mxu0 %v19177_v15  ;;  %20268 = vmatprep.subr.bf16.mxu1 %v20267_v13  ;;  %v1220_v15 = vld [vmem:[%s22382_s4 + $0x16f0] sm:$0xff]  ;;  %v20297_v13 = vunpack.c.h.s8.bf16 %v1193_v26  ;;  %v1217_v26 = vld [vmem:[%s22382_s4 + $0x16d8] sm:$0xff] }
 0x6d6   : > { %19180 = vmatprep.subr.bf16.mxu0 %v19179_v60  ;;  %v19209_v60 = vunpack.c.h.s8.bf16 %v1275_v29  ;;  %v20299_v6 = vunpack.c.l.s8.bf16 %v1220_v15  ;;  %v1287_v29 = vld [vmem:[%s22382_s4 + $0x1908] sm:$0xff] }
 0x6d7   : > { %12960 = vmatmul.mubr.f32.vlgmr.msra.gmra.mrb[58].mxu1 %v23445_v42  ;;  %v19191_v42 = vunpack.c.h.s8.bf16 %v1270_v37  ;;  %v20303_v37 = vunpack.c.h.s8.bf16 %v1220_v15  ;;  %v1291_v15 = vld [vmem:[%s22382_s4 + $0x1928] sm:$0xff] }
 0x6d8   : > { %20270 = vmatpush3.bf16.msra.mxu1 %v20269_v24  ;;  %13029 = vmatprep.mubr.f32.mxu1 %v23504_v28  ;;  %v19195_v28 = vunpack.c.l.s8.bf16 %v1273_v19  ;;  %v1208_v24 = vld [vmem:[%s22382_s4 + $0x1690] sm:$0xff] }
 0x6d9   : > { %19182 = vmatpush1.bf16.msra.mxu0 %v19181_v48  ;;  %20272 = vmatprep.subr.bf16.mxu1 %v20271_v49  ;;  %v1278_v48 = vld [vmem:[%s22382_s4 + $0x18c0] sm:$0xff]  ;;  %v20301_v49 = vunpack.c.l.s8.bf16 %v1208_v24 }
 0x6da   : > { %19184 = vmatprep.subr.bf16.mxu0 %v19183_v50  ;;  %v19213_v50 = vunpack.c.l.s8.bf16 %v1278_v48 }
 0x6dc   : > { %20274 = vmatpush3.bf16.msra.mxu1 %v20273_v9 }
 0x6dd   : > { %19186 = vmatpush1.bf16.msra.mxu0 %v19185_v53  ;;  %20276 = vmatprep.subr.bf16.mxu1 %v20275_v25  ;;  %v1223_v53 = vld [vmem:[%s22382_s4 + $0x1708] sm:$0xff]  ;;  %v20305_v25 = vunpack.c.h.s8.bf16 %v1208_v24  ;;  %v1232_v24 = vld [vmem:[%s22382_s4 + $0x1750] sm:$0xff] }
 0x6de   : > { %19188 = vmatprep.subr.bf16.mxu0 %v19187_v16  ;;  %v19217_v16 = vunpack.c.h.s8.bf16 %v1278_v48  ;;  %v20307_v5 = vunpack.c.l.s8.bf16 %v1223_v53  ;;  %v20311_v19 = vunpack.c.h.s8.bf16 %v1223_v53  ;;  %v1290_v48 = vld [vmem:[%s22382_s4 + $0x1920] sm:$0xff] }
 0x6df   : > { %v19249_v53 = vunpack.c.h.s8.bf16 %v1290_v48 }
 0x6e0   : > { %20278 = vmatpush3.bf16.msra.mxu1 %v20277_v2  ;;  %v1211_v2 = vld [vmem:[%s22382_s4 + $0x16a8] sm:$0xff] }
 0x6e1   : > { %19190 = vmatpush1.bf16.msra.mxu0 %v19189_v47  ;;  %20280 = vmatprep.subr.bf16.mxu1 %v20279_v31  ;;  %v1281_v47 = vld [vmem:[%s22382_s4 + $0x18d8] sm:$0xff]  ;;  %v19223_v31 = vunpack.c.h.s8.bf16 %v1282_v10  ;;  %v1247_v10 = vld [vmem:[%s22382_s4 + $0x17c8] sm:$0xff] }
 0x6e2   : > { %19192 = vmatprep.subr.bf16.mxu0 %v19191_v42  ;;  %v20309_v42 = vunpack.c.l.s8.bf16 %v1211_v2 }
 0x6e4   : > { %20282 = vmatpush3.bf16.msra.mxu1 %v20281_v17  ;;  %v19225_v17 = vunpack.c.h.s8.bf16 %v1281_v47 }
 0x6e5   : > { %19194 = vmatpush1.bf16.msra.mxu0 %v19193_v59  ;;  %20284 = vmatprep.subr.bf16.mxu1 %v20283_v55  ;;  %v1226_v59 = vld [vmem:[%s22382_s4 + $0x1720] sm:$0xff] }
 0x6e6   : > { %19196 = vmatprep.subr.bf16.mxu0 %v19195_v28  ;;  %v20313_v28 = vunpack.c.h.s8.bf16 %v1211_v2  ;;  %v20315_v55 = vunpack.c.l.s8.bf16 %v1226_v59 }
 0x6e8   : > { %20286 = vmatpush3.bf16.msra.mxu1 %v20285_v61  ;;  %v20317_v61 = vunpack.c.l.s8.bf16 %v1214_v38 }
 0x6e9   : > { %19198 = vmatpush1.bf16.msra.mxu0 %v19197_v1  ;;  %20288 = vmatprep.subr.bf16.mxu1 %v20287_v41  ;;  %v19229_v1 = vunpack.c.l.s8.bf16 %v1284_v56  ;;  %v20319_v41 = vunpack.c.h.s8.bf16 %v1226_v59 }
 0x6ea   : > { %19200 = vmatprep.subr.bf16.mxu0 %v19199_v36  ;;  %v16416_v57 = vpop.f32.mrb[46].mxu1  ;;  %v19231_v36 = vunpack.c.h.s8.bf16 %v1285_v30 }
 0x6eb   : > { %v16417_v20 = vpop.f32.mrb[47].mxu1 }
 0x6ec   : > { %v16418_v23 = vadd.f32 %v16417_v20, %v16416_v57  ;;  %20290 = vmatpush3.bf16.msra.mxu1 %v20289_v46  ;;  %v20321_v46 = vunpack.c.h.s8.bf16 %v1214_v38 }
 0x6ed   : > { %19202 = vmatpush1.bf16.msra.mxu0 %v19201_v12  ;;  %20292 = vmatprep.subr.bf16.mxu1 %v20291_v45  ;;  %v19233_v12 = vunpack.c.h.s8.bf16 %v1284_v56  ;;  %v20323_v45 = vunpack.c.l.s8.bf16 %v1229_v22 }
 0x6ee   : > { %19204 = vmatprep.subr.bf16.mxu0 %v19203_v54  ;;  %v23705_v43 = vadd.f32 %v16418_v23, %v23684_v3  ;;  %v23714_v3 = vrot.slane %v8355_v27, %v22435_v51  ;;  %v19235_v54 = vunpack.c.l.s8.bf16 %v1288_v44  ;;  %v1244_v27 = vld [vmem:[%s22382_s4 + $0x17b0] sm:$0xff] }
 0x6f0   : > { %20294 = vmatpush3.bf16.msra.mxu1 %v20293_v0  ;;  %v23720_v9 = vcombine.high %v23714_v3, %v23714_v3  ;;  %v20325_v0 = vunpack.c.l.s8.bf16 %v1217_v26 }
 0x6f1   : > { %19206 = vmatpush1.bf16.msra.mxu0 %v19205_v40  ;;  %20296 = vmatprep.subr.bf16.mxu1 %v20295_v14  ;;  %v19237_v40 = vunpack.c.l.s8.bf16 %v1287_v29  ;;  %v20327_v14 = vunpack.c.h.s8.bf16 %v1229_v22 }
 0x6f2   : > { %19208 = vmatprep.subr.bf16.mxu0 %v19207_v8  ;;  %v19239_v8 = vunpack.c.h.s8.bf16 %v1288_v44 }
 0x6f4   : > { %20298 = vmatpush3.bf16.msra.mxu1 %v20297_v13  ;;  %v20329_v13 = vunpack.c.h.s8.bf16 %v1217_v26 }
 0x6f5   : > { %19210 = vmatpush1.bf16.msra.mxu0 %v19209_v60  ;;  %20300 = vmatprep.subr.bf16.mxu1 %v20299_v6  ;;  %v19241_v60 = vunpack.c.h.s8.bf16 %v1287_v29  ;;  %v20331_v6 = vunpack.c.l.s8.bf16 %v1244_v27 }
 0x6f6   : > { %19212 = vmatprep.subr.bf16.mxu0 %v19211_v33  ;;  %v19243_v33 = vunpack.c.l.s8.bf16 %v1291_v15 }
 0x6f7   : > { %13030 = vmatmul.mubr.f32.vlgmr.msra.gmra.mrb[60].mxu1 %v23498_v18  ;;  %v19221_v18 = vunpack.c.l.s8.bf16 %v1281_v47  ;;  %v1235_v47 = vld [vmem:[%s22382_s4 + $0x1768] sm:$0xff] }
 0x6f8   : > { %10787 = vmatmul.mubr.f32.vlgmr.msra.gmra.mrb[0].mxu0 %v23661_v32  ;;  %20302 = vmatpush3.bf16.msra.mxu1 %v20301_v49  ;;  %v20333_v49 = vunpack.c.l.s8.bf16 %v1232_v24  ;;  %v20345_v59 = vunpack.c.h.s8.bf16 %v1235_v47 }
 0x6f9   : > { %19214 = vmatpush1.bf16.msra.mxu0 %v19213_v50  ;;  %20304 = vmatprep.subr.bf16.mxu1 %v20303_v37  ;;  %v19245_v50 = vunpack.c.l.s8.bf16 %v1290_v48  ;;  %v1294_v37 = vld [vmem:[%s22382_s4 + $0x1940] sm:$0xff]  ;;  %v23765_v48 = vld.sshfl [vmem:[%s22408_s17 + $0x88] sm:$0x33 pattern:$0x76325410] }
 0x6fa   : > { %19216 = vmatprep.subr.bf16.mxu0 %v19215_v52  ;;  %13099 = vmatprep.mubr.f32.mxu1 %v23559_v34  ;;  %v19227_v34 = vunpack.c.l.s8.bf16 %v1285_v30  ;;  %v20335_v52 = vunpack.c.h.s8.bf16 %v1244_v27 }
 0x6fb   : > { %10857 = vmatprep.mubr.f32.mxu0 %v23720_v9 }
 0x6fc   : > { %20306 = vmatpush3.bf16.msra.mxu1 %v20305_v25  ;;  %v19251_v25 = vunpack.c.l.s8.bf16 %v1294_v37 }
 0x6fd   : > { %19218 = vmatpush1.bf16.msra.mxu0 %v19217_v16  ;;  %20308 = vmatprep.subr.bf16.mxu1 %v20307_v5  ;;  %v20337_v16 = vunpack.c.h.s8.bf16 %v1232_v24  ;;  %v1293_v5 = vld [vmem:[%s22382_s4 + $0x1938] sm:$0xff] }
 0x6fe   : > { %19220 = vmatprep.subr.bf16.mxu0 %v19219_v62  ;;  %v20339_v62 = vunpack.c.l.s8.bf16 %v1247_v10  ;;  %v19253_v2 = vunpack.c.l.s8.bf16 %v1293_v5  ;;  %v19257_v30 = vunpack.c.h.s8.bf16 %v1293_v5  ;;  %v1259_v5 = vld [vmem:[%s22382_s4 + $0x1828] sm:$0xff] }
 0x700   : > { %20310 = vmatpush3.bf16.msra.mxu1 %v20309_v42  ;;  %v20343_v42 = vunpack.c.h.s8.bf16 %v1247_v10 }
 0x701   : > { %19222 = vmatpush1.bf16.msra.mxu0 %v19221_v18  ;;  %20312 = vmatprep.subr.bf16.mxu1 %v20311_v19  ;;  %v20341_v18 = vunpack.c.l.s8.bf16 %v1235_v47  ;;  %v1250_v19 = vld [vmem:[%s22382_s4 + $0x17e0] sm:$0xff]  ;;  %v20373_v47 = vunpack.c.l.s8.bf16 %v1259_v5 }
 0x702   : > { %19224 = vmatprep.subr.bf16.mxu0 %v19223_v31  ;;  %v1297_v31 = vld [vmem:[%s22382_s4 + $0x1958] sm:$0xff] }
 0x703   : > { %v19263_v38 = vunpack.c.h.s8.bf16 %v1297_v31 }
 0x704   : > { %20314 = vmatpush3.bf16.msra.mxu1 %v20313_v28  ;;  %v1296_v28 = vld [vmem:[%s22382_s4 + $0x1950] sm:$0xff] }
 0x705   : > { %19226 = vmatpush1.bf16.msra.mxu0 %v19225_v17  ;;  %20316 = vmatprep.subr.bf16.mxu1 %v20315_v55  ;;  %v20347_v17 = vunpack.c.l.s8.bf16 %v1250_v19  ;;  %v19261_v55 = vunpack.c.l.s8.bf16 %v1296_v28 }
 0x706   : > { %19228 = vmatprep.subr.bf16.mxu0 %v19227_v34  ;;  %v1238_v34 = vld [vmem:[%s22382_s4 + $0x1780] sm:$0xff] }
 0x707   : > { %v20349_v56 = vunpack.c.l.s8.bf16 %v1238_v34  ;;  %v20353_v44 = vunpack.c.h.s8.bf16 %v1238_v34 }
 0x708   : > { %20318 = vmatpush3.bf16.msra.mxu1 %v20317_v61  ;;  %v1300_v61 = vld [vmem:[%s22382_s4 + $0x1970] sm:$0xff] }
 0x709   : > { %19230 = vmatpush1.bf16.msra.mxu0 %v19229_v1  ;;  %20320 = vmatprep.subr.bf16.mxu1 %v20319_v41  ;;  %v20351_v1 = vunpack.c.h.s8.bf16 %v1250_v19  ;;  %v19265_v41 = vunpack.c.h.s8.bf16 %v1296_v28  ;;  %v19267_v22 = vunpack.c.l.s8.bf16 %v1300_v61  ;;  %v20377_v19 = vunpack.c.h.s8.bf16 %v1259_v5 }
 0x70a   : > { %19232 = vmatprep.subr.bf16.mxu0 %v19231_v36  ;;  %v16451_v57 = vpop.f32.mrb[48].mxu1  ;;  %v1253_v36 = vld [vmem:[%s22382_s4 + $0x17f8] sm:$0xff] }
 0x70b   : > { %v16452_v20 = vpop.f32.mrb[49].mxu1 }
 0x70c   : > { %v16453_v23 = vadd.f32 %v16452_v20, %v16451_v57  ;;  %20322 = vmatpush3.bf16.msra.mxu1 %v20321_v46  ;;  %v1299_v46 = vld [vmem:[%s22382_s4 + $0x1968] sm:$0xff] }
 0x70d   : > { %19234 = vmatpush1.bf16.msra.mxu0 %v19233_v12  ;;  %20324 = vmatprep.subr.bf16.mxu1 %v20323_v45  ;;  %v20355_v12 = vunpack.c.l.s8.bf16 %v1253_v36  ;;  %v19269_v57 = vunpack.c.l.s8.bf16 %v1299_v46 }
 0x70e   : > { %19236 = vmatprep.subr.bf16.mxu0 %v19235_v54  ;;  %v23737_v7 = vadd.f32 %v16453_v23, %v23705_v43  ;;  %v19247_v43 = vunpack.c.h.s8.bf16 %v1291_v15  ;;  %v1241_v54 = vld [vmem:[%s22382_s4 + $0x1798] sm:$0xff]  ;;  %v19271_v23 = vunpack.c.h.s8.bf16 %v1300_v61  ;;  %v19273_v15 = vunpack.c.h.s8.bf16 %v1299_v46 }
 0x70f   : > { %v20357_v20 = vunpack.c.l.s8.bf16 %v1241_v54  ;;  %v20361_v27 = vunpack.c.h.s8.bf16 %v1241_v54 }
 0x710   : > { %20326 = vmatpush3.bf16.msra.mxu1 %v20325_v0 }
 0x711   : > { %19238 = vmatpush1.bf16.msra.mxu0 %v19237_v40  ;;  %20328 = vmatprep.subr.bf16.mxu1 %v20327_v14  ;;  %v20359_v40 = vunpack.c.h.s8.bf16 %v1253_v36  ;;  %v1268_v14 = vld [vmem:[%s22382_s4 + $0x1870] sm:$0xff] }
 0x712   : > { %19240 = vmatprep.subr.bf16.mxu0 %v19239_v8  ;;  %v1303_v8 = vld [vmem:[%s22382_s4 + $0x1988] sm:$0xff] }
 0x714   : > { %20330 = vmatpush3.bf16.msra.mxu1 %v20329_v13  ;;  %v20363_v13 = vunpack.c.l.s8.bf16 %v1268_v14 }
 0x715   : > { %19242 = vmatpush1.bf16.msra.mxu0 %v19241_v60  ;;  %20332 = vmatprep.subr.bf16.mxu1 %v20331_v6  ;;  %v19275_v60 = vunpack.c.l.s8.bf16 %v1303_v8  ;;  %v1256_v6 = vld [vmem:[%s22382_s4 + $0x1810] sm:$0xff] }
 0x716   : > { %19244 = vmatprep.subr.bf16.mxu0 %v19243_v33  ;;  %v1302_v33 = vld [vmem:[%s22382_s4 + $0x1980] sm:$0xff]  ;;  %v20365_v24 = vunpack.c.l.s8.bf16 %v1256_v6 }
 0x717   : > { %13100 = vmatmul.mubr.f32.vlgmr.msra.gmra.mrb[62].mxu1 %v23553_v35  ;;  %v19255_v35 = vunpack.c.h.s8.bf16 %v1294_v37  ;;  %v23771_v37 = vcombine.high %v23765_v48, %v23765_v48  ;;  %v19281_v10 = vunpack.c.h.s8.bf16 %v1302_v33 }
 0x718   : > { %20334 = vmatpush3.bf16.msra.mxu1 %v20333_v49  ;;  %13169 = vmatprep.mubr.f32.mxu1 %v23612_v58  ;;  %v19259_v58 = vunpack.c.l.s8.bf16 %v1297_v31  ;;  %v20367_v49 = vunpack.c.h.s8.bf16 %v1268_v14 }
 0x719   : > { %19246 = vmatpush1.bf16.msra.mxu0 %v19245_v50  ;;  %20336 = vmatprep.subr.bf16.mxu1 %v20335_v52  ;;  %v19279_v50 = vunpack.c.h.s8.bf16 %v1303_v8  ;;  %v1271_v52 = vld [vmem:[%s22382_s4 + $0x1888] sm:$0xff] }
 0x71a   : > { %19248 = vmatprep.subr.bf16.mxu0 %v19247_v43  ;;  %v1306_v43 = vld [vmem:[%s22382_s4 + $0x19a0] sm:$0xff] }
 0x71c   : > { %20338 = vmatpush3.bf16.msra.mxu1 %v20337_v16  ;;  %v19283_v16 = vunpack.c.l.s8.bf16 %v1306_v43 }
 0x71d   : > { %19250 = vmatpush1.bf16.msra.mxu0 %v19249_v53  ;;  %20340 = vmatprep.subr.bf16.mxu1 %v20339_v62  ;;  %v20369_v53 = vunpack.c.h.s8.bf16 %v1256_v6  ;;  %v1305_v62 = vld [vmem:[%s22382_s4 + $0x1998] sm:$0xff] }
 0x71e   : > { %19252 = vmatprep.subr.bf16.mxu0 %v19251_v25  ;;  %v20371_v25 = vunpack.c.l.s8.bf16 %v1271_v52  ;;  %v19289_v31 = vunpack.c.h.s8.bf16 %v1305_v62 }
 0x720   : > { %20342 = vmatpush3.bf16.msra.mxu1 %v20341_v18  ;;  %v20375_v18 = vunpack.c.h.s8.bf16 %v1271_v52 }
 0x721   : > { %19254 = vmatpush1.bf16.msra.mxu0 %v19253_v2  ;;  %20344 = vmatprep.subr.bf16.mxu1 %v20343_v42  ;;  %v19287_v2 = vunpack.c.h.s8.bf16 %v1306_v43  ;;  %v1274_v42 = vld [vmem:[%s22382_s4 + $0x18a0] sm:$0xff] }
 0x722   : > { %19256 = vmatprep.subr.bf16.mxu0 %v19255_v35  ;;  %v1309_v35 = vld [vmem:[%s22382_s4 + $0x19b8] sm:$0xff] }
 0x723   : > { %v19295_v34 = vunpack.c.h.s8.bf16 %v1309_v35 }
 0x724   : > { %20346 = vmatpush3.bf16.msra.mxu1 %v20345_v59  ;;  %v1308_v59 = vld [vmem:[%s22382_s4 + $0x19b0] sm:$0xff] }
 0x725   : > { %19258 = vmatpush1.bf16.msra.mxu0 %v19257_v30  ;;  %20348 = vmatprep.subr.bf16.mxu1 %v20347_v17  ;;  %v20379_v30 = vunpack.c.l.s8.bf16 %v1274_v42  ;;  %v19293_v17 = vunpack.c.l.s8.bf16 %v1308_v59 }
 0x726   : > { %19260 = vmatprep.subr.bf16.mxu0 %v19259_v58  ;;  %v1262_v58 = vld [vmem:[%s22382_s4 + $0x1840] sm:$0xff] }
 0x727   : > { %v20381_v28 = vunpack.c.l.s8.bf16 %v1262_v58  ;;  %v20385_v61 = vunpack.c.h.s8.bf16 %v1262_v58  ;;  %v1324_v58 = vld [vmem:[%s22382_s4 + $0x1a30] sm:$0xff] }
 0x728   : > { %20350 = vmatpush3.bf16.msra.mxu1 %v20349_v56  ;;  %v1312_v56 = vld [vmem:[%s22382_s4 + $0x19d0] sm:$0xff] }
 0x729   : > { %19262 = vmatpush1.bf16.msra.mxu0 %v19261_v55  ;;  %20352 = vmatprep.subr.bf16.mxu1 %v20351_v1  ;;  %v20383_v55 = vunpack.c.h.s8.bf16 %v1274_v42  ;;  %v19297_v1 = vunpack.c.h.s8.bf16 %v1308_v59  ;;  %v19299_v36 = vunpack.c.l.s8.bf16 %v1312_v56  ;;  %v1320_v42 = vld [vmem:[%s22382_s4 + $0x1a10] sm:$0xff] }
 0x72a   : > { %19264 = vmatprep.subr.bf16.mxu0 %v19263_v38  ;;  %v16486_v45 = vpop.f32.mrb[50].mxu1  ;;  %v1277_v38 = vld [vmem:[%s22382_s4 + $0x18b8] sm:$0xff] }
 0x72b   : > { %v16487_v29 = vpop.f32.mrb[51].mxu1 }
 0x72c   : > { %v16488_v26 = vadd.f32 %v16487_v29, %v16486_v45  ;;  %20354 = vmatpush3.bf16.msra.mxu1 %v20353_v44  ;;  %v1311_v44 = vld [vmem:[%s22382_s4 + $0x19c8] sm:$0xff] }
 0x72d   : > { %19266 = vmatpush1.bf16.msra.mxu0 %v19265_v41  ;;  %20356 = vmatprep.subr.bf16.mxu1 %v20355_v12  ;;  %v20387_v41 = vunpack.c.l.s8.bf16 %v1277_v38  ;;  %v19301_v45 = vunpack.c.l.s8.bf16 %v1311_v44  ;;  %v19305_v8 = vunpack.c.h.s8.bf16 %v1311_v44 }
 0x72e   : > { %19268 = vmatprep.subr.bf16.mxu0 %v19267_v22  ;;  %v23758_v0 = vadd.f32 %v16488_v26, %v23737_v7  ;;  %v19277_v7 = vunpack.c.l.s8.bf16 %v1302_v33  ;;  %v1265_v22 = vld [vmem:[%s22382_s4 + $0x1858] sm:$0xff]  ;;  %v19303_v26 = vunpack.c.h.s8.bf16 %v1312_v56 }
 0x72f   : > { %v20389_v29 = vunpack.c.l.s8.bf16 %v1265_v22  ;;  %v20393_v14 = vunpack.c.h.s8.bf16 %v1265_v22 }
 0x730   : > { %20358 = vmatpush3.bf16.msra.mxu1 %v20357_v20 }
 0x731   : > { %19270 = vmatpush1.bf16.msra.mxu0 %v19269_v57  ;;  %20360 = vmatprep.subr.bf16.mxu1 %v20359_v40  ;;  %v20391_v57 = vunpack.c.h.s8.bf16 %v1277_v38  ;;  %v1292_v40 = vld [vmem:[%s22382_s4 + $0x1930] sm:$0xff]  ;;  %v1323_v38 = vld [vmem:[%s22382_s4 + $0x1a28] sm:$0xff] }
 0x732   : > { %19272 = vmatprep.subr.bf16.mxu0 %v19271_v23  ;;  %v1315_v23 = vld [vmem:[%s22382_s4 + $0x19e8] sm:$0xff]  ;;  %v19333_v44 = vunpack.c.l.s8.bf16 %v1323_v38 }
 0x734   : > { %20362 = vmatpush3.bf16.msra.mxu1 %v20361_v27  ;;  %v20395_v27 = vunpack.c.l.s8.bf16 %v1292_v40 }
 0x735   : > { %19274 = vmatpush1.bf16.msra.mxu0 %v19273_v15  ;;  %20364 = vmatprep.subr.bf16.mxu1 %v20363_v13  ;;  %v19307_v15 = vunpack.c.l.s8.bf16 %v1315_v23  ;;  %v1280_v13 = vld [vmem:[%s22382_s4 + $0x18d0] sm:$0xff] }
 0x736   : > { %19276 = vmatprep.subr.bf16.mxu0 %v19275_v60  ;;  %v1314_v60 = vld [vmem:[%s22382_s4 + $0x19e0] sm:$0xff]  ;;  %v20397_v6 = vunpack.c.l.s8.bf16 %v1280_v13  ;;  %v20401_v43 = vunpack.c.h.s8.bf16 %v1280_v13 }
 0x737   : > { %13170 = vmatmul.mubr.f32.vlgmr.msra.gmra.mrb[64].mxu1 %v23606_v4  ;;  %v19285_v4 = vunpack.c.l.s8.bf16 %v1305_v62  ;;  %v19309_v33 = vunpack.c.l.s8.bf16 %v1314_v60 }
 0x738   : > { %10858 = vmatmul.mubr.f32.vlgmr.msra.gmra.mrb[0].mxu0 %v23714_v3  ;;  %20366 = vmatpush3.bf16.msra.mxu1 %v20365_v24  ;;  %v1318_v24 = vld [vmem:[%s22382_s4 + $0x1a00] sm:$0xff] }
 0x739   : > { %19278 = vmatpush1.bf16.msra.mxu0 %v19277_v7  ;;  %20368 = vmatprep.subr.bf16.mxu1 %v20367_v49  ;;  %v20399_v7 = vunpack.c.h.s8.bf16 %v1292_v40  ;;  %v19313_v49 = vunpack.c.h.s8.bf16 %v1314_v60  ;;  %v19315_v52 = vunpack.c.l.s8.bf16 %v1318_v24 }
 0x73a   : > { %19280 = vmatprep.subr.bf16.mxu0 %v19279_v50  ;;  %13239 = vmatprep.mubr.f32.mxu1 %v23667_v21  ;;  %v19291_v21 = vunpack.c.l.s8.bf16 %v1309_v35  ;;  %v1295_v50 = vld [vmem:[%s22382_s4 + $0x1948] sm:$0xff] }
 0x73b   : > { %10928 = vmatprep.mubr.f32.mxu0 %v23771_v37  ;;  %v20407_v5 = vunpack.c.h.s8.bf16 %v1295_v50 }
 0x73c   : > { %20370 = vmatpush3.bf16.msra.mxu1 %v20369_v53  ;;  %v1317_v53 = vld [vmem:[%s22382_s4 + $0x19f8] sm:$0xff] }
 0x73d   : > { %19282 = vmatpush1.bf16.msra.mxu0 %v19281_v10  ;;  %20372 = vmatprep.subr.bf16.mxu1 %v20371_v25  ;;  %v20403_v10 = vunpack.c.l.s8.bf16 %v1295_v50  ;;  %v19317_v25 = vunpack.c.l.s8.bf16 %v1317_v53 }
 0x73e   : > { %19284 = vmatprep.subr.bf16.mxu0 %v19283_v16  ;;  %v1283_v16 = vld [vmem:[%s22382_s4 + $0x18e8] sm:$0xff] }
 0x73f   : > { %v20405_v62 = vunpack.c.l.s8.bf16 %v1283_v16 }
 0x740   : > { %20374 = vmatpush3.bf16.msra.mxu1 %v20373_v47  ;;  %v1298_v47 = vld [vmem:[%s22382_s4 + $0x1960] sm:$0xff] }
 0x741   : > { %19286 = vmatpush1.bf16.msra.mxu0 %v19285_v4  ;;  %20376 = vmatprep.subr.bf16.mxu1 %v20375_v18  ;;  %v1321_v4 = vld [vmem:[%s22382_s4 + $0x1a18] sm:$0xff]  ;;  %v20409_v18 = vunpack.c.h.s8.bf16 %v1283_v16  ;;  %v20411_v35 = vunpack.c.l.s8.bf16 %v1298_v47  ;;  %v20415_v59 = vunpack.c.h.s8.bf16 %v1298_v47 }
 0x742   : > { %19288 = vmatprep.subr.bf16.mxu0 %v19287_v2  ;;  %v19321_v2 = vunpack.c.h.s8.bf16 %v1317_v53 }
 0x744   : > { %20378 = vmatpush3.bf16.msra.mxu1 %v20377_v19  ;;  %v19325_v19 = vunpack.c.l.s8.bf16 %v1320_v42 }
 0x745   : > { %19290 = vmatpush1.bf16.msra.mxu0 %v19289_v31  ;;  %20380 = vmatprep.subr.bf16.mxu1 %v20379_v30  ;;  %v1286_v31 = vld [vmem:[%s22382_s4 + $0x1900] sm:$0xff]  ;;  %v19327_v30 = vunpack.c.h.s8.bf16 %v1321_v4 }
 0x746   : > { %19292 = vmatprep.subr.bf16.mxu0 %v19291_v21  ;;  %v20413_v21 = vunpack.c.l.s8.bf16 %v1286_v31 }
 0x748   : > { %20382 = vmatpush3.bf16.msra.mxu1 %v20381_v28  ;;  %v19329_v28 = vunpack.c.h.s8.bf16 %v1320_v42 }
 0x749   : > { %19294 = vmatpush1.bf16.msra.mxu0 %v19293_v17  ;;  %20384 = vmatprep.subr.bf16.mxu1 %v20383_v55  ;;  %v1301_v17 = vld [vmem:[%s22382_s4 + $0x1978] sm:$0xff]  ;;  %v19331_v55 = vunpack.c.l.s8.bf16 %v1324_v58 }
 0x74a   : > { %19296 = vmatprep.subr.bf16.mxu0 %v19295_v34  ;;  %v16521_v12 = vpop.f32.mrb[52].mxu1  ;;  %v20417_v34 = vunpack.c.h.s8.bf16 %v1286_v31  ;;  %v20419_v56 = vunpack.c.l.s8.bf16 %v1301_v17 }
 0x74b   : > { %v16522_v46 = vpop.f32.mrb[53].mxu1 }
 0x74c   : > { %v16523_v54 = vadd.f32 %v16522_v46, %v16521_v12  ;;  %20386 = vmatpush3.bf16.msra.mxu1 %v20385_v61  ;;  %v19335_v12 = vunpack.c.h.s8.bf16 %v1324_v58  ;;  %v20423_v46 = vunpack.c.h.s8.bf16 %v1301_v17 }
 0x74d   : > { %19298 = vmatpush1.bf16.msra.mxu0 %v19297_v1  ;;  %20388 = vmatprep.subr.bf16.mxu1 %v20387_v41  ;;  %v1289_v1 = vld [vmem:[%s22382_s4 + $0x1918] sm:$0xff] }
 0x74e   : > { %19300 = vmatprep.subr.bf16.mxu0 %v19299_v36  ;;  %v23788_v20 = vadd.f32 %v16523_v54, %v23758_v0  ;;  %v19311_v0 = vunpack.c.h.s8.bf16 %v1315_v23  ;;  %v20421_v22 = vunpack.c.l.s8.bf16 %v1289_v1  ;;  %v1304_v23 = vld [vmem:[%s22382_s4 + $0x1990] sm:$0xff] }
 0x74f   : > { %v20429_v40 = vunpack.c.l.s8.bf16 %v1304_v23 }
 0x750   : > { %20390 = vmatpush3.bf16.msra.mxu1 %v20389_v29  ;;  %v19337_v29 = vunpack.c.h.s8.bf16 %v1323_v38 }
 0x751   : > { %19302 = vmatpush1.bf16.msra.mxu0 %v19301_v45  ;;  %20392 = vmatprep.subr.bf16.mxu1 %v20391_v57  ;;  %v1316_v45 = vld [vmem:[%s22382_s4 + $0x19f0] sm:$0xff] }
 0x752   : > { %19304 = vmatprep.subr.bf16.mxu0 %v19303_v26  ;;  %v20425_v26 = vunpack.c.h.s8.bf16 %v1289_v1  ;;  %v20427_v57 = vunpack.c.l.s8.bf16 %v1316_v45 }
 0x754   : > { %20394 = vmatpush3.bf16.msra.mxu1 %v20393_v14  ;;  %v1319_v14 = vld [vmem:[%s22382_s4 + $0x1a08] sm:$0xff] }
 0x755   : > { %19306 = vmatpush1.bf16.msra.mxu0 %v19305_v8  ;;  %20396 = vmatprep.subr.bf16.mxu1 %v20395_v27  ;;  %v20431_v8 = vunpack.c.h.s8.bf16 %v1316_v45  ;;  %v1307_v27 = vld [vmem:[%s22382_s4 + $0x19a8] sm:$0xff]  ;;  %v20439_v13 = vunpack.c.h.s8.bf16 %v1319_v14 }
 0x756   : > { %19308 = vmatprep.subr.bf16.mxu0 %v19307_v15  ;;  %v20435_v15 = vunpack.c.l.s8.bf16 %v1319_v14  ;;  %v20437_v60 = vunpack.c.l.s8.bf16 %v1307_v27 }
 0x757   : > { %13240 = vmatmul.mubr.f32.vlgmr.msra.gmra.mrb[66].mxu1 %v23661_v32  ;;  %v19319_v32 = vunpack.c.h.s8.bf16 %v1318_v24 }
 0x758   : > { %20398 = vmatpush3.bf16.msra.mxu1 %v20397_v6  ;;  %13309 = vmatprep.mubr.f32.mxu1 %v23720_v9  ;;  %v19323_v9 = vunpack.c.l.s8.bf16 %v1321_v4  ;;  %v20441_v6 = vunpack.c.h.s8.bf16 %v1307_v27 }
 0x759   : > { %19310 = vmatpush1.bf16.msra.mxu0 %v19309_v33  ;;  %20400 = vmatprep.subr.bf16.mxu1 %v20399_v7  ;;  %v1322_v33 = vld [vmem:[%s22382_s4 + $0x1a20] sm:$0xff] }
 0x75a   : > { %19312 = vmatprep.subr.bf16.mxu0 %v19311_v0  ;;  %v20443_v0 = vunpack.c.l.s8.bf16 %v1322_v33  ;;  %v20447_v24 = vunpack.c.h.s8.bf16 %v1322_v33 }
 0x75c   : > { %20402 = vmatpush3.bf16.msra.mxu1 %v20401_v43  ;;  %v1313_v43 = vld [vmem:[%s22382_s4 + $0x19d8] sm:$0xff] }
 0x75d   : > { %19314 = vmatpush1.bf16.msra.mxu0 %v19313_v49  ;;  %20404 = vmatprep.subr.bf16.mxu1 %v20403_v10  ;;  %v20453_v16 = vunpack.c.l.s8.bf16 %v1313_v43 }
 0x75e   : > { %19316 = vmatprep.subr.bf16.mxu0 %v19315_v52 }
 0x760   : > { %20406 = vmatpush3.bf16.msra.mxu1 %v20405_v62 }
 0x761   : > { %19318 = vmatpush1.bf16.msra.mxu0 %v19317_v25  ;;  %20408 = vmatprep.subr.bf16.mxu1 %v20407_v5 }
 0x762   : > { %19320 = vmatprep.subr.bf16.mxu0 %v19319_v32  ;;  %v20457_v32 = vunpack.c.h.s8.bf16 %v1313_v43 }
 0x764   : > { %20410 = vmatpush3.bf16.msra.mxu1 %v20409_v18 }
 0x765   : > { %19322 = vmatpush1.bf16.msra.mxu0 %v19321_v2  ;;  %20412 = vmatprep.subr.bf16.mxu1 %v20411_v35 }
 0x766   : > { %19324 = vmatprep.subr.bf16.mxu0 %v19323_v9 }
 0x768   : > { %20414 = vmatpush3.bf16.msra.mxu1 %v20413_v21 }
 0x769   : > { %19326 = vmatpush1.bf16.msra.mxu0 %v19325_v19  ;;  %20416 = vmatprep.subr.bf16.mxu1 %v20415_v59 }
 0x76a   : > { %19328 = vmatprep.subr.bf16.mxu0 %v19327_v30  ;;  %v16556_v61 = vpop.f32.mrb[54].mxu1 }
 0x76b   : > { %v16557_v36 = vpop.f32.mrb[55].mxu1 }
 0x76c   : > { %v16558_v41 = vadd.f32 %v16557_v36, %v16556_v61  ;;  %20418 = vmatpush3.bf16.msra.mxu1 %v20417_v34 }
 0x76d   : > { %19330 = vmatpush1.bf16.msra.mxu0 %v19329_v28  ;;  %20420 = vmatprep.subr.bf16.mxu1 %v20419_v56 }
 0x76e   : > { %19332 = vmatprep.subr.bf16.mxu0 %v19331_v55  ;;  %v12822_v54 = vadd.f32 %v16558_v41, %v23788_v20  ;;  %v20433_v20 = vunpack.c.h.s8.bf16 %v1304_v23 }
 0x770   : > { %20422 = vmatpush3.bf16.msra.mxu1 %v20421_v22 }
 0x771   : > { %19334 = vmatpush1.bf16.msra.mxu0 %v19333_v44  ;;  %20424 = vmatprep.subr.bf16.mxu1 %v20423_v46 }
 0x772   : > { %19336 = vmatprep.subr.bf16.mxu0 %v19335_v12 }
 0x774   : > { %20426 = vmatpush3.bf16.msra.mxu1 %v20425_v26 }
 0x775   : > { %19338 = vmatpush1.bf16.msra.mxu0 %v19337_v29  ;;  %20428 = vmatprep.subr.bf16.mxu1 %v20427_v57 }
 0x777   : > { %13310 = vmatmul.mubr.f32.vlgmr.msra.gmra.mrb[68].mxu1 %v23714_v3  ;;  %v1310_v3 = vld [vmem:[%s22382_s4 + $0x19c0] sm:$0xff] }
 0x778   : > { %10929 = vmatmul.mubr.f32.vlgmr.msra.gmra.mrb[0].mxu0 %v23765_v48  ;;  %20430 = vmatpush3.bf16.msra.mxu1 %v20429_v40  ;;  %v20445_v7 = vunpack.c.l.s8.bf16 %v1310_v3  ;;  %v20449_v50 = vunpack.c.h.s8.bf16 %v1310_v3  ;;  %v8046_v40 = vld [vmem:[#allocation2] sm:$0x3f] }
 0x779   : > { %13379 = vmatprep.mubr.f32.mxu1 %v23771_v37  ;;  %20432 = vmatprep.subr.bf16.mxu1 %v20431_v8  ;;  %v1325_v37 = vld [vmem:[%s22382_s4 + $0x1a38] sm:$0xff] }
 0x77a   : > { %v20451_v49 = vunpack.c.l.s8.bf16 %v1325_v37  ;;  %v20455_v25 = vunpack.c.h.s8.bf16 %v1325_v37 }
 0x77c   : > { %20434 = vmatpush3.bf16.msra.mxu1 %v20433_v20 }
 0x77d   : > { %20436 = vmatprep.subr.bf16.mxu1 %v20435_v15 }
 0x780   : > { %20438 = vmatpush3.bf16.msra.mxu1 %v20437_v60 }
 0x781   : > { %20440 = vmatprep.subr.bf16.mxu1 %v20439_v13 }
 0x784   : > { %20442 = vmatpush3.bf16.msra.mxu1 %v20441_v6 }
 0x785   : > { %20444 = vmatprep.subr.bf16.mxu1 %v20443_v0 }
 0x788   : > { %20446 = vmatpush3.bf16.msra.mxu1 %v20445_v7 }
 0x789   : > { %20448 = vmatprep.subr.bf16.mxu1 %v20447_v24 }
 0x78a   : > { %v16591_v52 = vpop.f32.mrb[56].mxu1 }
 0x78b   : > { %v16592_v10 = vpop.f32.mrb[57].mxu1 }
 0x78c   : > { %v16593_v53 = vadd.f32 %v16592_v10, %v16591_v52  ;;  %20450 = vmatpush3.bf16.msra.mxu1 %v20449_v50 }
 0x78d   : > { %20452 = vmatprep.subr.bf16.mxu1 %v20451_v49 }
 0x78e   : > { %v12892_v62 = vadd.f32 %v16593_v53, %v12822_v54 }
 0x790   : > { %20454 = vmatpush3.bf16.msra.mxu1 %v20453_v16 }
 0x791   : > { %20456 = vmatprep.subr.bf16.mxu1 %v20455_v25 }
 0x794   : > { %20458 = vmatpush3.bf16.msra.mxu1 %v20457_v32 }
 0x797   : > { %13380 = vmatmul.mubr.f32.vlgmr.msra.gmra.mrb[70].mxu1 %v23765_v48 }
 0x7aa   : > { %v16626_v5 = vpop.f32.mrb[58].mxu1 }
 0x7ab   : > { %v16627_v4 = vpop.f32.mrb[59].mxu1 }
 0x7ac   : > { %v16628_v47 = vadd.f32 %v16627_v4, %v16626_v5 }
 0x7ae   : > { %v12962_v2 = vadd.f32 %v16628_v47, %v12892_v62 }
 0x7ca   : > { %v16661_v18 = vpop.f32.mrb[60].mxu1 }
 0x7cb   : > { %v16662_v9 = vpop.f32.mrb[61].mxu1 }
 0x7cc   : > { %v16663_v35 = vadd.f32 %v16662_v9, %v16661_v18 }
 0x7ce   : > { %v13032_v42 = vadd.f32 %v16663_v35, %v12962_v2 }
 0x7ea   : > { %v16696_v31 = vpop.f32.mrb[62].mxu1 }
 0x7eb   : > { %v16697_v19 = vpop.f32.mrb[63].mxu1 }
 0x7ec   : > { %v16698_v21 = vadd.f32 %v16697_v19, %v16696_v31 }
 0x7ee   : > { %v13102_v30 = vadd.f32 %v16698_v21, %v13032_v42 }
 0x80a   : > { %v16731_v59 = vpop.f32.mrb[64].mxu1 }
 0x80b   : > { %v16732_v58 = vpop.f32.mrb[65].mxu1 }
 0x80c   : > { %v16733_v17 = vadd.f32 %v16732_v58, %v16731_v59 }
 0x80e   : > { %v13172_v28 = vadd.f32 %v16733_v17, %v13102_v30 }
 0x82a   : > { %v16766_v34 = vpop.f32.mrb[66].mxu1 }
 0x82b   : > { %v16767_v55 = vpop.f32.mrb[67].mxu1 }
 0x82c   : > { %v16768_v56 = vadd.f32 %v16767_v55, %v16766_v34 }
 0x82e   : > { %v13242_v48 = vadd.f32 %v16768_v56, %v13172_v28 }
 0x84a   : > { %v16801_v1 = vpop.f32.mrb[68].mxu1 }
 0x84b   : > { %v10930_v38 = vpop.f32.mrb[0].mxu0  ;;  %v16802_v41 = vpop.f32.mrb[69].mxu1 }
 0x84c   : > { %v21475_v61 = vadd.f32 %v10930_v38, %v23088_v11  ;;  %v10932_v36 = vpop.f32.mrb[1].mxu0  ;;  %v16803_v22 = vadd.f32 %v16802_v41, %v16801_v1 }
 0x84d   : > { %v21476_v44 = vadd.f32 %v10932_v36, %v23090_v63 }
 0x84e   : > { %v13312_v46 = vadd.f32 %v16803_v22, %v13242_v48 }
 0x84f   : > { %v13388_v12 = vcombine.low %v21475_v61, %v21476_v44 }
 0x851   : > { %v13395_v57 = vrot.slane %v13388_v12, %v22435_v51 }
 0x86a   : > { %v16836_v54 = vpop.f32.mrb[70].mxu1 }
 0x86b   : > { %v16837_v45 = vpop.f32.mrb[71].mxu1 }
 0x86c   : > { %v16838_v29 = vadd.f32 %v16837_v45, %v16836_v54 }
 0x86e   : > { %v13382_v26 = vadd.f32 %v16838_v29, %v13312_v46 }
 0x870   : > { %v13402_v23 = vrot.slane %v13382_v26, %v22435_v51  ;;  %13410 = sbr.rel (%p15594_p5) target bundleno = 4556 (0x11cc), region = 100 }
 0x872   : > { %v13403_v8 = vcombine.low %v13395_v57, %v13402_v23 }
 0x874   : > { %v13405_v14 = vadd.f32 %v13403_v8, %v8046_v40 }
 0x876   : > { %13406 = vst [vmem:[#allocation2] sm:$0x3f] %v13405_v14 }
 0x877   : > { %v13477_v11 = vld [vmem:[#allocation9 + $0x8] sm:$0xff]  ;;  %v13483_v63 = vld [vmem:[#allocation9 + $0x38] sm:$0xff]  ;;  %v13476_v20 = vld [vmem:[#allocation9] sm:$0xff]  ;;  %v24853_v33 = vmov 0.0   ;;  %vm22059_vm0 = vmmov 0   ;;  %vm15452_vm1 = vcmask 80896  }
 0x878   : > { %v23826_v15 = vpack.c.bf16 %v13483_v63, %v13477_v11  ;;  %v13482_v27 = vld [vmem:[#allocation9 + $0x30] sm:$0xff]  ;;  %v13489_v60 = vld [vmem:[#allocation9 + $0x68] sm:$0xff]  ;;  %v13495_v13 = vld [vmem:[#allocation9 + $0x98] sm:$0xff]  ;;  %13813 = vmatprep.mubr.f32.mxu0 %v24853_v33  ;;  %13884 = vmatprep.mubr.f32.mxu1 %v24853_v33 }
 0x879   : > { %v23830_v6 = vpack.c.bf16 %v13482_v27, %v13476_v20  ;;  %v23832_v0 = vpack.c.bf16 %v13495_v13, %v13489_v60  ;;  %v13488_v3 = vld [vmem:[#allocation9 + $0x60] sm:$0xff]  ;;  %v13494_v7 = vld [vmem:[#allocation9 + $0x90] sm:$0xff]  ;;  %v13501_v24 = vld [vmem:[#allocation9 + $0xc8] sm:$0xff] }
 0x87a   : > { %25104 = vst [vmem:[#allocation22_spill] sm:$0xff] %v23826_v15  ;;  %20460 = vmatprep.subr.bf16.mxu0 %v23826_v15  ;;  %v13507_v37 = vld [vmem:[#allocation9 + $0xf8] sm:$0xff]  ;;  %v23836_v50 = vpack.c.bf16 %v13494_v7, %v13488_v3  ;;  %v13500_v43 = vld [vmem:[#allocation9 + $0xc0] sm:$0xff]  ;;  %v13506_v52 = vld [vmem:[#allocation9 + $0xf0] sm:$0xff] }
 0x87b   : > { %25105 = vst [vmem:[#allocation23_spill] sm:$0xff] %v23830_v6  ;;  %25106 = vst [vmem:[#allocation24_spill] sm:$0xff] %v23832_v0  ;;  %20462 = vmatpush1.bf16.msra.mxu0 %v23830_v6  ;;  %v23839_v49 = vpack.c.bf16 %v13507_v37, %v13501_v24  ;;  %v13513_v10 = vld [vmem:[#allocation9 + $0x128] sm:$0xff]  ;;  %v13519_v53 = vld [vmem:[#allocation9 + $0x158] sm:$0xff]  ;;  %v23842_v16 = vpack.c.bf16 %v13506_v52, %v13500_v43 }
 0x87c   : > { %25107 = vst [vmem:[#allocation25_spill] sm:$0xff] %v23836_v50  ;;  %20464 = vmatprep.subr.bf16.mxu0 %v23832_v0  ;;  %v13512_v25 = vld [vmem:[#allocation9 + $0x120] sm:$0xff]  ;;  %v23845_v62 = vpack.c.bf16 %v13519_v53, %v13513_v10  ;;  %v13518_v32 = vld [vmem:[#allocation9 + $0x150] sm:$0xff]  ;;  %v13479_v5 = vld [vmem:[#allocation9 + $0x18] sm:$0xff] }
 0x87d   : > { %25108 = vst [vmem:[#allocation26_spill] sm:$0xff] %v23839_v49  ;;  %25109 = vst [vmem:[#allocation27_spill] sm:$0xff] %v23842_v16  ;;  %v13485_v4 = vld [vmem:[#allocation9 + $0x48] sm:$0xff]  ;;  %v13531_v2 = vld [vmem:[#allocation9 + $0x1b8] sm:$0xff]  ;;  %v23850_v42 = vpack.c.bf16 %v13518_v32, %v13512_v25 }
 0x87e   : > { %25110 = vst [vmem:[#allocation28_spill] sm:$0xff] %v23845_v62  ;;  %v13525_v47 = vld [vmem:[#allocation9 + $0x188] sm:$0xff]  ;;  %v23847_v18 = vpack.c.bf16 %v13485_v4, %v13479_v5  ;;  %v13478_v9 = vld [vmem:[#allocation9 + $0x10] sm:$0xff]  ;;  %v13484_v35 = vld [vmem:[#allocation9 + $0x40] sm:$0xff] }
 0x87f   : > { %20466 = vmatpush1.bf16.msra.mxu0 %v23836_v50  ;;  %25111 = vst [vmem:[#allocation29_spill] sm:$0xff] %v23850_v42  ;;  %v13524_v31 = vld [vmem:[#allocation9 + $0x180] sm:$0xff]  ;;  %v23853_v19 = vpack.c.bf16 %v13484_v35, %v13478_v9  ;;  %v13491_v21 = vld [vmem:[#allocation9 + $0x78] sm:$0xff]  ;;  %v13497_v30 = vld [vmem:[#allocation9 + $0xa8] sm:$0xff]  ;;  %v23856_v59 = vpack.c.bf16 %v13531_v2, %v13525_v47 }
 0x880   : > { %20468 = vmatprep.subr.bf16.mxu0 %v23839_v49  ;;  %20524 = vmatprep.subr.bf16.mxu1 %v23847_v18  ;;  %v13530_v58 = vld [vmem:[#allocation9 + $0x1b0] sm:$0xff]  ;;  %v23858_v17 = vpack.c.bf16 %v13497_v30, %v13491_v21  ;;  %v13496_v34 = vld [vmem:[#allocation9 + $0xa0] sm:$0xff]  ;;  %v13537_v55 = vld [vmem:[#allocation9 + $0x1e8] sm:$0xff] }
 0x881   : > { %25112 = vst [vmem:[#allocation30_spill] sm:$0xff] %v23853_v19  ;;  %25113 = vst [vmem:[#allocation31_spill] sm:$0xff] %v23856_v59  ;;  %v13490_v28 = vld [vmem:[#allocation9 + $0x70] sm:$0xff]  ;;  %v13543_v56 = vld [vmem:[#allocation9 + $0x218] sm:$0xff]  ;;  %20526 = vmatpush1.bf16.msra.mxu1 %v23853_v19  ;;  %v23865_v61 = vpack.c.bf16 %v13530_v58, %v13524_v31 }
 0x882   : > { %25114 = vst [vmem:[#allocation32_spill] sm:$0xff] %v23858_v17  ;;  %v23861_v48 = vpack.c.bf16 %v13496_v34, %v13490_v28  ;;  %v13503_v38 = vld [vmem:[#allocation9 + $0xd8] sm:$0xff]  ;;  %20528 = vmatprep.subr.bf16.mxu1 %v23858_v17  ;;  %v13509_v1 = vld [vmem:[#allocation9 + $0x108] sm:$0xff]  ;;  %v13536_v36 = vld [vmem:[#allocation9 + $0x1e0] sm:$0xff]  ;;  %v23870_v12 = vpack.c.bf16 %v13543_v56, %v13537_v55 }
 0x883   : > { %20470 = vmatpush1.bf16.msra.mxu0 %v23842_v16  ;;  %25116 = vst [vmem:[#allocation34_spill] sm:$0xff] %v23865_v61  ;;  %v23867_v41 = vpack.c.bf16 %v13509_v1, %v13503_v38  ;;  %v13502_v44 = vld [vmem:[#allocation9 + $0xd0] sm:$0xff]  ;;  %v13508_v22 = vld [vmem:[#allocation9 + $0x100] sm:$0xff]  ;;  %v13515_v54 = vld [vmem:[#allocation9 + $0x138] sm:$0xff] }
 0x884   : > { %20472 = vmatprep.subr.bf16.mxu0 %v23845_v62  ;;  %25115 = vst [vmem:[#allocation33_spill] sm:$0xff] %v23861_v48  ;;  %25118 = vst [vmem:[#allocation36_spill] sm:$0xff] %v23870_v12  ;;  %v13542_v46 = vld [vmem:[#allocation9 + $0x210] sm:$0xff]  ;;  %v13521_v45 = vld [vmem:[#allocation9 + $0x168] sm:$0xff]  ;;  %v23873_v57 = vpack.c.bf16 %v13508_v22, %v13502_v44 }
 0x885   : > { %25117 = vst [vmem:[#allocation35_spill] sm:$0xff] %v23867_v41  ;;  %v13549_v29 = vld [vmem:[#allocation9 + $0x248] sm:$0xff]  ;;  %v13555_v26 = vld [vmem:[#allocation9 + $0x278] sm:$0xff]  ;;  %20530 = vmatpush1.bf16.msra.mxu1 %v23861_v48  ;;  %v23876_v23 = vpack.c.bf16 %v13521_v45, %v13515_v54  ;;  %v13514_v40 = vld [vmem:[#allocation9 + $0x130] sm:$0xff]  ;;  %v23879_v14 = vpack.c.bf16 %v13542_v46, %v13536_v36 }
 0x886   : > { %25119 = vst [vmem:[#allocation37_spill] sm:$0xff] %v23873_v57  ;;  %20532 = vmatprep.subr.bf16.mxu1 %v23867_v41  ;;  %v13520_v8 = vld [vmem:[#allocation9 + $0x160] sm:$0xff]  ;;  %v13527_v11 = vld [vmem:[#allocation9 + $0x198] sm:$0xff]  ;;  %v13533_v63 = vld [vmem:[#allocation9 + $0x1c8] sm:$0xff]  ;;  %v23882_v20 = vpack.c.bf16 %v13555_v26, %v13549_v29 }
 0x887   : > { %20474 = vmatpush1.bf16.msra.mxu0 %v23850_v42  ;;  %25120 = vst [vmem:[#allocation38_spill] sm:$0xff] %v23876_v23  ;;  %25121 = vst [vmem:[#allocation39_spill] sm:$0xff] %v23879_v14  ;;  %v13548_v27 = vld [vmem:[#allocation9 + $0x240] sm:$0xff]  ;;  %v13554_v60 = vld [vmem:[#allocation9 + $0x270] sm:$0xff]  ;;  %v23885_v7 = vpack.c.bf16 %v13520_v8, %v13514_v40  ;;  %v23888_v24 = vpack.c.bf16 %v13533_v63, %v13527_v11 }
 0x888   : > { %20476 = vmatprep.subr.bf16.mxu0 %v23856_v59  ;;  %25122 = vst [vmem:[#allocation40_spill] sm:$0xff] %v23882_v20  ;;  %v13561_v13 = vld [vmem:[#allocation9 + $0x2a8] sm:$0xff]  ;;  %v13567_v3 = vld [vmem:[#allocation9 + $0x2d8] sm:$0xff]  ;;  %v13526_v37 = vld [vmem:[#allocation9 + $0x190] sm:$0xff]  ;;  %v23891_v52 = vpack.c.bf16 %v13554_v60, %v13548_v27 }
 0x889   : > { %20534 = vmatpush1.bf16.msra.mxu1 %v23873_v57  ;;  %25123 = vst [vmem:[#allocation41_spill] sm:$0xff] %v23885_v7  ;;  %25124 = vst [vmem:[#allocation42_spill] sm:$0xff] %v23888_v24  ;;  %v13532_v43 = vld [vmem:[#allocation9 + $0x1c0] sm:$0xff]  ;;  %v13539_v10 = vld [vmem:[#allocation9 + $0x1f8] sm:$0xff]  ;;  %v23894_v25 = vpack.c.bf16 %v13567_v3, %v13561_v13 }
 0x88a   : > { %20536 = vmatprep.subr.bf16.mxu1 %v23876_v23  ;;  %25125 = vst [vmem:[#allocation43_spill] sm:$0xff] %v23891_v52  ;;  %v13545_v53 = vld [vmem:[#allocation9 + $0x228] sm:$0xff]  ;;  %v13560_v32 = vld [vmem:[#allocation9 + $0x2a0] sm:$0xff]  ;;  %v13566_v5 = vld [vmem:[#allocation9 + $0x2d0] sm:$0xff]  ;;  %v23897_v2 = vpack.c.bf16 %v13532_v43, %v13526_v37 }
 0x88b   : > { %20478 = vmatpush1.bf16.msra.mxu0 %v23865_v61  ;;  %25126 = vst [vmem:[#allocation44_spill] sm:$0xff] %v23894_v25  ;;  %v13573_v4 = vld [vmem:[#allocation9 + $0x308] sm:$0xff]  ;;  %v13579_v47 = vld [vmem:[#allocation9 + $0x338] sm:$0xff]  ;;  %v23900_v9 = vpack.c.bf16 %v13545_v53, %v13539_v10  ;;  %v13538_v35 = vld [vmem:[#allocation9 + $0x1f0] sm:$0xff]  ;;  %v23903_v21 = vpack.c.bf16 %v13566_v5, %v13560_v32 }
 0x88c   : > { %20480 = vmatprep.subr.bf16.mxu0 %v23870_v12  ;;  %25127 = vst [vmem:[#allocation45_spill] sm:$0xff] %v23897_v2  ;;  %v13544_v31 = vld [vmem:[#allocation9 + $0x220] sm:$0xff]  ;;  %v13551_v30 = vld [vmem:[#allocation9 + $0x258] sm:$0xff]  ;;  %v13557_v58 = vld [vmem:[#allocation9 + $0x288] sm:$0xff]  ;;  %v23906_v28 = vpack.c.bf16 %v13579_v47, %v13573_v4 }
 0x88d   : > { %20538 = vmatpush1.bf16.msra.mxu1 %v23885_v7  ;;  %25128 = vst [vmem:[#allocation46_spill] sm:$0xff] %v23900_v9  ;;  %25129 = vst [vmem:[#allocation47_spill] sm:$0xff] %v23903_v21  ;;  %v13572_v34 = vld [vmem:[#allocation9 + $0x300] sm:$0xff]  ;;  %v13578_v55 = vld [vmem:[#allocation9 + $0x330] sm:$0xff]  ;;  %v23909_v1 = vpack.c.bf16 %v13544_v31, %v13538_v35  ;;  %v23912_v36 = vpack.c.bf16 %v13557_v58, %v13551_v30 }
 0x88e   : > { %20540 = vmatprep.subr.bf16.mxu1 %v23888_v24  ;;  %25130 = vst [vmem:[#allocation48_spill] sm:$0xff] %v23906_v28  ;;  %v13585_v56 = vld [vmem:[#allocation9 + $0x368] sm:$0xff]  ;;  %v13591_v38 = vld [vmem:[#allocation9 + $0x398] sm:$0xff]  ;;  %v13550_v44 = vld [vmem:[#allocation9 + $0x250] sm:$0xff]  ;;  %v23915_v46 = vpack.c.bf16 %v13578_v55, %v13572_v34 }
 0x88f   : > { %20482 = vmatpush1.bf16.msra.mxu0 %v23879_v14  ;;  %25131 = vst [vmem:[#allocation49_spill] sm:$0xff] %v23909_v1  ;;  %25132 = vst [vmem:[#allocation50_spill] sm:$0xff] %v23912_v36  ;;  %v13556_v22 = vld [vmem:[#allocation9 + $0x280] sm:$0xff]  ;;  %v13563_v54 = vld [vmem:[#allocation9 + $0x2b8] sm:$0xff]  ;;  %v23918_v29 = vpack.c.bf16 %v13591_v38, %v13585_v56 }
 0x890   : > { %20484 = vmatprep.subr.bf16.mxu0 %v23882_v20  ;;  %25133 = vst [vmem:[#allocation51_spill] sm:$0xff] %v23915_v46  ;;  %v13569_v45 = vld [vmem:[#allocation9 + $0x2e8] sm:$0xff]  ;;  %v13584_v26 = vld [vmem:[#allocation9 + $0x360] sm:$0xff]  ;;  %v13590_v40 = vld [vmem:[#allocation9 + $0x390] sm:$0xff]  ;;  %v23921_v63 = vpack.c.bf16 %v13556_v22, %v13550_v44 }
 0x891   : > { %20542 = vmatpush1.bf16.msra.mxu1 %v23897_v2  ;;  %25134 = vst [vmem:[#allocation52_spill] sm:$0xff] %v23918_v29  ;;  %v13597_v8 = vld [vmem:[#allocation9 + $0x3c8] sm:$0xff]  ;;  %v13603_v11 = vld [vmem:[#allocation9 + $0x3f8] sm:$0xff]  ;;  %v23924_v27 = vpack.c.bf16 %v13569_v45, %v13563_v54  ;;  %v13562_v60 = vld [vmem:[#allocation9 + $0x2b0] sm:$0xff]  ;;  %v23927_v3 = vpack.c.bf16 %v13590_v40, %v13584_v26 }
 0x892   : > { %20544 = vmatprep.subr.bf16.mxu1 %v23900_v9  ;;  %25135 = vst [vmem:[#allocation53_spill] sm:$0xff] %v23921_v63  ;;  %v13568_v13 = vld [vmem:[#allocation9 + $0x2e0] sm:$0xff]  ;;  %v13575_v37 = vld [vmem:[#allocation9 + $0x318] sm:$0xff]  ;;  %v13581_v43 = vld [vmem:[#allocation9 + $0x348] sm:$0xff]  ;;  %v23930_v10 = vpack.c.bf16 %v13603_v11, %v13597_v8 }
 0x893   : > { %20486 = vmatpush1.bf16.msra.mxu0 %v23891_v52  ;;  %25136 = vst [vmem:[#allocation54_spill] sm:$0xff] %v23924_v27  ;;  %25137 = vst [vmem:[#allocation55_spill] sm:$0xff] %v23927_v3  ;;  %v13596_v53 = vld [vmem:[#allocation9 + $0x3c0] sm:$0xff]  ;;  %v13602_v32 = vld [vmem:[#allocation9 + $0x3f0] sm:$0xff]  ;;  %v23933_v47 = vpack.c.bf16 %v13568_v13, %v13562_v60  ;;  %v23936_v35 = vpack.c.bf16 %v13581_v43, %v13575_v37 }
 0x894   : > { %20488 = vmatprep.subr.bf16.mxu0 %v23894_v25  ;;  %25138 = vst [vmem:[#allocation56_spill] sm:$0xff] %v23930_v10  ;;  %v13609_v5 = vld [vmem:[#allocation9 + $0x428] sm:$0xff]  ;;  %v13615_v4 = vld [vmem:[#allocation9 + $0x458] sm:$0xff]  ;;  %v13574_v31 = vld [vmem:[#allocation9 + $0x310] sm:$0xff]  ;;  %v23939_v58 = vpack.c.bf16 %v13602_v32, %v13596_v53 }
 0x895   : > { %20546 = vmatpush1.bf16.msra.mxu1 %v23909_v1  ;;  %25139 = vst [vmem:[#allocation57_spill] sm:$0xff] %v23933_v47  ;;  %25140 = vst [vmem:[#allocation58_spill] sm:$0xff] %v23936_v35  ;;  %v13580_v30 = vld [vmem:[#allocation9 + $0x340] sm:$0xff]  ;;  %v13587_v34 = vld [vmem:[#allocation9 + $0x378] sm:$0xff]  ;;  %v23942_v56 = vpack.c.bf16 %v13615_v4, %v13609_v5 }
 0x896   : > { %20548 = vmatprep.subr.bf16.mxu1 %v23912_v36  ;;  %25141 = vst [vmem:[#allocation59_spill] sm:$0xff] %v23939_v58  ;;  %v13593_v55 = vld [vmem:[#allocation9 + $0x3a8] sm:$0xff]  ;;  %v13608_v38 = vld [vmem:[#allocation9 + $0x420] sm:$0xff]  ;;  %v13614_v44 = vld [vmem:[#allocation9 + $0x450] sm:$0xff]  ;;  %v23945_v45 = vpack.c.bf16 %v13580_v30, %v13574_v31 }
 0x897   : > { %20490 = vmatpush1.bf16.msra.mxu0 %v23903_v21  ;;  %25142 = vst [vmem:[#allocation60_spill] sm:$0xff] %v23942_v56  ;;  %v13621_v22 = vld [vmem:[#allocation9 + $0x488] sm:$0xff]  ;;  %v13627_v54 = vld [vmem:[#allocation9 + $0x4b8] sm:$0xff]  ;;  %v23948_v26 = vpack.c.bf16 %v13593_v55, %v13587_v34  ;;  %v13586_v40 = vld [vmem:[#allocation9 + $0x370] sm:$0xff]  ;;  %v23951_v11 = vpack.c.bf16 %v13614_v44, %v13608_v38 }
 0x898   : > { %20492 = vmatprep.subr.bf16.mxu0 %v23906_v28  ;;  %25143 = vst [vmem:[#allocation61_spill] sm:$0xff] %v23945_v45  ;;  %v13592_v8 = vld [vmem:[#allocation9 + $0x3a0] sm:$0xff]  ;;  %v13599_v60 = vld [vmem:[#allocation9 + $0x3d8] sm:$0xff]  ;;  %v13605_v13 = vld [vmem:[#allocation9 + $0x408] sm:$0xff]  ;;  %v23954_v37 = vpack.c.bf16 %v13627_v54, %v13621_v22 }
 0x899   : > { %20550 = vmatpush1.bf16.msra.mxu1 %v23921_v63  ;;  %25144 = vst [vmem:[#allocation62_spill] sm:$0xff] %v23948_v26  ;;  %25145 = vst [vmem:[#allocation63_spill] sm:$0xff] %v23951_v11  ;;  %v13620_v43 = vld [vmem:[#allocation9 + $0x480] sm:$0xff]  ;;  %v13626_v53 = vld [vmem:[#allocation9 + $0x4b0] sm:$0xff]  ;;  %v23957_v4 = vpack.c.bf16 %v13592_v8, %v13586_v40  ;;  %v23960_v31 = vpack.c.bf16 %v13605_v13, %v13599_v60 }
 0x89a   : > { %20552 = vmatprep.subr.bf16.mxu1 %v23924_v27  ;;  %25146 = vst [vmem:[#allocation64_spill] sm:$0xff] %v23954_v37  ;;  %v13633_v32 = vld [vmem:[#allocation9 + $0x4e8] sm:$0xff]  ;;  %v13639_v5 = vld [vmem:[#allocation9 + $0x518] sm:$0xff]  ;;  %v13598_v30 = vld [vmem:[#allocation9 + $0x3d0] sm:$0xff]  ;;  %v23963_v55 = vpack.c.bf16 %v13626_v53, %v13620_v43 }
 0x89b   : > { %20494 = vmatpush1.bf16.msra.mxu0 %v23915_v46  ;;  %25147 = vst [vmem:[#allocation65_spill] sm:$0xff] %v23957_v4  ;;  %25148 = vst [vmem:[#allocation66_spill] sm:$0xff] %v23960_v31  ;;  %v13604_v34 = vld [vmem:[#allocation9 + $0x400] sm:$0xff]  ;;  %v13611_v38 = vld [vmem:[#allocation9 + $0x438] sm:$0xff]  ;;  %v23966_v22 = vpack.c.bf16 %v13639_v5, %v13633_v32 }
 0x89c   : > { %20496 = vmatprep.subr.bf16.mxu0 %v23918_v29  ;;  %25149 = vst [vmem:[#allocation67_spill] sm:$0xff] %v23963_v55  ;;  %v13617_v44 = vld [vmem:[#allocation9 + $0x468] sm:$0xff]  ;;  %v13632_v54 = vld [vmem:[#allocation9 + $0x4e0] sm:$0xff]  ;;  %v13638_v33 = vld [vmem:[#allocation9 + $0x510] sm:$0xff]  ;;  %v23969_v60 = vpack.c.bf16 %v13604_v34, %v13598_v30 }
 0x89d   : > { %20554 = vmatpush1.bf16.msra.mxu1 %v23933_v47  ;;  %25150 = vst [vmem:[#allocation68_spill] sm:$0xff] %v23966_v22  ;;  %v13645_v40 = vld [vmem:[#allocation9 + $0x548] sm:$0xff]  ;;  %v13651_v8 = vld [vmem:[#allocation9 + $0x578] sm:$0xff]  ;;  %v23972_v13 = vpack.c.bf16 %v13617_v44, %v13611_v38  ;;  %v13610_v43 = vld [vmem:[#allocation9 + $0x430] sm:$0xff] }
 0x89e   : > { %20556 = vmatprep.subr.bf16.mxu1 %v23936_v35  ;;  %25151 = vst [vmem:[#allocation69_spill] sm:$0xff] %v23969_v60  ;;  %v13616_v53 = vld [vmem:[#allocation9 + $0x460] sm:$0xff]  ;;  %v13623_v32 = vld [vmem:[#allocation9 + $0x498] sm:$0xff]  ;;  %v13629_v5 = vld [vmem:[#allocation9 + $0x4c8] sm:$0xff] }
 0x89f   : > { %20498 = vmatpush1.bf16.msra.mxu0 %v23927_v3  ;;  %25152 = vst [vmem:[#allocation70_spill] sm:$0xff] %v23972_v13  ;;  %v13644_v35 = vld [vmem:[#allocation9 + $0x540] sm:$0xff]  ;;  %v13657_v30 = vld [vmem:[#allocation9 + $0x5a8] sm:$0xff]  ;;  %v13663_v34 = vld [vmem:[#allocation9 + $0x5d8] sm:$0xff]  ;;  %v23981_v38 = vpack.c.bf16 %v13616_v53, %v13610_v43  ;;  %v23984_v44 = vpack.c.bf16 %v13629_v5, %v13623_v32 }
 0x8a0   : > { %20500 = vmatprep.subr.bf16.mxu0 %v23930_v10  ;;  %v23990_v47 = vpack.c.bf16 %v13663_v34, %v13657_v30  ;;  %v13656_v27 = vld [vmem:[#allocation9 + $0x5a0] sm:$0xff]  ;;  %v13481_v53 = vld [vmem:[#allocation9 + $0x28] sm:$0xff]  ;;  %v13487_v32 = vld [vmem:[#allocation9 + $0x58] sm:$0xff] }
 0x8a1   : > { %20558 = vmatpush1.bf16.msra.mxu1 %v23945_v45  ;;  %v23978_v45 = vpack.c.bf16 %v13651_v8, %v13645_v40  ;;  %25155 = vst [vmem:[#allocation73_spill] sm:$0xff] %v23981_v38  ;;  %25156 = vst [vmem:[#allocation74_spill] sm:$0xff] %v23984_v44  ;;  %v13635_v40 = vld [vmem:[#allocation9 + $0x4f8] sm:$0xff]  ;;  %v13641_v8 = vld [vmem:[#allocation9 + $0x528] sm:$0xff]  ;;  %v24002_v63 = vpack.c.bf16 %v13487_v32, %v13481_v53 }
 0x8a2   : > { %20560 = vmatprep.subr.bf16.mxu1 %v23948_v26  ;;  %v23975_v26 = vpack.c.bf16 %v13638_v33, %v13632_v54  ;;  %v13622_v33 = vld [vmem:[#allocation9 + $0x490] sm:$0xff]  ;;  %v13628_v54 = vld [vmem:[#allocation9 + $0x4c0] sm:$0xff]  ;;  %25158 = vst [vmem:[#allocation76_spill] sm:$0xff] %v23990_v47  ;;  %v23996_v5 = vpack.c.bf16 %v13641_v8, %v13635_v40  ;;  %v13647_v30 = vld [vmem:[#allocation9 + $0x558] sm:$0xff] }
 0x8a3   : > { %20502 = vmatpush1.bf16.msra.mxu0 %v23939_v58  ;;  %25154 = vst [vmem:[#allocation72_spill] sm:$0xff] %v23978_v45  ;;  %v23993_v43 = vpack.c.bf16 %v13628_v54, %v13622_v33  ;;  %v13653_v34 = vld [vmem:[#allocation9 + $0x588] sm:$0xff]  ;;  %25162 = vst [vmem:[#allocation80_spill] sm:$0xff] %v24002_v63  ;;  %v13480_v33 = vld [vmem:[#allocation9 + $0x20] sm:$0xff] }
 0x8a4   : > { %20504 = vmatprep.subr.bf16.mxu0 %v23942_v56  ;;  %25153 = vst [vmem:[#allocation71_spill] sm:$0xff] %v23975_v26  ;;  %25160 = vst [vmem:[#allocation78_spill] sm:$0xff] %v23996_v5  ;;  %v13486_v54 = vld [vmem:[#allocation9 + $0x50] sm:$0xff]  ;;  %v13493_v40 = vld [vmem:[#allocation9 + $0x88] sm:$0xff] }
 0x8a5   : > { %20562 = vmatpush1.bf16.msra.mxu1 %v23957_v4  ;;  %v13650_v4 = vld [vmem:[#allocation9 + $0x570] sm:$0xff]  ;;  %25159 = vst [vmem:[#allocation77_spill] sm:$0xff] %v23993_v43  ;;  %v13499_v8 = vld [vmem:[#allocation9 + $0xb8] sm:$0xff]  ;;  %v13665_v1 = vld [vmem:[#allocation9 + $0x5e8] sm:$0xff]  ;;  %v24011_v53 = vpack.c.bf16 %v13486_v54, %v13480_v33 }
 0x8a6   : > { %20564 = vmatprep.subr.bf16.mxu1 %v23960_v31  ;;  %v23987_v31 = vpack.c.bf16 %v13650_v4, %v13644_v35  ;;  %v13634_v35 = vld [vmem:[#allocation9 + $0x4f0] sm:$0xff]  ;;  %v13640_v4 = vld [vmem:[#allocation9 + $0x520] sm:$0xff]  ;;  %v13659_v36 = vld [vmem:[#allocation9 + $0x5b8] sm:$0xff]  ;;  %v24014_v32 = vpack.c.bf16 %v13499_v8, %v13493_v40 }
 0x8a7   : > { %20506 = vmatpush1.bf16.msra.mxu0 %v23951_v11  ;;  %25165 = vst [vmem:[#allocation83_spill] sm:$0xff] %v24011_v53  ;;  %v24021_v9 = vpack.c.bf16 %v13665_v1, %v13659_v36  ;;  %v13658_v33 = vld [vmem:[#allocation9 + $0x5b0] sm:$0xff]  ;;  %v13664_v54 = vld [vmem:[#allocation9 + $0x5e0] sm:$0xff]  ;;  %v13517_v1 = vld [vmem:[#allocation9 + $0x148] sm:$0xff] }
 0x8a8   : > { %20508 = vmatprep.subr.bf16.mxu0 %v23954_v37  ;;  %25157 = vst [vmem:[#allocation75_spill] sm:$0xff] %v23987_v31  ;;  %25166 = vst [vmem:[#allocation84_spill] sm:$0xff] %v24014_v32  ;;  %v13523_v36 = vld [vmem:[#allocation9 + $0x178] sm:$0xff] }
 0x8a9   : > { %20566 = vmatpush1.bf16.msra.mxu1 %v23969_v60  ;;  %v13662_v60 = vld [vmem:[#allocation9 + $0x5d0] sm:$0xff]  ;;  %25169 = vst [vmem:[#allocation86_spill] sm:$0xff] %v24021_v9 }
 0x8aa   : > { %20568 = vmatprep.subr.bf16.mxu1 %v23972_v13  ;;  %v23999_v13 = vpack.c.bf16 %v13662_v60, %v13656_v27  ;;  %v13646_v27 = vld [vmem:[#allocation9 + $0x550] sm:$0xff]  ;;  %v13652_v60 = vld [vmem:[#allocation9 + $0x580] sm:$0xff] }
 0x8ab   : > { %20510 = vmatpush1.bf16.msra.mxu0 %v23963_v55 }
 0x8ac   : > { %20512 = vmatprep.subr.bf16.mxu0 %v23966_v22  ;;  %25161 = vst [vmem:[#allocation79_spill] sm:$0xff] %v23999_v13 }
 0x8ad   : > { %20570 = vmatpush1.bf16.msra.mxu1 %v23981_v38  ;;  %v24005_v38 = vpack.c.bf16 %v13640_v4, %v13634_v35  ;;  %v13492_v35 = vld [vmem:[#allocation9 + $0x80] sm:$0xff]  ;;  %v13498_v4 = vld [vmem:[#allocation9 + $0xb0] sm:$0xff] }
 0x8ae   : > { %20572 = vmatprep.subr.bf16.mxu1 %v23984_v44  ;;  %v24008_v44 = vpack.c.bf16 %v13653_v34, %v13647_v30  ;;  %v13505_v30 = vld [vmem:[#allocation9 + $0xe8] sm:$0xff]  ;;  %v13511_v34 = vld [vmem:[#allocation9 + $0x118] sm:$0xff]  ;;  %v24024_v40 = vpack.c.bf16 %v13498_v4, %v13492_v35  ;;  %v24038_v4 = vpack.c.bf16 %v13523_v36, %v13517_v1  ;;  %v13528_v1 = vld [vmem:[#allocation9 + $0x1a0] sm:$0xff] }
 0x8af   : > { %20514 = vmatpush1.bf16.msra.mxu0 %v23975_v26  ;;  %25163 = vst [vmem:[#allocation81_spill] sm:$0xff] %v24005_v38  ;;  %v24028_v8 = vpack.c.bf16 %v13511_v34, %v13505_v30  ;;  %v13516_v30 = vld [vmem:[#allocation9 + $0x140] sm:$0xff]  ;;  %v13522_v34 = vld [vmem:[#allocation9 + $0x170] sm:$0xff] }
 0x8b0   : > { %20516 = vmatprep.subr.bf16.mxu0 %v23978_v45  ;;  %25164 = vst [vmem:[#allocation82_spill] sm:$0xff] %v24008_v44  ;;  %25170 = vst [vmem:[#allocation87_spill] sm:$0xff] %v24024_v40  ;;  %v13534_v36 = vld [vmem:[#allocation9 + $0x1d0] sm:$0xff] }
 0x8b1   : > { %20574 = vmatpush1.bf16.msra.mxu1 %v23993_v43  ;;  %v24017_v43 = vpack.c.bf16 %v13652_v60, %v13646_v27  ;;  %25171 = vst [vmem:[#allocation88_spill] sm:$0xff] %v24028_v8  ;;  %v13504_v27 = vld [vmem:[#allocation9 + $0xe0] sm:$0xff]  ;;  %v13510_v60 = vld [vmem:[#allocation9 + $0x110] sm:$0xff]  ;;  %25174 = vst [vmem:[#allocation91_spill] sm:$0xff] %v24038_v4 }
 0x8b2   : > { %20576 = vmatprep.subr.bf16.mxu1 %v23996_v5  ;;  %v25168_v5 = vmov 0.0   ;;  %v24035_v35 = vpack.c.bf16 %v13510_v60, %v13504_v27  ;;  %v13535_v27 = vld [vmem:[#allocation9 + $0x1d8] sm:$0xff] }
 0x8b3   : > { %20518 = vmatpush1.bf16.msra.mxu0 %v23987_v31  ;;  %25167 = vst [vmem:[#allocation85_spill] sm:$0xff] %v24017_v43 }
 0x8b4   : > { %20520 = vmatprep.subr.bf16.mxu0 %v23990_v47  ;;  %25173 = vst [vmem:[#allocation90_spill] sm:$0xff] %v24035_v35 }
 0x8b5   : > { %20578 = vmatpush1.bf16.msra.mxu1 %v24005_v38  ;;  %v24031_v38 = vpack.c.bf16 %v13664_v54, %v13658_v33  ;;  %v24045_v33 = vpack.c.bf16 %v13522_v34, %v13516_v30  ;;  %v13529_v54 = vld [vmem:[#allocation9 + $0x1a8] sm:$0xff]  ;;  %v13540_v30 = vld [vmem:[#allocation9 + $0x200] sm:$0xff]  ;;  %v13546_v34 = vld [vmem:[#allocation9 + $0x230] sm:$0xff] }
 0x8b6   : > { %20580 = vmatprep.subr.bf16.mxu1 %v24008_v44  ;;  %v24048_v60 = vpack.c.bf16 %v13535_v27, %v13529_v54  ;;  %v13553_v54 = vld [vmem:[#allocation9 + $0x268] sm:$0xff]  ;;  %v13559_v27 = vld [vmem:[#allocation9 + $0x298] sm:$0xff] }
 0x8b7   : > { %20522 = vmatpush1.bf16.msra.mxu0 %v23999_v13  ;;  %25172 = vst [vmem:[#allocation89_spill] sm:$0xff] %v24031_v38  ;;  %25175 = vst [vmem:[#allocation92_spill] sm:$0xff] %v24045_v33 }
 0x8b8   : > { %20588 = vmatprep.subr.bf16.mxu0 %v24002_v63  ;;  %25176 = vst [vmem:[#allocation93_spill] sm:$0xff] %v24048_v60 }
 0x8b9   : > { %20582 = vmatpush1.bf16.msra.mxu1 %v24017_v43 }
 0x8ba   : > { %13814 = vmatmul.mubr.f32.vlgmr.msra.gmra.mrb[0].mxu0 %v25168_v5  ;;  %20584 = vmatprep.subr.bf16.mxu1 %v24021_v9 }
 0x8bb   : > { %20590 = vmatpush1.bf16.msra.mxu0 %v24011_v53  ;;  %13955 = vmatprep.mubr.f32.mxu0 %v25168_v5  ;;  %v13673_v53 = vld [vmem:[#allocation12 + $0x20] sm:$0xff] }
 0x8bc   : > { %20592 = vmatprep.subr.bf16.mxu0 %v24014_v32  ;;  %v24056_v32 = vpack.c.bf16 %v13546_v34, %v13540_v30  ;;  %v13564_v34 = vld [vmem:[#allocation9 + $0x2c0] sm:$0xff] }
 0x8bd   : > { %20586 = vmatpush1.bf16.msra.mxu1 %v24031_v38 }
 0x8be   : > { %25179 = vst [vmem:[#allocation96_spill] sm:$0xff] %v24056_v32 }
 0x8bf   : > { %20594 = vmatpush1.bf16.msra.mxu0 %v24024_v40 }
 0x8c0   : > { %20596 = vmatprep.subr.bf16.mxu0 %v24028_v8  ;;  %13885 = vmatmul.mubr.f32.vlgmr.msra.gmra.mrb[0].mxu1 %v25168_v5  ;;  %v24050_v8 = vpack.c.bf16 %v13534_v36, %v13528_v1  ;;  %v24060_v1 = vpack.c.bf16 %v13559_v27, %v13553_v54  ;;  %v13552_v36 = vld [vmem:[#allocation9 + $0x260] sm:$0xff] }
 0x8c1   : > { %14068 = vmatprep.mubr.f32.mxu1 %v25168_v5  ;;  %v13672_v27 = vld [vmem:[#allocation12 + $0x18] sm:$0xff] }
 0x8c2   : > { %25177 = vst [vmem:[#allocation94_spill] sm:$0xff] %v24050_v8  ;;  %25180 = vst [vmem:[#allocation97_spill] sm:$0xff] %v24060_v1 }
 0x8c3   : > { %20598 = vmatpush1.bf16.msra.mxu0 %v24035_v35  ;;  %v13547_v35 = vld [vmem:[#allocation9 + $0x238] sm:$0xff] }
 0x8c4   : > { %20600 = vmatprep.subr.bf16.mxu0 %v24038_v4  ;;  %v13541_v4 = vld [vmem:[#allocation9 + $0x208] sm:$0xff] }
 0x8c5   : > { %v24054_v40 = vpack.c.bf16 %v13547_v35, %v13541_v4  ;;  %v13565_v35 = vld [vmem:[#allocation9 + $0x2c8] sm:$0xff]  ;;  %v13571_v4 = vld [vmem:[#allocation9 + $0x2f8] sm:$0xff] }
 0x8c6   : > { %v24066_v30 = vpack.c.bf16 %v13571_v4, %v13565_v35  ;;  %v13582_v4 = vld [vmem:[#allocation9 + $0x350] sm:$0xff] }
 0x8c7   : > { %20602 = vmatpush1.bf16.msra.mxu0 %v24045_v33  ;;  %25178 = vst [vmem:[#allocation95_spill] sm:$0xff] %v24054_v40 }
 0x8c8   : > { %20604 = vmatprep.subr.bf16.mxu0 %v24048_v60  ;;  %v13558_v60 = vld [vmem:[#allocation9 + $0x290] sm:$0xff]  ;;  %25182 = vst [vmem:[#allocation99_spill] sm:$0xff] %v24066_v30 }
 0x8c9   : > { %v24062_v33 = vpack.c.bf16 %v13558_v60, %v13552_v36  ;;  %v13669_v60 = vld [vmem:[#allocation12] sm:$0xff] }
 0x8ca   : > { %v24074_v36 = vpack.c.bf16 %v13672_v27, %v13669_v60  ;;  %v13675_v60 = vld [vmem:[#allocation12 + $0x30] sm:$0xff]  ;;  %v13678_v27 = vld [vmem:[#allocation12 + $0x48] sm:$0xff] }
 0x8cb   : > { %20606 = vmatpush1.bf16.msra.mxu0 %v24050_v8  ;;  %25181 = vst [vmem:[#allocation98_spill] sm:$0xff] %v24062_v33 }
 0x8cc   : > { %20608 = vmatprep.subr.bf16.mxu0 %v24054_v40  ;;  %v13570_v40 = vld [vmem:[#allocation9 + $0x2f0] sm:$0xff]  ;;  %25185 = vst [vmem:[#allocation102_spill] sm:$0xff] %v24074_v36 }
 0x8cd   : > { %v24068_v8 = vpack.c.bf16 %v13570_v40, %v13564_v34  ;;  %v13576_v40 = vld [vmem:[#allocation9 + $0x320] sm:$0xff] }
 0x8ce   : > { %v24080_v34 = vpack.c.bf16 %v13582_v4, %v13576_v40  ;;  %v13588_v40 = vld [vmem:[#allocation9 + $0x380] sm:$0xff]  ;;  %v13594_v4 = vld [vmem:[#allocation9 + $0x3b0] sm:$0xff] }
 0x8cf   : > { %20610 = vmatpush1.bf16.msra.mxu0 %v24056_v32  ;;  %25183 = vst [vmem:[#allocation100_spill] sm:$0xff] %v24068_v8  ;;  %v13670_v32 = vld [vmem:[#allocation12 + $0x8] sm:$0xff] }
 0x8d0   : > { %20612 = vmatprep.subr.bf16.mxu0 %v24060_v1  ;;  %v24071_v54 = vpack.c.bf16 %v13673_v53, %v13670_v32  ;;  %v13583_v1 = vld [vmem:[#allocation9 + $0x358] sm:$0xff]  ;;  %25187 = vst [vmem:[#allocation104_spill] sm:$0xff] %v24080_v34 }
 0x8d1   : > { %v13676_v53 = vld [vmem:[#allocation12 + $0x38] sm:$0xff]  ;;  %v13679_v32 = vld [vmem:[#allocation12 + $0x50] sm:$0xff] }
 0x8d2   : > { %25184 = vst [vmem:[#allocation101_spill] sm:$0xff] %v24071_v54  ;;  %20652 = vmatprep.subr.bf16.mxu1 %v24071_v54 }
 0x8d3   : > { %20614 = vmatpush1.bf16.msra.mxu0 %v24062_v33  ;;  %v13577_v33 = vld [vmem:[#allocation9 + $0x328] sm:$0xff]  ;;  %20654 = vmatpush1.bf16.msra.mxu1 %v24074_v36  ;;  %v24092_v36 = vpack.c.bf16 %v13594_v4, %v13588_v40  ;;  %v13600_v40 = vld [vmem:[#allocation9 + $0x3e0] sm:$0xff]  ;;  %v13606_v4 = vld [vmem:[#allocation9 + $0x410] sm:$0xff] }
 0x8d4   : > { %20616 = vmatprep.subr.bf16.mxu0 %v24066_v30  ;;  %v24077_v35 = vpack.c.bf16 %v13583_v1, %v13577_v33  ;;  %v24083_v30 = vpack.c.bf16 %v13679_v32, %v13676_v53  ;;  %v13589_v33 = vld [vmem:[#allocation9 + $0x388] sm:$0xff]  ;;  %v13595_v1 = vld [vmem:[#allocation9 + $0x3b8] sm:$0xff] }
 0x8d5   : > { %v24089_v54 = vpack.c.bf16 %v13595_v1, %v13589_v33  ;;  %25191 = vst [vmem:[#allocation108_spill] sm:$0xff] %v24092_v36  ;;  %v13682_v53 = vld [vmem:[#allocation12 + $0x68] sm:$0xff]  ;;  %v13685_v32 = vld [vmem:[#allocation12 + $0x80] sm:$0xff]  ;;  %v13607_v1 = vld [vmem:[#allocation9 + $0x418] sm:$0xff] }
 0x8d6   : > { %25186 = vst [vmem:[#allocation103_spill] sm:$0xff] %v24077_v35  ;;  %25188 = vst [vmem:[#allocation105_spill] sm:$0xff] %v24083_v30  ;;  %20656 = vmatprep.subr.bf16.mxu1 %v24083_v30  ;;  %v13601_v33 = vld [vmem:[#allocation9 + $0x3e8] sm:$0xff] }
 0x8d7   : > { %20618 = vmatpush1.bf16.msra.mxu0 %v24068_v8  ;;  %v24086_v8 = vpack.c.bf16 %v13678_v27, %v13675_v60  ;;  %25190 = vst [vmem:[#allocation107_spill] sm:$0xff] %v24089_v54  ;;  %v13681_v60 = vld [vmem:[#allocation12 + $0x60] sm:$0xff]  ;;  %v13684_v27 = vld [vmem:[#allocation12 + $0x78] sm:$0xff]  ;;  %v24101_v30 = vpack.c.bf16 %v13607_v1, %v13601_v33 }
 0x8d8   : > { %20620 = vmatprep.subr.bf16.mxu0 %v24077_v35  ;;  %v24095_v35 = vpack.c.bf16 %v13685_v32, %v13682_v53  ;;  %v13688_v53 = vld [vmem:[#allocation12 + $0x98] sm:$0xff]  ;;  %v13691_v32 = vld [vmem:[#allocation12 + $0xb0] sm:$0xff]  ;;  %v13613_v33 = vld [vmem:[#allocation9 + $0x448] sm:$0xff] }
 0x8d9   : > { %25189 = vst [vmem:[#allocation106_spill] sm:$0xff] %v24086_v8  ;;  %20658 = vmatpush1.bf16.msra.mxu1 %v24086_v8  ;;  %25194 = vst [vmem:[#allocation111_spill] sm:$0xff] %v24101_v30  ;;  %v24104_v8 = vpack.c.bf16 %v13606_v4, %v13600_v40  ;;  %v13619_v1 = vld [vmem:[#allocation9 + $0x478] sm:$0xff]  ;;  %v13612_v40 = vld [vmem:[#allocation9 + $0x440] sm:$0xff] }
 0x8da   : > { %25192 = vst [vmem:[#allocation109_spill] sm:$0xff] %v24095_v35  ;;  %20660 = vmatprep.subr.bf16.mxu1 %v24095_v35  ;;  %v24113_v35 = vpack.c.bf16 %v13619_v1, %v13613_v33  ;;  %v13618_v4 = vld [vmem:[#allocation9 + $0x470] sm:$0xff]  ;;  %v13625_v33 = vld [vmem:[#allocation9 + $0x4a8] sm:$0xff]  ;;  %v13631_v1 = vld [vmem:[#allocation9 + $0x4d8] sm:$0xff] }
 0x8db   : > { %20622 = vmatpush1.bf16.msra.mxu0 %v24080_v34  ;;  %v24098_v34 = vpack.c.bf16 %v13684_v27, %v13681_v60  ;;  %25195 = vst [vmem:[#allocation112_spill] sm:$0xff] %v24104_v8  ;;  %v13687_v60 = vld [vmem:[#allocation12 + $0x90] sm:$0xff]  ;;  %v13690_v27 = vld [vmem:[#allocation12 + $0xa8] sm:$0xff] }
 0x8dc   : > { %20624 = vmatprep.subr.bf16.mxu0 %v24089_v54  ;;  %v24107_v54 = vpack.c.bf16 %v13691_v32, %v13688_v53  ;;  %25198 = vst [vmem:[#allocation115_spill] sm:$0xff] %v24113_v35  ;;  %v13694_v53 = vld [vmem:[#allocation12 + $0xc8] sm:$0xff]  ;;  %v13697_v32 = vld [vmem:[#allocation12 + $0xe0] sm:$0xff] }
 0x8dd   : > { %25193 = vst [vmem:[#allocation110_spill] sm:$0xff] %v24098_v34  ;;  %20662 = vmatpush1.bf16.msra.mxu1 %v24098_v34  ;;  %v24116_v34 = vpack.c.bf16 %v13618_v4, %v13612_v40  ;;  %v13624_v40 = vld [vmem:[#allocation9 + $0x4a0] sm:$0xff]  ;;  %v13630_v4 = vld [vmem:[#allocation9 + $0x4d0] sm:$0xff] }
 0x8de   : > { %25196 = vst [vmem:[#allocation113_spill] sm:$0xff] %v24107_v54  ;;  %20664 = vmatprep.subr.bf16.mxu1 %v24107_v54  ;;  %v24125_v54 = vpack.c.bf16 %v13631_v1, %v13625_v33  ;;  %v13637_v33 = vld [vmem:[#allocation9 + $0x508] sm:$0xff]  ;;  %v13643_v1 = vld [vmem:[#allocation9 + $0x538] sm:$0xff] }
 0x8df   : > { %20626 = vmatpush1.bf16.msra.mxu0 %v24092_v36  ;;  %v24110_v36 = vpack.c.bf16 %v13690_v27, %v13687_v60  ;;  %25199 = vst [vmem:[#allocation116_spill] sm:$0xff] %v24116_v34  ;;  %v13693_v60 = vld [vmem:[#allocation12 + $0xc0] sm:$0xff]  ;;  %v13696_v27 = vld [vmem:[#allocation12 + $0xd8] sm:$0xff] }
 0x8e0   : > { %20628 = vmatprep.subr.bf16.mxu0 %v24101_v30  ;;  %v24119_v30 = vpack.c.bf16 %v13697_v32, %v13694_v53  ;;  %25202 = vst [vmem:[#allocation119_spill] sm:$0xff] %v24125_v54  ;;  %v13700_v53 = vld [vmem:[#allocation12 + $0xf8] sm:$0xff]  ;;  %v13703_v32 = vld [vmem:[#allocation12 + $0x110] sm:$0xff] }
 0x8e1   : > { %25197 = vst [vmem:[#allocation114_spill] sm:$0xff] %v24110_v36  ;;  %20666 = vmatpush1.bf16.msra.mxu1 %v24110_v36  ;;  %v24128_v36 = vpack.c.bf16 %v13630_v4, %v13624_v40  ;;  %v13636_v40 = vld [vmem:[#allocation9 + $0x500] sm:$0xff]  ;;  %v13642_v4 = vld [vmem:[#allocation9 + $0x530] sm:$0xff] }
 0x8e2   : > { %25200 = vst [vmem:[#allocation117_spill] sm:$0xff] %v24119_v30  ;;  %20668 = vmatprep.subr.bf16.mxu1 %v24119_v30  ;;  %v24137_v30 = vpack.c.bf16 %v13643_v1, %v13637_v33  ;;  %v13649_v33 = vld [vmem:[#allocation9 + $0x568] sm:$0xff]  ;;  %v13655_v1 = vld [vmem:[#allocation9 + $0x598] sm:$0xff] }
 0x8e3   : > { %20630 = vmatpush1.bf16.msra.mxu0 %v24104_v8  ;;  %v24122_v8 = vpack.c.bf16 %v13696_v27, %v13693_v60  ;;  %25203 = vst [vmem:[#allocation120_spill] sm:$0xff] %v24128_v36  ;;  %v13699_v60 = vld [vmem:[#allocation12 + $0xf0] sm:$0xff]  ;;  %v13702_v27 = vld [vmem:[#allocation12 + $0x108] sm:$0xff] }
 0x8e4   : > { %20632 = vmatprep.subr.bf16.mxu0 %v24113_v35  ;;  %v24131_v35 = vpack.c.bf16 %v13703_v32, %v13700_v53  ;;  %25206 = vst [vmem:[#allocation123_spill] sm:$0xff] %v24137_v30  ;;  %v13706_v53 = vld [vmem:[#allocation12 + $0x128] sm:$0xff]  ;;  %v13709_v32 = vld [vmem:[#allocation12 + $0x140] sm:$0xff] }
 0x8e5   : > { %25201 = vst [vmem:[#allocation118_spill] sm:$0xff] %v24122_v8  ;;  %20670 = vmatpush1.bf16.msra.mxu1 %v24122_v8  ;;  %v24140_v8 = vpack.c.bf16 %v13642_v4, %v13636_v40  ;;  %v13648_v40 = vld [vmem:[#allocation9 + $0x560] sm:$0xff]  ;;  %v13654_v4 = vld [vmem:[#allocation9 + $0x590] sm:$0xff] }
 0x8e6   : > { %25204 = vst [vmem:[#allocation121_spill] sm:$0xff] %v24131_v35  ;;  %20672 = vmatprep.subr.bf16.mxu1 %v24131_v35  ;;  %v24149_v35 = vpack.c.bf16 %v13655_v1, %v13649_v33  ;;  %v13661_v33 = vld [vmem:[#allocation9 + $0x5c8] sm:$0xff]  ;;  %v13667_v1 = vld [vmem:[#allocation9 + $0x5f8] sm:$0xff] }
 0x8e7   : > { %20634 = vmatpush1.bf16.msra.mxu0 %v24116_v34  ;;  %v24134_v34 = vpack.c.bf16 %v13702_v27, %v13699_v60  ;;  %25207 = vst [vmem:[#allocation124_spill] sm:$0xff] %v24140_v8  ;;  %v13705_v60 = vld [vmem:[#allocation12 + $0x120] sm:$0xff]  ;;  %v13708_v27 = vld [vmem:[#allocation12 + $0x138] sm:$0xff] }
 0x8e8   : > { %20636 = vmatprep.subr.bf16.mxu0 %v24125_v54  ;;  %v24143_v54 = vpack.c.bf16 %v13709_v32, %v13706_v53  ;;  %25210 = vst [vmem:[#allocation127_spill] sm:$0xff] %v24149_v35  ;;  %v13712_v53 = vld [vmem:[#allocation12 + $0x158] sm:$0xff]  ;;  %v13715_v32 = vld [vmem:[#allocation12 + $0x170] sm:$0xff] }
 0x8e9   : > { %25205 = vst [vmem:[#allocation122_spill] sm:$0xff] %v24134_v34  ;;  %20674 = vmatpush1.bf16.msra.mxu1 %v24134_v34  ;;  %v24152_v34 = vpack.c.bf16 %v13654_v4, %v13648_v40  ;;  %v13660_v40 = vld [vmem:[#allocation9 + $0x5c0] sm:$0xff]  ;;  %v13666_v4 = vld [vmem:[#allocation9 + $0x5f0] sm:$0xff] }
 0x8ea   : > { %25208 = vst [vmem:[#allocation125_spill] sm:$0xff] %v24143_v54  ;;  %20676 = vmatprep.subr.bf16.mxu1 %v24143_v54  ;;  %v24161_v54 = vpack.c.bf16 %v13667_v1, %v13661_v33 }
 0x8eb   : > { %20638 = vmatpush1.bf16.msra.mxu0 %v24128_v36  ;;  %v24146_v36 = vpack.c.bf16 %v13708_v27, %v13705_v60  ;;  %25211 = vst [vmem:[#allocation128_spill] sm:$0xff] %v24152_v34  ;;  %v13711_v60 = vld [vmem:[#allocation12 + $0x150] sm:$0xff]  ;;  %v13714_v27 = vld [vmem:[#allocation12 + $0x168] sm:$0xff] }
 0x8ec   : > { %20640 = vmatprep.subr.bf16.mxu0 %v24137_v30  ;;  %v24155_v30 = vpack.c.bf16 %v13715_v32, %v13712_v53  ;;  %25214 = vst [vmem:[#allocation131_spill] sm:$0xff] %v24161_v54  ;;  %v24973_v53 = vmov 0.0|0.0   ;;  %v24198_v32 = vsub.s32 0, %v22425_v39 }
 0x8ed   : > { %25209 = vst [vmem:[#allocation126_spill] sm:$0xff] %v24146_v36  ;;  %20678 = vmatpush1.bf16.msra.mxu1 %v24146_v36  ;;  %v24164_v36 = vpack.c.bf16 %v13666_v4, %v13660_v40  ;;  %v24208_v40 = vsub.s32 2, %v22425_v39  ;;  %v13444_v4 = vld [vmem:[#allocation8] sm:$0x7] }
 0x8ee   : > { %25212 = vst [vmem:[#allocation129_spill] sm:$0xff] %v24155_v30  ;;  %20680 = vmatprep.subr.bf16.mxu1 %v24155_v30 }
 0x8ef   : > { %20642 = vmatpush1.bf16.msra.mxu0 %v24140_v8  ;;  %v24158_v8 = vpack.c.bf16 %v13714_v27, %v13711_v60  ;;  %25215 = vst [vmem:[#allocation132_spill] sm:$0xff] %v24164_v36  ;;  %v24201_v60 = vsub.s32 1, %v22425_v39  ;;  %v13412_v27 = vld [vmem:[#allocation6] sm:$0x7] }
 0x8f0   : > { %20644 = vmatprep.subr.bf16.mxu0 %v24149_v35  ;;  %v13417_v33 = vrot.slane %v13412_v27, %v24198_v32 }
 0x8f1   : > { %25213 = vst [vmem:[#allocation130_spill] sm:$0xff] %v24158_v8  ;;  %20682 = vmatpush1.bf16.msra.mxu1 %v24158_v8  ;;  %v13421_v1 = vrot.slane %v13412_v27, %v24201_v60 }
 0x8f2   : > { %20683 = vmatprep.subr.bf16.mxu1 %v24973_v53  ;;  %v13425_v53 = vrot.slane %v13412_v27, %v24208_v40 }
 0x8f3   : > { %20646 = vmatpush1.bf16.msra.mxu0 %v24152_v34 }
 0x8f4   : > { %20648 = vmatprep.subr.bf16.mxu0 %v24161_v54 }
 0x8f7   : > { %20650 = vmatpush1.bf16.msra.mxu0 %v24164_v36 }
 0x8f8   : > { %20708 = vmatprep.subr.bf16.mxu0 %v23826_v15 }
 0x8fa   : > { %13956 = vmatmul.mubr.f32.vlgmr.msra.gmra.mrb[2].mxu0 %v25168_v5 }
 0x8fb   : > { %20710 = vmatpush1.bf16.msra.mxu0 %v23830_v6 }
 0x8fc   : > { %20712 = vmatprep.subr.bf16.mxu0 %v23832_v0 }
 0x8ff   : > { %20714 = vmatpush1.bf16.msra.mxu0 %v23836_v50 }
 0x900   : > { %20716 = vmatprep.subr.bf16.mxu0 %v23839_v49 }
 0x903   : > { %20718 = vmatpush1.bf16.msra.mxu0 %v23842_v16 }
 0x904   : > { %20720 = vmatprep.subr.bf16.mxu0 %v23845_v62 }
 0x907   : > { %20722 = vmatpush1.bf16.msra.mxu0 %v23850_v42 }
 0x908   : > { %20724 = vmatprep.subr.bf16.mxu0 %v23856_v59 }
 0x90b   : > { %20726 = vmatpush1.bf16.msra.mxu0 %v23865_v61 }
 0x90c   : > { %20728 = vmatprep.subr.bf16.mxu0 %v23870_v12 }
 0x90f   : > { %20730 = vmatpush1.bf16.msra.mxu0 %v23879_v14 }
 0x910   : > { %20732 = vmatprep.subr.bf16.mxu0 %v23882_v20 }
 0x913   : > { %20734 = vmatpush1.bf16.msra.mxu0 %v23891_v52 }
 0x914   : > { %20736 = vmatprep.subr.bf16.mxu0 %v23894_v25 }
 0x917   : > { %20738 = vmatpush1.bf16.msra.mxu0 %v23903_v21 }
 0x918   : > { %20740 = vmatprep.subr.bf16.mxu0 %v23906_v28 }
 0x91b   : > { %20742 = vmatpush1.bf16.msra.mxu0 %v23915_v46 }
 0x91c   : > { %20744 = vmatprep.subr.bf16.mxu0 %v23918_v29 }
 0x91f   : > { %20746 = vmatpush1.bf16.msra.mxu0 %v23927_v3 }
 0x920   : > { %20748 = vmatprep.subr.bf16.mxu0 %v23930_v10  ;;  %v24222_v10 = vld [vmem:[#allocation11] sm:$0x3f] }
 0x923   : > { %20750 = vmatpush1.bf16.msra.mxu0 %v23939_v58 }
 0x924   : > { %20752 = vmatprep.subr.bf16.mxu0 %v23942_v56 }
 0x927   : > { %20754 = vmatpush1.bf16.msra.mxu0 %v23951_v11  ;;  %v13457_v11 = vrot.slane %v13444_v4, %v24208_v40 }
 0x928   : > { %20756 = vmatprep.subr.bf16.mxu0 %v23954_v37  ;;  %v13440_v37 = vrot.slane %v13425_v53, %v22435_v51  ;;  %v24232_v53 = vrot.slane %v24222_v10, %v24201_v60 }
 0x929   : > { %v13472_v27 = vrot.slane %v13457_v11, %v22435_v51 }
 0x92a   : > { %25218 = vst [vmem:[#allocation135_spill] sm:$0xff] %v24232_v53 }
 0x92b   : > { %20758 = vmatpush1.bf16.msra.mxu0 %v23963_v55  ;;  %v13449_v55 = vrot.slane %v13444_v4, %v24198_v32 }
 0x92c   : > { %20760 = vmatprep.subr.bf16.mxu0 %v23966_v22  ;;  %v13426_v22 = vcombine.low %v13417_v33, %v13421_v1  ;;  %v13411_v33 = vld [vmem:[#allocation2] sm:$0x3f] }
 0x92f   : > { %20762 = vmatpush1.bf16.msra.mxu0 %v23975_v26  ;;  %v13453_v26 = vrot.slane %v13444_v4, %v24201_v60 }
 0x930   : > { %20764 = vmatprep.subr.bf16.mxu0 %v23978_v45  ;;  %v13433_v45 = vrot.slane %v13426_v22, %v22435_v51 }
 0x932   : > { %v13441_v56 = vcombine.low %v13433_v45, %v13440_v37 }
 0x933   : > { %20766 = vmatpush1.bf16.msra.mxu0 %v23987_v31  ;;  %v13458_v31 = vcombine.low %v13449_v55, %v13453_v26 }
 0x934   : > { %20768 = vmatprep.subr.bf16.mxu0 %v23990_v47  ;;  %v13443_v1 = vmul.f32 %v13441_v56, %v13411_v33 }
 0x935   : > { %v13465_v47 = vrot.slane %v13458_v31, %v22435_v51 }
 0x937   : > { %20770 = vmatpush1.bf16.msra.mxu0 %v23999_v13  ;;  %v13473_v58 = vcombine.low %v13465_v47, %v13472_v27 }
 0x938   : > { %20836 = vmatprep.subr.bf16.mxu0 %v24002_v63  ;;  %v24226_v63 = vrot.slane %v24222_v10, %v24198_v32 }
 0x939   : > { %v24228_v22 = vadd.f32 %v13473_v58, %v13443_v1  ;;  %v24245_v1 = vrot.slane %v24222_v10, %v24208_v40 }
 0x93a   : > { %25216 = vst [vmem:[#allocation133_spill] sm:$0xff] %v24226_v63 }
 0x93b   : > { %25217 = vst [vmem:[#allocation134_spill] sm:$0xff] %v24228_v22  ;;  %v24237_v47 = vrot.slane %v24228_v22, 2  ;;  %25220 = vst [vmem:[#allocation137_spill] sm:$0xff] %v24245_v1 }
 0x93d   : > { %25219 = vst [vmem:[#allocation136_spill] sm:$0xff] %v24237_v47 }
 0x98d   : > { %v13815_v45 = vpop.f32.mrb[0].mxu0 }
 0x98e   : > { %v13816_v26 = vadd.f32 %v13815_v45, %v24226_v63  ;;  %v13817_v37 = vpop.f32.mrb[1].mxu0 }
 0x98f   : > { %v13818_v51 = vadd.f32 %v13817_v37, %v24232_v53 }
 0x990   : > { %v13962_v56 = vadd.f32 %v13816_v26, %v24228_v22 }
 0x991   : > { %v13972_v31 = vadd.f32 %v24237_v47, %v13818_v51  ;;  %v13674_v47 = vld [vmem:[#allocation12 + $0x28] sm:$0xff] }
 0x992   : > { %v15595_v11 = vmul.f32 -1.442695, %v13962_v56  ;;  %v24249_v56 = vrot.slane %v24228_v22, 4 }
 0x993   : > { %v15596_v58 = vmul.f32 -1.442695, %v13972_v31  ;;  %v13886_v55 = vpop.f32.mrb[0].mxu1 }
 0x994   : > { %21684 = vpow2.f32 %v15595_v11  ;;  %v24241_v4 = vpop.f32.mrb[1].mxu1  ;;  %v13887_v26 = vadd.f32 %v13886_v55, %v24245_v1  ;;  %v13677_v55 = vld [vmem:[#allocation12 + $0x40] sm:$0xff]  ;;  %v13680_v1 = vld [vmem:[#allocation12 + $0x58] sm:$0xff] }
 0x995   : > { %21686 = vpow2.f32 %v15596_v58 }
 0x99e   : > { %v21685_v27 = vpop.eup %21684 }
 0x99f   : > { %v13966_v33 = vadd.f32 1.0, %v21685_v27  ;;  %v21687_v45 = vpop.eup %21686 }
 0x9a0   : > { %v13976_v37 = vadd.f32 1.0, %v21687_v45 }
 0x9a1   : > { %21688 = vrcp.f32 %v13966_v33  ;;  %v13671_v33 = vld [vmem:[#allocation12 + $0x10] sm:$0xff] }
 0x9a2   : > { %21690 = vrcp.f32 %v13976_v37  ;;  %v24252_v3 = vpack.c.bf16 %v13674_v47, %v13671_v33  ;;  %v24258_v37 = vpack.c.bf16 %v13680_v1, %v13677_v55  ;;  %v13692_v47 = vld [vmem:[#allocation12 + $0xb8] sm:$0xff] }
 0x9a3   : > { %v13704_v33 = vld [vmem:[#allocation12 + $0x118] sm:$0xff] }
 0x9ab   : > { %v21689_v51 = vpop.eup %21688 }
 0x9ac   : > { %v13979_v11 = vmul.f32 %v21689_v51, %v13887_v26  ;;  %v21691_v58 = vpop.eup %21690  ;;  %v25221_v26 = vmov 0.0|0.0   ;;  %v13683_v51 = vld [vmem:[#allocation12 + $0x70] sm:$0xff] }
 0x9ad   : > { %v13984_v27 = vsub.f32 1.0, %v21691_v58  ;;  %v13986_v63 = vmul.f32 0.0, %v21691_v58 }
 0x9ae   : > { %v13982_v31 = vadd.f32 %v24249_v56, %v13979_v11  ;;  %v13695_v11 = vld [vmem:[#allocation12 + $0xd0] sm:$0xff] }
 0x9b0   : > { %21692 = vtanh.f32 %v13982_v31  ;;  %v13698_v31 = vld [vmem:[#allocation12 + $0xe8] sm:$0xff] }
 0x9b1   : > { %v24272_v58 = vpack.c.bf16 %v13698_v31, %v13695_v11  ;;  %v13716_v11 = vld [vmem:[#allocation12 + $0x178] sm:$0xff] }
 0x9ba   : > { %v21693_v53 = vpop.eup %21692 }
 0x9bb   : > { %v13985_v13 = vmul.f32 %v21693_v53, %v13984_v27  ;;  %v13686_v53 = vld [vmem:[#allocation12 + $0x88] sm:$0xff]  ;;  %v13701_v27 = vld [vmem:[#allocation12 + $0x100] sm:$0xff] }
 0x9bc   : > { %v24276_v55 = vpack.c.bf16 %v13704_v33, %v13701_v27  ;;  %v25223_v27 = vld [vmem:[#allocation46_spill] sm:$0xff]  ;;  %v25224_v33 = vld [vmem:[#allocation49_spill] sm:$0xff] }
 0x9bd   : > { %v24254_v45 = vadd.f32 %v13986_v63, %v13985_v13  ;;  %v24264_v63 = vpack.c.bf16 %v13686_v53, %v13683_v51  ;;  %v13689_v13 = vld [vmem:[#allocation12 + $0xa0] sm:$0xff]  ;;  %v13707_v51 = vld [vmem:[#allocation12 + $0x130] sm:$0xff]  ;;  %v13710_v53 = vld [vmem:[#allocation12 + $0x148] sm:$0xff] }
 0x9be   : > { %v24268_v1 = vpack.c.bf16 %v13692_v47, %v13689_v13  ;;  %v24280_v13 = vpack.c.bf16 %v13710_v53, %v13707_v51  ;;  %v13713_v47 = vld [vmem:[#allocation12 + $0x160] sm:$0xff] }
 0x9bf   : > { %14069 = vmatmul.mubr.f32.vlgmr.msra.gmra.mrb[2].mxu1 %v24254_v45  ;;  %v24284_v31 = vpack.c.bf16 %v13716_v11, %v13713_v47  ;;  %v25225_v51 = vld [vmem:[#allocation50_spill] sm:$0xff]  ;;  %v25226_v53 = vld [vmem:[#allocation53_spill] sm:$0xff] }
 0x9c0   : > { %20685 = vmatpush3.bf16.msra.mxu1 %v24252_v3  ;;  %16956 = vmatprep.mubr.msk.f32.mxu1 %vm22059_vm0, %v25168_v5  ;;  %v25227_v47 = vld [vmem:[#allocation54_spill] sm:$0xff]  ;;  %v25228_v11 = vld [vmem:[#allocation57_spill] sm:$0xff] }
 0x9c1   : > { %20686 = vmatprep.subr.bf16.mxu1 %v25221_v26  ;;  %25222 = vst [vmem:[#allocation138_spill] sm:$0xff] %v24284_v31 }
 0x9c4   : > { %20688 = vmatpush3.bf16.msra.mxu1 %v24258_v37 }
 0x9c5   : > { %20689 = vmatprep.subr.bf16.mxu1 %v25221_v26 }
 0x9c8   : > { %20691 = vmatpush3.bf16.msra.mxu1 %v24264_v63 }
 0x9c9   : > { %20692 = vmatprep.subr.bf16.mxu1 %v25221_v26 }
 0x9cc   : > { %20694 = vmatpush3.bf16.msra.mxu1 %v24268_v1 }
 0x9cd   : > { %20695 = vmatprep.subr.bf16.mxu1 %v25221_v26 }
 0x9d0   : > { %20697 = vmatpush3.bf16.msra.mxu1 %v24272_v58 }
 0x9d1   : > { %20698 = vmatprep.subr.bf16.mxu1 %v25221_v26 }
 0x9d4   : > { %20700 = vmatpush3.bf16.msra.mxu1 %v24276_v55 }
 0x9d5   : > { %20701 = vmatprep.subr.bf16.mxu1 %v25221_v26 }
 0x9d8   : > { %20703 = vmatpush3.bf16.msra.mxu1 %v24280_v13 }
 0x9d9   : > { %20704 = vmatprep.subr.bf16.mxu1 %v25221_v26 }
 0x9dc   : > { %20706 = vmatpush3.bf16.msra.mxu1 %v24284_v31 }
 0x9dd   : > { %20772 = vmatprep.subr.bf16.mxu1 %v23847_v18 }
 0x9df   : > { %16957 = vmatmul.mubr.f32.vlgmr.msra.gmra.mrb[4].mxu1 %v24254_v45 }
 0x9e0   : > { %20774 = vmatpush1.bf16.msra.mxu1 %v23853_v19 }
 0x9e1   : > { %20776 = vmatprep.subr.bf16.mxu1 %v23858_v17  ;;  %v13741_v17 = vsub.s32 5, %v22425_v39 }
 0x9e4   : > { %20778 = vmatpush1.bf16.msra.mxu1 %v23861_v48 }
 0x9e5   : > { %20780 = vmatprep.subr.bf16.mxu1 %v23867_v41 }
 0x9e8   : > { %20782 = vmatpush1.bf16.msra.mxu1 %v23873_v57  ;;  %v25229_v57 = vld [vmem:[#allocation58_spill] sm:$0xff] }
 0x9e9   : > { %20784 = vmatprep.subr.bf16.mxu1 %v23876_v23  ;;  %v25230_v23 = vld [vmem:[#allocation61_spill] sm:$0xff] }
 0x9ec   : > { %20786 = vmatpush1.bf16.msra.mxu1 %v23885_v7  ;;  %v25231_v7 = vld [vmem:[#allocation62_spill] sm:$0xff] }
 0x9ed   : > { %20788 = vmatprep.subr.bf16.mxu1 %v23888_v24  ;;  %v25232_v24 = vld [vmem:[#allocation65_spill] sm:$0xff] }
 0x9f0   : > { %20790 = vmatpush1.bf16.msra.mxu1 %v23897_v2  ;;  %v25233_v2 = vld [vmem:[#allocation66_spill] sm:$0xff] }
 0x9f1   : > { %20792 = vmatprep.subr.bf16.mxu1 %v25223_v27  ;;  %v25234_v27 = vld [vmem:[#allocation69_spill] sm:$0xff] }
 0x9f4   : > { %20794 = vmatpush1.bf16.msra.mxu1 %v25224_v33  ;;  %v25235_v33 = vld [vmem:[#allocation70_spill] sm:$0xff] }
 0x9f5   : > { %20796 = vmatprep.subr.bf16.mxu1 %v25225_v51  ;;  %v25236_v51 = vld [vmem:[#allocation73_spill] sm:$0xff] }
 0x9f8   : > { %20798 = vmatpush1.bf16.msra.mxu1 %v25226_v53  ;;  %v25237_v53 = vld [vmem:[#allocation74_spill] sm:$0xff] }
 0x9f9   : > { %20800 = vmatprep.subr.bf16.mxu1 %v25227_v47  ;;  %v25238_v47 = vld [vmem:[#allocation77_spill] sm:$0xff] }
 0x9fc   : > { %20802 = vmatpush1.bf16.msra.mxu1 %v25228_v11  ;;  %v25239_v11 = vld [vmem:[#allocation78_spill] sm:$0xff] }
 0x9fd   : > { %20804 = vmatprep.subr.bf16.mxu1 %v25229_v57  ;;  %v13957_v57 = vpop.f32.mrb[2].mxu0 }
 0xa00   : > { %20806 = vmatpush1.bf16.msra.mxu1 %v25230_v23  ;;  %v25240_v23 = vld [vmem:[#allocation81_spill] sm:$0xff] }
 0xa01   : > { %20808 = vmatprep.subr.bf16.mxu1 %v25231_v7 }
 0xa04   : > { %20810 = vmatpush1.bf16.msra.mxu1 %v25232_v24 }
 0xa05   : > { %20812 = vmatprep.subr.bf16.mxu1 %v25233_v2 }
 0xa08   : > { %20814 = vmatpush1.bf16.msra.mxu1 %v25234_v27  ;;  %v13717_v27 = vld [vmem:[#allocation14] sm:$0x7] }
 0xa09   : > { %20816 = vmatprep.subr.bf16.mxu1 %v25235_v33  ;;  %v25241_v33 = vld [vmem:[#allocation101_spill] sm:$0xff] }
 0xa0c   : > { %20818 = vmatpush1.bf16.msra.mxu1 %v25236_v51  ;;  %v13959_v51 = vpop.f32.mrb[3].mxu0 }
 0xa0d   : > { %20820 = vmatprep.subr.bf16.mxu1 %v25237_v53  ;;  %v13737_v53 = vsub.s32 4, %v22425_v39 }
 0xa10   : > { %20822 = vmatpush1.bf16.msra.mxu1 %v25238_v47  ;;  %v13733_v47 = vsub.s32 3, %v22425_v39 }
 0xa11   : > { %20824 = vmatprep.subr.bf16.mxu1 %v25239_v11  ;;  %v24325_v11 = vrot.slane %v24222_v10, %v13737_v53 }
 0xa13   : > { %25242 = vst [vmem:[#allocation139_spill] sm:$0xff] %v24325_v11 }
 0xa14   : > { %20826 = vmatpush1.bf16.msra.mxu1 %v25240_v23  ;;  %v24328_v23 = vrot.slane %v24222_v10, %v13733_v47 }
 0xa15   : > { %20828 = vmatprep.subr.bf16.mxu1 %v24008_v44 }
 0xa16   : > { %25243 = vst [vmem:[#allocation140_spill] sm:$0xff] %v24328_v23  ;;  %v13889_v44 = vadd.f32 %v24241_v4, %v24328_v23 }
 0xa18   : > { %20830 = vmatpush1.bf16.msra.mxu1 %v24017_v43  ;;  %v24331_v43 = vrot.slane %v13717_v27, %v24198_v32 }
 0xa19   : > { %20832 = vmatprep.subr.bf16.mxu1 %v24021_v9  ;;  %v24334_v9 = vrot.slane %v13717_v27, %v24201_v60 }
 0xa1a   : > { %25244 = vst [vmem:[#allocation141_spill] sm:$0xff] %v24331_v43 }
 0xa1c   : > { %20834 = vmatpush1.bf16.msra.mxu1 %v24031_v38 }
 0xa1d   : > { %20900 = vmatprep.subr.bf16.mxu1 %v25241_v33  ;;  %v13958_v33 = vadd.f32 %v13957_v57, %v24325_v11  ;;  %v24343_v57 = vrot.slane %v24222_v10, %v13741_v17 }
 0xa92   : > { %v14070_v38 = vpop.f32.mrb[2].mxu1 }
 0xa93   : > { %v14071_v2 = vadd.f32 %v14070_v38, %v24331_v43  ;;  %v14072_v24 = vpop.f32.mrb[3].mxu1  ;;  %v13960_v38 = vadd.f32 %v13959_v51, %v24343_v57  ;;  %v25247_v51 = vld [vmem:[#allocation102_spill] sm:$0xff] }
 0xa94   : > { %v14073_v53 = vadd.f32 %v14072_v24, %v24334_v9  ;;  %v24347_v24 = vrot.slane %v13717_v27, %v24208_v40  ;;  %v25245_v40 = vld [vmem:[#allocation83_spill] sm:$0xff]  ;;  %v25246_v27 = vld [vmem:[#allocation84_spill] sm:$0xff] }
 0xa95   : > { %v14145_v7 = vadd.f32 %v14071_v2, %v13889_v44 }
 0xa96   : > { %v14152_v47 = vadd.f32 %v14073_v53, %v13958_v33 }
 0xa97   : > { %v15597_v41 = vmul.f32 -1.442695, %v14145_v7 }
 0xa98   : > { %v15598_v32 = vmul.f32 -1.442695, %v14152_v47 }
 0xa99   : > { %21694 = vpow2.f32 %v15597_v41 }
 0xa9a   : > { %21696 = vpow2.f32 %v15598_v32 }
 0xaa3   : > { %v21695_v48 = vpop.eup %21694 }
 0xaa4   : > { %v14149_v60 = vadd.f32 1.0, %v21695_v48  ;;  %v21697_v4 = vpop.eup %21696 }
 0xaa5   : > { %v14156_v11 = vadd.f32 1.0, %v21697_v4  ;;  %v25250_v4 = vld [vmem:[#allocation88_spill] sm:$0xff] }
 0xaa6   : > { %21698 = vrcp.f32 %v14149_v60  ;;  %v25249_v60 = vld [vmem:[#allocation87_spill] sm:$0xff] }
 0xaa7   : > { %21700 = vrcp.f32 %v14156_v11  ;;  %v25248_v11 = vld [vmem:[#allocation105_spill] sm:$0xff] }
 0xab0   : > { %v21699_v2 = vpop.eup %21698 }
 0xab1   : > { %v14159_v7 = vmul.f32 %v21699_v2, %v13960_v38  ;;  %v21701_v39 = vpop.eup %21700  ;;  %v25251_v38 = vld [vmem:[#allocation106_spill] sm:$0xff]  ;;  %v25252_v2 = vld [vmem:[#allocation109_spill] sm:$0xff] }
 0xab2   : > { %v14141_v41 = vpop.f32.mrb[4].mxu1  ;;  %v14162_v53 = vsub.f32 1.0, %v21701_v39  ;;  %v14164_v47 = vmul.f32 0.0, %v21701_v39  ;;  %v25258_v39 = vld [vmem:[#allocation93_spill] sm:$0xff] }
 0xab3   : > { %v14142_v44 = vadd.f32 %v14141_v41, %v24347_v24  ;;  %v16958_v48 = vpop.f32.mrb[5].mxu1  ;;  %v25254_v41 = vld [vmem:[#allocation91_spill] sm:$0xff] }
 0xab4   : > { %v25256_v48 = vld [vmem:[#allocation113_spill] sm:$0xff] }
 0xab5   : > { %v14160_v33 = vadd.f32 %v14159_v7, %v14142_v44  ;;  %v25253_v7 = vld [vmem:[#allocation90_spill] sm:$0xff] }
 0xab6   : > { %v25255_v44 = vld [vmem:[#allocation110_spill] sm:$0xff] }
 0xab7   : > { %21702 = vtanh.f32 %v14160_v33  ;;  %v25257_v33 = vld [vmem:[#allocation92_spill] sm:$0xff] }
 0xac1   : > { %v21703_v17 = vpop.eup %21702 }
 0xac2   : > { %v14163_v10 = vmul.f32 %v21703_v17, %v14162_v53  ;;  %v25259_v53 = vld [vmem:[#allocation114_spill] sm:$0xff]  ;;  %v25260_v17 = vld [vmem:[#allocation117_spill] sm:$0xff] }
 0xac4   : > { %v24350_v32 = vadd.f32 %v14164_v47, %v14163_v10  ;;  %v25261_v10 = vld [vmem:[#allocation94_spill] sm:$0xff]  ;;  %v25262_v47 = vld [vmem:[#allocation95_spill] sm:$0xff] }
 0xac6   : > { %14166 = vst [vmem:[#allocation3] sm:$0x3] %v24350_v32  ;;  %14231 = vmatprep.mubr.f32.mxu0 %v24350_v32  ;;  %14302 = vmatprep.mubr.f32.mxu1 %v24350_v32 }
 0xac7   : > { %14232 = vmatmul.mubr.f32.vlgmr.msra.gmra.mrb[4].mxu0 %v24254_v45  ;;  %14303 = vmatmul.mubr.f32.vlgmr.msra.gmra.mrb[6].mxu1 %v24254_v45 }
 0xac8   : > { %20838 = vmatpush1.bf16.msra.mxu0 %v25245_v40  ;;  %14373 = vmatprep.mubr.f32.mxu0 %v24350_v32 }
 0xac9   : > { %20840 = vmatprep.subr.bf16.mxu0 %v25246_v27  ;;  %20902 = vmatpush1.bf16.msra.mxu1 %v25247_v51 }
 0xaca   : > { %20904 = vmatprep.subr.bf16.mxu1 %v25248_v11  ;;  %14465 = vmatprep.mubr.f32.mxu1 %v25168_v5 }
 0xacc   : > { %20842 = vmatpush1.bf16.msra.mxu0 %v25249_v60 }
 0xacd   : > { %20844 = vmatprep.subr.bf16.mxu0 %v25250_v4  ;;  %20906 = vmatpush1.bf16.msra.mxu1 %v25251_v38 }
 0xace   : > { %20908 = vmatprep.subr.bf16.mxu1 %v25252_v2  ;;  %v25263_v2 = vld [vmem:[#allocation118_spill] sm:$0xff] }
 0xad0   : > { %20846 = vmatpush1.bf16.msra.mxu0 %v25253_v7  ;;  %v25264_v7 = vld [vmem:[#allocation121_spill] sm:$0xff] }
 0xad1   : > { %20848 = vmatprep.subr.bf16.mxu0 %v25254_v41  ;;  %20910 = vmatpush1.bf16.msra.mxu1 %v25255_v44  ;;  %v25265_v41 = vld [vmem:[#allocation96_spill] sm:$0xff]  ;;  %v25266_v44 = vld [vmem:[#allocation97_spill] sm:$0xff] }
 0xad2   : > { %20912 = vmatprep.subr.bf16.mxu1 %v25256_v48  ;;  %v25267_v48 = vld [vmem:[#allocation122_spill] sm:$0xff] }
 0xad4   : > { %20850 = vmatpush1.bf16.msra.mxu0 %v25257_v33  ;;  %v25268_v33 = vld [vmem:[#allocation125_spill] sm:$0xff] }
 0xad5   : > { %20852 = vmatprep.subr.bf16.mxu0 %v25258_v39  ;;  %20914 = vmatpush1.bf16.msra.mxu1 %v25259_v53  ;;  %v25269_v39 = vld [vmem:[#allocation98_spill] sm:$0xff]  ;;  %v25270_v53 = vld [vmem:[#allocation99_spill] sm:$0xff] }
 0xad6   : > { %20916 = vmatprep.subr.bf16.mxu1 %v25260_v17  ;;  %v25271_v17 = vld [vmem:[#allocation126_spill] sm:$0xff] }
 0xad8   : > { %20854 = vmatpush1.bf16.msra.mxu0 %v25261_v10 }
 0xad9   : > { %20856 = vmatprep.subr.bf16.mxu0 %v25262_v47  ;;  %20918 = vmatpush1.bf16.msra.mxu1 %v25263_v2  ;;  %v25272_v47 = vld [vmem:[#allocation100_spill] sm:$0xff]  ;;  %v25273_v2 = vld [vmem:[#allocation103_spill] sm:$0xff] }
 0xada   : > { %20920 = vmatprep.subr.bf16.mxu1 %v25264_v7 }
 0xadc   : > { %20858 = vmatpush1.bf16.msra.mxu0 %v25265_v41  ;;  %v25284_v41 = vld [vmem:[#allocation124_spill] sm:$0xff] }
 0xadd   : > { %20860 = vmatprep.subr.bf16.mxu0 %v25266_v44  ;;  %20922 = vmatpush1.bf16.msra.mxu1 %v25267_v48  ;;  %v25274_v44 = vld [vmem:[#allocation104_spill] sm:$0xff]  ;;  %v25275_v48 = vld [vmem:[#allocation107_spill] sm:$0xff] }
 0xade   : > { %20924 = vmatprep.subr.bf16.mxu1 %v25268_v33  ;;  %v25276_v33 = vld [vmem:[#allocation108_spill] sm:$0xff] }
 0xae0   : > { %20862 = vmatpush1.bf16.msra.mxu0 %v25269_v39  ;;  %v25277_v39 = vld [vmem:[#allocation111_spill] sm:$0xff] }
 0xae1   : > { %20864 = vmatprep.subr.bf16.mxu0 %v25270_v53  ;;  %20926 = vmatpush1.bf16.msra.mxu1 %v25271_v17  ;;  %v25278_v53 = vld [vmem:[#allocation112_spill] sm:$0xff]  ;;  %v25279_v17 = vld [vmem:[#allocation115_spill] sm:$0xff] }
 0xae2   : > { %20928 = vmatprep.subr.bf16.mxu1 %v24155_v30  ;;  %v25280_v30 = vld [vmem:[#allocation116_spill] sm:$0xff] }
 0xae4   : > { %20866 = vmatpush1.bf16.msra.mxu0 %v25272_v47  ;;  %v25281_v47 = vld [vmem:[#allocation119_spill] sm:$0xff] }
 0xae5   : > { %20868 = vmatprep.subr.bf16.mxu0 %v25273_v2  ;;  %20930 = vmatpush1.bf16.msra.mxu1 %v24158_v8  ;;  %v25282_v2 = vld [vmem:[#allocation120_spill] sm:$0xff]  ;;  %v25283_v8 = vld [vmem:[#allocation123_spill] sm:$0xff] }
 0xae6   : > { %20931 = vmatprep.subr.bf16.mxu1 %v25221_v26 }
 0xae8   : > { %20870 = vmatpush1.bf16.msra.mxu0 %v25274_v44 }
 0xae9   : > { %20872 = vmatprep.subr.bf16.mxu0 %v25275_v48 }
 0xaec   : > { %20874 = vmatpush1.bf16.msra.mxu0 %v25276_v33 }
 0xaed   : > { %20876 = vmatprep.subr.bf16.mxu0 %v25277_v39 }
 0xaf0   : > { %20878 = vmatpush1.bf16.msra.mxu0 %v25278_v53 }
 0xaf1   : > { %20880 = vmatprep.subr.bf16.mxu0 %v25279_v17 }
 0xaf4   : > { %20882 = vmatpush1.bf16.msra.mxu0 %v25280_v30 }
 0xaf5   : > { %20884 = vmatprep.subr.bf16.mxu0 %v25281_v47 }
 0xaf8   : > { %20886 = vmatpush1.bf16.msra.mxu0 %v25282_v2 }
 0xaf9   : > { %20888 = vmatprep.subr.bf16.mxu0 %v25283_v8 }
 0xafc   : > { %20890 = vmatpush1.bf16.msra.mxu0 %v25284_v41 }
 0xafd   : > { %20892 = vmatprep.subr.bf16.mxu0 %v24149_v35 }
 0xb00   : > { %20894 = vmatpush1.bf16.msra.mxu0 %v24152_v34 }
 0xb01   : > { %20896 = vmatprep.subr.bf16.mxu0 %v24161_v54 }
 0xb04   : > { %20898 = vmatpush1.bf16.msra.mxu0 %v24164_v36 }
 0xb05   : > { %20956 = vmatprep.subr.bf16.mxu0 %v23826_v15 }
 0xb07   : > { %14374 = vmatmul.mubr.f32.vlgmr.msra.gmra.mrb[6].mxu0 %v24254_v45 }
 0xb08   : > { %20958 = vmatpush1.bf16.msra.mxu0 %v23830_v6  ;;  %v25302_v6 = vld [vmem:[#allocation137_spill] sm:$0xff] }
 0xb09   : > { %20960 = vmatprep.subr.bf16.mxu0 %v23832_v0 }
 0xb0c   : > { %20962 = vmatpush1.bf16.msra.mxu0 %v23836_v50 }
 0xb0d   : > { %20964 = vmatprep.subr.bf16.mxu0 %v23839_v49  ;;  %v25301_v49 = vld [vmem:[#allocation136_spill] sm:$0xff] }
 0xb10   : > { %20966 = vmatpush1.bf16.msra.mxu0 %v23842_v16 }
 0xb11   : > { %20968 = vmatprep.subr.bf16.mxu0 %v23845_v62 }
 0xb14   : > { %20970 = vmatpush1.bf16.msra.mxu0 %v23850_v42  ;;  %v25299_v42 = vld [vmem:[#allocation133_spill] sm:$0xff] }
 0xb15   : > { %20972 = vmatprep.subr.bf16.mxu0 %v23856_v59  ;;  %v25285_v59 = vld [vmem:[#allocation55_spill] sm:$0xff] }
 0xb18   : > { %20974 = vmatpush1.bf16.msra.mxu0 %v23865_v61  ;;  %v25286_v61 = vld [vmem:[#allocation56_spill] sm:$0xff] }
 0xb19   : > { %20976 = vmatprep.subr.bf16.mxu0 %v23870_v12  ;;  %v25287_v12 = vld [vmem:[#allocation59_spill] sm:$0xff] }
 0xb1c   : > { %20978 = vmatpush1.bf16.msra.mxu0 %v23879_v14  ;;  %v25288_v14 = vld [vmem:[#allocation60_spill] sm:$0xff] }
 0xb1d   : > { %20980 = vmatprep.subr.bf16.mxu0 %v23882_v20  ;;  %v25289_v20 = vld [vmem:[#allocation63_spill] sm:$0xff] }
 0xb20   : > { %20982 = vmatpush1.bf16.msra.mxu0 %v23891_v52  ;;  %v25290_v52 = vld [vmem:[#allocation64_spill] sm:$0xff] }
 0xb21   : > { %20984 = vmatprep.subr.bf16.mxu0 %v23894_v25  ;;  %v25291_v25 = vld [vmem:[#allocation67_spill] sm:$0xff] }
 0xb24   : > { %20986 = vmatpush1.bf16.msra.mxu0 %v23903_v21  ;;  %v25292_v21 = vld [vmem:[#allocation68_spill] sm:$0xff] }
 0xb25   : > { %20988 = vmatprep.subr.bf16.mxu0 %v23906_v28  ;;  %v25293_v28 = vld [vmem:[#allocation71_spill] sm:$0xff] }
 0xb28   : > { %20990 = vmatpush1.bf16.msra.mxu0 %v23915_v46  ;;  %v25294_v46 = vld [vmem:[#allocation72_spill] sm:$0xff] }
 0xb29   : > { %20992 = vmatprep.subr.bf16.mxu0 %v23918_v29  ;;  %v25295_v29 = vld [vmem:[#allocation75_spill] sm:$0xff] }
 0xb2c   : > { %20994 = vmatpush1.bf16.msra.mxu0 %v25285_v59  ;;  %v25296_v59 = vld [vmem:[#allocation76_spill] sm:$0xff] }
 0xb2d   : > { %20996 = vmatprep.subr.bf16.mxu0 %v25286_v61  ;;  %v25297_v61 = vld [vmem:[#allocation79_spill] sm:$0xff] }
 0xb30   : > { %20998 = vmatpush1.bf16.msra.mxu0 %v25287_v12  ;;  %v25298_v12 = vld [vmem:[#allocation80_spill] sm:$0xff] }
 0xb31   : > { %21000 = vmatprep.subr.bf16.mxu0 %v25288_v14 }
 0xb34   : > { %21002 = vmatpush1.bf16.msra.mxu0 %v25289_v20 }
 0xb35   : > { %21004 = vmatprep.subr.bf16.mxu0 %v25290_v52 }
 0xb38   : > { %21006 = vmatpush1.bf16.msra.mxu0 %v25291_v25 }
 0xb39   : > { %21008 = vmatprep.subr.bf16.mxu0 %v25292_v21  ;;  %v25300_v21 = vld [vmem:[#allocation135_spill] sm:$0xff] }
 0xb3c   : > { %21010 = vmatpush1.bf16.msra.mxu0 %v25293_v28 }
 0xb3d   : > { %21012 = vmatprep.subr.bf16.mxu0 %v25294_v46 }
 0xb40   : > { %21014 = vmatpush1.bf16.msra.mxu0 %v25295_v29 }
 0xb41   : > { %21016 = vmatprep.subr.bf16.mxu0 %v25296_v59 }
 0xb44   : > { %21018 = vmatpush1.bf16.msra.mxu0 %v25297_v61 }
 0xb45   : > { %21084 = vmatprep.subr.bf16.mxu0 %v25298_v12 }
 0xb9a   : > { %v14233_v14 = vpop.f32.mrb[4].mxu0  ;;  %v14304_v20 = vpop.f32.mrb[6].mxu1 }
 0xb9b   : > { %v14234_v52 = vadd.f32 %v14233_v14, %v25299_v42  ;;  %v14235_v62 = vpop.f32.mrb[5].mxu0  ;;  %v24441_v25 = vpop.f32.mrb[7].mxu1  ;;  %v14305_v14 = vadd.f32 %v14304_v20, %v25302_v6  ;;  %v25307_v20 = vld [vmem:[#allocation38_spill] sm:$0xff] }
 0xb9c   : > { %v14236_v16 = vadd.f32 %v14235_v62, %v25300_v21 }
 0xb9d   : > { %v14380_v28 = vadd.f32 %v14234_v52, %v24228_v22 }
 0xb9e   : > { %v14387_v29 = vadd.f32 %v14236_v16, %v25301_v49 }
 0xb9f   : > { %v15599_v46 = vmul.f32 -1.442695, %v14380_v28 }
 0xba0   : > { %v15600_v59 = vmul.f32 -1.442695, %v14387_v29  ;;  %v25308_v29 = vld [vmem:[#allocation41_spill] sm:$0xff] }
 0xba1   : > { %21704 = vpow2.f32 %v15599_v46 }
 0xba2   : > { %21706 = vpow2.f32 %v15600_v59 }
 0xbab   : > { %v21705_v61 = vpop.eup %21704 }
 0xbac   : > { %v14384_v50 = vadd.f32 1.0, %v21705_v61  ;;  %v21707_v12 = vpop.eup %21706  ;;  %v25305_v61 = vld [vmem:[#allocation35_spill] sm:$0xff] }
 0xbad   : > { %v14391_v0 = vadd.f32 1.0, %v21707_v12  ;;  %v25306_v12 = vld [vmem:[#allocation37_spill] sm:$0xff] }
 0xbae   : > { %21708 = vrcp.f32 %v14384_v50  ;;  %v25303_v50 = vld [vmem:[#allocation32_spill] sm:$0xff] }
 0xbaf   : > { %21710 = vrcp.f32 %v14391_v0 }
 0xbb8   : > { %v21709_v42 = vpop.eup %21708 }
 0xbb9   : > { %v14394_v15 = vmul.f32 %v21709_v42, %v14305_v14  ;;  %v21711_v52 = vpop.eup %21710  ;;  %v25304_v42 = vld [vmem:[#allocation33_spill] sm:$0xff]  ;;  %v25311_v14 = vld [vmem:[#allocation46_spill] sm:$0xff] }
 0xbba   : > { %v14397_v28 = vsub.f32 1.0, %v21711_v52  ;;  %v14399_v16 = vmul.f32 %v21711_v52, %v24254_v45  ;;  %v25310_v45 = vld [vmem:[#allocation45_spill] sm:$0xff]  ;;  %v25313_v52 = vld [vmem:[#allocation50_spill] sm:$0xff] }
 0xbbb   : > { %v14395_v62 = vadd.f32 %v14394_v15, %v24249_v56 }
 0xbbd   : > { %21712 = vtanh.f32 %v14395_v62  ;;  %v25312_v62 = vld [vmem:[#allocation49_spill] sm:$0xff] }
 0xbc7   : > { %v21713_v22 = vpop.eup %21712 }
 0xbc8   : > { %v14398_v46 = vmul.f32 %v21713_v22, %v14397_v28  ;;  %v25309_v22 = vld [vmem:[#allocation42_spill] sm:$0xff]  ;;  %v25314_v28 = vld [vmem:[#allocation53_spill] sm:$0xff] }
 0xbca   : > { %v24449_v59 = vadd.f32 %v14399_v16, %v14398_v46  ;;  %v25315_v16 = vld [vmem:[#allocation54_spill] sm:$0xff]  ;;  %v25316_v46 = vld [vmem:[#allocation57_spill] sm:$0xff] }
 0xbcc   : > { %14466 = vmatmul.mubr.f32.vlgmr.msra.gmra.mrb[8].mxu1 %v24449_v59 }
 0xbcd   : > { %20933 = vmatpush3.bf16.msra.mxu1 %v24252_v3  ;;  %16991 = vmatprep.mubr.msk.f32.mxu1 %vm22059_vm0, %v25168_v5 }
 0xbce   : > { %20934 = vmatprep.subr.bf16.mxu1 %v25221_v26 }
 0xbd1   : > { %20936 = vmatpush3.bf16.msra.mxu1 %v24258_v37 }
 0xbd2   : > { %20937 = vmatprep.subr.bf16.mxu1 %v25221_v26 }
 0xbd5   : > { %20939 = vmatpush3.bf16.msra.mxu1 %v24264_v63 }
 0xbd6   : > { %20940 = vmatprep.subr.bf16.mxu1 %v25221_v26 }
 0xbd9   : > { %20942 = vmatpush3.bf16.msra.mxu1 %v24268_v1 }
 0xbda   : > { %v14375_v15 = vpop.f32.mrb[6].mxu0  ;;  %20943 = vmatprep.subr.bf16.mxu1 %v25221_v26 }
 0xbdb   : > { %v14377_v0 = vpop.f32.mrb[7].mxu0 }
 0xbdd   : > { %20945 = vmatpush3.bf16.msra.mxu1 %v24272_v58 }
 0xbde   : > { %20946 = vmatprep.subr.bf16.mxu1 %v25221_v26 }
 0xbe1   : > { %20948 = vmatpush3.bf16.msra.mxu1 %v24276_v55 }
 0xbe2   : > { %20949 = vmatprep.subr.bf16.mxu1 %v25221_v26 }
 0xbe5   : > { %20951 = vmatpush3.bf16.msra.mxu1 %v24280_v13 }
 0xbe6   : > { %20952 = vmatprep.subr.bf16.mxu1 %v25221_v26 }
 0xbe9   : > { %20954 = vmatpush3.bf16.msra.mxu1 %v24284_v31 }
 0xbea   : > { %21020 = vmatprep.subr.bf16.mxu1 %v23847_v18 }
 0xbec   : > { %16992 = vmatmul.mubr.f32.vlgmr.msra.gmra.mrb[10].mxu1 %v24449_v59 }
 0xbed   : > { %21022 = vmatpush1.bf16.msra.mxu1 %v23853_v19  ;;  %v14378_v19 = vadd.f32 %v14377_v0, %v24343_v57  ;;  %v25339_v0 = vld [vmem:[#allocation113_spill] sm:$0xff] }
 0xbee   : > { %21024 = vmatprep.subr.bf16.mxu1 %v25303_v50 }
 0xbf1   : > { %21026 = vmatpush1.bf16.msra.mxu1 %v25304_v42 }
 0xbf2   : > { %21028 = vmatprep.subr.bf16.mxu1 %v25305_v61 }
 0xbf5   : > { %21030 = vmatpush1.bf16.msra.mxu1 %v25306_v12  ;;  %v25317_v12 = vld [vmem:[#allocation58_spill] sm:$0xff] }
 0xbf6   : > { %21032 = vmatprep.subr.bf16.mxu1 %v25307_v20  ;;  %v25318_v20 = vld [vmem:[#allocation61_spill] sm:$0xff] }
 0xbf9   : > { %21034 = vmatpush1.bf16.msra.mxu1 %v25308_v29  ;;  %v25319_v29 = vld [vmem:[#allocation62_spill] sm:$0xff] }
 0xbfa   : > { %21036 = vmatprep.subr.bf16.mxu1 %v25309_v22  ;;  %v25320_v22 = vld [vmem:[#allocation65_spill] sm:$0xff] }
 0xbfd   : > { %21038 = vmatpush1.bf16.msra.mxu1 %v25310_v45  ;;  %v25321_v45 = vld [vmem:[#allocation66_spill] sm:$0xff] }
 0xbfe   : > { %21040 = vmatprep.subr.bf16.mxu1 %v25311_v14  ;;  %v25322_v14 = vld [vmem:[#allocation69_spill] sm:$0xff] }
 0xc01   : > { %21042 = vmatpush1.bf16.msra.mxu1 %v25312_v62  ;;  %v25323_v62 = vld [vmem:[#allocation70_spill] sm:$0xff] }
 0xc02   : > { %21044 = vmatprep.subr.bf16.mxu1 %v25313_v52  ;;  %v25324_v52 = vld [vmem:[#allocation73_spill] sm:$0xff] }
 0xc05   : > { %21046 = vmatpush1.bf16.msra.mxu1 %v25314_v28  ;;  %v25325_v28 = vld [vmem:[#allocation74_spill] sm:$0xff] }
 0xc06   : > { %21048 = vmatprep.subr.bf16.mxu1 %v25315_v16  ;;  %v25326_v16 = vld [vmem:[#allocation77_spill] sm:$0xff] }
 0xc09   : > { %21050 = vmatpush1.bf16.msra.mxu1 %v25316_v46  ;;  %v25327_v46 = vld [vmem:[#allocation78_spill] sm:$0xff] }
 0xc0a   : > { %21052 = vmatprep.subr.bf16.mxu1 %v25317_v12  ;;  %v25328_v12 = vld [vmem:[#allocation81_spill] sm:$0xff] }
 0xc0d   : > { %21054 = vmatpush1.bf16.msra.mxu1 %v25318_v20  ;;  %v25329_v20 = vld [vmem:[#allocation82_spill] sm:$0xff] }
 0xc0e   : > { %21056 = vmatprep.subr.bf16.mxu1 %v25319_v29  ;;  %v25330_v29 = vld [vmem:[#allocation85_spill] sm:$0xff] }
 0xc11   : > { %21058 = vmatpush1.bf16.msra.mxu1 %v25320_v22  ;;  %v25331_v22 = vld [vmem:[#allocation86_spill] sm:$0xff] }
 0xc12   : > { %21060 = vmatprep.subr.bf16.mxu1 %v25321_v45  ;;  %v25332_v45 = vld [vmem:[#allocation89_spill] sm:$0xff] }
 0xc15   : > { %21062 = vmatpush1.bf16.msra.mxu1 %v25322_v14  ;;  %v25333_v14 = vld [vmem:[#allocation101_spill] sm:$0xff] }
 0xc16   : > { %21064 = vmatprep.subr.bf16.mxu1 %v25323_v62 }
 0xc19   : > { %21066 = vmatpush1.bf16.msra.mxu1 %v25324_v52 }
 0xc1a   : > { %21068 = vmatprep.subr.bf16.mxu1 %v25325_v28  ;;  %v14307_v28 = vadd.f32 %v24441_v25, %v24328_v23 }
 0xc1d   : > { %21070 = vmatpush1.bf16.msra.mxu1 %v25326_v16 }
 0xc1e   : > { %21072 = vmatprep.subr.bf16.mxu1 %v25327_v46  ;;  %v25334_v46 = vld [vmem:[#allocation139_spill] sm:$0xff] }
 0xc1f   : > { %v14376_v61 = vadd.f32 %v14375_v15, %v25334_v46 }
 0xc21   : > { %21074 = vmatpush1.bf16.msra.mxu1 %v25328_v12 }
 0xc22   : > { %21076 = vmatprep.subr.bf16.mxu1 %v25329_v20 }
 0xc25   : > { %21078 = vmatpush1.bf16.msra.mxu1 %v25330_v29 }
 0xc26   : > { %21080 = vmatprep.subr.bf16.mxu1 %v25331_v22 }
 0xc29   : > { %21082 = vmatpush1.bf16.msra.mxu1 %v25332_v45 }
 0xc2a   : > { %21148 = vmatprep.subr.bf16.mxu1 %v25333_v14 }
 0xc9f   : > { %v14467_v62 = vpop.f32.mrb[8].mxu1 }
 0xca0   : > { %v14468_v16 = vadd.f32 %v14467_v62, %v24331_v43  ;;  %v14469_v52 = vpop.f32.mrb[9].mxu1 }
 0xca1   : > { %v14470_v12 = vadd.f32 %v14469_v52, %v24334_v9 }
 0xca2   : > { %v14542_v20 = vadd.f32 %v14468_v16, %v14307_v28  ;;  %v25343_v16 = vld [vmem:[#allocation117_spill] sm:$0xff] }
 0xca3   : > { %v14549_v42 = vadd.f32 %v14470_v12, %v14376_v61 }
 0xca4   : > { %v15601_v29 = vmul.f32 -1.442695, %v14542_v20 }
 0xca5   : > { %v15602_v22 = vmul.f32 -1.442695, %v14549_v42 }
 0xca6   : > { %21714 = vpow2.f32 %v15601_v29 }
 0xca7   : > { %21716 = vpow2.f32 %v15602_v22  ;;  %v25340_v22 = vld [vmem:[#allocation92_spill] sm:$0xff] }
 0xcb0   : > { %v21715_v45 = vpop.eup %21714 }
 0xcb1   : > { %v14546_v50 = vadd.f32 1.0, %v21715_v45  ;;  %v21717_v14 = vpop.eup %21716  ;;  %v25341_v45 = vld [vmem:[#allocation93_spill] sm:$0xff] }
 0xcb2   : > { %v14553_v25 = vadd.f32 1.0, %v21717_v14  ;;  %v25342_v14 = vld [vmem:[#allocation114_spill] sm:$0xff] }
 0xcb3   : > { %21718 = vrcp.f32 %v14546_v50 }
 0xcb4   : > { %21720 = vrcp.f32 %v14553_v25  ;;  %v25344_v25 = vld [vmem:[#allocation95_spill] sm:$0xff] }
 0xcbd   : > { %v21719_v23 = vpop.eup %21718 }
 0xcbe   : > { %v14556_v62 = vmul.f32 %v21719_v23, %v14378_v19  ;;  %v21721_v61 = vpop.eup %21720  ;;  %v25335_v19 = vld [vmem:[#allocation109_spill] sm:$0xff]  ;;  %v25336_v23 = vld [vmem:[#allocation90_spill] sm:$0xff] }
 0xcbf   : > { %v14538_v43 = vpop.f32.mrb[10].mxu1  ;;  %v14559_v12 = vsub.f32 1.0, %v21721_v61  ;;  %v14561_v29 = vmul.f32 %v21721_v61, %v24350_v32  ;;  %v25338_v32 = vld [vmem:[#allocation110_spill] sm:$0xff]  ;;  %v25349_v61 = vld [vmem:[#allocation125_spill] sm:$0xff] }
 0xcc0   : > { %v14539_v15 = vadd.f32 %v14538_v43, %v24347_v24  ;;  %v16993_v52 = vpop.f32.mrb[11].mxu1  ;;  %v25337_v43 = vld [vmem:[#allocation91_spill] sm:$0xff] }
 0xcc1   : > { %v25347_v52 = vld [vmem:[#allocation97_spill] sm:$0xff] }
 0xcc2   : > { %v14557_v28 = vadd.f32 %v14556_v62, %v14539_v15  ;;  %v25345_v62 = vld [vmem:[#allocation118_spill] sm:$0xff]  ;;  %v25346_v15 = vld [vmem:[#allocation96_spill] sm:$0xff] }
 0xcc4   : > { %21722 = vtanh.f32 %v14557_v28  ;;  %v25348_v28 = vld [vmem:[#allocation122_spill] sm:$0xff] }
 0xcce   : > { %v21723_v42 = vpop.eup %21722 }
 0xccf   : > { %v14560_v20 = vmul.f32 %v21723_v42, %v14559_v12  ;;  %v25350_v12 = vld [vmem:[#allocation98_spill] sm:$0xff]  ;;  %v25351_v42 = vld [vmem:[#allocation99_spill] sm:$0xff] }
 0xcd1   : > { %v24511_v50 = vadd.f32 %v14561_v29, %v14560_v20  ;;  %v25352_v20 = vld [vmem:[#allocation126_spill] sm:$0xff]  ;;  %v25353_v29 = vld [vmem:[#allocation129_spill] sm:$0xff] }
 0xcd3   : > { %14563 = vst [vmem:[#allocation3 + $0x2] sm:$0x3] %v24511_v50  ;;  %14628 = vmatprep.mubr.f32.mxu0 %v24511_v50  ;;  %14699 = vmatprep.mubr.f32.mxu1 %v24511_v50 }
 0xcd4   : > { %14629 = vmatmul.mubr.f32.vlgmr.msra.gmra.mrb[8].mxu0 %v24449_v59  ;;  %14700 = vmatmul.mubr.f32.vlgmr.msra.gmra.mrb[12].mxu1 %v24449_v59 }
 0xcd5   : > { %21086 = vmatpush1.bf16.msra.mxu0 %v25245_v40  ;;  %14770 = vmatprep.mubr.f32.mxu0 %v24511_v50 }
 0xcd6   : > { %21088 = vmatprep.subr.bf16.mxu0 %v25246_v27  ;;  %21150 = vmatpush1.bf16.msra.mxu1 %v25247_v51 }
 0xcd7   : > { %21152 = vmatprep.subr.bf16.mxu1 %v25248_v11  ;;  %14862 = vmatprep.mubr.f32.mxu1 %v25168_v5 }
 0xcd9   : > { %21090 = vmatpush1.bf16.msra.mxu0 %v25249_v60 }
 0xcda   : > { %21092 = vmatprep.subr.bf16.mxu0 %v25250_v4  ;;  %21154 = vmatpush1.bf16.msra.mxu1 %v25251_v38 }
 0xcdb   : > { %21156 = vmatprep.subr.bf16.mxu1 %v25335_v19 }
 0xcdd   : > { %21094 = vmatpush1.bf16.msra.mxu0 %v25336_v23 }
 0xcde   : > { %21096 = vmatprep.subr.bf16.mxu0 %v25337_v43  ;;  %21158 = vmatpush1.bf16.msra.mxu1 %v25338_v32 }
 0xcdf   : > { %21160 = vmatprep.subr.bf16.mxu1 %v25339_v0 }
 0xce1   : > { %21098 = vmatpush1.bf16.msra.mxu0 %v25340_v22 }
 0xce2   : > { %21100 = vmatprep.subr.bf16.mxu0 %v25341_v45  ;;  %21162 = vmatpush1.bf16.msra.mxu1 %v25342_v14 }
 0xce3   : > { %21164 = vmatprep.subr.bf16.mxu1 %v25343_v16 }
 0xce5   : > { %21102 = vmatpush1.bf16.msra.mxu0 %v25261_v10 }
 0xce6   : > { %21104 = vmatprep.subr.bf16.mxu0 %v25344_v25  ;;  %21166 = vmatpush1.bf16.msra.mxu1 %v25345_v62  ;;  %v25354_v25 = vld [vmem:[#allocation100_spill] sm:$0xff]  ;;  %v25355_v62 = vld [vmem:[#allocation103_spill] sm:$0xff] }
 0xce7   : > { %21168 = vmatprep.subr.bf16.mxu1 %v25264_v7  ;;  %v25356_v7 = vld [vmem:[#allocation130_spill] sm:$0xff] }
 0xce9   : > { %21106 = vmatpush1.bf16.msra.mxu0 %v25346_v15 }
 0xcea   : > { %21108 = vmatprep.subr.bf16.mxu0 %v25347_v52  ;;  %21170 = vmatpush1.bf16.msra.mxu1 %v25348_v28 }
 0xceb   : > { %21172 = vmatprep.subr.bf16.mxu1 %v25349_v61 }
 0xced   : > { %21110 = vmatpush1.bf16.msra.mxu0 %v25350_v12 }
 0xcee   : > { %21112 = vmatprep.subr.bf16.mxu0 %v25351_v42  ;;  %21174 = vmatpush1.bf16.msra.mxu1 %v25352_v20 }
 0xcef   : > { %21176 = vmatprep.subr.bf16.mxu1 %v25353_v29 }
 0xcf1   : > { %21114 = vmatpush1.bf16.msra.mxu0 %v25354_v25 }
 0xcf2   : > { %21116 = vmatprep.subr.bf16.mxu0 %v25355_v62  ;;  %21178 = vmatpush1.bf16.msra.mxu1 %v25356_v7 }
 0xcf3   : > { %21179 = vmatprep.subr.bf16.mxu1 %v25221_v26 }
 0xcf5   : > { %21118 = vmatpush1.bf16.msra.mxu0 %v25274_v44 }
 0xcf6   : > { %21120 = vmatprep.subr.bf16.mxu0 %v25275_v48 }
 0xcf9   : > { %21122 = vmatpush1.bf16.msra.mxu0 %v25276_v33 }
 0xcfa   : > { %21124 = vmatprep.subr.bf16.mxu0 %v25277_v39  ;;  %v25390_v39 = vld [vmem:[#allocation133_spill] sm:$0xff] }
 0xcfd   : > { %21126 = vmatpush1.bf16.msra.mxu0 %v25278_v53  ;;  %v25357_v53 = vld [vmem:[#allocation22_spill] sm:$0xff] }
 0xcfe   : > { %21128 = vmatprep.subr.bf16.mxu0 %v25279_v17  ;;  %v25368_v17 = vld [vmem:[#allocation39_spill] sm:$0xff] }
 0xd01   : > { %21130 = vmatpush1.bf16.msra.mxu0 %v25280_v30  ;;  %v25358_v30 = vld [vmem:[#allocation23_spill] sm:$0xff] }
 0xd02   : > { %21132 = vmatprep.subr.bf16.mxu0 %v25281_v47  ;;  %v25359_v47 = vld [vmem:[#allocation24_spill] sm:$0xff] }
 0xd05   : > { %21134 = vmatpush1.bf16.msra.mxu0 %v25282_v2  ;;  %v25360_v2 = vld [vmem:[#allocation25_spill] sm:$0xff] }
 0xd06   : > { %21136 = vmatprep.subr.bf16.mxu0 %v25283_v8  ;;  %v25361_v8 = vld [vmem:[#allocation26_spill] sm:$0xff] }
 0xd09   : > { %21138 = vmatpush1.bf16.msra.mxu0 %v25284_v41  ;;  %v25362_v41 = vld [vmem:[#allocation27_spill] sm:$0xff] }
 0xd0a   : > { %21140 = vmatprep.subr.bf16.mxu0 %v24149_v35  ;;  %v25363_v35 = vld [vmem:[#allocation28_spill] sm:$0xff] }
 0xd0d   : > { %21142 = vmatpush1.bf16.msra.mxu0 %v24152_v34  ;;  %v25364_v34 = vld [vmem:[#allocation29_spill] sm:$0xff] }
 0xd0e   : > { %21144 = vmatprep.subr.bf16.mxu0 %v24161_v54  ;;  %v25365_v54 = vld [vmem:[#allocation31_spill] sm:$0xff] }
 0xd11   : > { %21146 = vmatpush1.bf16.msra.mxu0 %v24164_v36  ;;  %v25366_v36 = vld [vmem:[#allocation34_spill] sm:$0xff] }
 0xd12   : > { %21204 = vmatprep.subr.bf16.mxu0 %v25357_v53  ;;  %v25367_v53 = vld [vmem:[#allocation36_spill] sm:$0xff] }
 0xd14   : > { %14771 = vmatmul.mubr.f32.vlgmr.msra.gmra.mrb[10].mxu0 %v24449_v59 }
 0xd15   : > { %21206 = vmatpush1.bf16.msra.mxu0 %v25358_v30  ;;  %v25369_v30 = vld [vmem:[#allocation40_spill] sm:$0xff] }
 0xd16   : > { %21208 = vmatprep.subr.bf16.mxu0 %v25359_v47  ;;  %v25370_v47 = vld [vmem:[#allocation43_spill] sm:$0xff] }
 0xd19   : > { %21210 = vmatpush1.bf16.msra.mxu0 %v25360_v2  ;;  %v25371_v2 = vld [vmem:[#allocation44_spill] sm:$0xff] }
 0xd1a   : > { %21212 = vmatprep.subr.bf16.mxu0 %v25361_v8  ;;  %v25372_v8 = vld [vmem:[#allocation47_spill] sm:$0xff] }
 0xd1d   : > { %21214 = vmatpush1.bf16.msra.mxu0 %v25362_v41  ;;  %v25373_v41 = vld [vmem:[#allocation48_spill] sm:$0xff] }
 0xd1e   : > { %21216 = vmatprep.subr.bf16.mxu0 %v25363_v35  ;;  %v25374_v35 = vld [vmem:[#allocation51_spill] sm:$0xff] }
 0xd21   : > { %21218 = vmatpush1.bf16.msra.mxu0 %v25364_v34  ;;  %v25375_v34 = vld [vmem:[#allocation52_spill] sm:$0xff] }
 0xd22   : > { %21220 = vmatprep.subr.bf16.mxu0 %v25365_v54  ;;  %v25376_v54 = vld [vmem:[#allocation55_spill] sm:$0xff] }
 0xd25   : > { %21222 = vmatpush1.bf16.msra.mxu0 %v25366_v36  ;;  %v25377_v36 = vld [vmem:[#allocation56_spill] sm:$0xff] }
 0xd26   : > { %21224 = vmatprep.subr.bf16.mxu0 %v25367_v53  ;;  %v25378_v53 = vld [vmem:[#allocation59_spill] sm:$0xff] }
 0xd29   : > { %21226 = vmatpush1.bf16.msra.mxu0 %v25368_v17  ;;  %v25379_v17 = vld [vmem:[#allocation60_spill] sm:$0xff] }
 0xd2a   : > { %21228 = vmatprep.subr.bf16.mxu0 %v25369_v30  ;;  %v25380_v30 = vld [vmem:[#allocation63_spill] sm:$0xff] }
 0xd2d   : > { %21230 = vmatpush1.bf16.msra.mxu0 %v25370_v47  ;;  %v25381_v47 = vld [vmem:[#allocation64_spill] sm:$0xff] }
 0xd2e   : > { %21232 = vmatprep.subr.bf16.mxu0 %v25371_v2  ;;  %v25382_v2 = vld [vmem:[#allocation67_spill] sm:$0xff] }
 0xd31   : > { %21234 = vmatpush1.bf16.msra.mxu0 %v25372_v8  ;;  %v25383_v8 = vld [vmem:[#allocation68_spill] sm:$0xff] }
 0xd32   : > { %21236 = vmatprep.subr.bf16.mxu0 %v25373_v41  ;;  %v25384_v41 = vld [vmem:[#allocation71_spill] sm:$0xff] }
 0xd35   : > { %21238 = vmatpush1.bf16.msra.mxu0 %v25374_v35  ;;  %v25385_v35 = vld [vmem:[#allocation72_spill] sm:$0xff] }
 0xd36   : > { %21240 = vmatprep.subr.bf16.mxu0 %v25375_v34  ;;  %v25386_v34 = vld [vmem:[#allocation75_spill] sm:$0xff] }
 0xd39   : > { %21242 = vmatpush1.bf16.msra.mxu0 %v25376_v54  ;;  %v25387_v54 = vld [vmem:[#allocation76_spill] sm:$0xff] }
 0xd3a   : > { %21244 = vmatprep.subr.bf16.mxu0 %v25377_v36  ;;  %v25388_v36 = vld [vmem:[#allocation79_spill] sm:$0xff] }
 0xd3d   : > { %21246 = vmatpush1.bf16.msra.mxu0 %v25378_v53  ;;  %v25389_v53 = vld [vmem:[#allocation80_spill] sm:$0xff] }
 0xd3e   : > { %21248 = vmatprep.subr.bf16.mxu0 %v25379_v17 }
 0xd41   : > { %21250 = vmatpush1.bf16.msra.mxu0 %v25380_v30 }
 0xd42   : > { %21252 = vmatprep.subr.bf16.mxu0 %v25381_v47 }
 0xd45   : > { %21254 = vmatpush1.bf16.msra.mxu0 %v25382_v2 }
 0xd46   : > { %21256 = vmatprep.subr.bf16.mxu0 %v25383_v8 }
 0xd49   : > { %21258 = vmatpush1.bf16.msra.mxu0 %v25384_v41  ;;  %v25391_v41 = vld [vmem:[#allocation134_spill] sm:$0xff] }
 0xd4a   : > { %21260 = vmatprep.subr.bf16.mxu0 %v25385_v35 }
 0xd4d   : > { %21262 = vmatpush1.bf16.msra.mxu0 %v25386_v34 }
 0xd4e   : > { %21264 = vmatprep.subr.bf16.mxu0 %v25387_v54 }
 0xd51   : > { %21266 = vmatpush1.bf16.msra.mxu0 %v25388_v36 }
 0xd52   : > { %21332 = vmatprep.subr.bf16.mxu0 %v25389_v53 }
 0xda7   : > { %v14630_v17 = vpop.f32.mrb[8].mxu0  ;;  %v14701_v30 = vpop.f32.mrb[12].mxu1 }
 0xda8   : > { %v14631_v47 = vadd.f32 %v14630_v17, %v25390_v39  ;;  %v14632_v33 = vpop.f32.mrb[9].mxu0  ;;  %v24602_v2 = vpop.f32.mrb[13].mxu1  ;;  %v14702_v17 = vadd.f32 %v14701_v30, %v25302_v6  ;;  %v25395_v30 = vld [vmem:[#allocation35_spill] sm:$0xff] }
 0xda9   : > { %v14633_v8 = vadd.f32 %v14632_v33, %v25300_v21 }
 0xdaa   : > { %v14777_v48 = vadd.f32 %v14631_v47, %v25391_v41 }
 0xdab   : > { %v14784_v34 = vadd.f32 %v14633_v8, %v25301_v49 }
 0xdac   : > { %v15603_v35 = vmul.f32 -1.442695, %v14777_v48 }
 0xdad   : > { %v15604_v54 = vmul.f32 -1.442695, %v14784_v34 }
 0xdae   : > { %21724 = vpow2.f32 %v15603_v35 }
 0xdaf   : > { %21726 = vpow2.f32 %v15604_v54  ;;  %v25397_v54 = vld [vmem:[#allocation38_spill] sm:$0xff] }
 0xdb8   : > { %v21725_v36 = vpop.eup %21724 }
 0xdb9   : > { %v14781_v44 = vadd.f32 1.0, %v21725_v36  ;;  %v21727_v53 = vpop.eup %21726  ;;  %v25398_v36 = vld [vmem:[#allocation41_spill] sm:$0xff] }
 0xdba   : > { %v14788_v7 = vadd.f32 1.0, %v21727_v53  ;;  %v25399_v53 = vld [vmem:[#allocation42_spill] sm:$0xff] }
 0xdbb   : > { %21728 = vrcp.f32 %v14781_v44 }
 0xdbc   : > { %21730 = vrcp.f32 %v14788_v7 }
 0xdc5   : > { %v21729_v39 = vpop.eup %21728 }
 0xdc6   : > { %v14791_v62 = vmul.f32 %v21729_v39, %v14702_v17  ;;  %v21731_v47 = vpop.eup %21730  ;;  %v25392_v39 = vld [vmem:[#allocation30_spill] sm:$0xff]  ;;  %v25400_v17 = vld [vmem:[#allocation45_spill] sm:$0xff] }
 0xdc7   : > { %v14794_v48 = vsub.f32 1.0, %v21731_v47  ;;  %v14796_v8 = vmul.f32 %v21731_v47, %v24449_v59  ;;  %v25393_v59 = vld [vmem:[#allocation32_spill] sm:$0xff]  ;;  %v25403_v47 = vld [vmem:[#allocation50_spill] sm:$0xff] }
 0xdc8   : > { %v14792_v33 = vadd.f32 %v14791_v62, %v24249_v56  ;;  %v25394_v62 = vld [vmem:[#allocation33_spill] sm:$0xff] }
 0xdca   : > { %21732 = vtanh.f32 %v14792_v33  ;;  %v25402_v33 = vld [vmem:[#allocation49_spill] sm:$0xff] }
 0xdd4   : > { %v21733_v41 = vpop.eup %21732 }
 0xdd5   : > { %v14795_v35 = vmul.f32 %v21733_v41, %v14794_v48  ;;  %v25396_v41 = vld [vmem:[#allocation37_spill] sm:$0xff] }
 0xdd6   : > { %v25404_v48 = vld [vmem:[#allocation53_spill] sm:$0xff] }
 0xdd7   : > { %v24610_v34 = vadd.f32 %v14796_v8, %v14795_v35  ;;  %v25405_v8 = vld [vmem:[#allocation54_spill] sm:$0xff]  ;;  %v25406_v35 = vld [vmem:[#allocation57_spill] sm:$0xff] }
 0xdd9   : > { %14863 = vmatmul.mubr.f32.vlgmr.msra.gmra.mrb[14].mxu1 %v24610_v34 }
 0xdda   : > { %21181 = vmatpush3.bf16.msra.mxu1 %v24252_v3  ;;  %17026 = vmatprep.mubr.msk.f32.mxu1 %vm22059_vm0, %v25168_v5 }
 0xddb   : > { %21182 = vmatprep.subr.bf16.mxu1 %v25221_v26 }
 0xdde   : > { %21184 = vmatpush3.bf16.msra.mxu1 %v24258_v37 }
 0xddf   : > { %21185 = vmatprep.subr.bf16.mxu1 %v25221_v26 }
 0xde2   : > { %21187 = vmatpush3.bf16.msra.mxu1 %v24264_v63 }
 0xde3   : > { %21188 = vmatprep.subr.bf16.mxu1 %v25221_v26 }
 0xde6   : > { %21190 = vmatpush3.bf16.msra.mxu1 %v24268_v1 }
 0xde7   : > { %v14772_v7 = vpop.f32.mrb[10].mxu0  ;;  %21191 = vmatprep.subr.bf16.mxu1 %v25221_v26 }
 0xde8   : > { %v14774_v44 = vpop.f32.mrb[11].mxu0 }
 0xdea   : > { %21193 = vmatpush3.bf16.msra.mxu1 %v24272_v58 }
 0xdeb   : > { %21194 = vmatprep.subr.bf16.mxu1 %v25221_v26 }
 0xdee   : > { %21196 = vmatpush3.bf16.msra.mxu1 %v24276_v55 }
 0xdef   : > { %21197 = vmatprep.subr.bf16.mxu1 %v25221_v26 }
 0xdf2   : > { %21199 = vmatpush3.bf16.msra.mxu1 %v24280_v13 }
 0xdf3   : > { %21200 = vmatprep.subr.bf16.mxu1 %v25221_v26 }
 0xdf6   : > { %21202 = vmatpush3.bf16.msra.mxu1 %v24284_v31  ;;  %v14775_v31 = vadd.f32 %v14774_v44, %v24343_v57 }
 0xdf7   : > { %21268 = vmatprep.subr.bf16.mxu1 %v23847_v18  ;;  %v25401_v18 = vld [vmem:[#allocation46_spill] sm:$0xff] }
 0xdf9   : > { %17027 = vmatmul.mubr.f32.vlgmr.msra.gmra.mrb[16].mxu1 %v24610_v34 }
 0xdfa   : > { %21270 = vmatpush1.bf16.msra.mxu1 %v25392_v39  ;;  %v25407_v39 = vld [vmem:[#allocation58_spill] sm:$0xff] }
 0xdfb   : > { %21272 = vmatprep.subr.bf16.mxu1 %v25393_v59  ;;  %v25408_v59 = vld [vmem:[#allocation61_spill] sm:$0xff] }
 0xdfe   : > { %21274 = vmatpush1.bf16.msra.mxu1 %v25394_v62  ;;  %v25409_v62 = vld [vmem:[#allocation62_spill] sm:$0xff] }
 0xdff   : > { %21276 = vmatprep.subr.bf16.mxu1 %v25395_v30  ;;  %v25410_v30 = vld [vmem:[#allocation65_spill] sm:$0xff] }
 0xe02   : > { %21278 = vmatpush1.bf16.msra.mxu1 %v25396_v41  ;;  %v25411_v41 = vld [vmem:[#allocation66_spill] sm:$0xff] }
 0xe03   : > { %21280 = vmatprep.subr.bf16.mxu1 %v25397_v54  ;;  %v25412_v54 = vld [vmem:[#allocation69_spill] sm:$0xff] }
 0xe06   : > { %21282 = vmatpush1.bf16.msra.mxu1 %v25398_v36  ;;  %v25413_v36 = vld [vmem:[#allocation70_spill] sm:$0xff] }
 0xe07   : > { %21284 = vmatprep.subr.bf16.mxu1 %v25399_v53  ;;  %v25414_v53 = vld [vmem:[#allocation73_spill] sm:$0xff] }
 0xe0a   : > { %21286 = vmatpush1.bf16.msra.mxu1 %v25400_v17  ;;  %v25415_v17 = vld [vmem:[#allocation74_spill] sm:$0xff] }
 0xe0b   : > { %21288 = vmatprep.subr.bf16.mxu1 %v25401_v18  ;;  %v25416_v18 = vld [vmem:[#allocation77_spill] sm:$0xff] }
 0xe0e   : > { %21290 = vmatpush1.bf16.msra.mxu1 %v25402_v33  ;;  %v25417_v33 = vld [vmem:[#allocation78_spill] sm:$0xff] }
 0xe0f   : > { %21292 = vmatprep.subr.bf16.mxu1 %v25403_v47  ;;  %v25418_v47 = vld [vmem:[#allocation81_spill] sm:$0xff] }
 0xe12   : > { %21294 = vmatpush1.bf16.msra.mxu1 %v25404_v48  ;;  %v25419_v48 = vld [vmem:[#allocation82_spill] sm:$0xff] }
 0xe13   : > { %21296 = vmatprep.subr.bf16.mxu1 %v25405_v8  ;;  %v25420_v8 = vld [vmem:[#allocation85_spill] sm:$0xff] }
 0xe16   : > { %21298 = vmatpush1.bf16.msra.mxu1 %v25406_v35  ;;  %v25421_v35 = vld [vmem:[#allocation86_spill] sm:$0xff] }
 0xe17   : > { %21300 = vmatprep.subr.bf16.mxu1 %v25407_v39  ;;  %v25422_v39 = vld [vmem:[#allocation89_spill] sm:$0xff] }
 0xe1a   : > { %21302 = vmatpush1.bf16.msra.mxu1 %v25408_v59  ;;  %v25423_v59 = vld [vmem:[#allocation101_spill] sm:$0xff] }
 0xe1b   : > { %21304 = vmatprep.subr.bf16.mxu1 %v25409_v62 }
 0xe1e   : > { %21306 = vmatpush1.bf16.msra.mxu1 %v25410_v30  ;;  %v25424_v30 = vld [vmem:[#allocation140_spill] sm:$0xff] }
 0xe1f   : > { %21308 = vmatprep.subr.bf16.mxu1 %v25411_v41  ;;  %v14704_v41 = vadd.f32 %v24602_v2, %v25424_v30 }
 0xe22   : > { %21310 = vmatpush1.bf16.msra.mxu1 %v25412_v54  ;;  %v25425_v54 = vld [vmem:[#allocation141_spill] sm:$0xff] }
 0xe23   : > { %21312 = vmatprep.subr.bf16.mxu1 %v25413_v36 }
 0xe26   : > { %21314 = vmatpush1.bf16.msra.mxu1 %v25414_v53 }
 0xe27   : > { %21316 = vmatprep.subr.bf16.mxu1 %v25415_v17  ;;  %v14773_v17 = vadd.f32 %v14772_v7, %v25334_v46 }
 0xe2a   : > { %21318 = vmatpush1.bf16.msra.mxu1 %v25416_v18 }
 0xe2b   : > { %21320 = vmatprep.subr.bf16.mxu1 %v25417_v33 }
 0xe2e   : > { %21322 = vmatpush1.bf16.msra.mxu1 %v25418_v47 }
 0xe2f   : > { %21324 = vmatprep.subr.bf16.mxu1 %v25419_v48 }
 0xe32   : > { %21326 = vmatpush1.bf16.msra.mxu1 %v25420_v8 }
 0xe33   : > { %21328 = vmatprep.subr.bf16.mxu1 %v25421_v35 }
 0xe36   : > { %21330 = vmatpush1.bf16.msra.mxu1 %v25422_v39 }
 0xe37   : > { %21396 = vmatprep.subr.bf16.mxu1 %v25423_v59 }
 0xeac   : > { %v14864_v62 = vpop.f32.mrb[14].mxu1 }
 0xead   : > { %v14865_v36 = vadd.f32 %v14864_v62, %v25425_v54  ;;  %v14866_v53 = vpop.f32.mrb[15].mxu1 }
 0xeae   : > { %v14867_v18 = vadd.f32 %v14866_v53, %v24334_v9 }
 0xeaf   : > { %v14939_v33 = vadd.f32 %v14865_v36, %v14704_v41 }
 0xeb0   : > { %v14946_v47 = vadd.f32 %v14867_v18, %v14773_v17 }
 0xeb1   : > { %v15605_v48 = vmul.f32 -1.442695, %v14939_v33 }
 0xeb2   : > { %v15606_v8 = vmul.f32 -1.442695, %v14946_v47 }
 0xeb3   : > { %21734 = vpow2.f32 %v15605_v48 }
 0xeb4   : > { %21736 = vpow2.f32 %v15606_v8 }
 0xebd   : > { %v21735_v35 = vpop.eup %21734 }
 0xebe   : > { %v14943_v39 = vadd.f32 1.0, %v21735_v35  ;;  %v21737_v59 = vpop.eup %21736 }
 0xebf   : > { %v14950_v2 = vadd.f32 1.0, %v21737_v59 }
 0xec0   : > { %21738 = vrcp.f32 %v14943_v39 }
 0xec1   : > { %21740 = vrcp.f32 %v14950_v2 }
 0xeca   : > { %v21739_v30 = vpop.eup %21738 }
 0xecb   : > { %v14953_v62 = vmul.f32 %v21739_v30, %v14775_v31  ;;  %v21741_v36 = vpop.eup %21740  ;;  %v25426_v31 = vld [vmem:[#allocation95_spill] sm:$0xff] }
 0xecc   : > { %v14935_v54 = vpop.f32.mrb[16].mxu1  ;;  %v14956_v17 = vsub.f32 1.0, %v21741_v36  ;;  %v14958_v47 = vmul.f32 %v21741_v36, %v24511_v50  ;;  %v25435_v50 = vld [vmem:[#allocation112_spill] sm:$0xff] }
 0xecd   : > { %v14936_v7 = vadd.f32 %v14935_v54, %v24347_v24  ;;  %v17028_v53 = vpop.f32.mrb[17].mxu1 }
 0xecf   : > { %v14954_v41 = vadd.f32 %v14953_v62, %v14936_v7 }
 0xed1   : > { %21742 = vtanh.f32 %v14954_v41 }
 0xedb   : > { %v21743_v18 = vpop.eup %21742 }
 0xedc   : > { %v14957_v33 = vmul.f32 %v21743_v18, %v14956_v17 }
 0xede   : > { %v24672_v48 = vadd.f32 %v14958_v47, %v14957_v33 }
 0xee0   : > { %14960 = vst [vmem:[#allocation3 + $0x4] sm:$0x3] %v24672_v48  ;;  %15025 = vmatprep.mubr.f32.mxu0 %v24672_v48  ;;  %15096 = vmatprep.mubr.f32.mxu1 %v24672_v48 }
 0xee1   : > { %15026 = vmatmul.mubr.f32.vlgmr.msra.gmra.mrb[12].mxu0 %v24610_v34  ;;  %15097 = vmatmul.mubr.f32.vlgmr.msra.gmra.mrb[18].mxu1 %v24610_v34 }
 0xee2   : > { %21334 = vmatpush1.bf16.msra.mxu0 %v25245_v40  ;;  %15167 = vmatprep.mubr.f32.mxu0 %v24672_v48  ;;  %v25427_v40 = vld [vmem:[#allocation118_spill] sm:$0xff] }
 0xee3   : > { %21336 = vmatprep.subr.bf16.mxu0 %v25246_v27  ;;  %21398 = vmatpush1.bf16.msra.mxu1 %v25247_v51  ;;  %v25428_v27 = vld [vmem:[#allocation121_spill] sm:$0xff]  ;;  %v25429_v51 = vld [vmem:[#allocation103_spill] sm:$0xff] }
 0xee4   : > { %21400 = vmatprep.subr.bf16.mxu1 %v25248_v11  ;;  %15259 = vmatprep.mubr.f32.mxu1 %v25168_v5  ;;  %v25430_v11 = vld [vmem:[#allocation130_spill] sm:$0xff] }
 0xee6   : > { %21338 = vmatpush1.bf16.msra.mxu0 %v25249_v60  ;;  %v25431_v60 = vld [vmem:[#allocation104_spill] sm:$0xff] }
 0xee7   : > { %21340 = vmatprep.subr.bf16.mxu0 %v25250_v4  ;;  %21402 = vmatpush1.bf16.msra.mxu1 %v25251_v38  ;;  %v25432_v4 = vld [vmem:[#allocation107_spill] sm:$0xff]  ;;  %v25433_v38 = vld [vmem:[#allocation108_spill] sm:$0xff] }
 0xee8   : > { %21404 = vmatprep.subr.bf16.mxu1 %v25335_v19  ;;  %v25436_v19 = vld [vmem:[#allocation115_spill] sm:$0xff] }
 0xeea   : > { %21342 = vmatpush1.bf16.msra.mxu0 %v25336_v23  ;;  %v25437_v23 = vld [vmem:[#allocation116_spill] sm:$0xff] }
 0xeeb   : > { %21344 = vmatprep.subr.bf16.mxu0 %v25337_v43  ;;  %21406 = vmatpush1.bf16.msra.mxu1 %v25338_v32  ;;  %v25438_v43 = vld [vmem:[#allocation119_spill] sm:$0xff]  ;;  %v25439_v32 = vld [vmem:[#allocation120_spill] sm:$0xff] }
 0xeec   : > { %21408 = vmatprep.subr.bf16.mxu1 %v25339_v0  ;;  %v25440_v0 = vld [vmem:[#allocation123_spill] sm:$0xff] }
 0xeee   : > { %21346 = vmatpush1.bf16.msra.mxu0 %v25340_v22  ;;  %v25441_v22 = vld [vmem:[#allocation124_spill] sm:$0xff] }
 0xeef   : > { %21348 = vmatprep.subr.bf16.mxu0 %v25341_v45  ;;  %21410 = vmatpush1.bf16.msra.mxu1 %v25342_v14  ;;  %v25442_v45 = vld [vmem:[#allocation127_spill] sm:$0xff]  ;;  %v25443_v14 = vld [vmem:[#allocation128_spill] sm:$0xff] }
 0xef0   : > { %21412 = vmatprep.subr.bf16.mxu1 %v25343_v16  ;;  %v25444_v16 = vld [vmem:[#allocation131_spill] sm:$0xff] }
 0xef2   : > { %21350 = vmatpush1.bf16.msra.mxu0 %v25261_v10  ;;  %v25434_v10 = vld [vmem:[#allocation111_spill] sm:$0xff] }
 0xef3   : > { %21352 = vmatprep.subr.bf16.mxu0 %v25426_v31  ;;  %21414 = vmatpush1.bf16.msra.mxu1 %v25427_v40  ;;  %v15365_v31 = vld [vmem:[%s24848_s8 + $0x30] sm:$0xff]  ;;  %v15366_v40 = vld [vmem:[%s24848_s8 + $0x38] sm:$0xff] }
 0xef4   : > { %21416 = vmatprep.subr.bf16.mxu1 %v25428_v27  ;;  %v21461_v27 = vpack.c.bf16 %v15366_v40, %v15365_v31 }
 0xef6   : > { %21354 = vmatpush1.bf16.msra.mxu0 %v25346_v15 }
 0xef7   : > { %21356 = vmatprep.subr.bf16.mxu0 %v25347_v52  ;;  %21418 = vmatpush1.bf16.msra.mxu1 %v25348_v28  ;;  %v25446_v28 = vld [vmem:[#allocation133_spill] sm:$0xff] }
 0xef8   : > { %21420 = vmatprep.subr.bf16.mxu1 %v25349_v61 }
 0xefa   : > { %21358 = vmatpush1.bf16.msra.mxu0 %v25350_v12 }
 0xefb   : > { %21360 = vmatprep.subr.bf16.mxu0 %v25351_v42  ;;  %21422 = vmatpush1.bf16.msra.mxu1 %v25352_v20 }
 0xefc   : > { %21424 = vmatprep.subr.bf16.mxu1 %v25353_v29  ;;  %v25447_v29 = vld [vmem:[#allocation134_spill] sm:$0xff] }
 0xefe   : > { %21362 = vmatpush1.bf16.msra.mxu0 %v25354_v25  ;;  %v25445_v25 = vld [vmem:[#allocation132_spill] sm:$0xff] }
 0xeff   : > { %21364 = vmatprep.subr.bf16.mxu0 %v25429_v51  ;;  %21426 = vmatpush1.bf16.msra.mxu1 %v25430_v11  ;;  %v15367_v51 = vld [vmem:[%s24848_s8 + $0x40] sm:$0xff]  ;;  %v15368_v11 = vld [vmem:[%s24848_s8 + $0x48] sm:$0xff] }
 0xf00   : > { %21427 = vmatprep.subr.bf16.mxu1 %v25221_v26 }
 0xf02   : > { %21366 = vmatpush1.bf16.msra.mxu0 %v25431_v60  ;;  %v21464_v60 = vpack.c.bf16 %v15368_v11, %v15367_v51 }
 0xf03   : > { %21368 = vmatprep.subr.bf16.mxu0 %v25432_v4  ;;  %v15369_v4 = vld [vmem:[%s24848_s8 + $0x50] sm:$0xff] }
 0xf06   : > { %21370 = vmatpush1.bf16.msra.mxu0 %v25433_v38  ;;  %v15370_v38 = vld [vmem:[%s24848_s8 + $0x58] sm:$0xff] }
 0xf07   : > { %21372 = vmatprep.subr.bf16.mxu0 %v25434_v10  ;;  %v21467_v10 = vpack.c.bf16 %v15370_v38, %v15369_v4 }
 0xf0a   : > { %21374 = vmatpush1.bf16.msra.mxu0 %v25435_v50  ;;  %v15371_v50 = vld [vmem:[%s24848_s8 + $0x60] sm:$0xff] }
 0xf0b   : > { %21376 = vmatprep.subr.bf16.mxu0 %v25436_v19  ;;  %v15372_v19 = vld [vmem:[%s24848_s8 + $0x68] sm:$0xff] }
 0xf0e   : > { %21378 = vmatpush1.bf16.msra.mxu0 %v25437_v23  ;;  %v21470_v23 = vpack.c.bf16 %v15372_v19, %v15371_v50 }
 0xf0f   : > { %21380 = vmatprep.subr.bf16.mxu0 %v25438_v43  ;;  %v15373_v43 = vld [vmem:[%s24848_s8 + $0x70] sm:$0xff] }
 0xf12   : > { %21382 = vmatpush1.bf16.msra.mxu0 %v25439_v32  ;;  %v15374_v32 = vld [vmem:[%s24848_s8 + $0x78] sm:$0xff] }
 0xf13   : > { %21384 = vmatprep.subr.bf16.mxu0 %v25440_v0  ;;  %v21473_v0 = vpack.c.bf16 %v15374_v32, %v15373_v43 }
 0xf16   : > { %21386 = vmatpush1.bf16.msra.mxu0 %v25441_v22 }
 0xf17   : > { %21388 = vmatprep.subr.bf16.mxu0 %v25442_v45  ;;  %v25449_v45 = vld [vmem:[#allocation140_spill] sm:$0xff] }
 0xf1a   : > { %21390 = vmatpush1.bf16.msra.mxu0 %v25443_v14 }
 0xf1b   : > { %21392 = vmatprep.subr.bf16.mxu0 %v25444_v16  ;;  %v25450_v16 = vld [vmem:[#allocation141_spill] sm:$0xff] }
 0xf1e   : > { %21394 = vmatpush1.bf16.msra.mxu0 %v25445_v25 }
 0xf1f   : > { %21451 = vmatprep.subr.bf16.mxu0 %v25221_v26 }
 0xf21   : > { %15168 = vmatmul.mubr.f32.vlgmr.msra.gmra.mrb[14].mxu0 %v24610_v34 }
 0xf22   : > { %17096 = vmatprep.mubr.msk.f32.mxu0 %vm22059_vm0, %v25168_v5 }
 0xfb4   : > { %v15027_v15 = vpop.f32.mrb[12].mxu0  ;;  %v15098_v52 = vpop.f32.mrb[18].mxu1 }
 0xfb5   : > { %v15028_v61 = vadd.f32 %v15027_v15, %v25446_v28  ;;  %v15029_v12 = vpop.f32.mrb[13].mxu0  ;;  %v24733_v42 = vpop.f32.mrb[19].mxu1  ;;  %v15099_v62 = vadd.f32 %v15098_v52, %v25302_v6 }
 0xfb6   : > { %v15030_v20 = vadd.f32 %v15029_v12, %v25300_v21  ;;  %v15101_v14 = vadd.f32 %v24733_v42, %v25449_v45 }
 0xfb7   : > { %v15174_v44 = vadd.f32 %v15028_v61, %v25447_v29 }
 0xfb8   : > { %v15181_v54 = vadd.f32 %v15030_v20, %v25301_v49 }
 0xfb9   : > { %v15607_v30 = vmul.f32 -1.442695, %v15174_v44 }
 0xfba   : > { %v15608_v8 = vmul.f32 -1.442695, %v15181_v54 }
 0xfbb   : > { %21744 = vpow2.f32 %v15607_v30 }
 0xfbc   : > { %21746 = vpow2.f32 %v15608_v8 }
 0xfc5   : > { %v21745_v35 = vpop.eup %21744 }
 0xfc6   : > { %v15178_v39 = vadd.f32 1.0, %v21745_v35  ;;  %v21747_v59 = vpop.eup %21746 }
 0xfc7   : > { %v15185_v2 = vadd.f32 1.0, %v21747_v59 }
 0xfc8   : > { %21748 = vrcp.f32 %v15178_v39 }
 0xfc9   : > { %21750 = vrcp.f32 %v15185_v2 }
 0xfd2   : > { %v21749_v7 = vpop.eup %21748 }
 0xfd3   : > { %v15188_v53 = vmul.f32 %v21749_v7, %v15099_v62  ;;  %v21751_v41 = vpop.eup %21750 }
 0xfd4   : > { %v15191_v36 = vsub.f32 1.0, %v21751_v41  ;;  %v15193_v18 = vmul.f32 %v21751_v41, %v24610_v34  ;;  %v15364_v34 = vld [vmem:[%s24848_s8 + $0x28] sm:$0xff] }
 0xfd5   : > { %v15189_v21 = vadd.f32 %v15188_v53, %v24249_v56 }
 0xfd7   : > { %21752 = vtanh.f32 %v15189_v21 }
 0xfe1   : > { %v21753_v17 = vpop.eup %21752 }
 0xfe2   : > { %v15192_v49 = vmul.f32 %v21753_v17, %v15191_v36 }
 0xfe4   : > { %v15194_v33 = vadd.f32 %v15193_v18, %v15192_v49 }
 0xfe6   : > { %15260 = vmatmul.mubr.f32.vlgmr.msra.gmra.mrb[20].mxu1 %v15194_v33 }
 0xfe7   : > { %21429 = vmatpush3.bf16.msra.mxu1 %v24252_v3  ;;  %17061 = vmatprep.mubr.msk.f32.mxu1 %vm22059_vm0, %v25168_v5  ;;  %v25448_v3 = vld [vmem:[#allocation138_spill] sm:$0xff] }
 0xfe8   : > { %21430 = vmatprep.subr.bf16.mxu1 %v25221_v26  ;;  %v15359_v5 = vld [vmem:[%s24848_s8] sm:$0xff] }
 0xfeb   : > { %21432 = vmatpush3.bf16.msra.mxu1 %v24258_v37  ;;  %v15360_v37 = vld [vmem:[%s24848_s8 + $0x8] sm:$0xff] }
 0xfec   : > { %21433 = vmatprep.subr.bf16.mxu1 %v25221_v26 }
 0xfef   : > { %21435 = vmatpush3.bf16.msra.mxu1 %v24264_v63  ;;  %v21452_v63 = vpack.c.bf16 %v15360_v37, %v15359_v5 }
 0xff0   : > { %21436 = vmatprep.subr.bf16.mxu1 %v25221_v26 }
 0xff1   : > { %21453 = vmatpush3.bf16.msra.mxu0 %v21452_v63 }
 0xff2   : > { %21454 = vmatprep.subr.bf16.mxu0 %v25221_v26 }
 0xff3   : > { %21438 = vmatpush3.bf16.msra.mxu1 %v24268_v1  ;;  %v15361_v1 = vld [vmem:[%s24848_s8 + $0x10] sm:$0xff] }
 0xff4   : > { %v15169_v6 = vpop.f32.mrb[14].mxu0  ;;  %21439 = vmatprep.subr.bf16.mxu1 %v25221_v26 }
 0xff5   : > { %v24751_v56 = vpop.f32.mrb[15].mxu0  ;;  %v15170_v52 = vadd.f32 %v15169_v6, %v25334_v46 }
 0xff6   : > { %v15172_v42 = vadd.f32 %v24751_v56, %v24343_v57  ;;  %v15611_v57 = vld [vmem:[#allocation15] ss:$0 sm:$0xff] }
 0xff7   : > { %21441 = vmatpush3.bf16.msra.mxu1 %v24272_v58  ;;  %v15362_v58 = vld [vmem:[%s24848_s8 + $0x18] sm:$0xff] }
 0xff8   : > { %21442 = vmatprep.subr.bf16.mxu1 %v25221_v26 }
 0xffb   : > { %21444 = vmatpush3.bf16.msra.mxu1 %v24276_v55  ;;  %v21455_v55 = vpack.c.bf16 %v15362_v58, %v15361_v1 }
 0xffc   : > { %21445 = vmatprep.subr.bf16.mxu1 %v25221_v26 }
 0xffd   : > { %21456 = vmatpush3.bf16.msra.mxu0 %v21455_v55 }
 0xffe   : > { %21457 = vmatprep.subr.bf16.mxu0 %v25221_v26 }
 0xfff   : > { %21447 = vmatpush3.bf16.msra.mxu1 %v24280_v13  ;;  %v15363_v13 = vld [vmem:[%s24848_s8 + $0x20] sm:$0xff] }
0x1000   : > { %21448 = vmatprep.subr.bf16.mxu1 %v25221_v26  ;;  %v21458_v47 = vpack.c.bf16 %v15364_v34, %v15363_v13 }
0x1002   : > { %21459 = vmatpush3.bf16.msra.mxu0 %v21458_v47 }
0x1003   : > { %21450 = vmatpush3.bf16.msra.mxu1 %v25448_v3  ;;  %21460 = vmatprep.subr.bf16.mxu0 %v25221_v26 }
0x1006   : > { %17062 = vmatmul.mubr.f32.vlgmr.msra.gmra.mrb[22].mxu1 %v15194_v33  ;;  %21462 = vmatpush3.bf16.msra.mxu0 %v21461_v27 }
0x1007   : > { %21463 = vmatprep.subr.bf16.mxu0 %v25221_v26 }
0x100a   : > { %21465 = vmatpush3.bf16.msra.mxu0 %v21464_v60 }
0x100b   : > { %21466 = vmatprep.subr.bf16.mxu0 %v25221_v26 }
0x100e   : > { %21468 = vmatpush3.bf16.msra.mxu0 %v21467_v10 }
0x100f   : > { %21469 = vmatprep.subr.bf16.mxu0 %v25221_v26 }
0x1012   : > { %21471 = vmatpush3.bf16.msra.mxu0 %v21470_v23 }
0x1013   : > { %21472 = vmatprep.subr.bf16.mxu0 %v25221_v26 }
0x1016   : > { %21474 = vmatpush3.bf16.msra.mxu0 %v21473_v0 }
0x10b9   : > { %v15261_v22 = vpop.f32.mrb[20].mxu1 }
0x10ba   : > { %v15262_v25 = vadd.f32 %v15261_v22, %v25450_v16  ;;  %v15263_v15 = vpop.f32.mrb[21].mxu1 }
0x10bb   : > { %v15264_v28 = vadd.f32 %v15263_v15, %v24334_v9 }
0x10bc   : > { %v15336_v61 = vadd.f32 %v15262_v25, %v15101_v14 }
0x10bd   : > { %v15343_v12 = vadd.f32 %v15264_v28, %v15170_v52 }
0x10be   : > { %v15609_v20 = vmul.f32 -1.442695, %v15336_v61 }
0x10bf   : > { %v15610_v29 = vmul.f32 -1.442695, %v15343_v12 }
0x10c0   : > { %21754 = vpow2.f32 %v15609_v20 }
0x10c1   : > { %21756 = vpow2.f32 %v15610_v29 }
0x10ca   : > { %v21755_v44 = vpop.eup %21754 }
0x10cb   : > { %v15340_v26 = vadd.f32 1.0, %v21755_v44  ;;  %v21757_v30 = vpop.eup %21756 }
0x10cc   : > { %v15347_v54 = vadd.f32 1.0, %v21757_v30 }
0x10cd   : > { %21758 = vrcp.f32 %v15340_v26 }
0x10ce   : > { %21760 = vrcp.f32 %v15347_v54 }
0x10d7   : > { %v21759_v8 = vpop.eup %21758 }
0x10d8   : > { %v15350_v35 = vmul.f32 %v21759_v8, %v15172_v42  ;;  %v21761_v2 = vpop.eup %21760 }
0x10d9   : > { %v15332_v39 = vpop.f32.mrb[22].mxu1  ;;  %v15353_v62 = vsub.f32 1.0, %v21761_v2  ;;  %v15355_v53 = vmul.f32 %v21761_v2, %v24672_v48 }
0x10da   : > { %v15333_v9 = vadd.f32 %v15332_v39, %v24347_v24  ;;  %v17063_v46 = vpop.f32.mrb[23].mxu1 }
0x10dc   : > { %v15351_v59 = vadd.f32 %v15350_v35, %v15333_v9 }
0x10de   : > { %21762 = vtanh.f32 %v15351_v59 }
0x10e8   : > { %v21763_v7 = vpop.eup %21762 }
0x10e9   : > { %v15354_v21 = vmul.f32 %v21763_v7, %v15353_v62 }
0x10eb   : > { %v15356_v41 = vadd.f32 %v15355_v53, %v15354_v21 }
0x10ed   : > { %15357 = vst [vmem:[#allocation3 + $0x6] sm:$0x3] %v15356_v41 }
0x10f4   : > { %v15358_v36 = vld [vmem:[#allocation3] sm:$0xff] }
0x10f5   : > { %17097 = vmatmul.mubr.f32.vlgmr.msra.gmra.mrb[16].mxu0 %v15358_v36 }
0x11c8   : > { %v15448_v17 = vpop.f32.mrb[16].mxu0 }
0x11c9   : > { %v15449_v49 = vadd.f32 %v15611_v57, %v15448_v17  ;;  %v17098_v18 = vpop.f32.mrb[17].mxu0 }
0x11cb   : > { %15453 = vst.msk [vmem:[%s24850_s10] sm:$0xff] %vm15452_vm1, %v15449_v49 }
0x11cc PF: > { %p24_p8 = scmp.ge.s32.totalorder %s22315_s11, 5   ;;  %s25451_s13 = smov %s22033_s14 }
0x11cd   : > { %s25452_s14 = smov %s22037_s15  ;;  %s25453_s15 = smov %s22327_s25 }
0x11ce   : > { %s25454_s16 = smov %s22315_s11  ;;  %26 = sbr.rel (!%p24_p8) target bundleno = 10 (0xa), region = 135 }
0x11d5   :  { %15465 = vsyncpa [#allocation5], 1 }
0x11d6   :  { %15467 = vsyncpa [#allocation5 + $0x1], 1 }
0x11d7   :  { %15468 = vsyncpa [#allocation7], 1 }
0x11d8   :  { %15469 = vsyncpa [#allocation10], 1 }
0x11d9   :  { %15470 = vsyncpa [#allocation13], 1 }
0x11da   :  { %15471 = vsyncpa [#allocation16], 1 }

</bundles_post_ra>
